<compile_context>
chip_gen: v7x
topology: tpu7x:2x2x1
jax: 0.10.0
libtpu: 0.0.40
codegen_flags: <defaults>
</compile_context>

<pallas_src>
import jax
import jax.numpy as jnp
from jax.experimental import pallas as pl
from jax.experimental.pallas import tpu as pltpu

EMB = 128            # emb_dim
ATOM_FEAT = 45       # atom_features
FRAG_FEAT = 45       # frag_features (dead wrt output, kept for input fidelity)
EDGE_FEAT = 12       # edge_features (dead wrt output, kept for input fidelity)
OUT_DIM = 13         # FragNetPreTrain.out
OUT_PAD = 128        # lane-dense padded head output
NUM_LAYERS = 4       # FragNet.forward calls layer1..layer4
GRAPHS_PER_BLOCK = 8 # graphs processed per grid step


# ----------------------------------------------------------------------------
# Fused Pallas kernel: 4 FragNet layers + head for one block of graphs.
# ----------------------------------------------------------------------------
def fragnet_fused_kernel(x_ref, a_ref, wa_ref, ba_ref,
                         wl1_ref, bl1_ref, wout_ref, bout_ref, out_ref):
    # Per-graph slices keep vreg pressure bounded (don't hoist the whole block).
    for g in range(GRAPHS_PER_BLOCK):           # static unroll over graphs
        a = a_ref[g]                            # (n_pad, n_pad) bf16 adjacency
        x = x_ref[g]                            # (n_pad, EMB)  bf16 features
        for li in range(NUM_LAYERS):            # static unroll over layers
            # atom_embed: bf16 MXU inputs, f32 accumulation, f32 bias add
            h = jnp.dot(x, wa_ref[li],
                        preferred_element_type=jnp.float32) + ba_ref[li]
            # GCN aggregation (index_select + scatter_add == A_hat @ h),
            # followed by the inter-layer ReLU FragNet always applies.
            agg = jnp.dot(a, h.astype(jnp.bfloat16),
                          preferred_element_type=jnp.float32)
            x = jnp.maximum(agg, 0.0).astype(jnp.bfloat16)
        # head: dropout(id) -> lin1 -> ReLU -> dropout(id) -> out (lane padded)
        h = jnp.maximum(
            jnp.dot(x, wl1_ref[...],
                    preferred_element_type=jnp.float32) + bl1_ref[...], 0.0)
        out_ref[g] = jnp.dot(h.astype(jnp.bfloat16), wout_ref[...],
                             preferred_element_type=jnp.float32) + bout_ref[...]


def run_fragnet_fused(x_pad, a_hat, wa, ba, wl1, bl1, wout, bout):
    g_pad, n_pad, _ = x_pad.shape
    gb = GRAPHS_PER_BLOCK
    return pl.pallas_call(
        fragnet_fused_kernel,
        out_shape=jax.ShapeDtypeStruct((g_pad, n_pad, OUT_PAD), jnp.float32),
        grid_spec=pltpu.PrefetchScalarGridSpec(
            num_scalar_prefetch=0,
            grid=(g_pad // gb,),
            in_specs=[
                pl.BlockSpec((gb, n_pad, EMB),       lambda i: (i, 0, 0)),  # x
                pl.BlockSpec((gb, n_pad, n_pad),     lambda i: (i, 0, 0)),  # A_hat
                pl.BlockSpec((NUM_LAYERS, EMB, EMB), lambda i: (0, 0, 0)),  # Wa (resident)
                pl.BlockSpec((NUM_LAYERS, 1, EMB),   lambda i: (0, 0, 0)),  # ba (resident)
                pl.BlockSpec((EMB, EMB),             lambda i: (0, 0)),     # W_lin1
                pl.BlockSpec((1, EMB),               lambda i: (0, 0)),     # b_lin1
                pl.BlockSpec((EMB, OUT_PAD),         lambda i: (0, 0)),     # W_out (padded)
                pl.BlockSpec((1, OUT_PAD),           lambda i: (0, 0)),     # b_out (padded)
            ],
            out_specs=pl.BlockSpec((gb, n_pad, OUT_PAD), lambda i: (i, 0, 0)),
        ),
        compiler_params=pltpu.CompilerParams(
            dimension_semantics=("parallel",),     # shards graph blocks across v7x's 2 TCs
            vmem_limit_bytes=32 * 1024 * 1024,     # per-step footprint ~3 MiB; <= v7x 64 MiB
        ),
    )(x_pad, a_hat, wa, ba, wl1, bl1, wout, bout)


# ----------------------------------------------------------------------------
# JAX glue (all jitted): per-graph operator + bucketed padding + kernel call.
# ----------------------------------------------------------------------------
def _round_up(x, m):
    return (x + m - 1) // m * m


def _bucket_rows(n):
    """Pad the atom count to a power-of-two bucket (>=128) so jit keeps a
    handful of compiled variants instead of recompiling per graph size."""
    b = 128
    while b < n:
        b *= 2
    return b


def build_a_hat(edge_index, num_atoms, n_pad):
    """Normalized adjacency with self loops (bf16):
       A_hat[t, s] = sum over edges s->t of deg^-1/2[s] * deg^-1/2[t],
       deg = count of source occurrences (incl. self loops)."""
    src, tgt = edge_index[0], edge_index[1]
    loops = jnp.arange(num_atoms, dtype=src.dtype)              # add_self_loops
    src_full = jnp.concatenate([src, loops])
    tgt_full = jnp.concatenate([tgt, loops])

    deg = jnp.zeros((num_atoms,), jnp.float32).at[src_full].add(1.0)
    deg_inv_sqrt = jnp.where(deg > 0,
                             jax.lax.rsqrt(jnp.where(deg > 0, deg, 1.0)), 0.0)
    norm = deg_inv_sqrt[src_full] * deg_inv_sqrt[tgt_full]

    # Built directly in bf16 at padded size (padded rows/cols stay zero);
    # halves the O(N^2) HBM traffic of this XLA scatter.
    return jnp.zeros((n_pad, n_pad), jnp.bfloat16).at[tgt_full, src_full].add(
        norm.astype(jnp.bfloat16))


@jax.jit
def fragnet_pretrain_forward(x_atoms, edge_index, params):
    """x_atoms: (G, N, 45) f32, edge_index: (G, 2, E) int32  ->  (G, N, 13) f32."""
    wa, ba, wl1, bl1, wout, bout = params
    g, n, _ = x_atoms.shape
    n_pad = _bucket_rows(n)                         # bucketed row padding
    g_pad = _round_up(g, GRAPHS_PER_BLOCK)

    a_hat = jax.vmap(lambda ei: build_a_hat(ei, n, n_pad))(edge_index)
    x_pad = jnp.zeros((g, n_pad, EMB), jnp.bfloat16)
    x_pad = x_pad.at[:, :n, :ATOM_FEAT].set(x_atoms.astype(jnp.bfloat16))
    if g_pad > g:                                   # pad graph axis to GB multiple
        pad = ((0, g_pad - g), (0, 0), (0, 0))
        a_hat = jnp.pad(a_hat, pad)
        x_pad = jnp.pad(x_pad, pad)

    out_pad = run_fragnet_fused(x_pad, a_hat, wa, ba, wl1, bl1, wout, bout)
    return out_pad[:g, :n, :OUT_DIM]


# ----------------------------------------------------------------------------
# Deterministic parameter init (torch.nn.Linear-style U(-1/sqrt(fan_in), ..)).
# Weights stored as (in, out) so y = x @ W + b; MXU operands cast to bf16.
# ----------------------------------------------------------------------------
def init_linear(key, fan_in, fan_out):
    kw, kb = jax.random.split(key)
    bound = 1.0 / float(fan_in) ** 0.5
    w = jax.random.uniform(kw, (fan_in, fan_out), jnp.float32, -bound, bound)
    b = jax.random.uniform(kb, (1, fan_out), jnp.float32, -bound, bound)
    return w, b


def init_params(key):
    keys = jax.random.split(key, NUM_LAYERS + 2)
    wa_l, ba_l = [], []
    for li in range(NUM_LAYERS):
        fan_in = ATOM_FEAT if li == 0 else EMB
        w, b = init_linear(keys[li], fan_in, EMB)          # atom_embed of layer li
        if fan_in < EMB:   # zero-row pad so all layers share (EMB, EMB); math unchanged
            w = jnp.concatenate([w, jnp.zeros((EMB - fan_in, EMB), jnp.float32)], 0)
        wa_l.append(w)
        ba_l.append(b)
    wa = jnp.stack(wa_l).astype(jnp.bfloat16)              # (4, 128, 128) bf16
    ba = jnp.stack(ba_l)                                   # (4, 1, 128) f32 (added post-accum)
    wl1, bl1 = init_linear(keys[NUM_LAYERS], EMB, EMB)     # lin1
    wout, bout = init_linear(keys[NUM_LAYERS + 1], EMB, OUT_DIM)   # out
    # lane-dense pad of the head output 13 -> 128 (zero columns; sliced away later)
    wout = jnp.concatenate([wout, jnp.zeros((EMB, OUT_PAD - OUT_DIM), jnp.float32)], 1)
    bout = jnp.concatenate([bout, jnp.zeros((1, OUT_PAD - OUT_DIM), jnp.float32)], 1)
    return (wa, ba, wl1.astype(jnp.bfloat16), bl1, wout.astype(jnp.bfloat16), bout)


# ----------------------------------------------------------------------------
# Pure-JAX f32 reference (scatter form, mirrors the torch code) for validation.
# ----------------------------------------------------------------------------
def fragnet_reference(x_atoms, edge_index, params):
    wa, ba, wl1, bl1, wout, bout = params
    wa = wa.astype(jnp.float32)
    wl1 = wl1.astype(jnp.float32)
    wout = wout.astype(jnp.float32)

    def one(xa, ei):
        n = xa.shape[0]
        src, tgt = ei[0], ei[1]
        loops = jnp.arange(n, dtype=src.dtype)
        srcf = jnp.concatenate([src, loops])
        tgtf = jnp.concatenate([tgt, loops])
        deg = jnp.zeros((n,), jnp.float32).at[srcf].add(1.0)
        dis = jnp.where(deg > 0, jax.lax.rsqrt(jnp.where(deg > 0, deg, 1.0)), 0.0)
        norm = dis[srcf] * dis[tgtf]
        x = jnp.zeros((n, EMB), jnp.float32).at[:, :ATOM_FEAT].set(xa)
        for li in range(NUM_LAYERS):
            h = x @ wa[li] + ba[li]
            msg = h[srcf] * norm[:, None]
            x = jnp.maximum(jnp.zeros((n, EMB), jnp.float32).at[tgtf].add(msg), 0.0)
        h = jnp.maximum(x @ wl1 + bl1, 0.0)
        return (h @ wout + bout)[:, :OUT_DIM]

    return jax.vmap(one)(x_atoms, edge_index)


# ----------------------------------------------------------------------------
if __name__ == "__main__":
    key = jax.random.PRNGKey(0)
    k_graph, k_feat, k_params = jax.random.split(key, 3)

    G, N_ATOMS, N_EDGES = 16, 32, 64
    N_FRAGS, N_FRAG_EDGES = 8, 16

    ks = jax.random.split(k_graph, 3)
    edge_src = jax.random.randint(ks[0], (G, N_EDGES), 0, N_ATOMS, jnp.int32)
    edge_tgt = jax.random.randint(ks[1], (G, N_EDGES), 0, N_ATOMS, jnp.int32)
    edge_index = jnp.stack([edge_src, edge_tgt], axis=1)             # (G, 2, E)

    kf = jax.random.split(k_feat, 3)
    # The following batch entries exist in the module's input contract but are
    # dead with respect to the returned output (see header comment).
    batch = dict(
        x_atoms=jax.random.normal(kf[0], (G, N_ATOMS, ATOM_FEAT), jnp.float32),
        edge_index=edge_index,
        edge_attr=jax.random.normal(kf[1], (G, N_EDGES, EDGE_FEAT), jnp.float32),   # unused downstream
        frag_index=jax.random.randint(ks[2], (G, 2, N_FRAG_EDGES), 0, N_FRAGS,
                                      jnp.int32),                                   # unused downstream
        x_frags=jax.random.normal(kf[2], (G, N_FRAGS, FRAG_FEAT), jnp.float32),     # unused downstream
        atom_to_frag_ids=jnp.tile(jnp.arange(N_ATOMS, dtype=jnp.int32) % N_FRAGS,
                                  (G, 1)),                                          # unused downstream
    )

    params = init_params(k_params)

    out = fragnet_pretrain_forward(batch['x_atoms'], batch['edge_index'], params)
    out = jax.block_until_ready(out)

    assert out.shape == (G, N_ATOMS, OUT_DIM) and out.dtype == jnp.float32
    assert bool(jnp.all(jnp.isfinite(out)))

    # Validate the bf16-MXU kernel against the f32 scatter-form reference.
    ref = fragnet_reference(batch['x_atoms'], batch['edge_index'], params)
    max_err = float(jnp.max(jnp.abs(out - ref)))
    assert max_err < 0.15, f"max |kernel - ref| = {max_err}"

    print("KERNEL_OK")
</pallas_src>

<mosaic_0001>
module attributes {stable_mosaic.version = 11 : i64} {
  func.func private @main(%arg0: i32) attributes {dimension_semantics = [#tpu.dimension_semantics<core_parallel>], iteration_bounds = array<i64: 2>, tpu.core_type = #tpu.core_type<sc_scalar_subcore>, window_params = []} {
    return
  }
}

module attributes {stable_mosaic.version = 11 : i64} {
  func.func private @main(%arg0: i32) attributes {dimension_semantics = [#tpu.dimension_semantics<core_parallel>], iteration_bounds = array<i64: 2>, tpu.core_type = #tpu.core_type<sc_scalar_subcore>, window_params = []} {
    return
  }
}

module attributes {stable_mosaic.version = 11 : i64} {
  func.func @fragnet_fused_kernel(%arg0: i32, %arg1: memref<8x128x128xbf16, #tpu.memory_space<vmem>>, %arg2: memref<8x128x128xbf16, #tpu.memory_space<vmem>>, %arg3: memref<4x128x128xbf16, #tpu.memory_space<vmem>>, %arg4: memref<4x1x128xf32, #tpu.memory_space<vmem>>, %arg5: memref<128x128xbf16, #tpu.memory_space<vmem>>, %arg6: memref<1x128xf32, #tpu.memory_space<vmem>>, %arg7: memref<128x128xbf16, #tpu.memory_space<vmem>>, %arg8: memref<1x128xf32, #tpu.memory_space<vmem>>, %arg9: memref<8x128x128xf32, #tpu.memory_space<vmem>>) attributes {dimension_semantics = [#tpu.dimension_semantics<parallel>], iteration_bounds = array<i64: 2>, scalar_prefetch = 0 : i64, scratch_operands = 0 : i64, tpu.core_type = #tpu.core_type<tc>, window_params = [{transform_indices = @transform_0, window_bounds = array<i64: 8, 128, 128>}, {transform_indices = @transform_1, window_bounds = array<i64: 8, 128, 128>}, {pipeline_mode = #tpu.pipeline_mode<synchronous>, transform_indices = @transform_2, window_bounds = array<i64: 4, 128, 128>}, {pipeline_mode = #tpu.pipeline_mode<synchronous>, transform_indices = @transform_3, window_bounds = array<i64: 4, 1, 128>}, {pipeline_mode = #tpu.pipeline_mode<synchronous>, transform_indices = @transform_4, window_bounds = array<i64: 128, 128>}, {pipeline_mode = #tpu.pipeline_mode<synchronous>, transform_indices = @transform_5, window_bounds = array<i64: 1, 128>}, {pipeline_mode = #tpu.pipeline_mode<synchronous>, transform_indices = @transform_6, window_bounds = array<i64: 128, 128>}, {pipeline_mode = #tpu.pipeline_mode<synchronous>, transform_indices = @transform_7, window_bounds = array<i64: 1, 128>}, {transform_indices = @transform_8, window_bounds = array<i64: 8, 128, 128>}]} {
    %c0 = arith.constant 0 : index
    %c0_0 = arith.constant 0 : index
    %c0_1 = arith.constant 0 : index
    %0 = vector.load %arg2[%c0, %c0_0, %c0_1] : memref<8x128x128xbf16, #tpu.memory_space<vmem>>, vector<1x128x128xbf16>
    %1 = vector.shape_cast %0 : vector<1x128x128xbf16> to vector<128x128xbf16>
    %c0_2 = arith.constant 0 : index
    %c0_3 = arith.constant 0 : index
    %c0_4 = arith.constant 0 : index
    %2 = vector.load %arg1[%c0_2, %c0_3, %c0_4] : memref<8x128x128xbf16, #tpu.memory_space<vmem>>, vector<1x128x128xbf16>
    %3 = vector.shape_cast %2 : vector<1x128x128xbf16> to vector<128x128xbf16>
    %c0_5 = arith.constant 0 : index
    %c0_6 = arith.constant 0 : index
    %c0_7 = arith.constant 0 : index
    %4 = vector.load %arg3[%c0_5, %c0_6, %c0_7] : memref<4x128x128xbf16, #tpu.memory_space<vmem>>, vector<1x128x128xbf16>
    %5 = vector.shape_cast %4 : vector<1x128x128xbf16> to vector<128x128xbf16>
    %cst = arith.constant dense<0.000000e+00> : vector<128x128xf32>
    %6 = tpu.matmul %3, %5, %cst {dimension_numbers = #tpu.dot_dimension_numbers<[1], [0], [0], [1], [0, 0, 1, 1], [], []>} : vector<128x128xbf16>, vector<128x128xbf16>, vector<128x128xf32> -> vector<128x128xf32>
    %c0_8 = arith.constant 0 : index
    %c0_9 = arith.constant 0 : index
    %c0_10 = arith.constant 0 : index
    %7 = vector.load %arg4[%c0_8, %c0_9, %c0_10] : memref<4x1x128xf32, #tpu.memory_space<vmem>>, vector<1x1x128xf32>
    %8 = vector.shape_cast %7 : vector<1x1x128xf32> to vector<1x128xf32>
    %9 = vector.broadcast %8 : vector<1x128xf32> to vector<128x128xf32>
    %10 = arith.addf %6, %9 : vector<128x128xf32>
    %11 = arith.truncf %10 : vector<128x128xf32> to vector<128x128xbf16>
    %cst_11 = arith.constant dense<0.000000e+00> : vector<128x128xf32>
    %12 = tpu.matmul %1, %11, %cst_11 {dimension_numbers = #tpu.dot_dimension_numbers<[1], [0], [0], [1], [0, 0, 1, 1], [], []>} : vector<128x128xbf16>, vector<128x128xbf16>, vector<128x128xf32> -> vector<128x128xf32>
    %cst_12 = arith.constant 0.000000e+00 : f32
    %13 = vector.broadcast %cst_12 : f32 to vector<128x128xf32>
    %14 = arith.maximumf %12, %13 : vector<128x128xf32>
    %15 = arith.truncf %14 : vector<128x128xf32> to vector<128x128xbf16>
    %c1 = arith.constant 1 : index
    %c0_13 = arith.constant 0 : index
    %c0_14 = arith.constant 0 : index
    %16 = vector.load %arg3[%c1, %c0_13, %c0_14] : memref<4x128x128xbf16, #tpu.memory_space<vmem>>, vector<1x128x128xbf16>
    %17 = vector.shape_cast %16 : vector<1x128x128xbf16> to vector<128x128xbf16>
    %cst_15 = arith.constant dense<0.000000e+00> : vector<128x128xf32>
    %18 = tpu.matmul %15, %17, %cst_15 {dimension_numbers = #tpu.dot_dimension_numbers<[1], [0], [0], [1], [0, 0, 1, 1], [], []>} : vector<128x128xbf16>, vector<128x128xbf16>, vector<128x128xf32> -> vector<128x128xf32>
    %c1_16 = arith.constant 1 : index
    %c0_17 = arith.constant 0 : index
    %c0_18 = arith.constant 0 : index
    %19 = vector.load %arg4[%c1_16, %c0_17, %c0_18] : memref<4x1x128xf32, #tpu.memory_space<vmem>>, vector<1x1x128xf32>
    %20 = vector.shape_cast %19 : vector<1x1x128xf32> to vector<1x128xf32>
    %21 = vector.broadcast %20 : vector<1x128xf32> to vector<128x128xf32>
    %22 = arith.addf %18, %21 : vector<128x128xf32>
    %23 = arith.truncf %22 : vector<128x128xf32> to vector<128x128xbf16>
    %cst_19 = arith.constant dense<0.000000e+00> : vector<128x128xf32>
    %24 = tpu.matmul %1, %23, %cst_19 {dimension_numbers = #tpu.dot_dimension_numbers<[1], [0], [0], [1], [0, 0, 1, 1], [], []>} : vector<128x128xbf16>, vector<128x128xbf16>, vector<128x128xf32> -> vector<128x128xf32>
    %cst_20 = arith.constant 0.000000e+00 : f32
    %25 = vector.broadcast %cst_20 : f32 to vector<128x128xf32>
    %26 = arith.maximumf %24, %25 : vector<128x128xf32>
    %27 = arith.truncf %26 : vector<128x128xf32> to vector<128x128xbf16>
    %c2 = arith.constant 2 : index
    %c0_21 = arith.constant 0 : index
    %c0_22 = arith.constant 0 : index
    %28 = vector.load %arg3[%c2, %c0_21, %c0_22] : memref<4x128x128xbf16, #tpu.memory_space<vmem>>, vector<1x128x128xbf16>
    %29 = vector.shape_cast %28 : vector<1x128x128xbf16> to vector<128x128xbf16>
    %cst_23 = arith.constant dense<0.000000e+00> : vector<128x128xf32>
    %30 = tpu.matmul %27, %29, %cst_23 {dimension_numbers = #tpu.dot_dimension_numbers<[1], [0], [0], [1], [0, 0, 1, 1], [], []>} : vector<128x128xbf16>, vector<128x128xbf16>, vector<128x128xf32> -> vector<128x128xf32>
    %c2_24 = arith.constant 2 : index
    %c0_25 = arith.constant 0 : index
    %c0_26 = arith.constant 0 : index
    %31 = vector.load %arg4[%c2_24, %c0_25, %c0_26] : memref<4x1x128xf32, #tpu.memory_space<vmem>>, vector<1x1x128xf32>
    %32 = vector.shape_cast %31 : vector<1x1x128xf32> to vector<1x128xf32>
    %33 = vector.broadcast %32 : vector<1x128xf32> to vector<128x128xf32>
    %34 = arith.addf %30, %33 : vector<128x128xf32>
    %35 = arith.truncf %34 : vector<128x128xf32> to vector<128x128xbf16>
    %cst_27 = arith.constant dense<0.000000e+00> : vector<128x128xf32>
    %36 = tpu.matmul %1, %35, %cst_27 {dimension_numbers = #tpu.dot_dimension_numbers<[1], [0], [0], [1], [0, 0, 1, 1], [], []>} : vector<128x128xbf16>, vector<128x128xbf16>, vector<128x128xf32> -> vector<128x128xf32>
    %cst_28 = arith.constant 0.000000e+00 : f32
    %37 = vector.broadcast %cst_28 : f32 to vector<128x128xf32>
    %38 = arith.maximumf %36, %37 : vector<128x128xf32>
    %39 = arith.truncf %38 : vector<128x128xf32> to vector<128x128xbf16>
    %c3 = arith.constant 3 : index
    %c0_29 = arith.constant 0 : index
    %c0_30 = arith.constant 0 : index
    %40 = vector.load %arg3[%c3, %c0_29, %c0_30] : memref<4x128x128xbf16, #tpu.memory_space<vmem>>, vector<1x128x128xbf16>
    %41 = vector.shape_cast %40 : vector<1x128x128xbf16> to vector<128x128xbf16>
    %cst_31 = arith.constant dense<0.000000e+00> : vector<128x128xf32>
    %42 = tpu.matmul %39, %41, %cst_31 {dimension_numbers = #tpu.dot_dimension_numbers<[1], [0], [0], [1], [0, 0, 1, 1], [], []>} : vector<128x128xbf16>, vector<128x128xbf16>, vector<128x128xf32> -> vector<128x128xf32>
    %c3_32 = arith.constant 3 : index
    %c0_33 = arith.constant 0 : index
    %c0_34 = arith.constant 0 : index
    %43 = vector.load %arg4[%c3_32, %c0_33, %c0_34] : memref<4x1x128xf32, #tpu.memory_space<vmem>>, vector<1x1x128xf32>
    %44 = vector.shape_cast %43 : vector<1x1x128xf32> to vector<1x128xf32>
    %45 = vector.broadcast %44 : vector<1x128xf32> to vector<128x128xf32>
    %46 = arith.addf %42, %45 : vector<128x128xf32>
    %47 = arith.truncf %46 : vector<128x128xf32> to vector<128x128xbf16>
    %cst_35 = arith.constant dense<0.000000e+00> : vector<128x128xf32>
    %48 = tpu.matmul %1, %47, %cst_35 {dimension_numbers = #tpu.dot_dimension_numbers<[1], [0], [0], [1], [0, 0, 1, 1], [], []>} : vector<128x128xbf16>, vector<128x128xbf16>, vector<128x128xf32> -> vector<128x128xf32>
    %cst_36 = arith.constant 0.000000e+00 : f32
    %49 = vector.broadcast %cst_36 : f32 to vector<128x128xf32>
    %50 = arith.maximumf %48, %49 : vector<128x128xf32>
    %51 = arith.truncf %50 : vector<128x128xf32> to vector<128x128xbf16>
    %c0_37 = arith.constant 0 : index
    %c0_38 = arith.constant 0 : index
    %52 = vector.load %arg5[%c0_37, %c0_38] : memref<128x128xbf16, #tpu.memory_space<vmem>>, vector<128x128xbf16>
    %cst_39 = arith.constant dense<0.000000e+00> : vector<128x128xf32>
    %53 = tpu.matmul %51, %52, %cst_39 {dimension_numbers = #tpu.dot_dimension_numbers<[1], [0], [0], [1], [0, 0, 1, 1], [], []>} : vector<128x128xbf16>, vector<128x128xbf16>, vector<128x128xf32> -> vector<128x128xf32>
    %c0_40 = arith.constant 0 : index
    %c0_41 = arith.constant 0 : index
    %54 = vector.load %arg6[%c0_40, %c0_41] : memref<1x128xf32, #tpu.memory_space<vmem>>, vector<1x128xf32>
    %55 = vector.broadcast %54 : vector<1x128xf32> to vector<128x128xf32>
    %56 = arith.addf %53, %55 : vector<128x128xf32>
    %cst_42 = arith.constant 0.000000e+00 : f32
    %57 = vector.broadcast %cst_42 : f32 to vector<128x128xf32>
    %58 = arith.maximumf %56, %57 : vector<128x128xf32>
    %59 = arith.truncf %58 : vector<128x128xf32> to vector<128x128xbf16>
    %c0_43 = arith.constant 0 : index
    %c0_44 = arith.constant 0 : index
    %60 = vector.load %arg7[%c0_43, %c0_44] : memref<128x128xbf16, #tpu.memory_space<vmem>>, vector<128x128xbf16>
    %cst_45 = arith.constant dense<0.000000e+00> : vector<128x128xf32>
    %61 = tpu.matmul %59, %60, %cst_45 {dimension_numbers = #tpu.dot_dimension_numbers<[1], [0], [0], [1], [0, 0, 1, 1], [], []>} : vector<128x128xbf16>, vector<128x128xbf16>, vector<128x128xf32> -> vector<128x128xf32>
    %c0_46 = arith.constant 0 : index
    %c0_47 = arith.constant 0 : index
    %62 = vector.load %arg8[%c0_46, %c0_47] : memref<1x128xf32, #tpu.memory_space<vmem>>, vector<1x128xf32>
    %63 = vector.broadcast %62 : vector<1x128xf32> to vector<128x128xf32>
    %64 = arith.addf %61, %63 : vector<128x128xf32>
    %c0_48 = arith.constant 0 : index
    %c0_49 = arith.constant 0 : index
    %c0_50 = arith.constant 0 : index
    %65 = vector.load %arg9[%c0_48, %c0_49, %c0_50] : memref<8x128x128xf32, #tpu.memory_space<vmem>>, vector<1x128x128xf32>
    %66 = vector.shape_cast %65 : vector<1x128x128xf32> to vector<128x128xf32>
    %67 = vector.shape_cast %64 : vector<128x128xf32> to vector<1x128x128xf32>
    tpu.vector_store %arg9[%c0_48, %c0_49, %c0_50], %67 {strides = array<i32>} : memref<8x128x128xf32, #tpu.memory_space<vmem>>, vector<1x128x128xf32>,
    %c1_51 = arith.constant 1 : index
    %c0_52 = arith.constant 0 : index
    %c0_53 = arith.constant 0 : index
    %68 = vector.load %arg2[%c1_51, %c0_52, %c0_53] : memref<8x128x128xbf16, #tpu.memory_space<vmem>>, vector<1x128x128xbf16>
    %69 = vector.shape_cast %68 : vector<1x128x128xbf16> to vector<128x128xbf16>
    %c1_54 = arith.constant 1 : index
    %c0_55 = arith.constant 0 : index
    %c0_56 = arith.constant 0 : index
    %70 = vector.load %arg1[%c1_54, %c0_55, %c0_56] : memref<8x128x128xbf16, #tpu.memory_space<vmem>>, vector<1x128x128xbf16>
    %71 = vector.shape_cast %70 : vector<1x128x128xbf16> to vector<128x128xbf16>
    %c0_57 = arith.constant 0 : index
    %c0_58 = arith.constant 0 : index
    %c0_59 = arith.constant 0 : index
    %72 = vector.load %arg3[%c0_57, %c0_58, %c0_59] : memref<4x128x128xbf16, #tpu.memory_space<vmem>>, vector<1x128x128xbf16>
    %73 = vector.shape_cast %72 : vector<1x128x128xbf16> to vector<128x128xbf16>
    %cst_60 = arith.constant dense<0.000000e+00> : vector<128x128xf32>
    %74 = tpu.matmul %71, %73, %cst_60 {dimension_numbers = #tpu.dot_dimension_numbers<[1], [0], [0], [1], [0, 0, 1, 1], [], []>} : vector<128x128xbf16>, vector<128x128xbf16>, vector<128x128xf32> -> vector<128x128xf32>
    %c0_61 = arith.constant 0 : index
    %c0_62 = arith.constant 0 : index
    %c0_63 = arith.constant 0 : index
    %75 = vector.load %arg4[%c0_61, %c0_62, %c0_63] : memref<4x1x128xf32, #tpu.memory_space<vmem>>, vector<1x1x128xf32>
    %76 = vector.shape_cast %75 : vector<1x1x128xf32> to vector<1x128xf32>
    %77 = vector.broadcast %76 : vector<1x128xf32> to vector<128x128xf32>
    %78 = arith.addf %74, %77 : vector<128x128xf32>
    %79 = arith.truncf %78 : vector<128x128xf32> to vector<128x128xbf16>
    %cst_64 = arith.constant dense<0.000000e+00> : vector<128x128xf32>
    %80 = tpu.matmul %69, %79, %cst_64 {dimension_numbers = #tpu.dot_dimension_numbers<[1], [0], [0], [1], [0, 0, 1, 1], [], []>} : vector<128x128xbf16>, vector<128x128xbf16>, vector<128x128xf32> -> vector<128x128xf32>
    %cst_65 = arith.constant 0.000000e+00 : f32
    %81 = vector.broadcast %cst_65 : f32 to vector<128x128xf32>
    %82 = arith.maximumf %80, %81 : vector<128x128xf32>
    %83 = arith.truncf %82 : vector<128x128xf32> to vector<128x128xbf16>
    %c1_66 = arith.constant 1 : index
    %c0_67 = arith.constant 0 : index
    %c0_68 = arith.constant 0 : index
    %84 = vector.load %arg3[%c1_66, %c0_67, %c0_68] : memref<4x128x128xbf16, #tpu.memory_space<vmem>>, vector<1x128x128xbf16>
    %85 = vector.shape_cast %84 : vector<1x128x128xbf16> to vector<128x128xbf16>
    %cst_69 = arith.constant dense<0.000000e+00> : vector<128x128xf32>
    %86 = tpu.matmul %83, %85, %cst_69 {dimension_numbers = #tpu.dot_dimension_numbers<[1], [0], [0], [1], [0, 0, 1, 1], [], []>} : vector<128x128xbf16>, vector<128x128xbf16>, vector<128x128xf32> -> vector<128x128xf32>
    %c1_70 = arith.constant 1 : index
    %c0_71 = arith.constant 0 : index
    %c0_72 = arith.constant 0 : index
    %87 = vector.load %arg4[%c1_70, %c0_71, %c0_72] : memref<4x1x128xf32, #tpu.memory_space<vmem>>, vector<1x1x128xf32>
    %88 = vector.shape_cast %87 : vector<1x1x128xf32> to vector<1x128xf32>
    %89 = vector.broadcast %88 : vector<1x128xf32> to vector<128x128xf32>
    %90 = arith.addf %86, %89 : vector<128x128xf32>
    %91 = arith.truncf %90 : vector<128x128xf32> to vector<128x128xbf16>
    %cst_73 = arith.constant dense<0.000000e+00> : vector<128x128xf32>
    %92 = tpu.matmul %69, %91, %cst_73 {dimension_numbers = #tpu.dot_dimension_numbers<[1], [0], [0], [1], [0, 0, 1, 1], [], []>} : vector<128x128xbf16>, vector<128x128xbf16>, vector<128x128xf32> -> vector<128x128xf32>
    %cst_74 = arith.constant 0.000000e+00 : f32
    %93 = vector.broadcast %cst_74 : f32 to vector<128x128xf32>
    %94 = arith.maximumf %92, %93 : vector<128x128xf32>
    %95 = arith.truncf %94 : vector<128x128xf32> to vector<128x128xbf16>
    %c2_75 = arith.constant 2 : index
    %c0_76 = arith.constant 0 : index
    %c0_77 = arith.constant 0 : index
    %96 = vector.load %arg3[%c2_75, %c0_76, %c0_77] : memref<4x128x128xbf16, #tpu.memory_space<vmem>>, vector<1x128x128xbf16>
    %97 = vector.shape_cast %96 : vector<1x128x128xbf16> to vector<128x128xbf16>
    %cst_78 = arith.constant dense<0.000000e+00> : vector<128x128xf32>
    %98 = tpu.matmul %95, %97, %cst_78 {dimension_numbers = #tpu.dot_dimension_numbers<[1], [0], [0], [1], [0, 0, 1, 1], [], []>} : vector<128x128xbf16>, vector<128x128xbf16>, vector<128x128xf32> -> vector<128x128xf32>
    %c2_79 = arith.constant 2 : index
    %c0_80 = arith.constant 0 : index
    %c0_81 = arith.constant 0 : index
    %99 = vector.load %arg4[%c2_79, %c0_80, %c0_81] : memref<4x1x128xf32, #tpu.memory_space<vmem>>, vector<1x1x128xf32>
    %100 = vector.shape_cast %99 : vector<1x1x128xf32> to vector<1x128xf32>
    %101 = vector.broadcast %100 : vector<1x128xf32> to vector<128x128xf32>
    %102 = arith.addf %98, %101 : vector<128x128xf32>
    %103 = arith.truncf %102 : vector<128x128xf32> to vector<128x128xbf16>
    %cst_82 = arith.constant dense<0.000000e+00> : vector<128x128xf32>
    %104 = tpu.matmul %69, %103, %cst_82 {dimension_numbers = #tpu.dot_dimension_numbers<[1], [0], [0], [1], [0, 0, 1, 1], [], []>} : vector<128x128xbf16>, vector<128x128xbf16>, vector<128x128xf32> -> vector<128x128xf32>
    %cst_83 = arith.constant 0.000000e+00 : f32
    %105 = vector.broadcast %cst_83 : f32 to vector<128x128xf32>
    %106 = arith.maximumf %104, %105 : vector<128x128xf32>
    %107 = arith.truncf %106 : vector<128x128xf32> to vector<128x128xbf16>
    %c3_84 = arith.constant 3 : index
    %c0_85 = arith.constant 0 : index
    %c0_86 = arith.constant 0 : index
    %108 = vector.load %arg3[%c3_84, %c0_85, %c0_86] : memref<4x128x128xbf16, #tpu.memory_space<vmem>>, vector<1x128x128xbf16>
    %109 = vector.shape_cast %108 : vector<1x128x128xbf16> to vector<128x128xbf16>
    %cst_87 = arith.constant dense<0.000000e+00> : vector<128x128xf32>
    %110 = tpu.matmul %107, %109, %cst_87 {dimension_numbers = #tpu.dot_dimension_numbers<[1], [0], [0], [1], [0, 0, 1, 1], [], []>} : vector<128x128xbf16>, vector<128x128xbf16>, vector<128x128xf32> -> vector<128x128xf32>
    %c3_88 = arith.constant 3 : index
    %c0_89 = arith.constant 0 : index
    %c0_90 = arith.constant 0 : index
    %111 = vector.load %arg4[%c3_88, %c0_89, %c0_90] : memref<4x1x128xf32, #tpu.memory_space<vmem>>, vector<1x1x128xf32>
    %112 = vector.shape_cast %111 : vector<1x1x128xf32> to vector<1x128xf32>
    %113 = vector.broadcast %112 : vector<1x128xf32> to vector<128x128xf32>
    %114 = arith.addf %110, %113 : vector<128x128xf32>
    %115 = arith.truncf %114 : vector<128x128xf32> to vector<128x128xbf16>
    %cst_91 = arith.constant dense<0.000000e+00> : vector<128x128xf32>
    %116 = tpu.matmul %69, %115, %cst_91 {dimension_numbers = #tpu.dot_dimension_numbers<[1], [0], [0], [1], [0, 0, 1, 1], [], []>} : vector<128x128xbf16>, vector<128x128xbf16>, vector<128x128xf32> -> vector<128x128xf32>
    %cst_92 = arith.constant 0.000000e+00 : f32
    %117 = vector.broadcast %cst_92 : f32 to vector<128x128xf32>
    %118 = arith.maximumf %116, %117 : vector<128x128xf32>
    %119 = arith.truncf %118 : vector<128x128xf32> to vector<128x128xbf16>
    %c0_93 = arith.constant 0 : index
    %c0_94 = arith.constant 0 : index
    %120 = vector.load %arg5[%c0_93, %c0_94] : memref<128x128xbf16, #tpu.memory_space<vmem>>, vector<128x128xbf16>
    %cst_95 = arith.constant dense<0.000000e+00> : vector<128x128xf32>
    %121 = tpu.matmul %119, %120, %cst_95 {dimension_numbers = #tpu.dot_dimension_numbers<[1], [0], [0], [1], [0, 0, 1, 1], [], []>} : vector<128x128xbf16>, vector<128x128xbf16>, vector<128x128xf32> -> vector<128x128xf32>
    %c0_96 = arith.constant 0 : index
    %c0_97 = arith.constant 0 : index
    %122 = vector.load %arg6[%c0_96, %c0_97] : memref<1x128xf32, #tpu.memory_space<vmem>>, vector<1x128xf32>
    %123 = vector.broadcast %122 : vector<1x128xf32> to vector<128x128xf32>
    %124 = arith.addf %121, %123 : vector<128x128xf32>
    %cst_98 = arith.constant 0.000000e+00 : f32
    %125 = vector.broadcast %cst_98 : f32 to vector<128x128xf32>
    %126 = arith.maximumf %124, %125 : vector<128x128xf32>
    %127 = arith.truncf %126 : vector<128x128xf32> to vector<128x128xbf16>
    %c0_99 = arith.constant 0 : index
    %c0_100 = arith.constant 0 : index
    %128 = vector.load %arg7[%c0_99, %c0_100] : memref<128x128xbf16, #tpu.memory_space<vmem>>, vector<128x128xbf16>
    %cst_101 = arith.constant dense<0.000000e+00> : vector<128x128xf32>
    %129 = tpu.matmul %127, %128, %cst_101 {dimension_numbers = #tpu.dot_dimension_numbers<[1], [0], [0], [1], [0, 0, 1, 1], [], []>} : vector<128x128xbf16>, vector<128x128xbf16>, vector<128x128xf32> -> vector<128x128xf32>
    %c0_102 = arith.constant 0 : index
    %c0_103 = arith.constant 0 : index
    %130 = vector.load %arg8[%c0_102, %c0_103] : memref<1x128xf32, #tpu.memory_space<vmem>>, vector<1x128xf32>
    %131 = vector.broadcast %130 : vector<1x128xf32> to vector<128x128xf32>
    %132 = arith.addf %129, %131 : vector<128x128xf32>
    %c1_104 = arith.constant 1 : index
    %c0_105 = arith.constant 0 : index
    %c0_106 = arith.constant 0 : index
    %133 = vector.load %arg9[%c1_104, %c0_105, %c0_106] : memref<8x128x128xf32, #tpu.memory_space<vmem>>, vector<1x128x128xf32>
    %134 = vector.shape_cast %133 : vector<1x128x128xf32> to vector<128x128xf32>
    %135 = vector.shape_cast %132 : vector<128x128xf32> to vector<1x128x128xf32>
    tpu.vector_store %arg9[%c1_104, %c0_105, %c0_106], %135 {strides = array<i32>} : memref<8x128x128xf32, #tpu.memory_space<vmem>>, vector<1x128x128xf32>,
    %c2_107 = arith.constant 2 : index
    %c0_108 = arith.constant 0 : index
    %c0_109 = arith.constant 0 : index
    %136 = vector.load %arg2[%c2_107, %c0_108, %c0_109] : memref<8x128x128xbf16, #tpu.memory_space<vmem>>, vector<1x128x128xbf16>
    %137 = vector.shape_cast %136 : vector<1x128x128xbf16> to vector<128x128xbf16>
    %c2_110 = arith.constant 2 : index
    %c0_111 = arith.constant 0 : index
    %c0_112 = arith.constant 0 : index
    %138 = vector.load %arg1[%c2_110, %c0_111, %c0_112] : memref<8x128x128xbf16, #tpu.memory_space<vmem>>, vector<1x128x128xbf16>
    %139 = vector.shape_cast %138 : vector<1x128x128xbf16> to vector<128x128xbf16>
    %c0_113 = arith.constant 0 : index
    %c0_114 = arith.constant 0 : index
    %c0_115 = arith.constant 0 : index
    %140 = vector.load %arg3[%c0_113, %c0_114, %c0_115] : memref<4x128x128xbf16, #tpu.memory_space<vmem>>, vector<1x128x128xbf16>
    %141 = vector.shape_cast %140 : vector<1x128x128xbf16> to vector<128x128xbf16>
    %cst_116 = arith.constant dense<0.000000e+00> : vector<128x128xf32>
    %142 = tpu.matmul %139, %141, %cst_116 {dimension_numbers = #tpu.dot_dimension_numbers<[1], [0], [0], [1], [0, 0, 1, 1], [], []>} : vector<128x128xbf16>, vector<128x128xbf16>, vector<128x128xf32> -> vector<128x128xf32>
    %c0_117 = arith.constant 0 : index
    %c0_118 = arith.constant 0 : index
    %c0_119 = arith.constant 0 : index
    %143 = vector.load %arg4[%c0_117, %c0_118, %c0_119] : memref<4x1x128xf32, #tpu.memory_space<vmem>>, vector<1x1x128xf32>
    %144 = vector.shape_cast %143 : vector<1x1x128xf32> to vector<1x128xf32>
    %145 = vector.broadcast %144 : vector<1x128xf32> to vector<128x128xf32>
    %146 = arith.addf %142, %145 : vector<128x128xf32>
    %147 = arith.truncf %146 : vector<128x128xf32> to vector<128x128xbf16>
    %cst_120 = arith.constant dense<0.000000e+00> : vector<128x128xf32>
    %148 = tpu.matmul %137, %147, %cst_120 {dimension_numbers = #tpu.dot_dimension_numbers<[1], [0], [0], [1], [0, 0, 1, 1], [], []>} : vector<128x128xbf16>, vector<128x128xbf16>, vector<128x128xf32> -> vector<128x128xf32>
    %cst_121 = arith.constant 0.000000e+00 : f32
    %149 = vector.broadcast %cst_121 : f32 to vector<128x128xf32>
    %150 = arith.maximumf %148, %149 : vector<128x128xf32>
    %151 = arith.truncf %150 : vector<128x128xf32> to vector<128x128xbf16>
    %c1_122 = arith.constant 1 : index
    %c0_123 = arith.constant 0 : index
    %c0_124 = arith.constant 0 : index
    %152 = vector.load %arg3[%c1_122, %c0_123, %c0_124] : memref<4x128x128xbf16, #tpu.memory_space<vmem>>, vector<1x128x128xbf16>
    %153 = vector.shape_cast %152 : vector<1x128x128xbf16> to vector<128x128xbf16>
    %cst_125 = arith.constant dense<0.000000e+00> : vector<128x128xf32>
    %154 = tpu.matmul %151, %153, %cst_125 {dimension_numbers = #tpu.dot_dimension_numbers<[1], [0], [0], [1], [0, 0, 1, 1], [], []>} : vector<128x128xbf16>, vector<128x128xbf16>, vector<128x128xf32> -> vector<128x128xf32>
    %c1_126 = arith.constant 1 : index
    %c0_127 = arith.constant 0 : index
    %c0_128 = arith.constant 0 : index
    %155 = vector.load %arg4[%c1_126, %c0_127, %c0_128] : memref<4x1x128xf32, #tpu.memory_space<vmem>>, vector<1x1x128xf32>
    %156 = vector.shape_cast %155 : vector<1x1x128xf32> to vector<1x128xf32>
    %157 = vector.broadcast %156 : vector<1x128xf32> to vector<128x128xf32>
    %158 = arith.addf %154, %157 : vector<128x128xf32>
    %159 = arith.truncf %158 : vector<128x128xf32> to vector<128x128xbf16>
    %cst_129 = arith.constant dense<0.000000e+00> : vector<128x128xf32>
    %160 = tpu.matmul %137, %159, %cst_129 {dimension_numbers = #tpu.dot_dimension_numbers<[1], [0], [0], [1], [0, 0, 1, 1], [], []>} : vector<128x128xbf16>, vector<128x128xbf16>, vector<128x128xf32> -> vector<128x128xf32>
    %cst_130 = arith.constant 0.000000e+00 : f32
    %161 = vector.broadcast %cst_130 : f32 to vector<128x128xf32>
    %162 = arith.maximumf %160, %161 : vector<128x128xf32>
    %163 = arith.truncf %162 : vector<128x128xf32> to vector<128x128xbf16>
    %c2_131 = arith.constant 2 : index
    %c0_132 = arith.constant 0 : index
    %c0_133 = arith.constant 0 : index
    %164 = vector.load %arg3[%c2_131, %c0_132, %c0_133] : memref<4x128x128xbf16, #tpu.memory_space<vmem>>, vector<1x128x128xbf16>
    %165 = vector.shape_cast %164 : vector<1x128x128xbf16> to vector<128x128xbf16>
    %cst_134 = arith.constant dense<0.000000e+00> : vector<128x128xf32>
    %166 = tpu.matmul %163, %165, %cst_134 {dimension_numbers = #tpu.dot_dimension_numbers<[1], [0], [0], [1], [0, 0, 1, 1], [], []>} : vector<128x128xbf16>, vector<128x128xbf16>, vector<128x128xf32> -> vector<128x128xf32>
    %c2_135 = arith.constant 2 : index
    %c0_136 = arith.constant 0 : index
    %c0_137 = arith.constant 0 : index
    %167 = vector.load %arg4[%c2_135, %c0_136, %c0_137] : memref<4x1x128xf32, #tpu.memory_space<vmem>>, vector<1x1x128xf32>
    %168 = vector.shape_cast %167 : vector<1x1x128xf32> to vector<1x128xf32>
    %169 = vector.broadcast %168 : vector<1x128xf32> to vector<128x128xf32>
    %170 = arith.addf %166, %169 : vector<128x128xf32>
    %171 = arith.truncf %170 : vector<128x128xf32> to vector<128x128xbf16>
    %cst_138 = arith.constant dense<0.000000e+00> : vector<128x128xf32>
    %172 = tpu.matmul %137, %171, %cst_138 {dimension_numbers = #tpu.dot_dimension_numbers<[1], [0], [0], [1], [0, 0, 1, 1], [], []>} : vector<128x128xbf16>, vector<128x128xbf16>, vector<128x128xf32> -> vector<128x128xf32>
    %cst_139 = arith.constant 0.000000e+00 : f32
    %173 = vector.broadcast %cst_139 : f32 to vector<128x128xf32>
    %174 = arith.maximumf %172, %173 : vector<128x128xf32>
    %175 = arith.truncf %174 : vector<128x128xf32> to vector<128x128xbf16>
    %c3_140 = arith.constant 3 : index
    %c0_141 = arith.constant 0 : index
    %c0_142 = arith.constant 0 : index
    %176 = vector.load %arg3[%c3_140, %c0_141, %c0_142] : memref<4x128x128xbf16, #tpu.memory_space<vmem>>, vector<1x128x128xbf16>
    %177 = vector.shape_cast %176 : vector<1x128x128xbf16> to vector<128x128xbf16>
    %cst_143 = arith.constant dense<0.000000e+00> : vector<128x128xf32>
    %178 = tpu.matmul %175, %177, %cst_143 {dimension_numbers = #tpu.dot_dimension_numbers<[1], [0], [0], [1], [0, 0, 1, 1], [], []>} : vector<128x128xbf16>, vector<128x128xbf16>, vector<128x128xf32> -> vector<128x128xf32>
    %c3_144 = arith.constant 3 : index
    %c0_145 = arith.constant 0 : index
    %c0_146 = arith.constant 0 : index
    %179 = vector.load %arg4[%c3_144, %c0_145, %c0_146] : memref<4x1x128xf32, #tpu.memory_space<vmem>>, vector<1x1x128xf32>
    %180 = vector.shape_cast %179 : vector<1x1x128xf32> to vector<1x128xf32>
    %181 = vector.broadcast %180 : vector<1x128xf32> to vector<128x128xf32>
    %182 = arith.addf %178, %181 : vector<128x128xf32>
    %183 = arith.truncf %182 : vector<128x128xf32> to vector<128x128xbf16>
    %cst_147 = arith.constant dense<0.000000e+00> : vector<128x128xf32>
    %184 = tpu.matmul %137, %183, %cst_147 {dimension_numbers = #tpu.dot_dimension_numbers<[1], [0], [0], [1], [0, 0, 1, 1], [], []>} : vector<128x128xbf16>, vector<128x128xbf16>, vector<128x128xf32> -> vector<128x128xf32>
    %cst_148 = arith.constant 0.000000e+00 : f32
    %185 = vector.broadcast %cst_148 : f32 to vector<128x128xf32>
    %186 = arith.maximumf %184, %185 : vector<128x128xf32>
    %187 = arith.truncf %186 : vector<128x128xf32> to vector<128x128xbf16>
    %c0_149 = arith.constant 0 : index
    %c0_150 = arith.constant 0 : index
    %188 = vector.load %arg5[%c0_149, %c0_150] : memref<128x128xbf16, #tpu.memory_space<vmem>>, vector<128x128xbf16>
    %cst_151 = arith.constant dense<0.000000e+00> : vector<128x128xf32>
    %189 = tpu.matmul %187, %188, %cst_151 {dimension_numbers = #tpu.dot_dimension_numbers<[1], [0], [0], [1], [0, 0, 1, 1], [], []>} : vector<128x128xbf16>, vector<128x128xbf16>, vector<128x128xf32> -> vector<128x128xf32>
    %c0_152 = arith.constant 0 : index
    %c0_153 = arith.constant 0 : index
    %190 = vector.load %arg6[%c0_152, %c0_153] : memref<1x128xf32, #tpu.memory_space<vmem>>, vector<1x128xf32>
    %191 = vector.broadcast %190 : vector<1x128xf32> to vector<128x128xf32>
    %192 = arith.addf %189, %191 : vector<128x128xf32>
    %cst_154 = arith.constant 0.000000e+00 : f32
    %193 = vector.broadcast %cst_154 : f32 to vector<128x128xf32>
    %194 = arith.maximumf %192, %193 : vector<128x128xf32>
    %195 = arith.truncf %194 : vector<128x128xf32> to vector<128x128xbf16>
    %c0_155 = arith.constant 0 : index
    %c0_156 = arith.constant 0 : index
    %196 = vector.load %arg7[%c0_155, %c0_156] : memref<128x128xbf16, #tpu.memory_space<vmem>>, vector<128x128xbf16>
    %cst_157 = arith.constant dense<0.000000e+00> : vector<128x128xf32>
    %197 = tpu.matmul %195, %196, %cst_157 {dimension_numbers = #tpu.dot_dimension_numbers<[1], [0], [0], [1], [0, 0, 1, 1], [], []>} : vector<128x128xbf16>, vector<128x128xbf16>, vector<128x128xf32> -> vector<128x128xf32>
    %c0_158 = arith.constant 0 : index
    %c0_159 = arith.constant 0 : index
    %198 = vector.load %arg8[%c0_158, %c0_159] : memref<1x128xf32, #tpu.memory_space<vmem>>, vector<1x128xf32>
    %199 = vector.broadcast %198 : vector<1x128xf32> to vector<128x128xf32>
    %200 = arith.addf %197, %199 : vector<128x128xf32>
    %c2_160 = arith.constant 2 : index
    %c0_161 = arith.constant 0 : index
    %c0_162 = arith.constant 0 : index
    %201 = vector.load %arg9[%c2_160, %c0_161, %c0_162] : memref<8x128x128xf32, #tpu.memory_space<vmem>>, vector<1x128x128xf32>
    %202 = vector.shape_cast %201 : vector<1x128x128xf32> to vector<128x128xf32>
    %203 = vector.shape_cast %200 : vector<128x128xf32> to vector<1x128x128xf32>
    tpu.vector_store %arg9[%c2_160, %c0_161, %c0_162], %203 {strides = array<i32>} : memref<8x128x128xf32, #tpu.memory_space<vmem>>, vector<1x128x128xf32>,
    %c3_163 = arith.constant 3 : index
    %c0_164 = arith.constant 0 : index
    %c0_165 = arith.constant 0 : index
    %204 = vector.load %arg2[%c3_163, %c0_164, %c0_165] : memref<8x128x128xbf16, #tpu.memory_space<vmem>>, vector<1x128x128xbf16>
    %205 = vector.shape_cast %204 : vector<1x128x128xbf16> to vector<128x128xbf16>
    %c3_166 = arith.constant 3 : index
    %c0_167 = arith.constant 0 : index
    %c0_168 = arith.constant 0 : index
    %206 = vector.load %arg1[%c3_166, %c0_167, %c0_168] : memref<8x128x128xbf16, #tpu.memory_space<vmem>>, vector<1x128x128xbf16>
    %207 = vector.shape_cast %206 : vector<1x128x128xbf16> to vector<128x128xbf16>
    %c0_169 = arith.constant 0 : index
    %c0_170 = arith.constant 0 : index
    %c0_171 = arith.constant 0 : index
    %208 = vector.load %arg3[%c0_169, %c0_170, %c0_171] : memref<4x128x128xbf16, #tpu.memory_space<vmem>>, vector<1x128x128xbf16>
    %209 = vector.shape_cast %208 : vector<1x128x128xbf16> to vector<128x128xbf16>
    %cst_172 = arith.constant dense<0.000000e+00> : vector<128x128xf32>
    %210 = tpu.matmul %207, %209, %cst_172 {dimension_numbers = #tpu.dot_dimension_numbers<[1], [0], [0], [1], [0, 0, 1, 1], [], []>} : vector<128x128xbf16>, vector<128x128xbf16>, vector<128x128xf32> -> vector<128x128xf32>
    %c0_173 = arith.constant 0 : index
    %c0_174 = arith.constant 0 : index
    %c0_175 = arith.constant 0 : index
    %211 = vector.load %arg4[%c0_173, %c0_174, %c0_175] : memref<4x1x128xf32, #tpu.memory_space<vmem>>, vector<1x1x128xf32>
    %212 = vector.shape_cast %211 : vector<1x1x128xf32> to vector<1x128xf32>
    %213 = vector.broadcast %212 : vector<1x128xf32> to vector<128x128xf32>
    %214 = arith.addf %210, %213 : vector<128x128xf32>
    %215 = arith.truncf %214 : vector<128x128xf32> to vector<128x128xbf16>
    %cst_176 = arith.constant dense<0.000000e+00> : vector<128x128xf32>
    %216 = tpu.matmul %205, %215, %cst_176 {dimension_numbers = #tpu.dot_dimension_numbers<[1], [0], [0], [1], [0, 0, 1, 1], [], []>} : vector<128x128xbf16>, vector<128x128xbf16>, vector<128x128xf32> -> vector<128x128xf32>
    %cst_177 = arith.constant 0.000000e+00 : f32
    %217 = vector.broadcast %cst_177 : f32 to vector<128x128xf32>
    %218 = arith.maximumf %216, %217 : vector<128x128xf32>
    %219 = arith.truncf %218 : vector<128x128xf32> to vector<128x128xbf16>
    %c1_178 = arith.constant 1 : index
    %c0_179 = arith.constant 0 : index
    %c0_180 = arith.constant 0 : index
    %220 = vector.load %arg3[%c1_178, %c0_179, %c0_180] : memref<4x128x128xbf16, #tpu.memory_space<vmem>>, vector<1x128x128xbf16>
    %221 = vector.shape_cast %220 : vector<1x128x128xbf16> to vector<128x128xbf16>
    %cst_181 = arith.constant dense<0.000000e+00> : vector<128x128xf32>
    %222 = tpu.matmul %219, %221, %cst_181 {dimension_numbers = #tpu.dot_dimension_numbers<[1], [0], [0], [1], [0, 0, 1, 1], [], []>} : vector<128x128xbf16>, vector<128x128xbf16>, vector<128x128xf32> -> vector<128x128xf32>
    %c1_182 = arith.constant 1 : index
    %c0_183 = arith.constant 0 : index
    %c0_184 = arith.constant 0 : index
    %223 = vector.load %arg4[%c1_182, %c0_183, %c0_184] : memref<4x1x128xf32, #tpu.memory_space<vmem>>, vector<1x1x128xf32>
    %224 = vector.shape_cast %223 : vector<1x1x128xf32> to vector<1x128xf32>
    %225 = vector.broadcast %224 : vector<1x128xf32> to vector<128x128xf32>
    %226 = arith.addf %222, %225 : vector<128x128xf32>
    %227 = arith.truncf %226 : vector<128x128xf32> to vector<128x128xbf16>
    %cst_185 = arith.constant dense<0.000000e+00> : vector<128x128xf32>
    %228 = tpu.matmul %205, %227, %cst_185 {dimension_numbers = #tpu.dot_dimension_numbers<[1], [0], [0], [1], [0, 0, 1, 1], [], []>} : vector<128x128xbf16>, vector<128x128xbf16>, vector<128x128xf32> -> vector<128x128xf32>
    %cst_186 = arith.constant 0.000000e+00 : f32
    %229 = vector.broadcast %cst_186 : f32 to vector<128x128xf32>
    %230 = arith.maximumf %228, %229 : vector<128x128xf32>
    %231 = arith.truncf %230 : vector<128x128xf32> to vector<128x128xbf16>
    %c2_187 = arith.constant 2 : index
    %c0_188 = arith.constant 0 : index
    %c0_189 = arith.constant 0 : index
    %232 = vector.load %arg3[%c2_187, %c0_188, %c0_189] : memref<4x128x128xbf16, #tpu.memory_space<vmem>>, vector<1x128x128xbf16>
    %233 = vector.shape_cast %232 : vector<1x128x128xbf16> to vector<128x128xbf16>
    %cst_190 = arith.constant dense<0.000000e+00> : vector<128x128xf32>
    %234 = tpu.matmul %231, %233, %cst_190 {dimension_numbers = #tpu.dot_dimension_numbers<[1], [0], [0], [1], [0, 0, 1, 1], [], []>} : vector<128x128xbf16>, vector<128x128xbf16>, vector<128x128xf32> -> vector<128x128xf32>
    %c2_191 = arith.constant 2 : index
    %c0_192 = arith.constant 0 : index
    %c0_193 = arith.constant 0 : index
    %235 = vector.load %arg4[%c2_191, %c0_192, %c0_193] : memref<4x1x128xf32, #tpu.memory_space<vmem>>, vector<1x1x128xf32>
    %236 = vector.shape_cast %235 : vector<1x1x128xf32> to vector<1x128xf32>
    %237 = vector.broadcast %236 : vector<1x128xf32> to vector<128x128xf32>
    %238 = arith.addf %234, %237 : vector<128x128xf32>
    %239 = arith.truncf %238 : vector<128x128xf32> to vector<128x128xbf16>
    %cst_194 = arith.constant dense<0.000000e+00> : vector<128x128xf32>
    %240 = tpu.matmul %205, %239, %cst_194 {dimension_numbers = #tpu.dot_dimension_numbers<[1], [0], [0], [1], [0, 0, 1, 1], [], []>} : vector<128x128xbf16>, vector<128x128xbf16>, vector<128x128xf32> -> vector<128x128xf32>
    %cst_195 = arith.constant 0.000000e+00 : f32
    %241 = vector.broadcast %cst_195 : f32 to vector<128x128xf32>
    %242 = arith.maximumf %240, %241 : vector<128x128xf32>
    %243 = arith.truncf %242 : vector<128x128xf32> to vector<128x128xbf16>
    %c3_196 = arith.constant 3 : index
    %c0_197 = arith.constant 0 : index
    %c0_198 = arith.constant 0 : index
    %244 = vector.load %arg3[%c3_196, %c0_197, %c0_198] : memref<4x128x128xbf16, #tpu.memory_space<vmem>>, vector<1x128x128xbf16>
    %245 = vector.shape_cast %244 : vector<1x128x128xbf16> to vector<128x128xbf16>
    %cst_199 = arith.constant dense<0.000000e+00> : vector<128x128xf32>
    %246 = tpu.matmul %243, %245, %cst_199 {dimension_numbers = #tpu.dot_dimension_numbers<[1], [0], [0], [1], [0, 0, 1, 1], [], []>} : vector<128x128xbf16>, vector<128x128xbf16>, vector<128x128xf32> -> vector<128x128xf32>
    %c3_200 = arith.constant 3 : index
    %c0_201 = arith.constant 0 : index
    %c0_202 = arith.constant 0 : index
    %247 = vector.load %arg4[%c3_200, %c0_201, %c0_202] : memref<4x1x128xf32, #tpu.memory_space<vmem>>, vector<1x1x128xf32>
    %248 = vector.shape_cast %247 : vector<1x1x128xf32> to vector<1x128xf32>
    %249 = vector.broadcast %248 : vector<1x128xf32> to vector<128x128xf32>
    %250 = arith.addf %246, %249 : vector<128x128xf32>
    %251 = arith.truncf %250 : vector<128x128xf32> to vector<128x128xbf16>
    %cst_203 = arith.constant dense<0.000000e+00> : vector<128x128xf32>
    %252 = tpu.matmul %205, %251, %cst_203 {dimension_numbers = #tpu.dot_dimension_numbers<[1], [0], [0], [1], [0, 0, 1, 1], [], []>} : vector<128x128xbf16>, vector<128x128xbf16>, vector<128x128xf32> -> vector<128x128xf32>
    %cst_204 = arith.constant 0.000000e+00 : f32
    %253 = vector.broadcast %cst_204 : f32 to vector<128x128xf32>
    %254 = arith.maximumf %252, %253 : vector<128x128xf32>
    %255 = arith.truncf %254 : vector<128x128xf32> to vector<128x128xbf16>
    %c0_205 = arith.constant 0 : index
    %c0_206 = arith.constant 0 : index
    %256 = vector.load %arg5[%c0_205, %c0_206] : memref<128x128xbf16, #tpu.memory_space<vmem>>, vector<128x128xbf16>
    %cst_207 = arith.constant dense<0.000000e+00> : vector<128x128xf32>
    %257 = tpu.matmul %255, %256, %cst_207 {dimension_numbers = #tpu.dot_dimension_numbers<[1], [0], [0], [1], [0, 0, 1, 1], [], []>} : vector<128x128xbf16>, vector<128x128xbf16>, vector<128x128xf32> -> vector<128x128xf32>
    %c0_208 = arith.constant 0 : index
    %c0_209 = arith.constant 0 : index
    %258 = vector.load %arg6[%c0_208, %c0_209] : memref<1x128xf32, #tpu.memory_space<vmem>>, vector<1x128xf32>
    %259 = vector.broadcast %258 : vector<1x128xf32> to vector<128x128xf32>
    %260 = arith.addf %257, %259 : vector<128x128xf32>
    %cst_210 = arith.constant 0.000000e+00 : f32
    %261 = vector.broadcast %cst_210 : f32 to vector<128x128xf32>
    %262 = arith.maximumf %260, %261 : vector<128x128xf32>
    %263 = arith.truncf %262 : vector<128x128xf32> to vector<128x128xbf16>
    %c0_211 = arith.constant 0 : index
    %c0_212 = arith.constant 0 : index
    %264 = vector.load %arg7[%c0_211, %c0_212] : memref<128x128xbf16, #tpu.memory_space<vmem>>, vector<128x128xbf16>
    %cst_213 = arith.constant dense<0.000000e+00> : vector<128x128xf32>
    %265 = tpu.matmul %263, %264, %cst_213 {dimension_numbers = #tpu.dot_dimension_numbers<[1], [0], [0], [1], [0, 0, 1, 1], [], []>} : vector<128x128xbf16>, vector<128x128xbf16>, vector<128x128xf32> -> vector<128x128xf32>
    %c0_214 = arith.constant 0 : index
    %c0_215 = arith.constant 0 : index
    %266 = vector.load %arg8[%c0_214, %c0_215] : memref<1x128xf32, #tpu.memory_space<vmem>>, vector<1x128xf32>
    %267 = vector.broadcast %266 : vector<1x128xf32> to vector<128x128xf32>
    %268 = arith.addf %265, %267 : vector<128x128xf32>
    %c3_216 = arith.constant 3 : index
    %c0_217 = arith.constant 0 : index
    %c0_218 = arith.constant 0 : index
    %269 = vector.load %arg9[%c3_216, %c0_217, %c0_218] : memref<8x128x128xf32, #tpu.memory_space<vmem>>, vector<1x128x128xf32>
    %270 = vector.shape_cast %269 : vector<1x128x128xf32> to vector<128x128xf32>
    %271 = vector.shape_cast %268 : vector<128x128xf32> to vector<1x128x128xf32>
    tpu.vector_store %arg9[%c3_216, %c0_217, %c0_218], %271 {strides = array<i32>} : memref<8x128x128xf32, #tpu.memory_space<vmem>>, vector<1x128x128xf32>,
    %c4 = arith.constant 4 : index
    %c0_219 = arith.constant 0 : index
    %c0_220 = arith.constant 0 : index
    %272 = vector.load %arg2[%c4, %c0_219, %c0_220] : memref<8x128x128xbf16, #tpu.memory_space<vmem>>, vector<1x128x128xbf16>
    %273 = vector.shape_cast %272 : vector<1x128x128xbf16> to vector<128x128xbf16>
    %c4_221 = arith.constant 4 : index
    %c0_222 = arith.constant 0 : index
    %c0_223 = arith.constant 0 : index
    %274 = vector.load %arg1[%c4_221, %c0_222, %c0_223] : memref<8x128x128xbf16, #tpu.memory_space<vmem>>, vector<1x128x128xbf16>
    %275 = vector.shape_cast %274 : vector<1x128x128xbf16> to vector<128x128xbf16>
    %c0_224 = arith.constant 0 : index
    %c0_225 = arith.constant 0 : index
    %c0_226 = arith.constant 0 : index
    %276 = vector.load %arg3[%c0_224, %c0_225, %c0_226] : memref<4x128x128xbf16, #tpu.memory_space<vmem>>, vector<1x128x128xbf16>
    %277 = vector.shape_cast %276 : vector<1x128x128xbf16> to vector<128x128xbf16>
    %cst_227 = arith.constant dense<0.000000e+00> : vector<128x128xf32>
    %278 = tpu.matmul %275, %277, %cst_227 {dimension_numbers = #tpu.dot_dimension_numbers<[1], [0], [0], [1], [0, 0, 1, 1], [], []>} : vector<128x128xbf16>, vector<128x128xbf16>, vector<128x128xf32> -> vector<128x128xf32>
    %c0_228 = arith.constant 0 : index
    %c0_229 = arith.constant 0 : index
    %c0_230 = arith.constant 0 : index
    %279 = vector.load %arg4[%c0_228, %c0_229, %c0_230] : memref<4x1x128xf32, #tpu.memory_space<vmem>>, vector<1x1x128xf32>
    %280 = vector.shape_cast %279 : vector<1x1x128xf32> to vector<1x128xf32>
    %281 = vector.broadcast %280 : vector<1x128xf32> to vector<128x128xf32>
    %282 = arith.addf %278, %281 : vector<128x128xf32>
    %283 = arith.truncf %282 : vector<128x128xf32> to vector<128x128xbf16>
    %cst_231 = arith.constant dense<0.000000e+00> : vector<128x128xf32>
    %284 = tpu.matmul %273, %283, %cst_231 {dimension_numbers = #tpu.dot_dimension_numbers<[1], [0], [0], [1], [0, 0, 1, 1], [], []>} : vector<128x128xbf16>, vector<128x128xbf16>, vector<128x128xf32> -> vector<128x128xf32>
    %cst_232 = arith.constant 0.000000e+00 : f32
    %285 = vector.broadcast %cst_232 : f32 to vector<128x128xf32>
    %286 = arith.maximumf %284, %285 : vector<128x128xf32>
    %287 = arith.truncf %286 : vector<128x128xf32> to vector<128x128xbf16>
    %c1_233 = arith.constant 1 : index
    %c0_234 = arith.constant 0 : index
    %c0_235 = arith.constant 0 : index
    %288 = vector.load %arg3[%c1_233, %c0_234, %c0_235] : memref<4x128x128xbf16, #tpu.memory_space<vmem>>, vector<1x128x128xbf16>
    %289 = vector.shape_cast %288 : vector<1x128x128xbf16> to vector<128x128xbf16>
    %cst_236 = arith.constant dense<0.000000e+00> : vector<128x128xf32>
    %290 = tpu.matmul %287, %289, %cst_236 {dimension_numbers = #tpu.dot_dimension_numbers<[1], [0], [0], [1], [0, 0, 1, 1], [], []>} : vector<128x128xbf16>, vector<128x128xbf16>, vector<128x128xf32> -> vector<128x128xf32>
    %c1_237 = arith.constant 1 : index
    %c0_238 = arith.constant 0 : index
    %c0_239 = arith.constant 0 : index
    %291 = vector.load %arg4[%c1_237, %c0_238, %c0_239] : memref<4x1x128xf32, #tpu.memory_space<vmem>>, vector<1x1x128xf32>
    %292 = vector.shape_cast %291 : vector<1x1x128xf32> to vector<1x128xf32>
    %293 = vector.broadcast %292 : vector<1x128xf32> to vector<128x128xf32>
    %294 = arith.addf %290, %293 : vector<128x128xf32>
    %295 = arith.truncf %294 : vector<128x128xf32> to vector<128x128xbf16>
    %cst_240 = arith.constant dense<0.000000e+00> : vector<128x128xf32>
    %296 = tpu.matmul %273, %295, %cst_240 {dimension_numbers = #tpu.dot_dimension_numbers<[1], [0], [0], [1], [0, 0, 1, 1], [], []>} : vector<128x128xbf16>, vector<128x128xbf16>, vector<128x128xf32> -> vector<128x128xf32>
    %cst_241 = arith.constant 0.000000e+00 : f32
    %297 = vector.broadcast %cst_241 : f32 to vector<128x128xf32>
    %298 = arith.maximumf %296, %297 : vector<128x128xf32>
    %299 = arith.truncf %298 : vector<128x128xf32> to vector<128x128xbf16>
    %c2_242 = arith.constant 2 : index
    %c0_243 = arith.constant 0 : index
    %c0_244 = arith.constant 0 : index
    %300 = vector.load %arg3[%c2_242, %c0_243, %c0_244] : memref<4x128x128xbf16, #tpu.memory_space<vmem>>, vector<1x128x128xbf16>
    %301 = vector.shape_cast %300 : vector<1x128x128xbf16> to vector<128x128xbf16>
    %cst_245 = arith.constant dense<0.000000e+00> : vector<128x128xf32>
    %302 = tpu.matmul %299, %301, %cst_245 {dimension_numbers = #tpu.dot_dimension_numbers<[1], [0], [0], [1], [0, 0, 1, 1], [], []>} : vector<128x128xbf16>, vector<128x128xbf16>, vector<128x128xf32> -> vector<128x128xf32>
    %c2_246 = arith.constant 2 : index
    %c0_247 = arith.constant 0 : index
    %c0_248 = arith.constant 0 : index
    %303 = vector.load %arg4[%c2_246, %c0_247, %c0_248] : memref<4x1x128xf32, #tpu.memory_space<vmem>>, vector<1x1x128xf32>
    %304 = vector.shape_cast %303 : vector<1x1x128xf32> to vector<1x128xf32>
    %305 = vector.broadcast %304 : vector<1x128xf32> to vector<128x128xf32>
    %306 = arith.addf %302, %305 : vector<128x128xf32>
    %307 = arith.truncf %306 : vector<128x128xf32> to vector<128x128xbf16>
    %cst_249 = arith.constant dense<0.000000e+00> : vector<128x128xf32>
    %308 = tpu.matmul %273, %307, %cst_249 {dimension_numbers = #tpu.dot_dimension_numbers<[1], [0], [0], [1], [0, 0, 1, 1], [], []>} : vector<128x128xbf16>, vector<128x128xbf16>, vector<128x128xf32> -> vector<128x128xf32>
    %cst_250 = arith.constant 0.000000e+00 : f32
    %309 = vector.broadcast %cst_250 : f32 to vector<128x128xf32>
    %310 = arith.maximumf %308, %309 : vector<128x128xf32>
    %311 = arith.truncf %310 : vector<128x128xf32> to vector<128x128xbf16>
    %c3_251 = arith.constant 3 : index
    %c0_252 = arith.constant 0 : index
    %c0_253 = arith.constant 0 : index
    %312 = vector.load %arg3[%c3_251, %c0_252, %c0_253] : memref<4x128x128xbf16, #tpu.memory_space<vmem>>, vector<1x128x128xbf16>
    %313 = vector.shape_cast %312 : vector<1x128x128xbf16> to vector<128x128xbf16>
    %cst_254 = arith.constant dense<0.000000e+00> : vector<128x128xf32>
    %314 = tpu.matmul %311, %313, %cst_254 {dimension_numbers = #tpu.dot_dimension_numbers<[1], [0], [0], [1], [0, 0, 1, 1], [], []>} : vector<128x128xbf16>, vector<128x128xbf16>, vector<128x128xf32> -> vector<128x128xf32>
    %c3_255 = arith.constant 3 : index
    %c0_256 = arith.constant 0 : index
    %c0_257 = arith.constant 0 : index
    %315 = vector.load %arg4[%c3_255, %c0_256, %c0_257] : memref<4x1x128xf32, #tpu.memory_space<vmem>>, vector<1x1x128xf32>
    %316 = vector.shape_cast %315 : vector<1x1x128xf32> to vector<1x128xf32>
    %317 = vector.broadcast %316 : vector<1x128xf32> to vector<128x128xf32>
    %318 = arith.addf %314, %317 : vector<128x128xf32>
    %319 = arith.truncf %318 : vector<128x128xf32> to vector<128x128xbf16>
    %cst_258 = arith.constant dense<0.000000e+00> : vector<128x128xf32>
    %320 = tpu.matmul %273, %319, %cst_258 {dimension_numbers = #tpu.dot_dimension_numbers<[1], [0], [0], [1], [0, 0, 1, 1], [], []>} : vector<128x128xbf16>, vector<128x128xbf16>, vector<128x128xf32> -> vector<128x128xf32>
    %cst_259 = arith.constant 0.000000e+00 : f32
    %321 = vector.broadcast %cst_259 : f32 to vector<128x128xf32>
    %322 = arith.maximumf %320, %321 : vector<128x128xf32>
    %323 = arith.truncf %322 : vector<128x128xf32> to vector<128x128xbf16>
    %c0_260 = arith.constant 0 : index
    %c0_261 = arith.constant 0 : index
    %324 = vector.load %arg5[%c0_260, %c0_261] : memref<128x128xbf16, #tpu.memory_space<vmem>>, vector<128x128xbf16>
    %cst_262 = arith.constant dense<0.000000e+00> : vector<128x128xf32>
    %325 = tpu.matmul %323, %324, %cst_262 {dimension_numbers = #tpu.dot_dimension_numbers<[1], [0], [0], [1], [0, 0, 1, 1], [], []>} : vector<128x128xbf16>, vector<128x128xbf16>, vector<128x128xf32> -> vector<128x128xf32>
    %c0_263 = arith.constant 0 : index
    %c0_264 = arith.constant 0 : index
    %326 = vector.load %arg6[%c0_263, %c0_264] : memref<1x128xf32, #tpu.memory_space<vmem>>, vector<1x128xf32>
    %327 = vector.broadcast %326 : vector<1x128xf32> to vector<128x128xf32>
    %328 = arith.addf %325, %327 : vector<128x128xf32>
    %cst_265 = arith.constant 0.000000e+00 : f32
    %329 = vector.broadcast %cst_265 : f32 to vector<128x128xf32>
    %330 = arith.maximumf %328, %329 : vector<128x128xf32>
    %331 = arith.truncf %330 : vector<128x128xf32> to vector<128x128xbf16>
    %c0_266 = arith.constant 0 : index
    %c0_267 = arith.constant 0 : index
    %332 = vector.load %arg7[%c0_266, %c0_267] : memref<128x128xbf16, #tpu.memory_space<vmem>>, vector<128x128xbf16>
    %cst_268 = arith.constant dense<0.000000e+00> : vector<128x128xf32>
    %333 = tpu.matmul %331, %332, %cst_268 {dimension_numbers = #tpu.dot_dimension_numbers<[1], [0], [0], [1], [0, 0, 1, 1], [], []>} : vector<128x128xbf16>, vector<128x128xbf16>, vector<128x128xf32> -> vector<128x128xf32>
    %c0_269 = arith.constant 0 : index
    %c0_270 = arith.constant 0 : index
    %334 = vector.load %arg8[%c0_269, %c0_270] : memref<1x128xf32, #tpu.memory_space<vmem>>, vector<1x128xf32>
    %335 = vector.broadcast %334 : vector<1x128xf32> to vector<128x128xf32>
    %336 = arith.addf %333, %335 : vector<128x128xf32>
    %c4_271 = arith.constant 4 : index
    %c0_272 = arith.constant 0 : index
    %c0_273 = arith.constant 0 : index
    %337 = vector.load %arg9[%c4_271, %c0_272, %c0_273] : memref<8x128x128xf32, #tpu.memory_space<vmem>>, vector<1x128x128xf32>
    %338 = vector.shape_cast %337 : vector<1x128x128xf32> to vector<128x128xf32>
    %339 = vector.shape_cast %336 : vector<128x128xf32> to vector<1x128x128xf32>
    tpu.vector_store %arg9[%c4_271, %c0_272, %c0_273], %339 {strides = array<i32>} : memref<8x128x128xf32, #tpu.memory_space<vmem>>, vector<1x128x128xf32>,
    %c5 = arith.constant 5 : index
    %c0_274 = arith.constant 0 : index
    %c0_275 = arith.constant 0 : index
    %340 = vector.load %arg2[%c5, %c0_274, %c0_275] : memref<8x128x128xbf16, #tpu.memory_space<vmem>>, vector<1x128x128xbf16>
    %341 = vector.shape_cast %340 : vector<1x128x128xbf16> to vector<128x128xbf16>
    %c5_276 = arith.constant 5 : index
    %c0_277 = arith.constant 0 : index
    %c0_278 = arith.constant 0 : index
    %342 = vector.load %arg1[%c5_276, %c0_277, %c0_278] : memref<8x128x128xbf16, #tpu.memory_space<vmem>>, vector<1x128x128xbf16>
    %343 = vector.shape_cast %342 : vector<1x128x128xbf16> to vector<128x128xbf16>
    %c0_279 = arith.constant 0 : index
    %c0_280 = arith.constant 0 : index
    %c0_281 = arith.constant 0 : index
    %344 = vector.load %arg3[%c0_279, %c0_280, %c0_281] : memref<4x128x128xbf16, #tpu.memory_space<vmem>>, vector<1x128x128xbf16>
    %345 = vector.shape_cast %344 : vector<1x128x128xbf16> to vector<128x128xbf16>
    %cst_282 = arith.constant dense<0.000000e+00> : vector<128x128xf32>
    %346 = tpu.matmul %343, %345, %cst_282 {dimension_numbers = #tpu.dot_dimension_numbers<[1], [0], [0], [1], [0, 0, 1, 1], [], []>} : vector<128x128xbf16>, vector<128x128xbf16>, vector<128x128xf32> -> vector<128x128xf32>
    %c0_283 = arith.constant 0 : index
    %c0_284 = arith.constant 0 : index
    %c0_285 = arith.constant 0 : index
    %347 = vector.load %arg4[%c0_283, %c0_284, %c0_285] : memref<4x1x128xf32, #tpu.memory_space<vmem>>, vector<1x1x128xf32>
    %348 = vector.shape_cast %347 : vector<1x1x128xf32> to vector<1x128xf32>
    %349 = vector.broadcast %348 : vector<1x128xf32> to vector<128x128xf32>
    %350 = arith.addf %346, %349 : vector<128x128xf32>
    %351 = arith.truncf %350 : vector<128x128xf32> to vector<128x128xbf16>
    %cst_286 = arith.constant dense<0.000000e+00> : vector<128x128xf32>
    %352 = tpu.matmul %341, %351, %cst_286 {dimension_numbers = #tpu.dot_dimension_numbers<[1], [0], [0], [1], [0, 0, 1, 1], [], []>} : vector<128x128xbf16>, vector<128x128xbf16>, vector<128x128xf32> -> vector<128x128xf32>
    %cst_287 = arith.constant 0.000000e+00 : f32
    %353 = vector.broadcast %cst_287 : f32 to vector<128x128xf32>
    %354 = arith.maximumf %352, %353 : vector<128x128xf32>
    %355 = arith.truncf %354 : vector<128x128xf32> to vector<128x128xbf16>
    %c1_288 = arith.constant 1 : index
    %c0_289 = arith.constant 0 : index
    %c0_290 = arith.constant 0 : index
    %356 = vector.load %arg3[%c1_288, %c0_289, %c0_290] : memref<4x128x128xbf16, #tpu.memory_space<vmem>>, vector<1x128x128xbf16>
    %357 = vector.shape_cast %356 : vector<1x128x128xbf16> to vector<128x128xbf16>
    %cst_291 = arith.constant dense<0.000000e+00> : vector<128x128xf32>
    %358 = tpu.matmul %355, %357, %cst_291 {dimension_numbers = #tpu.dot_dimension_numbers<[1], [0], [0], [1], [0, 0, 1, 1], [], []>} : vector<128x128xbf16>, vector<128x128xbf16>, vector<128x128xf32> -> vector<128x128xf32>
    %c1_292 = arith.constant 1 : index
    %c0_293 = arith.constant 0 : index
    %c0_294 = arith.constant 0 : index
    %359 = vector.load %arg4[%c1_292, %c0_293, %c0_294] : memref<4x1x128xf32, #tpu.memory_space<vmem>>, vector<1x1x128xf32>
    %360 = vector.shape_cast %359 : vector<1x1x128xf32> to vector<1x128xf32>
    %361 = vector.broadcast %360 : vector<1x128xf32> to vector<128x128xf32>
    %362 = arith.addf %358, %361 : vector<128x128xf32>
    %363 = arith.truncf %362 : vector<128x128xf32> to vector<128x128xbf16>
    %cst_295 = arith.constant dense<0.000000e+00> : vector<128x128xf32>
    %364 = tpu.matmul %341, %363, %cst_295 {dimension_numbers = #tpu.dot_dimension_numbers<[1], [0], [0], [1], [0, 0, 1, 1], [], []>} : vector<128x128xbf16>, vector<128x128xbf16>, vector<128x128xf32> -> vector<128x128xf32>
    %cst_296 = arith.constant 0.000000e+00 : f32
    %365 = vector.broadcast %cst_296 : f32 to vector<128x128xf32>
    %366 = arith.maximumf %364, %365 : vector<128x128xf32>
    %367 = arith.truncf %366 : vector<128x128xf32> to vector<128x128xbf16>
    %c2_297 = arith.constant 2 : index
    %c0_298 = arith.constant 0 : index
    %c0_299 = arith.constant 0 : index
    %368 = vector.load %arg3[%c2_297, %c0_298, %c0_299] : memref<4x128x128xbf16, #tpu.memory_space<vmem>>, vector<1x128x128xbf16>
    %369 = vector.shape_cast %368 : vector<1x128x128xbf16> to vector<128x128xbf16>
    %cst_300 = arith.constant dense<0.000000e+00> : vector<128x128xf32>
    %370 = tpu.matmul %367, %369, %cst_300 {dimension_numbers = #tpu.dot_dimension_numbers<[1], [0], [0], [1], [0, 0, 1, 1], [], []>} : vector<128x128xbf16>, vector<128x128xbf16>, vector<128x128xf32> -> vector<128x128xf32>
    %c2_301 = arith.constant 2 : index
    %c0_302 = arith.constant 0 : index
    %c0_303 = arith.constant 0 : index
    %371 = vector.load %arg4[%c2_301, %c0_302, %c0_303] : memref<4x1x128xf32, #tpu.memory_space<vmem>>, vector<1x1x128xf32>
    %372 = vector.shape_cast %371 : vector<1x1x128xf32> to vector<1x128xf32>
    %373 = vector.broadcast %372 : vector<1x128xf32> to vector<128x128xf32>
    %374 = arith.addf %370, %373 : vector<128x128xf32>
    %375 = arith.truncf %374 : vector<128x128xf32> to vector<128x128xbf16>
    %cst_304 = arith.constant dense<0.000000e+00> : vector<128x128xf32>
    %376 = tpu.matmul %341, %375, %cst_304 {dimension_numbers = #tpu.dot_dimension_numbers<[1], [0], [0], [1], [0, 0, 1, 1], [], []>} : vector<128x128xbf16>, vector<128x128xbf16>, vector<128x128xf32> -> vector<128x128xf32>
    %cst_305 = arith.constant 0.000000e+00 : f32
    %377 = vector.broadcast %cst_305 : f32 to vector<128x128xf32>
    %378 = arith.maximumf %376, %377 : vector<128x128xf32>
    %379 = arith.truncf %378 : vector<128x128xf32> to vector<128x128xbf16>
    %c3_306 = arith.constant 3 : index
    %c0_307 = arith.constant 0 : index
    %c0_308 = arith.constant 0 : index
    %380 = vector.load %arg3[%c3_306, %c0_307, %c0_308] : memref<4x128x128xbf16, #tpu.memory_space<vmem>>, vector<1x128x128xbf16>
    %381 = vector.shape_cast %380 : vector<1x128x128xbf16> to vector<128x128xbf16>
    %cst_309 = arith.constant dense<0.000000e+00> : vector<128x128xf32>
    %382 = tpu.matmul %379, %381, %cst_309 {dimension_numbers = #tpu.dot_dimension_numbers<[1], [0], [0], [1], [0, 0, 1, 1], [], []>} : vector<128x128xbf16>, vector<128x128xbf16>, vector<128x128xf32> -> vector<128x128xf32>
    %c3_310 = arith.constant 3 : index
    %c0_311 = arith.constant 0 : index
    %c0_312 = arith.constant 0 : index
    %383 = vector.load %arg4[%c3_310, %c0_311, %c0_312] : memref<4x1x128xf32, #tpu.memory_space<vmem>>, vector<1x1x128xf32>
    %384 = vector.shape_cast %383 : vector<1x1x128xf32> to vector<1x128xf32>
    %385 = vector.broadcast %384 : vector<1x128xf32> to vector<128x128xf32>
    %386 = arith.addf %382, %385 : vector<128x128xf32>
    %387 = arith.truncf %386 : vector<128x128xf32> to vector<128x128xbf16>
    %cst_313 = arith.constant dense<0.000000e+00> : vector<128x128xf32>
    %388 = tpu.matmul %341, %387, %cst_313 {dimension_numbers = #tpu.dot_dimension_numbers<[1], [0], [0], [1], [0, 0, 1, 1], [], []>} : vector<128x128xbf16>, vector<128x128xbf16>, vector<128x128xf32> -> vector<128x128xf32>
    %cst_314 = arith.constant 0.000000e+00 : f32
    %389 = vector.broadcast %cst_314 : f32 to vector<128x128xf32>
    %390 = arith.maximumf %388, %389 : vector<128x128xf32>
    %391 = arith.truncf %390 : vector<128x128xf32> to vector<128x128xbf16>
    %c0_315 = arith.constant 0 : index
    %c0_316 = arith.constant 0 : index
    %392 = vector.load %arg5[%c0_315, %c0_316] : memref<128x128xbf16, #tpu.memory_space<vmem>>, vector<128x128xbf16>
    %cst_317 = arith.constant dense<0.000000e+00> : vector<128x128xf32>
    %393 = tpu.matmul %391, %392, %cst_317 {dimension_numbers = #tpu.dot_dimension_numbers<[1], [0], [0], [1], [0, 0, 1, 1], [], []>} : vector<128x128xbf16>, vector<128x128xbf16>, vector<128x128xf32> -> vector<128x128xf32>
    %c0_318 = arith.constant 0 : index
    %c0_319 = arith.constant 0 : index
    %394 = vector.load %arg6[%c0_318, %c0_319] : memref<1x128xf32, #tpu.memory_space<vmem>>, vector<1x128xf32>
    %395 = vector.broadcast %394 : vector<1x128xf32> to vector<128x128xf32>
    %396 = arith.addf %393, %395 : vector<128x128xf32>
    %cst_320 = arith.constant 0.000000e+00 : f32
    %397 = vector.broadcast %cst_320 : f32 to vector<128x128xf32>
    %398 = arith.maximumf %396, %397 : vector<128x128xf32>
    %399 = arith.truncf %398 : vector<128x128xf32> to vector<128x128xbf16>
    %c0_321 = arith.constant 0 : index
    %c0_322 = arith.constant 0 : index
    %400 = vector.load %arg7[%c0_321, %c0_322] : memref<128x128xbf16, #tpu.memory_space<vmem>>, vector<128x128xbf16>
    %cst_323 = arith.constant dense<0.000000e+00> : vector<128x128xf32>
    %401 = tpu.matmul %399, %400, %cst_323 {dimension_numbers = #tpu.dot_dimension_numbers<[1], [0], [0], [1], [0, 0, 1, 1], [], []>} : vector<128x128xbf16>, vector<128x128xbf16>, vector<128x128xf32> -> vector<128x128xf32>
    %c0_324 = arith.constant 0 : index
    %c0_325 = arith.constant 0 : index
    %402 = vector.load %arg8[%c0_324, %c0_325] : memref<1x128xf32, #tpu.memory_space<vmem>>, vector<1x128xf32>
    %403 = vector.broadcast %402 : vector<1x128xf32> to vector<128x128xf32>
    %404 = arith.addf %401, %403 : vector<128x128xf32>
    %c5_326 = arith.constant 5 : index
    %c0_327 = arith.constant 0 : index
    %c0_328 = arith.constant 0 : index
    %405 = vector.load %arg9[%c5_326, %c0_327, %c0_328] : memref<8x128x128xf32, #tpu.memory_space<vmem>>, vector<1x128x128xf32>
    %406 = vector.shape_cast %405 : vector<1x128x128xf32> to vector<128x128xf32>
    %407 = vector.shape_cast %404 : vector<128x128xf32> to vector<1x128x128xf32>
    tpu.vector_store %arg9[%c5_326, %c0_327, %c0_328], %407 {strides = array<i32>} : memref<8x128x128xf32, #tpu.memory_space<vmem>>, vector<1x128x128xf32>,
    %c6 = arith.constant 6 : index
    %c0_329 = arith.constant 0 : index
    %c0_330 = arith.constant 0 : index
    %408 = vector.load %arg2[%c6, %c0_329, %c0_330] : memref<8x128x128xbf16, #tpu.memory_space<vmem>>, vector<1x128x128xbf16>
    %409 = vector.shape_cast %408 : vector<1x128x128xbf16> to vector<128x128xbf16>
    %c6_331 = arith.constant 6 : index
    %c0_332 = arith.constant 0 : index
    %c0_333 = arith.constant 0 : index
    %410 = vector.load %arg1[%c6_331, %c0_332, %c0_333] : memref<8x128x128xbf16, #tpu.memory_space<vmem>>, vector<1x128x128xbf16>
    %411 = vector.shape_cast %410 : vector<1x128x128xbf16> to vector<128x128xbf16>
    %c0_334 = arith.constant 0 : index
    %c0_335 = arith.constant 0 : index
    %c0_336 = arith.constant 0 : index
    %412 = vector.load %arg3[%c0_334, %c0_335, %c0_336] : memref<4x128x128xbf16, #tpu.memory_space<vmem>>, vector<1x128x128xbf16>
    %413 = vector.shape_cast %412 : vector<1x128x128xbf16> to vector<128x128xbf16>
    %cst_337 = arith.constant dense<0.000000e+00> : vector<128x128xf32>
    %414 = tpu.matmul %411, %413, %cst_337 {dimension_numbers = #tpu.dot_dimension_numbers<[1], [0], [0], [1], [0, 0, 1, 1], [], []>} : vector<128x128xbf16>, vector<128x128xbf16>, vector<128x128xf32> -> vector<128x128xf32>
    %c0_338 = arith.constant 0 : index
    %c0_339 = arith.constant 0 : index
    %c0_340 = arith.constant 0 : index
    %415 = vector.load %arg4[%c0_338, %c0_339, %c0_340] : memref<4x1x128xf32, #tpu.memory_space<vmem>>, vector<1x1x128xf32>
    %416 = vector.shape_cast %415 : vector<1x1x128xf32> to vector<1x128xf32>
    %417 = vector.broadcast %416 : vector<1x128xf32> to vector<128x128xf32>
    %418 = arith.addf %414, %417 : vector<128x128xf32>
    %419 = arith.truncf %418 : vector<128x128xf32> to vector<128x128xbf16>
    %cst_341 = arith.constant dense<0.000000e+00> : vector<128x128xf32>
    %420 = tpu.matmul %409, %419, %cst_341 {dimension_numbers = #tpu.dot_dimension_numbers<[1], [0], [0], [1], [0, 0, 1, 1], [], []>} : vector<128x128xbf16>, vector<128x128xbf16>, vector<128x128xf32> -> vector<128x128xf32>
    %cst_342 = arith.constant 0.000000e+00 : f32
    %421 = vector.broadcast %cst_342 : f32 to vector<128x128xf32>
    %422 = arith.maximumf %420, %421 : vector<128x128xf32>
    %423 = arith.truncf %422 : vector<128x128xf32> to vector<128x128xbf16>
    %c1_343 = arith.constant 1 : index
    %c0_344 = arith.constant 0 : index
    %c0_345 = arith.constant 0 : index
    %424 = vector.load %arg3[%c1_343, %c0_344, %c0_345] : memref<4x128x128xbf16, #tpu.memory_space<vmem>>, vector<1x128x128xbf16>
    %425 = vector.shape_cast %424 : vector<1x128x128xbf16> to vector<128x128xbf16>
    %cst_346 = arith.constant dense<0.000000e+00> : vector<128x128xf32>
    %426 = tpu.matmul %423, %425, %cst_346 {dimension_numbers = #tpu.dot_dimension_numbers<[1], [0], [0], [1], [0, 0, 1, 1], [], []>} : vector<128x128xbf16>, vector<128x128xbf16>, vector<128x128xf32> -> vector<128x128xf32>
    %c1_347 = arith.constant 1 : index
    %c0_348 = arith.constant 0 : index
    %c0_349 = arith.constant 0 : index
    %427 = vector.load %arg4[%c1_347, %c0_348, %c0_349] : memref<4x1x128xf32, #tpu.memory_space<vmem>>, vector<1x1x128xf32>
    %428 = vector.shape_cast %427 : vector<1x1x128xf32> to vector<1x128xf32>
    %429 = vector.broadcast %428 : vector<1x128xf32> to vector<128x128xf32>
    %430 = arith.addf %426, %429 : vector<128x128xf32>
    %431 = arith.truncf %430 : vector<128x128xf32> to vector<128x128xbf16>
    %cst_350 = arith.constant dense<0.000000e+00> : vector<128x128xf32>
    %432 = tpu.matmul %409, %431, %cst_350 {dimension_numbers = #tpu.dot_dimension_numbers<[1], [0], [0], [1], [0, 0, 1, 1], [], []>} : vector<128x128xbf16>, vector<128x128xbf16>, vector<128x128xf32> -> vector<128x128xf32>
    %cst_351 = arith.constant 0.000000e+00 : f32
    %433 = vector.broadcast %cst_351 : f32 to vector<128x128xf32>
    %434 = arith.maximumf %432, %433 : vector<128x128xf32>
    %435 = arith.truncf %434 : vector<128x128xf32> to vector<128x128xbf16>
    %c2_352 = arith.constant 2 : index
    %c0_353 = arith.constant 0 : index
    %c0_354 = arith.constant 0 : index
    %436 = vector.load %arg3[%c2_352, %c0_353, %c0_354] : memref<4x128x128xbf16, #tpu.memory_space<vmem>>, vector<1x128x128xbf16>
    %437 = vector.shape_cast %436 : vector<1x128x128xbf16> to vector<128x128xbf16>
    %cst_355 = arith.constant dense<0.000000e+00> : vector<128x128xf32>
    %438 = tpu.matmul %435, %437, %cst_355 {dimension_numbers = #tpu.dot_dimension_numbers<[1], [0], [0], [1], [0, 0, 1, 1], [], []>} : vector<128x128xbf16>, vector<128x128xbf16>, vector<128x128xf32> -> vector<128x128xf32>
    %c2_356 = arith.constant 2 : index
    %c0_357 = arith.constant 0 : index
    %c0_358 = arith.constant 0 : index
    %439 = vector.load %arg4[%c2_356, %c0_357, %c0_358] : memref<4x1x128xf32, #tpu.memory_space<vmem>>, vector<1x1x128xf32>
    %440 = vector.shape_cast %439 : vector<1x1x128xf32> to vector<1x128xf32>
    %441 = vector.broadcast %440 : vector<1x128xf32> to vector<128x128xf32>
    %442 = arith.addf %438, %441 : vector<128x128xf32>
    %443 = arith.truncf %442 : vector<128x128xf32> to vector<128x128xbf16>
    %cst_359 = arith.constant dense<0.000000e+00> : vector<128x128xf32>
    %444 = tpu.matmul %409, %443, %cst_359 {dimension_numbers = #tpu.dot_dimension_numbers<[1], [0], [0], [1], [0, 0, 1, 1], [], []>} : vector<128x128xbf16>, vector<128x128xbf16>, vector<128x128xf32> -> vector<128x128xf32>
    %cst_360 = arith.constant 0.000000e+00 : f32
    %445 = vector.broadcast %cst_360 : f32 to vector<128x128xf32>
    %446 = arith.maximumf %444, %445 : vector<128x128xf32>
    %447 = arith.truncf %446 : vector<128x128xf32> to vector<128x128xbf16>
    %c3_361 = arith.constant 3 : index
    %c0_362 = arith.constant 0 : index
    %c0_363 = arith.constant 0 : index
    %448 = vector.load %arg3[%c3_361, %c0_362, %c0_363] : memref<4x128x128xbf16, #tpu.memory_space<vmem>>, vector<1x128x128xbf16>
    %449 = vector.shape_cast %448 : vector<1x128x128xbf16> to vector<128x128xbf16>
    %cst_364 = arith.constant dense<0.000000e+00> : vector<128x128xf32>
    %450 = tpu.matmul %447, %449, %cst_364 {dimension_numbers = #tpu.dot_dimension_numbers<[1], [0], [0], [1], [0, 0, 1, 1], [], []>} : vector<128x128xbf16>, vector<128x128xbf16>, vector<128x128xf32> -> vector<128x128xf32>
    %c3_365 = arith.constant 3 : index
    %c0_366 = arith.constant 0 : index
    %c0_367 = arith.constant 0 : index
    %451 = vector.load %arg4[%c3_365, %c0_366, %c0_367] : memref<4x1x128xf32, #tpu.memory_space<vmem>>, vector<1x1x128xf32>
    %452 = vector.shape_cast %451 : vector<1x1x128xf32> to vector<1x128xf32>
    %453 = vector.broadcast %452 : vector<1x128xf32> to vector<128x128xf32>
    %454 = arith.addf %450, %453 : vector<128x128xf32>
    %455 = arith.truncf %454 : vector<128x128xf32> to vector<128x128xbf16>
    %cst_368 = arith.constant dense<0.000000e+00> : vector<128x128xf32>
    %456 = tpu.matmul %409, %455, %cst_368 {dimension_numbers = #tpu.dot_dimension_numbers<[1], [0], [0], [1], [0, 0, 1, 1], [], []>} : vector<128x128xbf16>, vector<128x128xbf16>, vector<128x128xf32> -> vector<128x128xf32>
    %cst_369 = arith.constant 0.000000e+00 : f32
    %457 = vector.broadcast %cst_369 : f32 to vector<128x128xf32>
    %458 = arith.maximumf %456, %457 : vector<128x128xf32>
    %459 = arith.truncf %458 : vector<128x128xf32> to vector<128x128xbf16>
    %c0_370 = arith.constant 0 : index
    %c0_371 = arith.constant 0 : index
    %460 = vector.load %arg5[%c0_370, %c0_371] : memref<128x128xbf16, #tpu.memory_space<vmem>>, vector<128x128xbf16>
    %cst_372 = arith.constant dense<0.000000e+00> : vector<128x128xf32>
    %461 = tpu.matmul %459, %460, %cst_372 {dimension_numbers = #tpu.dot_dimension_numbers<[1], [0], [0], [1], [0, 0, 1, 1], [], []>} : vector<128x128xbf16>, vector<128x128xbf16>, vector<128x128xf32> -> vector<128x128xf32>
    %c0_373 = arith.constant 0 : index
    %c0_374 = arith.constant 0 : index
    %462 = vector.load %arg6[%c0_373, %c0_374] : memref<1x128xf32, #tpu.memory_space<vmem>>, vector<1x128xf32>
    %463 = vector.broadcast %462 : vector<1x128xf32> to vector<128x128xf32>
    %464 = arith.addf %461, %463 : vector<128x128xf32>
    %cst_375 = arith.constant 0.000000e+00 : f32
    %465 = vector.broadcast %cst_375 : f32 to vector<128x128xf32>
    %466 = arith.maximumf %464, %465 : vector<128x128xf32>
    %467 = arith.truncf %466 : vector<128x128xf32> to vector<128x128xbf16>
    %c0_376 = arith.constant 0 : index
    %c0_377 = arith.constant 0 : index
    %468 = vector.load %arg7[%c0_376, %c0_377] : memref<128x128xbf16, #tpu.memory_space<vmem>>, vector<128x128xbf16>
    %cst_378 = arith.constant dense<0.000000e+00> : vector<128x128xf32>
    %469 = tpu.matmul %467, %468, %cst_378 {dimension_numbers = #tpu.dot_dimension_numbers<[1], [0], [0], [1], [0, 0, 1, 1], [], []>} : vector<128x128xbf16>, vector<128x128xbf16>, vector<128x128xf32> -> vector<128x128xf32>
    %c0_379 = arith.constant 0 : index
    %c0_380 = arith.constant 0 : index
    %470 = vector.load %arg8[%c0_379, %c0_380] : memref<1x128xf32, #tpu.memory_space<vmem>>, vector<1x128xf32>
    %471 = vector.broadcast %470 : vector<1x128xf32> to vector<128x128xf32>
    %472 = arith.addf %469, %471 : vector<128x128xf32>
    %c6_381 = arith.constant 6 : index
    %c0_382 = arith.constant 0 : index
    %c0_383 = arith.constant 0 : index
    %473 = vector.load %arg9[%c6_381, %c0_382, %c0_383] : memref<8x128x128xf32, #tpu.memory_space<vmem>>, vector<1x128x128xf32>
    %474 = vector.shape_cast %473 : vector<1x128x128xf32> to vector<128x128xf32>
    %475 = vector.shape_cast %472 : vector<128x128xf32> to vector<1x128x128xf32>
    tpu.vector_store %arg9[%c6_381, %c0_382, %c0_383], %475 {strides = array<i32>} : memref<8x128x128xf32, #tpu.memory_space<vmem>>, vector<1x128x128xf32>,
    %c7 = arith.constant 7 : index
    %c0_384 = arith.constant 0 : index
    %c0_385 = arith.constant 0 : index
    %476 = vector.load %arg2[%c7, %c0_384, %c0_385] : memref<8x128x128xbf16, #tpu.memory_space<vmem>>, vector<1x128x128xbf16>
    %477 = vector.shape_cast %476 : vector<1x128x128xbf16> to vector<128x128xbf16>
    %c7_386 = arith.constant 7 : index
    %c0_387 = arith.constant 0 : index
    %c0_388 = arith.constant 0 : index
    %478 = vector.load %arg1[%c7_386, %c0_387, %c0_388] : memref<8x128x128xbf16, #tpu.memory_space<vmem>>, vector<1x128x128xbf16>
    %479 = vector.shape_cast %478 : vector<1x128x128xbf16> to vector<128x128xbf16>
    %c0_389 = arith.constant 0 : index
    %c0_390 = arith.constant 0 : index
    %c0_391 = arith.constant 0 : index
    %480 = vector.load %arg3[%c0_389, %c0_390, %c0_391] : memref<4x128x128xbf16, #tpu.memory_space<vmem>>, vector<1x128x128xbf16>
    %481 = vector.shape_cast %480 : vector<1x128x128xbf16> to vector<128x128xbf16>
    %cst_392 = arith.constant dense<0.000000e+00> : vector<128x128xf32>
    %482 = tpu.matmul %479, %481, %cst_392 {dimension_numbers = #tpu.dot_dimension_numbers<[1], [0], [0], [1], [0, 0, 1, 1], [], []>} : vector<128x128xbf16>, vector<128x128xbf16>, vector<128x128xf32> -> vector<128x128xf32>
    %c0_393 = arith.constant 0 : index
    %c0_394 = arith.constant 0 : index
    %c0_395 = arith.constant 0 : index
    %483 = vector.load %arg4[%c0_393, %c0_394, %c0_395] : memref<4x1x128xf32, #tpu.memory_space<vmem>>, vector<1x1x128xf32>
    %484 = vector.shape_cast %483 : vector<1x1x128xf32> to vector<1x128xf32>
    %485 = vector.broadcast %484 : vector<1x128xf32> to vector<128x128xf32>
    %486 = arith.addf %482, %485 : vector<128x128xf32>
    %487 = arith.truncf %486 : vector<128x128xf32> to vector<128x128xbf16>
    %cst_396 = arith.constant dense<0.000000e+00> : vector<128x128xf32>
    %488 = tpu.matmul %477, %487, %cst_396 {dimension_numbers = #tpu.dot_dimension_numbers<[1], [0], [0], [1], [0, 0, 1, 1], [], []>} : vector<128x128xbf16>, vector<128x128xbf16>, vector<128x128xf32> -> vector<128x128xf32>
    %cst_397 = arith.constant 0.000000e+00 : f32
    %489 = vector.broadcast %cst_397 : f32 to vector<128x128xf32>
    %490 = arith.maximumf %488, %489 : vector<128x128xf32>
    %491 = arith.truncf %490 : vector<128x128xf32> to vector<128x128xbf16>
    %c1_398 = arith.constant 1 : index
    %c0_399 = arith.constant 0 : index
    %c0_400 = arith.constant 0 : index
    %492 = vector.load %arg3[%c1_398, %c0_399, %c0_400] : memref<4x128x128xbf16, #tpu.memory_space<vmem>>, vector<1x128x128xbf16>
    %493 = vector.shape_cast %492 : vector<1x128x128xbf16> to vector<128x128xbf16>
    %cst_401 = arith.constant dense<0.000000e+00> : vector<128x128xf32>
    %494 = tpu.matmul %491, %493, %cst_401 {dimension_numbers = #tpu.dot_dimension_numbers<[1], [0], [0], [1], [0, 0, 1, 1], [], []>} : vector<128x128xbf16>, vector<128x128xbf16>, vector<128x128xf32> -> vector<128x128xf32>
    %c1_402 = arith.constant 1 : index
    %c0_403 = arith.constant 0 : index
    %c0_404 = arith.constant 0 : index
    %495 = vector.load %arg4[%c1_402, %c0_403, %c0_404] : memref<4x1x128xf32, #tpu.memory_space<vmem>>, vector<1x1x128xf32>
    %496 = vector.shape_cast %495 : vector<1x1x128xf32> to vector<1x128xf32>
    %497 = vector.broadcast %496 : vector<1x128xf32> to vector<128x128xf32>
    %498 = arith.addf %494, %497 : vector<128x128xf32>
    %499 = arith.truncf %498 : vector<128x128xf32> to vector<128x128xbf16>
    %cst_405 = arith.constant dense<0.000000e+00> : vector<128x128xf32>
    %500 = tpu.matmul %477, %499, %cst_405 {dimension_numbers = #tpu.dot_dimension_numbers<[1], [0], [0], [1], [0, 0, 1, 1], [], []>} : vector<128x128xbf16>, vector<128x128xbf16>, vector<128x128xf32> -> vector<128x128xf32>
    %cst_406 = arith.constant 0.000000e+00 : f32
    %501 = vector.broadcast %cst_406 : f32 to vector<128x128xf32>
    %502 = arith.maximumf %500, %501 : vector<128x128xf32>
    %503 = arith.truncf %502 : vector<128x128xf32> to vector<128x128xbf16>
    %c2_407 = arith.constant 2 : index
    %c0_408 = arith.constant 0 : index
    %c0_409 = arith.constant 0 : index
    %504 = vector.load %arg3[%c2_407, %c0_408, %c0_409] : memref<4x128x128xbf16, #tpu.memory_space<vmem>>, vector<1x128x128xbf16>
    %505 = vector.shape_cast %504 : vector<1x128x128xbf16> to vector<128x128xbf16>
    %cst_410 = arith.constant dense<0.000000e+00> : vector<128x128xf32>
    %506 = tpu.matmul %503, %505, %cst_410 {dimension_numbers = #tpu.dot_dimension_numbers<[1], [0], [0], [1], [0, 0, 1, 1], [], []>} : vector<128x128xbf16>, vector<128x128xbf16>, vector<128x128xf32> -> vector<128x128xf32>
    %c2_411 = arith.constant 2 : index
    %c0_412 = arith.constant 0 : index
    %c0_413 = arith.constant 0 : index
    %507 = vector.load %arg4[%c2_411, %c0_412, %c0_413] : memref<4x1x128xf32, #tpu.memory_space<vmem>>, vector<1x1x128xf32>
    %508 = vector.shape_cast %507 : vector<1x1x128xf32> to vector<1x128xf32>
    %509 = vector.broadcast %508 : vector<1x128xf32> to vector<128x128xf32>
    %510 = arith.addf %506, %509 : vector<128x128xf32>
    %511 = arith.truncf %510 : vector<128x128xf32> to vector<128x128xbf16>
    %cst_414 = arith.constant dense<0.000000e+00> : vector<128x128xf32>
    %512 = tpu.matmul %477, %511, %cst_414 {dimension_numbers = #tpu.dot_dimension_numbers<[1], [0], [0], [1], [0, 0, 1, 1], [], []>} : vector<128x128xbf16>, vector<128x128xbf16>, vector<128x128xf32> -> vector<128x128xf32>
    %cst_415 = arith.constant 0.000000e+00 : f32
    %513 = vector.broadcast %cst_415 : f32 to vector<128x128xf32>
    %514 = arith.maximumf %512, %513 : vector<128x128xf32>
    %515 = arith.truncf %514 : vector<128x128xf32> to vector<128x128xbf16>
    %c3_416 = arith.constant 3 : index
    %c0_417 = arith.constant 0 : index
    %c0_418 = arith.constant 0 : index
    %516 = vector.load %arg3[%c3_416, %c0_417, %c0_418] : memref<4x128x128xbf16, #tpu.memory_space<vmem>>, vector<1x128x128xbf16>
    %517 = vector.shape_cast %516 : vector<1x128x128xbf16> to vector<128x128xbf16>
    %cst_419 = arith.constant dense<0.000000e+00> : vector<128x128xf32>
    %518 = tpu.matmul %515, %517, %cst_419 {dimension_numbers = #tpu.dot_dimension_numbers<[1], [0], [0], [1], [0, 0, 1, 1], [], []>} : vector<128x128xbf16>, vector<128x128xbf16>, vector<128x128xf32> -> vector<128x128xf32>
    %c3_420 = arith.constant 3 : index
    %c0_421 = arith.constant 0 : index
    %c0_422 = arith.constant 0 : index
    %519 = vector.load %arg4[%c3_420, %c0_421, %c0_422] : memref<4x1x128xf32, #tpu.memory_space<vmem>>, vector<1x1x128xf32>
    %520 = vector.shape_cast %519 : vector<1x1x128xf32> to vector<1x128xf32>
    %521 = vector.broadcast %520 : vector<1x128xf32> to vector<128x128xf32>
    %522 = arith.addf %518, %521 : vector<128x128xf32>
    %523 = arith.truncf %522 : vector<128x128xf32> to vector<128x128xbf16>
    %cst_423 = arith.constant dense<0.000000e+00> : vector<128x128xf32>
    %524 = tpu.matmul %477, %523, %cst_423 {dimension_numbers = #tpu.dot_dimension_numbers<[1], [0], [0], [1], [0, 0, 1, 1], [], []>} : vector<128x128xbf16>, vector<128x128xbf16>, vector<128x128xf32> -> vector<128x128xf32>
    %cst_424 = arith.constant 0.000000e+00 : f32
    %525 = vector.broadcast %cst_424 : f32 to vector<128x128xf32>
    %526 = arith.maximumf %524, %525 : vector<128x128xf32>
    %527 = arith.truncf %526 : vector<128x128xf32> to vector<128x128xbf16>
    %c0_425 = arith.constant 0 : index
    %c0_426 = arith.constant 0 : index
    %528 = vector.load %arg5[%c0_425, %c0_426] : memref<128x128xbf16, #tpu.memory_space<vmem>>, vector<128x128xbf16>
    %cst_427 = arith.constant dense<0.000000e+00> : vector<128x128xf32>
    %529 = tpu.matmul %527, %528, %cst_427 {dimension_numbers = #tpu.dot_dimension_numbers<[1], [0], [0], [1], [0, 0, 1, 1], [], []>} : vector<128x128xbf16>, vector<128x128xbf16>, vector<128x128xf32> -> vector<128x128xf32>
    %c0_428 = arith.constant 0 : index
    %c0_429 = arith.constant 0 : index
    %530 = vector.load %arg6[%c0_428, %c0_429] : memref<1x128xf32, #tpu.memory_space<vmem>>, vector<1x128xf32>
    %531 = vector.broadcast %530 : vector<1x128xf32> to vector<128x128xf32>
    %532 = arith.addf %529, %531 : vector<128x128xf32>
    %cst_430 = arith.constant 0.000000e+00 : f32
    %533 = vector.broadcast %cst_430 : f32 to vector<128x128xf32>
    %534 = arith.maximumf %532, %533 : vector<128x128xf32>
    %535 = arith.truncf %534 : vector<128x128xf32> to vector<128x128xbf16>
    %c0_431 = arith.constant 0 : index
    %c0_432 = arith.constant 0 : index
    %536 = vector.load %arg7[%c0_431, %c0_432] : memref<128x128xbf16, #tpu.memory_space<vmem>>, vector<128x128xbf16>
    %cst_433 = arith.constant dense<0.000000e+00> : vector<128x128xf32>
    %537 = tpu.matmul %535, %536, %cst_433 {dimension_numbers = #tpu.dot_dimension_numbers<[1], [0], [0], [1], [0, 0, 1, 1], [], []>} : vector<128x128xbf16>, vector<128x128xbf16>, vector<128x128xf32> -> vector<128x128xf32>
    %c0_434 = arith.constant 0 : index
    %c0_435 = arith.constant 0 : index
    %538 = vector.load %arg8[%c0_434, %c0_435] : memref<1x128xf32, #tpu.memory_space<vmem>>, vector<1x128xf32>
    %539 = vector.broadcast %538 : vector<1x128xf32> to vector<128x128xf32>
    %540 = arith.addf %537, %539 : vector<128x128xf32>
    %c7_436 = arith.constant 7 : index
    %c0_437 = arith.constant 0 : index
    %c0_438 = arith.constant 0 : index
    %541 = vector.load %arg9[%c7_436, %c0_437, %c0_438] : memref<8x128x128xf32, #tpu.memory_space<vmem>>, vector<1x128x128xf32>
    %542 = vector.shape_cast %541 : vector<1x128x128xf32> to vector<128x128xf32>
    %543 = vector.shape_cast %540 : vector<128x128xf32> to vector<1x128x128xf32>
    tpu.vector_store %arg9[%c7_436, %c0_437, %c0_438], %543 {strides = array<i32>} : memref<8x128x128xf32, #tpu.memory_space<vmem>>, vector<1x128x128xf32>,
    return
  }
  func.func @transform_0(%arg0: i32) -> (i32, i32, i32) {
    %c0_i32 = arith.constant 0 : i32
    %c0_i32_0 = arith.constant 0 : i32
    %c0_i32_1 = arith.constant 0 : i32
    return %arg0, %c0_i32, %c0_i32_0 : i32, i32, i32
  }
  func.func @transform_1(%arg0: i32) -> (i32, i32, i32) {
    %c0_i32 = arith.constant 0 : i32
    %c0_i32_0 = arith.constant 0 : i32
    %c0_i32_1 = arith.constant 0 : i32
    return %arg0, %c0_i32, %c0_i32_0 : i32, i32, i32
  }
  func.func @transform_2(%arg0: i32) -> (i32, i32, i32) {
    %c0_i32 = arith.constant 0 : i32
    %c0_i32_0 = arith.constant 0 : i32
    %c0_i32_1 = arith.constant 0 : i32
    %c0_i32_2 = arith.constant 0 : i32
    return %c0_i32, %c0_i32_0, %c0_i32_1 : i32, i32, i32
  }
  func.func @transform_3(%arg0: i32) -> (i32, i32, i32) {
    %c0_i32 = arith.constant 0 : i32
    %c0_i32_0 = arith.constant 0 : i32
    %c0_i32_1 = arith.constant 0 : i32
    %c0_i32_2 = arith.constant 0 : i32
    return %c0_i32, %c0_i32_0, %c0_i32_1 : i32, i32, i32
  }
  func.func @transform_4(%arg0: i32) -> (i32, i32) {
    %c0_i32 = arith.constant 0 : i32
    %c0_i32_0 = arith.constant 0 : i32
    %c0_i32_1 = arith.constant 0 : i32
    return %c0_i32, %c0_i32_0 : i32, i32
  }
  func.func @transform_5(%arg0: i32) -> (i32, i32) {
    %c0_i32 = arith.constant 0 : i32
    %c0_i32_0 = arith.constant 0 : i32
    %c0_i32_1 = arith.constant 0 : i32
    return %c0_i32, %c0_i32_0 : i32, i32
  }
  func.func @transform_6(%arg0: i32) -> (i32, i32) {
    %c0_i32 = arith.constant 0 : i32
    %c0_i32_0 = arith.constant 0 : i32
    %c0_i32_1 = arith.constant 0 : i32
    return %c0_i32, %c0_i32_0 : i32, i32
  }
  func.func @transform_7(%arg0: i32) -> (i32, i32) {
    %c0_i32 = arith.constant 0 : i32
    %c0_i32_0 = arith.constant 0 : i32
    %c0_i32_1 = arith.constant 0 : i32
    return %c0_i32, %c0_i32_0 : i32, i32
  }
  func.func @transform_8(%arg0: i32) -> (i32, i32, i32) {
    %c0_i32 = arith.constant 0 : i32
    %c0_i32_0 = arith.constant 0 : i32
    %c0_i32_1 = arith.constant 0 : i32
    return %arg0, %c0_i32, %c0_i32_0 : i32, i32, i32
  }
}

</mosaic_0001>

<bundles_post_ra>
// kernel: fragnet_pretrain_forward.1
= control target key start
LH: loop header
LB: loop body
LE: loop exit
PB: predicated region body
PF: predicated region fallthrough
CT: control target
= control target key end

     0   :  { %s19717_s27 = smov 0   ;;  %s21689_s0 = inlined_call_operand.vmem [shape: bf16[16,128,128], index: 0, kind: input, shape index: {}]   ;;  %s21690_s1 = inlined_call_operand.vmem [shape: bf16[16,128,128], index: 1, kind: input, shape index: {}]   ;;  %s21691_s2 = inlined_call_operand.vmem [shape: bf16[4,128,128], index: 2, kind: input, shape index: {}]   ;;  %s21692_s3 = inlined_call_operand.vmem [shape: f32[4,1,128], index: 3, kind: input, shape index: {}]   ;;  %s21693_s4 = inlined_call_operand.vmem [shape: bf16[128,128], index: 4, kind: input, shape index: {}]   ;;  %s21694_s5 = inlined_call_operand.vmem [shape: f32[1,128], index: 5, kind: input, shape index: {}]   ;;  %s21695_s6 = inlined_call_operand.vmem [shape: bf16[128,128], index: 6, kind: input, shape index: {}]   ;;  %s21696_s7 = inlined_call_operand.vmem [shape: f32[1,128], index: 7, kind: input, shape index: {}]   ;;  %s21697_s8 = inlined_call_operand.vmem [shape: f32[16,128,128], index: 8, kind: output, shape index: {}]  }
   0x1 LB: > { %s13973_s28 = sadd.s32 4294967295, %s19670_s27   ;;  %p13977_p0 = scmp.ge.s32.totalorder %s19670_s27, 1  ;;  %s19670_s27 = sphi %s19717_s27, %s18_s27  }
   0x2   : > { %p276_p1 = scmp.lt.s32.totalorder %s19670_s27, 3 }
   0x4   : > { %p277_p2 = pnand %p13977_p0, %p276_p1 }
   0x5   : > { %v19144_v0 = vld [vmem:[%s21691_s2] sm:$0xff] (!%p277_p2)   ;;  %s13978_s9 = sshll.u32 (!%p277_p2), %s13973_s28, 3  ;;  %v19145_v1 = vld [vmem:[%s21691_s2 + $0x8] sm:$0xff] (!%p277_p2)   ;;  %v19146_v2 = vld [vmem:[%s21691_s2 + $0x10] sm:$0xff] (!%p277_p2)  }
   0x6   : > { %280 = sbr.rel (%p277_p2) target bundleno = 15798 (0x3db6), region = 52  ;;  %p319_p3 = scmp.lt.s32.totalorder (!%p277_p2), %s13978_s9, 15  ;;  %16576 = vmatprep.subr.bf16.mxu0 (!%p277_p2), %v19144_v0  ;;  %v19147_v3 = vld [vmem:[%s21691_s2 + $0x18] sm:$0xff] (!%p277_p2)   ;;  %v19148_v5 = vld [vmem:[%s21691_s2 + $0x20] sm:$0xff] (!%p277_p2)   ;;  %v19149_v6 = vld [vmem:[%s21691_s2 + $0x28] sm:$0xff] (!%p277_p2)  }
   0x7   : > { %16577 = vmatpush3.bf16.msra.mxu0 (!%p277_p2), %v19144_v0  ;;  %v19150_v7 = vld [vmem:[%s21691_s2 + $0x30] sm:$0xff] (!%p277_p2)   ;;  %v19151_v8 = vld [vmem:[%s21691_s2 + $0x38] sm:$0xff] (!%p277_p2)   ;;  %v19168_v17 = vld [vmem:[%s21691_s2 + $0x40] sm:$0xff] (!%p277_p2)  }
   0x8   : > { %16578 = vmatprep.subr.bf16.mxu0 (!%p277_p2), %v19145_v1  ;;  %v19169_v18 = vld [vmem:[%s21691_s2 + $0x48] sm:$0xff] (!%p277_p2)   ;;  %v19170_v19 = vld [vmem:[%s21691_s2 + $0x50] sm:$0xff] (!%p277_p2)   ;;  %v19171_v20 = vld [vmem:[%s21691_s2 + $0x58] sm:$0xff] (!%p277_p2)  }
   0x9   : > { %v19172_v21 = vld [vmem:[%s21691_s2 + $0x60] sm:$0xff] (!%p277_p2)   ;;  %v19173_v22 = vld [vmem:[%s21691_s2 + $0x68] sm:$0xff] (!%p277_p2)  }
   0xa   : > { %v13987_v23 = vld [vmem:[%s21692_s3] ss:$0 sm:$0xff] (!%p277_p2) }
   0xb   : > { %16579 = vmatpush3.bf16.msra.mxu0 (!%p277_p2), %v19145_v1 }
   0xc   : > { %16580 = vmatprep.subr.bf16.mxu0 (!%p277_p2), %v19146_v2 }
   0xd   : > { %s21699_s9 = smov (!%p319_p3, %s13978_s9), 15 }
   0xe   : > { %s15293_s14 = sshll.u32 %s21699_s9, 6  ;;  %s15295_s30 = sshll.u32 %s21699_s9, 7 }
   0xf   : > { %s19740_s17 = scalar_lea.vmem %s21689_s0, %s15293_s14  ;;  %16581 = vmatpush3.bf16.msra.mxu0 %v19146_v2  ;;  %s19755_s26 = scalar_lea.vmem %s21690_s1, %s15293_s14 }
  0x10   : > { %v19152_v4 = vld [vmem:[%s19740_s17] sm:$0xff]   ;;  %16582 = vmatprep.subr.bf16.mxu0 %v19147_v3  ;;  %v19153_v9 = vld [vmem:[%s19740_s17 + $0x8] sm:$0xff]   ;;  %v19154_v10 = vld [vmem:[%s19740_s17 + $0x10] sm:$0xff]   ;;  %s20066_s14 = scalar_lea.vmem %s21697_s8, %s15295_s30 }
  0x11   : > { %16592 = vmatprep.mubr.bf16.mxu0 %v19152_v4  ;;  %v19155_v11 = vld [vmem:[%s19740_s17 + $0x18] sm:$0xff]   ;;  %v19156_v12 = vld [vmem:[%s19740_s17 + $0x20] sm:$0xff]   ;;  %v19157_v13 = vld [vmem:[%s19740_s17 + $0x28] sm:$0xff]  }
  0x12   : > { %v19158_v14 = vld [vmem:[%s19740_s17 + $0x30] sm:$0xff]   ;;  %v19159_v15 = vld [vmem:[%s19740_s17 + $0x38] sm:$0xff]   ;;  %v19160_v16 = vld [vmem:[%s19755_s26] sm:$0xff]  }
  0x13   : > { %16583 = vmatpush3.bf16.msra.mxu0 %v19147_v3  ;;  %16624 = vmatprep.mubr.bf16.mxu1 %v19160_v16  ;;  %v19793_v0 = vld [vmem:[%s19755_s26 + $0x8] sm:$0xff]   ;;  %v19796_v1 = vld [vmem:[%s19755_s26 + $0x10] sm:$0xff]   ;;  %v19801_v2 = vld [vmem:[%s19755_s26 + $0x18] sm:$0xff]  }
  0x14   : > { %16584 = vmatprep.subr.bf16.mxu0 %v19148_v5  ;;  %v19804_v3 = vld [vmem:[%s19755_s26 + $0x20] sm:$0xff]   ;;  %v19809_v4 = vld [vmem:[%s19755_s26 + $0x28] sm:$0xff]  }
  0x17   : > { %16585 = vmatpush3.bf16.msra.mxu0 %v19148_v5  ;;  %v19812_v5 = vld [vmem:[%s19755_s26 + $0x30] sm:$0xff]  }
  0x18   : > { %16586 = vmatprep.subr.bf16.mxu0 %v19149_v6 }
  0x1b   : > { %16587 = vmatpush3.bf16.msra.mxu0 %v19149_v6  ;;  %v19817_v6 = vld [vmem:[%s19755_s26 + $0x38] sm:$0xff]  }
  0x1c   : > { %16588 = vmatprep.subr.bf16.mxu0 %v19150_v7 }
  0x1f   : > { %16589 = vmatpush3.bf16.msra.mxu0 %v19150_v7  ;;  %v19821_v7 = vld [vmem:[%s19755_s26] sm:$0xff]  }
  0x20   : > { %16590 = vmatprep.subr.bf16.mxu0 %v19151_v8 }
  0x23   : > { %16591 = vmatpush3.bf16.msra.mxu0 %v19151_v8  ;;  %v19174_v8 = vld [vmem:[%s21691_s2 + $0x70] sm:$0xff]  }
  0x24   : > { %16640 = vmatprep.subr.bf16.mxu0 %v19168_v17 }
  0x26   : > { %16593 = vmatmul.mubr.bf16.vlgmr.msra.gmra.mrb[0].mxu0 %v19153_v9  ;;  %v19175_v9 = vld [vmem:[%s21691_s2 + $0x78] sm:$0xff]  }
  0x27   : > { %16596 = vmatprep.mubr.bf16.mxu0 %v19154_v10  ;;  %16641 = vmatpush3.bf16.msra.mxu0 %v19168_v17 }
  0x28   : > { %16642 = vmatprep.subr.bf16.mxu0 %v19169_v18 }
  0x2b   : > { %16643 = vmatpush3.bf16.msra.mxu0 %v19169_v18 }
  0x2c   : > { %16644 = vmatprep.subr.bf16.mxu0 %v19170_v19 }
  0x2e   : > { %16597 = vmatmul.mubr.bf16.gmra.mrb[4].mxu0 %v19155_v11 }
  0x2f   : > { %16600 = vmatprep.mubr.bf16.mxu0 %v19156_v12  ;;  %16645 = vmatpush3.bf16.msra.mxu0 %v19170_v19 }
  0x30   : > { %16646 = vmatprep.subr.bf16.mxu0 %v19171_v20 }
  0x33   : > { %16647 = vmatpush3.bf16.msra.mxu0 %v19171_v20 }
  0x34   : > { %16648 = vmatprep.subr.bf16.mxu0 %v19172_v21 }
  0x36   : > { %16601 = vmatmul.mubr.bf16.gmra.mrb[8].mxu0 %v19157_v13 }
  0x37   : > { %16604 = vmatprep.mubr.bf16.mxu0 %v19158_v14  ;;  %16649 = vmatpush3.bf16.msra.mxu0 %v19172_v21 }
  0x38   : > { %16650 = vmatprep.subr.bf16.mxu0 %v19173_v22 }
  0x3b   : > { %16651 = vmatpush3.bf16.msra.mxu0 %v19173_v22 }
  0x3c   : > { %16652 = vmatprep.subr.bf16.mxu0 %v19174_v8 }
  0x3e   : > { %16605 = vmatmul.mubr.bf16.gmra.mrb[12].mxu0 %v19159_v15 }
  0x3f   : > { %16653 = vmatpush3.bf16.msra.mxu0 %v19174_v8 }
  0x40   : > { %16654 = vmatprep.subr.bf16.mxu0 %v19175_v9 }
  0x43   : > { %16655 = vmatpush3.bf16.msra.mxu0 %v19175_v9 }
  0xf9   : > { %v16594_v24 = vpop.f32.mrb[0].mxu0 }
  0xfa   : > { %v525_v25 = vpop.f32.mrb[1].mxu0  ;;  %v534_v27 = vadd.f32 %v16594_v24, %v13987_v23 }
  0xfb   : > { %v16595_v26 = vpop.f32.mrb[2].mxu0  ;;  %v526_v30 = vadd.f32 %v13987_v23, %v525_v25 }
  0xfc   : > { %v537_v28 = vadd.f32 %v16595_v26, %v13987_v23  ;;  %v528_v29 = vpop.f32.mrb[3].mxu0 }
  0xfd   : > { %v529_v31 = vadd.f32 %v13987_v23, %v528_v29 }
  0xfe   : > { %v589_v32 = vpack.c.bf16 %v537_v28, %v534_v27 }
  0xff   : > { %v588_v33 = vpack.c.bf16 %v529_v31, %v526_v30 }
 0x101   : > { %v16598_v34 = vpop.f32.mrb[4].mxu0  ;;  %16608 = vmatprep.subr.bf16.mxu1 %v588_v33 }
 0x102   : > { %v541_v35 = vpop.f32.mrb[5].mxu0  ;;  %16609 = vmatpush3.bf16.msra.mxu1 %v588_v33  ;;  %v550_v37 = vadd.f32 %v16598_v34, %v13987_v23 }
 0x103   : > { %v16599_v36 = vpop.f32.mrb[6].mxu0  ;;  %16610 = vmatprep.subr.bf16.mxu1 %v589_v32  ;;  %v542_v40 = vadd.f32 %v13987_v23, %v541_v35 }
 0x104   : > { %v553_v38 = vadd.f32 %v16599_v36, %v13987_v23  ;;  %v544_v39 = vpop.f32.mrb[7].mxu0 }
 0x105   : > { %v545_v41 = vadd.f32 %v13987_v23, %v544_v39 }
 0x106   : > { %16611 = vmatpush3.bf16.msra.mxu1 %v589_v32  ;;  %v591_v42 = vpack.c.bf16 %v553_v38, %v550_v37 }
 0x107   : > { %v590_v43 = vpack.c.bf16 %v545_v41, %v542_v40 }
 0x109   : > { %v16602_v44 = vpop.f32.mrb[8].mxu0  ;;  %16612 = vmatprep.subr.bf16.mxu1 %v590_v43 }
 0x10a   : > { %v557_v45 = vpop.f32.mrb[9].mxu0  ;;  %16613 = vmatpush3.bf16.msra.mxu1 %v590_v43  ;;  %v566_v47 = vadd.f32 %v16602_v44, %v13987_v23 }
 0x10b   : > { %v16603_v46 = vpop.f32.mrb[10].mxu0  ;;  %16614 = vmatprep.subr.bf16.mxu1 %v591_v42  ;;  %v558_v50 = vadd.f32 %v13987_v23, %v557_v45 }
 0x10c   : > { %v569_v48 = vadd.f32 %v16603_v46, %v13987_v23  ;;  %v560_v49 = vpop.f32.mrb[11].mxu0 }
 0x10d   : > { %v561_v51 = vadd.f32 %v13987_v23, %v560_v49 }
 0x10e   : > { %16615 = vmatpush3.bf16.msra.mxu1 %v591_v42  ;;  %v593_v52 = vpack.c.bf16 %v569_v48, %v566_v47 }
 0x10f   : > { %v592_v53 = vpack.c.bf16 %v561_v51, %v558_v50  ;;  %v19176_v50 = vld [vmem:[%s21691_s2 + $0x80] sm:$0xff]   ;;  %v19177_v51 = vld [vmem:[%s21691_s2 + $0x88] sm:$0xff]  }
 0x110   : > { %16704 = vmatprep.subr.bf16.mxu0 %v19176_v50 }
 0x111   : > { %v16606_v54 = vpop.f32.mrb[12].mxu0  ;;  %16616 = vmatprep.subr.bf16.mxu1 %v592_v53 }
 0x112   : > { %v573_v55 = vpop.f32.mrb[13].mxu0  ;;  %16617 = vmatpush3.bf16.msra.mxu1 %v592_v53  ;;  %v582_v57 = vadd.f32 %v16606_v54, %v13987_v23  ;;  %v19179_v53 = vld [vmem:[%s21691_s2 + $0x98] sm:$0xff]   ;;  %v19180_v54 = vld [vmem:[%s21691_s2 + $0xa0] sm:$0xff]  }
 0x113   : > { %v16607_v56 = vpop.f32.mrb[14].mxu0  ;;  %16618 = vmatprep.subr.bf16.mxu1 %v593_v52  ;;  %v574_v60 = vadd.f32 %v13987_v23, %v573_v55  ;;  %v19181_v55 = vld [vmem:[%s21691_s2 + $0xa8] sm:$0xff]  }
 0x114   : > { %v585_v58 = vadd.f32 %v16607_v56, %v13987_v23  ;;  %v576_v59 = vpop.f32.mrb[15].mxu0 }
 0x115   : > { %v577_v61 = vadd.f32 %v13987_v23, %v576_v59 }
 0x116   : > { %16619 = vmatpush3.bf16.msra.mxu1 %v593_v52  ;;  %v595_v62 = vpack.c.bf16 %v585_v58, %v582_v57  ;;  %v19178_v52 = vld [vmem:[%s21691_s2 + $0x90] sm:$0xff]   ;;  %v14029_v57 = vld [vmem:[%s21692_s3 + $0x1] ss:$0 sm:$0xff] }
 0x117   : > { %v594_v63 = vpack.c.bf16 %v577_v61, %v574_v60 }
 0x119   : > { %16620 = vmatprep.subr.bf16.mxu1 %v594_v63 }
 0x11a   : > { %16621 = vmatpush3.bf16.msra.mxu1 %v594_v63 }
 0x11b   : > { %16622 = vmatprep.subr.bf16.mxu1 %v595_v62 }
 0x11e   : > { %16623 = vmatpush3.bf16.msra.mxu1 %v595_v62 }
 0x121   : > { %16625 = vmatmul.mubr.bf16.vlgmr.msra.gmra.mrb[0].mxu1 %v19793_v0 }
 0x122   : > { %16628 = vmatprep.mubr.bf16.mxu1 %v19796_v1 }
 0x129   : > { %16629 = vmatmul.mubr.bf16.gmra.mrb[4].mxu1 %v19801_v2 }
 0x12a   : > { %16632 = vmatprep.mubr.bf16.mxu1 %v19804_v3 }
 0x131   : > { %16633 = vmatmul.mubr.bf16.gmra.mrb[8].mxu1 %v19809_v4 }
 0x132   : > { %16636 = vmatprep.mubr.bf16.mxu1 %v19812_v5 }
 0x139   : > { %16637 = vmatmul.mubr.bf16.gmra.mrb[12].mxu1 %v19817_v6 }
 0x13a   : > { %16688 = vmatprep.mubr.bf16.mxu1 %v19821_v7 }
 0x1f4   : > { %v16626_v10 = vpop.f32.mrb[0].mxu1 }
 0x1f5   : > { %v678_v11 = vpop.f32.mrb[1].mxu1  ;;  %v743_v13 = vmax.f32 %v16626_v10, 0.0 }
 0x1f6   : > { %v16627_v12 = vpop.f32.mrb[2].mxu1  ;;  %v741_v16 = vmax.f32 %v678_v11, 0.0 }
 0x1f7   : > { %v744_v14 = vmax.f32 %v16627_v12, 0.0  ;;  %v681_v15 = vpop.f32.mrb[3].mxu1 }
 0x1f8   : > { %v742_v17 = vmax.f32 %v681_v15, 0.0 }
 0x1f9   : > { %v758_v18 = vpack.c.bf16 %v744_v14, %v743_v13 }
 0x1fa   : > { %v757_v19 = vpack.c.bf16 %v742_v17, %v741_v16 }
 0x1fc   : > { %v16630_v20 = vpop.f32.mrb[4].mxu1  ;;  %16656 = vmatprep.mubr.bf16.mxu0 %v757_v19 }
 0x1fd   : > { %v694_v21 = vpop.f32.mrb[5].mxu1  ;;  %16657 = vmatmul.mubr.bf16.vlgmr.msra.gmra.mrb[16].mxu0 %v758_v18  ;;  %v747_v23 = vmax.f32 %v16630_v20, 0.0 }
 0x1fe   : > { %v16631_v22 = vpop.f32.mrb[6].mxu1  ;;  %v745_v26 = vmax.f32 %v694_v21, 0.0  ;;  %16705 = vmatpush3.bf16.msra.mxu0 %v19176_v50 }
 0x1ff   : > { %v748_v24 = vmax.f32 %v16631_v22, 0.0  ;;  %v697_v25 = vpop.f32.mrb[7].mxu1  ;;  %16706 = vmatprep.subr.bf16.mxu0 %v19177_v51 }
 0x200   : > { %v746_v27 = vmax.f32 %v697_v25, 0.0 }
 0x201   : > { %v760_v28 = vpack.c.bf16 %v748_v24, %v747_v23 }
 0x202   : > { %v759_v29 = vpack.c.bf16 %v746_v27, %v745_v26  ;;  %16707 = vmatpush3.bf16.msra.mxu0 %v19177_v51 }
 0x203   : > { %16708 = vmatprep.subr.bf16.mxu0 %v19178_v52 }
 0x204   : > { %v16634_v30 = vpop.f32.mrb[8].mxu1  ;;  %16660 = vmatprep.mubr.bf16.mxu0 %v759_v29 }
 0x205   : > { %v710_v31 = vpop.f32.mrb[9].mxu1  ;;  %16661 = vmatmul.mubr.bf16.gmra.mrb[20].mxu0 %v760_v28  ;;  %v751_v33 = vmax.f32 %v16634_v30, 0.0 }
 0x206   : > { %v16635_v32 = vpop.f32.mrb[10].mxu1  ;;  %v749_v36 = vmax.f32 %v710_v31, 0.0  ;;  %16709 = vmatpush3.bf16.msra.mxu0 %v19178_v52 }
 0x207   : > { %v752_v34 = vmax.f32 %v16635_v32, 0.0  ;;  %v713_v35 = vpop.f32.mrb[11].mxu1  ;;  %16710 = vmatprep.subr.bf16.mxu0 %v19179_v53 }
 0x208   : > { %v750_v37 = vmax.f32 %v713_v35, 0.0 }
 0x209   : > { %v762_v38 = vpack.c.bf16 %v752_v34, %v751_v33 }
 0x20a   : > { %v761_v39 = vpack.c.bf16 %v750_v37, %v749_v36  ;;  %16711 = vmatpush3.bf16.msra.mxu0 %v19179_v53 }
 0x20b   : > { %16712 = vmatprep.subr.bf16.mxu0 %v19180_v54 }
 0x20c   : > { %v16638_v40 = vpop.f32.mrb[12].mxu1  ;;  %16664 = vmatprep.mubr.bf16.mxu0 %v761_v39 }
 0x20d   : > { %v726_v41 = vpop.f32.mrb[13].mxu1  ;;  %16665 = vmatmul.mubr.bf16.gmra.mrb[24].mxu0 %v762_v38  ;;  %v755_v43 = vmax.f32 %v16638_v40, 0.0 }
 0x20e   : > { %v16639_v42 = vpop.f32.mrb[14].mxu1  ;;  %v753_v46 = vmax.f32 %v726_v41, 0.0  ;;  %16713 = vmatpush3.bf16.msra.mxu0 %v19180_v54  ;;  %v19182_v41 = vld [vmem:[%s21691_s2 + $0xb0] sm:$0xff]  }
 0x20f   : > { %v756_v44 = vmax.f32 %v16639_v42, 0.0  ;;  %v729_v45 = vpop.f32.mrb[15].mxu1  ;;  %16714 = vmatprep.subr.bf16.mxu0 %v19181_v55 }
 0x210   : > { %v754_v47 = vmax.f32 %v729_v45, 0.0 }
 0x211   : > { %v764_v48 = vpack.c.bf16 %v756_v44, %v755_v43 }
 0x212   : > { %v763_v49 = vpack.c.bf16 %v754_v47, %v753_v46  ;;  %16715 = vmatpush3.bf16.msra.mxu0 %v19181_v55 }
 0x213   : > { %16716 = vmatprep.subr.bf16.mxu0 %v19182_v41 }
 0x214   : > { %16668 = vmatprep.mubr.bf16.mxu0 %v763_v49 }
 0x215   : > { %16669 = vmatmul.mubr.bf16.gmra.mrb[28].mxu0 %v764_v48 }
 0x216   : > { %16717 = vmatpush3.bf16.msra.mxu0 %v19182_v41 }
 0x2d0   : > { %v16658_v56 = vpop.f32.mrb[16].mxu0 }
 0x2d1   : > { %v872_v58 = vpop.f32.mrb[17].mxu0  ;;  %v881_v60 = vadd.f32 %v16658_v56, %v14029_v57 }
 0x2d2   : > { %v16659_v59 = vpop.f32.mrb[18].mxu0  ;;  %v873_v63 = vadd.f32 %v14029_v57, %v872_v58 }
 0x2d3   : > { %v884_v61 = vadd.f32 %v16659_v59, %v14029_v57  ;;  %v875_v62 = vpop.f32.mrb[19].mxu0 }
 0x2d4   : > { %v876_v8 = vadd.f32 %v14029_v57, %v875_v62 }
 0x2d5   : > { %v936_v9 = vpack.c.bf16 %v884_v61, %v881_v60 }
 0x2d6   : > { %v935_v10 = vpack.c.bf16 %v876_v8, %v873_v63 }
 0x2d8   : > { %v16662_v11 = vpop.f32.mrb[20].mxu0  ;;  %16672 = vmatprep.subr.bf16.mxu1 %v935_v10 }
 0x2d9   : > { %v888_v12 = vpop.f32.mrb[21].mxu0  ;;  %16673 = vmatpush3.bf16.msra.mxu1 %v935_v10  ;;  %v897_v14 = vadd.f32 %v16662_v11, %v14029_v57 }
 0x2da   : > { %v16663_v13 = vpop.f32.mrb[22].mxu0  ;;  %16674 = vmatprep.subr.bf16.mxu1 %v936_v9  ;;  %v889_v17 = vadd.f32 %v14029_v57, %v888_v12 }
 0x2db   : > { %v900_v15 = vadd.f32 %v16663_v13, %v14029_v57  ;;  %v891_v16 = vpop.f32.mrb[23].mxu0 }
 0x2dc   : > { %v892_v18 = vadd.f32 %v14029_v57, %v891_v16 }
 0x2dd   : > { %16675 = vmatpush3.bf16.msra.mxu1 %v936_v9  ;;  %v938_v19 = vpack.c.bf16 %v900_v15, %v897_v14 }
 0x2de   : > { %v937_v20 = vpack.c.bf16 %v892_v18, %v889_v17 }
 0x2e0   : > { %v16666_v21 = vpop.f32.mrb[24].mxu0  ;;  %16676 = vmatprep.subr.bf16.mxu1 %v937_v20 }
 0x2e1   : > { %v904_v22 = vpop.f32.mrb[25].mxu0  ;;  %16677 = vmatpush3.bf16.msra.mxu1 %v937_v20  ;;  %v913_v24 = vadd.f32 %v16666_v21, %v14029_v57 }
 0x2e2   : > { %v16667_v23 = vpop.f32.mrb[26].mxu0  ;;  %16678 = vmatprep.subr.bf16.mxu1 %v938_v19  ;;  %v905_v27 = vadd.f32 %v14029_v57, %v904_v22 }
 0x2e3   : > { %v916_v25 = vadd.f32 %v16667_v23, %v14029_v57  ;;  %v907_v26 = vpop.f32.mrb[27].mxu0 }
 0x2e4   : > { %v908_v28 = vadd.f32 %v14029_v57, %v907_v26  ;;  %v19185_v26 = vld [vmem:[%s21691_s2 + $0xc8] sm:$0xff]  }
 0x2e5   : > { %16679 = vmatpush3.bf16.msra.mxu1 %v938_v19  ;;  %v940_v29 = vpack.c.bf16 %v916_v25, %v913_v24  ;;  %v19184_v25 = vld [vmem:[%s21691_s2 + $0xc0] sm:$0xff]  }
 0x2e6   : > { %v939_v30 = vpack.c.bf16 %v908_v28, %v905_v27  ;;  %v19186_v27 = vld [vmem:[%s21691_s2 + $0xd0] sm:$0xff]   ;;  %v19187_v28 = vld [vmem:[%s21691_s2 + $0xd8] sm:$0xff]  }
 0x2e8   : > { %v16670_v31 = vpop.f32.mrb[28].mxu0  ;;  %16680 = vmatprep.subr.bf16.mxu1 %v939_v30 }
 0x2e9   : > { %v920_v32 = vpop.f32.mrb[29].mxu0  ;;  %16681 = vmatpush3.bf16.msra.mxu1 %v939_v30  ;;  %v929_v34 = vadd.f32 %v16670_v31, %v14029_v57  ;;  %v19189_v30 = vld [vmem:[%s21691_s2 + $0xe8] sm:$0xff]  }
 0x2ea   : > { %v16671_v33 = vpop.f32.mrb[30].mxu0  ;;  %16682 = vmatprep.subr.bf16.mxu1 %v940_v29  ;;  %v921_v37 = vadd.f32 %v14029_v57, %v920_v32  ;;  %v14055_v32 = vld [vmem:[%s21692_s3 + $0x2] ss:$0 sm:$0xff] }
 0x2eb   : > { %v932_v35 = vadd.f32 %v16671_v33, %v14029_v57  ;;  %v923_v36 = vpop.f32.mrb[31].mxu0 }
 0x2ec   : > { %v924_v38 = vadd.f32 %v14029_v57, %v923_v36 }
 0x2ed   : > { %16683 = vmatpush3.bf16.msra.mxu1 %v940_v29  ;;  %v942_v39 = vpack.c.bf16 %v932_v35, %v929_v34  ;;  %v19188_v29 = vld [vmem:[%s21691_s2 + $0xe0] sm:$0xff]  }
 0x2ee   : > { %v941_v40 = vpack.c.bf16 %v924_v38, %v921_v37 }
 0x2f0   : > { %16684 = vmatprep.subr.bf16.mxu1 %v941_v40 }
 0x2f1   : > { %16685 = vmatpush3.bf16.msra.mxu1 %v941_v40 }
 0x2f2   : > { %16686 = vmatprep.subr.bf16.mxu1 %v942_v39 }
 0x2f5   : > { %16687 = vmatpush3.bf16.msra.mxu1 %v942_v39 }
 0x2f8   : > { %16689 = vmatmul.mubr.bf16.vlgmr.msra.gmra.mrb[16].mxu1 %v19793_v0  ;;  %v19183_v0 = vld [vmem:[%s21691_s2 + $0xb8] sm:$0xff]  }
 0x2f9   : > { %16692 = vmatprep.mubr.bf16.mxu1 %v19796_v1  ;;  %16718 = vmatprep.subr.bf16.mxu0 %v19183_v0 }
 0x2fa   : > { %16719 = vmatpush3.bf16.msra.mxu0 %v19183_v0 }
 0x2fb   : > { %16768 = vmatprep.subr.bf16.mxu0 %v19184_v25 }
 0x300   : > { %16693 = vmatmul.mubr.bf16.gmra.mrb[20].mxu1 %v19801_v2 }
 0x301   : > { %16696 = vmatprep.mubr.bf16.mxu1 %v19804_v3 }
 0x308   : > { %16697 = vmatmul.mubr.bf16.gmra.mrb[24].mxu1 %v19809_v4 }
 0x309   : > { %16700 = vmatprep.mubr.bf16.mxu1 %v19812_v5 }
 0x310   : > { %16701 = vmatmul.mubr.bf16.gmra.mrb[28].mxu1 %v19817_v6 }
 0x311   : > { %16752 = vmatprep.mubr.bf16.mxu1 %v19821_v7 }
 0x3cb   : > { %v16690_v1 = vpop.f32.mrb[16].mxu1 }
 0x3cc   : > { %v977_v42 = vpop.f32.mrb[17].mxu1  ;;  %v1042_v44 = vmax.f32 %v16690_v1, 0.0 }
 0x3cd   : > { %v16691_v43 = vpop.f32.mrb[18].mxu1  ;;  %v1040_v47 = vmax.f32 %v977_v42, 0.0 }
 0x3ce   : > { %v1043_v45 = vmax.f32 %v16691_v43, 0.0  ;;  %v980_v46 = vpop.f32.mrb[19].mxu1 }
 0x3cf   : > { %v1041_v48 = vmax.f32 %v980_v46, 0.0 }
 0x3d0   : > { %v1057_v49 = vpack.c.bf16 %v1043_v45, %v1042_v44 }
 0x3d1   : > { %v1056_v50 = vpack.c.bf16 %v1041_v48, %v1040_v47 }
 0x3d3   : > { %v16694_v51 = vpop.f32.mrb[20].mxu1  ;;  %16720 = vmatprep.mubr.bf16.mxu0 %v1056_v50 }
 0x3d4   : > { %v993_v52 = vpop.f32.mrb[21].mxu1  ;;  %16721 = vmatmul.mubr.bf16.vlgmr.msra.gmra.mrb[32].mxu0 %v1057_v49  ;;  %v1046_v54 = vmax.f32 %v16694_v51, 0.0 }
 0x3d5   : > { %v16695_v53 = vpop.f32.mrb[22].mxu1  ;;  %v1044_v57 = vmax.f32 %v993_v52, 0.0  ;;  %16769 = vmatpush3.bf16.msra.mxu0 %v19184_v25 }
 0x3d6   : > { %v1047_v55 = vmax.f32 %v16695_v53, 0.0  ;;  %v996_v56 = vpop.f32.mrb[23].mxu1  ;;  %16770 = vmatprep.subr.bf16.mxu0 %v19185_v26 }
 0x3d7   : > { %v1045_v58 = vmax.f32 %v996_v56, 0.0 }
 0x3d8   : > { %v1059_v59 = vpack.c.bf16 %v1047_v55, %v1046_v54 }
 0x3d9   : > { %v1058_v60 = vpack.c.bf16 %v1045_v58, %v1044_v57  ;;  %16771 = vmatpush3.bf16.msra.mxu0 %v19185_v26 }
 0x3da   : > { %16772 = vmatprep.subr.bf16.mxu0 %v19186_v27 }
 0x3db   : > { %v16698_v61 = vpop.f32.mrb[24].mxu1  ;;  %16724 = vmatprep.mubr.bf16.mxu0 %v1058_v60 }
 0x3dc   : > { %v1009_v62 = vpop.f32.mrb[25].mxu1  ;;  %16725 = vmatmul.mubr.bf16.gmra.mrb[36].mxu0 %v1059_v59  ;;  %v1050_v8 = vmax.f32 %v16698_v61, 0.0 }
 0x3dd   : > { %v16699_v63 = vpop.f32.mrb[26].mxu1  ;;  %v1048_v11 = vmax.f32 %v1009_v62, 0.0  ;;  %16773 = vmatpush3.bf16.msra.mxu0 %v19186_v27 }
 0x3de   : > { %v1051_v9 = vmax.f32 %v16699_v63, 0.0  ;;  %v1012_v10 = vpop.f32.mrb[27].mxu1  ;;  %16774 = vmatprep.subr.bf16.mxu0 %v19187_v28 }
 0x3df   : > { %v1049_v12 = vmax.f32 %v1012_v10, 0.0 }
 0x3e0   : > { %v1061_v13 = vpack.c.bf16 %v1051_v9, %v1050_v8 }
 0x3e1   : > { %v1060_v14 = vpack.c.bf16 %v1049_v12, %v1048_v11  ;;  %16775 = vmatpush3.bf16.msra.mxu0 %v19187_v28 }
 0x3e2   : > { %16776 = vmatprep.subr.bf16.mxu0 %v19188_v29 }
 0x3e3   : > { %v16702_v15 = vpop.f32.mrb[28].mxu1  ;;  %16728 = vmatprep.mubr.bf16.mxu0 %v1060_v14  ;;  %v19887_v14 = vld [vmem:[%s19755_s26 + $0x8] sm:$0xff]  }
 0x3e4   : > { %v1025_v16 = vpop.f32.mrb[29].mxu1  ;;  %16729 = vmatmul.mubr.bf16.gmra.mrb[40].mxu0 %v1061_v13  ;;  %v1054_v18 = vmax.f32 %v16702_v15, 0.0  ;;  %v19891_v15 = vld [vmem:[%s19755_s26 + $0x10] sm:$0xff]  }
 0x3e5   : > { %v16703_v17 = vpop.f32.mrb[30].mxu1  ;;  %v1052_v21 = vmax.f32 %v1025_v16, 0.0  ;;  %16777 = vmatpush3.bf16.msra.mxu0 %v19188_v29  ;;  %v19190_v16 = vld [vmem:[%s21691_s2 + $0xf0] sm:$0xff]  }
 0x3e6   : > { %v1055_v19 = vmax.f32 %v16703_v17, 0.0  ;;  %v1028_v20 = vpop.f32.mrb[31].mxu1  ;;  %16778 = vmatprep.subr.bf16.mxu0 %v19189_v30 }
 0x3e7   : > { %v1053_v22 = vmax.f32 %v1028_v20, 0.0 }
 0x3e8   : > { %v1063_v23 = vpack.c.bf16 %v1055_v19, %v1054_v18 }
 0x3e9   : > { %v1062_v24 = vpack.c.bf16 %v1053_v22, %v1052_v21  ;;  %16779 = vmatpush3.bf16.msra.mxu0 %v19189_v30 }
 0x3ea   : > { %16780 = vmatprep.subr.bf16.mxu0 %v19190_v16 }
 0x3eb   : > { %16732 = vmatprep.mubr.bf16.mxu0 %v1062_v24 }
 0x3ec   : > { %16733 = vmatmul.mubr.bf16.gmra.mrb[44].mxu0 %v1063_v23 }
 0x3ed   : > { %16781 = vmatpush3.bf16.msra.mxu0 %v19190_v16 }
 0x4a7   : > { %v16722_v31 = vpop.f32.mrb[32].mxu0 }
 0x4a8   : > { %v1171_v33 = vpop.f32.mrb[33].mxu0  ;;  %v1180_v35 = vadd.f32 %v16722_v31, %v14055_v32 }
 0x4a9   : > { %v16723_v34 = vpop.f32.mrb[34].mxu0  ;;  %v1172_v38 = vadd.f32 %v14055_v32, %v1171_v33 }
 0x4aa   : > { %v1183_v36 = vadd.f32 %v16723_v34, %v14055_v32  ;;  %v1174_v37 = vpop.f32.mrb[35].mxu0 }
 0x4ab   : > { %v1175_v39 = vadd.f32 %v14055_v32, %v1174_v37 }
 0x4ac   : > { %v1235_v40 = vpack.c.bf16 %v1183_v36, %v1180_v35 }
 0x4ad   : > { %v1234_v41 = vpack.c.bf16 %v1175_v39, %v1172_v38 }
 0x4af   : > { %v16726_v0 = vpop.f32.mrb[36].mxu0  ;;  %16736 = vmatprep.subr.bf16.mxu1 %v1234_v41 }
 0x4b0   : > { %v1187_v1 = vpop.f32.mrb[37].mxu0  ;;  %16737 = vmatpush3.bf16.msra.mxu1 %v1234_v41  ;;  %v1196_v43 = vadd.f32 %v16726_v0, %v14055_v32 }
 0x4b1   : > { %v16727_v42 = vpop.f32.mrb[38].mxu0  ;;  %16738 = vmatprep.subr.bf16.mxu1 %v1235_v40  ;;  %v1188_v46 = vadd.f32 %v14055_v32, %v1187_v1 }
 0x4b2   : > { %v1199_v44 = vadd.f32 %v16727_v42, %v14055_v32  ;;  %v1190_v45 = vpop.f32.mrb[39].mxu0 }
 0x4b3   : > { %v1191_v47 = vadd.f32 %v14055_v32, %v1190_v45 }
 0x4b4   : > { %16739 = vmatpush3.bf16.msra.mxu1 %v1235_v40  ;;  %v1237_v48 = vpack.c.bf16 %v1199_v44, %v1196_v43 }
 0x4b5   : > { %v1236_v49 = vpack.c.bf16 %v1191_v47, %v1188_v46 }
 0x4b7   : > { %v16730_v50 = vpop.f32.mrb[40].mxu0  ;;  %16740 = vmatprep.subr.bf16.mxu1 %v1236_v49 }
 0x4b8   : > { %v1203_v51 = vpop.f32.mrb[41].mxu0  ;;  %16741 = vmatpush3.bf16.msra.mxu1 %v1236_v49  ;;  %v1212_v53 = vadd.f32 %v16730_v50, %v14055_v32  ;;  %v19192_v50 = vld [vmem:[%s21693_s4] sm:$0xff]  }
 0x4b9   : > { %v16731_v52 = vpop.f32.mrb[42].mxu0  ;;  %16742 = vmatprep.subr.bf16.mxu1 %v1237_v48  ;;  %v1204_v56 = vadd.f32 %v14055_v32, %v1203_v51  ;;  %v19193_v51 = vld [vmem:[%s21693_s4 + $0x8] sm:$0xff]  }
 0x4ba   : > { %v1215_v54 = vadd.f32 %v16731_v52, %v14055_v32  ;;  %v1206_v55 = vpop.f32.mrb[43].mxu0  ;;  %v19194_v52 = vld [vmem:[%s21693_s4 + $0x10] sm:$0xff]  }
 0x4bb   : > { %v1207_v57 = vadd.f32 %v14055_v32, %v1206_v55  ;;  %v19197_v55 = vld [vmem:[%s21693_s4 + $0x28] sm:$0xff]  }
 0x4bc   : > { %16743 = vmatpush3.bf16.msra.mxu1 %v1237_v48  ;;  %v1239_v58 = vpack.c.bf16 %v1215_v54, %v1212_v53  ;;  %v19195_v53 = vld [vmem:[%s21693_s4 + $0x18] sm:$0xff]   ;;  %v19196_v54 = vld [vmem:[%s21693_s4 + $0x20] sm:$0xff]  }
 0x4bd   : > { %v1238_v59 = vpack.c.bf16 %v1207_v57, %v1204_v56  ;;  %v14081_v57 = vld [vmem:[%s21692_s3 + $0x3] ss:$0 sm:$0xff] }
 0x4bf   : > { %v16734_v60 = vpop.f32.mrb[44].mxu0  ;;  %16744 = vmatprep.subr.bf16.mxu1 %v1238_v59 }
 0x4c0   : > { %v1219_v61 = vpop.f32.mrb[45].mxu0  ;;  %16745 = vmatpush3.bf16.msra.mxu1 %v1238_v59  ;;  %v1228_v63 = vadd.f32 %v16734_v60, %v14055_v32 }
 0x4c1   : > { %v16735_v62 = vpop.f32.mrb[46].mxu0  ;;  %16746 = vmatprep.subr.bf16.mxu1 %v1239_v58  ;;  %v1220_v10 = vadd.f32 %v14055_v32, %v1219_v61 }
 0x4c2   : > { %v1231_v8 = vadd.f32 %v16735_v62, %v14055_v32  ;;  %v1222_v9 = vpop.f32.mrb[47].mxu0 }
 0x4c3   : > { %v1223_v11 = vadd.f32 %v14055_v32, %v1222_v9 }
 0x4c4   : > { %16747 = vmatpush3.bf16.msra.mxu1 %v1239_v58  ;;  %v1241_v12 = vpack.c.bf16 %v1231_v8, %v1228_v63 }
 0x4c5   : > { %v1240_v13 = vpack.c.bf16 %v1223_v11, %v1220_v10 }
 0x4c7   : > { %16748 = vmatprep.subr.bf16.mxu1 %v1240_v13 }
 0x4c8   : > { %16749 = vmatpush3.bf16.msra.mxu1 %v1240_v13 }
 0x4c9   : > { %16750 = vmatprep.subr.bf16.mxu1 %v1241_v12 }
 0x4cc   : > { %16751 = vmatpush3.bf16.msra.mxu1 %v1241_v12 }
 0x4cf   : > { %16753 = vmatmul.mubr.bf16.vlgmr.msra.gmra.mrb[32].mxu1 %v19887_v14 }
 0x4d0   : > { %16756 = vmatprep.mubr.bf16.mxu1 %v19891_v15 }
 0x4d7   : > { %16757 = vmatmul.mubr.bf16.gmra.mrb[36].mxu1 %v19801_v2  ;;  %v19191_v2 = vld [vmem:[%s21691_s2 + $0xf8] sm:$0xff]  }
 0x4d8   : > { %16760 = vmatprep.mubr.bf16.mxu1 %v19804_v3  ;;  %16782 = vmatprep.subr.bf16.mxu0 %v19191_v2 }
 0x4d9   : > { %16783 = vmatpush3.bf16.msra.mxu0 %v19191_v2 }
 0x4da   : > { %16832 = vmatprep.subr.bf16.mxu0 %v19192_v50 }
 0x4df   : > { %16761 = vmatmul.mubr.bf16.gmra.mrb[40].mxu1 %v19809_v4 }
 0x4e0   : > { %16764 = vmatprep.mubr.bf16.mxu1 %v19812_v5 }
 0x4e7   : > { %16765 = vmatmul.mubr.bf16.gmra.mrb[44].mxu1 %v19817_v6 }
 0x4e8   : > { %16816 = vmatprep.mubr.bf16.mxu1 %v19821_v7 }
 0x5a2   : > { %v16754_v3 = vpop.f32.mrb[32].mxu1 }
 0x5a3   : > { %v1276_v4 = vpop.f32.mrb[33].mxu1  ;;  %v1341_v5 = vmax.f32 %v16754_v3, 0.0 }
 0x5a4   : > { %v16755_v17 = vpop.f32.mrb[34].mxu1  ;;  %v1339_v19 = vmax.f32 %v1276_v4, 0.0 }
 0x5a5   : > { %v1342_v18 = vmax.f32 %v16755_v17, 0.0  ;;  %v1279_v6 = vpop.f32.mrb[35].mxu1 }
 0x5a6   : > { %v1340_v7 = vmax.f32 %v1279_v6, 0.0 }
 0x5a7   : > { %v1356_v20 = vpack.c.bf16 %v1342_v18, %v1341_v5 }
 0x5a8   : > { %v1355_v21 = vpack.c.bf16 %v1340_v7, %v1339_v19 }
 0x5aa   : > { %v16758_v22 = vpop.f32.mrb[36].mxu1  ;;  %16784 = vmatprep.mubr.bf16.mxu0 %v1355_v21 }
 0x5ab   : > { %v1292_v23 = vpop.f32.mrb[37].mxu1  ;;  %16785 = vmatmul.mubr.bf16.vlgmr.msra.gmra.mrb[48].mxu0 %v1356_v20  ;;  %v1345_v25 = vmax.f32 %v16758_v22, 0.0 }
 0x5ac   : > { %v16759_v24 = vpop.f32.mrb[38].mxu1  ;;  %v1343_v28 = vmax.f32 %v1292_v23, 0.0  ;;  %16833 = vmatpush3.bf16.msra.mxu0 %v19192_v50 }
 0x5ad   : > { %v1346_v26 = vmax.f32 %v16759_v24, 0.0  ;;  %v1295_v27 = vpop.f32.mrb[39].mxu1  ;;  %16834 = vmatprep.subr.bf16.mxu0 %v19193_v51 }
 0x5ae   : > { %v1344_v29 = vmax.f32 %v1295_v27, 0.0 }
 0x5af   : > { %v1358_v30 = vpack.c.bf16 %v1346_v26, %v1345_v25 }
 0x5b0   : > { %v1357_v31 = vpack.c.bf16 %v1344_v29, %v1343_v28  ;;  %16835 = vmatpush3.bf16.msra.mxu0 %v19193_v51 }
 0x5b1   : > { %16836 = vmatprep.subr.bf16.mxu0 %v19194_v52 }
 0x5b2   : > { %v16762_v32 = vpop.f32.mrb[40].mxu1  ;;  %16788 = vmatprep.mubr.bf16.mxu0 %v1357_v31 }
 0x5b3   : > { %v1308_v33 = vpop.f32.mrb[41].mxu1  ;;  %16789 = vmatmul.mubr.bf16.gmra.mrb[52].mxu0 %v1358_v30  ;;  %v1349_v35 = vmax.f32 %v16762_v32, 0.0 }
 0x5b4   : > { %v16763_v34 = vpop.f32.mrb[42].mxu1  ;;  %v1347_v38 = vmax.f32 %v1308_v33, 0.0  ;;  %16837 = vmatpush3.bf16.msra.mxu0 %v19194_v52 }
 0x5b5   : > { %v1350_v36 = vmax.f32 %v16763_v34, 0.0  ;;  %v1311_v37 = vpop.f32.mrb[43].mxu1  ;;  %16838 = vmatprep.subr.bf16.mxu0 %v19195_v53 }
 0x5b6   : > { %v1348_v39 = vmax.f32 %v1311_v37, 0.0  ;;  %v19659_v37 = vld [vmem:[%s19755_s26 + $0x18] sm:$0xff]  }
 0x5b7   : > { %v1360_v40 = vpack.c.bf16 %v1350_v36, %v1349_v35 }
 0x5b8   : > { %v1359_v41 = vpack.c.bf16 %v1348_v39, %v1347_v38  ;;  %16839 = vmatpush3.bf16.msra.mxu0 %v19195_v53  ;;  %v19660_v38 = vld [vmem:[%s19755_s26 + $0x20] sm:$0xff]   ;;  %v19661_v39 = vld [vmem:[%s19755_s26 + $0x28] sm:$0xff]  }
 0x5b9   : > { %16840 = vmatprep.subr.bf16.mxu0 %v19196_v54 }
 0x5ba   : > { %v16766_v0 = vpop.f32.mrb[44].mxu1  ;;  %16792 = vmatprep.mubr.bf16.mxu0 %v1359_v41  ;;  %v19663_v41 = vld [vmem:[%s19755_s26 + $0x38] sm:$0xff]  }
 0x5bb   : > { %v1324_v1 = vpop.f32.mrb[45].mxu1  ;;  %16793 = vmatmul.mubr.bf16.gmra.mrb[56].mxu0 %v1360_v40  ;;  %v1353_v43 = vmax.f32 %v16766_v0, 0.0  ;;  %v19662_v40 = vld [vmem:[%s19755_s26 + $0x30] sm:$0xff]  }
 0x5bc   : > { %v16767_v42 = vpop.f32.mrb[46].mxu1  ;;  %v1351_v46 = vmax.f32 %v1324_v1, 0.0  ;;  %16841 = vmatpush3.bf16.msra.mxu0 %v19196_v54  ;;  %v19198_v0 = vld [vmem:[%s21693_s4 + $0x30] sm:$0xff]   ;;  %v19216_v1 = vld [vmem:[%s21695_s6] sm:$0xff]  }
 0x5bd   : > { %v1354_v44 = vmax.f32 %v16767_v42, 0.0  ;;  %v1327_v45 = vpop.f32.mrb[47].mxu1  ;;  %16842 = vmatprep.subr.bf16.mxu0 %v19197_v55  ;;  %v19217_v42 = vld [vmem:[%s21695_s6 + $0x8] sm:$0xff]  }
 0x5be   : > { %v1352_v47 = vmax.f32 %v1327_v45, 0.0  ;;  %v19220_v45 = vld [vmem:[%s21695_s6 + $0x20] sm:$0xff]  }
 0x5bf   : > { %v1362_v48 = vpack.c.bf16 %v1354_v44, %v1353_v43  ;;  %v19218_v43 = vld [vmem:[%s21695_s6 + $0x10] sm:$0xff]   ;;  %v19219_v44 = vld [vmem:[%s21695_s6 + $0x18] sm:$0xff]  }
 0x5c0   : > { %v1361_v49 = vpack.c.bf16 %v1352_v47, %v1351_v46  ;;  %16843 = vmatpush3.bf16.msra.mxu0 %v19197_v55  ;;  %v19221_v46 = vld [vmem:[%s21695_s6 + $0x28] sm:$0xff]  }
 0x5c1   : > { %16844 = vmatprep.subr.bf16.mxu0 %v19198_v0 }
 0x5c2   : > { %16796 = vmatprep.mubr.bf16.mxu0 %v1361_v49 }
 0x5c3   : > { %16797 = vmatmul.mubr.bf16.gmra.mrb[60].mxu0 %v1362_v48 }
 0x5c4   : > { %16845 = vmatpush3.bf16.msra.mxu0 %v19198_v0  ;;  %v19222_v0 = vld [vmem:[%s21695_s6 + $0x30] sm:$0xff]  }
 0x67e   : > { %v16786_v56 = vpop.f32.mrb[48].mxu0 }
 0x67f   : > { %v1470_v58 = vpop.f32.mrb[49].mxu0  ;;  %v1479_v60 = vadd.f32 %v16786_v56, %v14081_v57 }
 0x680   : > { %v16787_v59 = vpop.f32.mrb[50].mxu0  ;;  %v1471_v63 = vadd.f32 %v14081_v57, %v1470_v58 }
 0x681   : > { %v1482_v61 = vadd.f32 %v16787_v59, %v14081_v57  ;;  %v1473_v62 = vpop.f32.mrb[51].mxu0 }
 0x682   : > { %v1474_v8 = vadd.f32 %v14081_v57, %v1473_v62 }
 0x683   : > { %v1534_v9 = vpack.c.bf16 %v1482_v61, %v1479_v60 }
 0x684   : > { %v1533_v10 = vpack.c.bf16 %v1474_v8, %v1471_v63  ;;  %v19202_v8 = vld [vmem:[%s21691_s2 + $0x10] sm:$0xff]  }
 0x686   : > { %v16790_v11 = vpop.f32.mrb[52].mxu0  ;;  %16800 = vmatprep.subr.bf16.mxu1 %v1533_v10 }
 0x687   : > { %v1486_v12 = vpop.f32.mrb[53].mxu0  ;;  %16801 = vmatpush3.bf16.msra.mxu1 %v1533_v10  ;;  %v1495_v16 = vadd.f32 %v16790_v11, %v14081_v57 }
 0x688   : > { %v16791_v13 = vpop.f32.mrb[54].mxu0  ;;  %16802 = vmatprep.subr.bf16.mxu1 %v1534_v9  ;;  %v1487_v4 = vadd.f32 %v14081_v57, %v1486_v12 }
 0x689   : > { %v1498_v2 = vadd.f32 %v16791_v13, %v14081_v57  ;;  %v1489_v3 = vpop.f32.mrb[55].mxu0  ;;  %v19203_v13 = vld [vmem:[%s21691_s2 + $0x18] sm:$0xff]  }
 0x68a   : > { %v1490_v17 = vadd.f32 %v14081_v57, %v1489_v3 }
 0x68b   : > { %16803 = vmatpush3.bf16.msra.mxu1 %v1534_v9  ;;  %v1536_v5 = vpack.c.bf16 %v1498_v2, %v1495_v16 }
 0x68c   : > { %v1535_v18 = vpack.c.bf16 %v1490_v17, %v1487_v4 }
 0x68e   : > { %v16794_v6 = vpop.f32.mrb[56].mxu0  ;;  %16804 = vmatprep.subr.bf16.mxu1 %v1535_v18 }
 0x68f   : > { %v1502_v19 = vpop.f32.mrb[57].mxu0  ;;  %16805 = vmatpush3.bf16.msra.mxu1 %v1535_v18  ;;  %v1511_v20 = vadd.f32 %v16794_v6, %v14081_v57  ;;  %v19204_v18 = vld [vmem:[%s21691_s2 + $0x20] sm:$0xff]  }
 0x690   : > { %v16795_v7 = vpop.f32.mrb[58].mxu0  ;;  %16806 = vmatprep.subr.bf16.mxu1 %v1536_v5  ;;  %v1503_v23 = vadd.f32 %v14081_v57, %v1502_v19 }
 0x691   : > { %v1514_v21 = vadd.f32 %v16795_v7, %v14081_v57  ;;  %v1505_v22 = vpop.f32.mrb[59].mxu0 }
 0x692   : > { %v1506_v24 = vadd.f32 %v14081_v57, %v1505_v22 }
 0x693   : > { %16807 = vmatpush3.bf16.msra.mxu1 %v1536_v5  ;;  %v1538_v25 = vpack.c.bf16 %v1514_v21, %v1511_v20  ;;  %v19205_v21 = vld [vmem:[%s21691_s2 + $0x28] sm:$0xff]  }
 0x694   : > { %v1537_v26 = vpack.c.bf16 %v1506_v24, %v1503_v23 }
 0x696   : > { %v16798_v27 = vpop.f32.mrb[60].mxu0  ;;  %16808 = vmatprep.subr.bf16.mxu1 %v1537_v26 }
 0x697   : > { %v1518_v28 = vpop.f32.mrb[61].mxu0  ;;  %16809 = vmatpush3.bf16.msra.mxu1 %v1537_v26  ;;  %v1527_v30 = vadd.f32 %v16798_v27, %v14081_v57 }
 0x698   : > { %v16799_v29 = vpop.f32.mrb[62].mxu0  ;;  %16810 = vmatprep.subr.bf16.mxu1 %v1538_v25  ;;  %v1519_v33 = vadd.f32 %v14081_v57, %v1518_v28  ;;  %v19206_v28 = vld [vmem:[%s21691_s2 + $0x30] sm:$0xff]  }
 0x699   : > { %v1530_v31 = vadd.f32 %v16799_v29, %v14081_v57  ;;  %v1521_v32 = vpop.f32.mrb[63].mxu0 }
 0x69a   : > { %v1522_v34 = vadd.f32 %v14081_v57, %v1521_v32  ;;  %v19201_v57 = vld [vmem:[%s21691_s2 + $0x8] sm:$0xff]  }
 0x69b   : > { %16811 = vmatpush3.bf16.msra.mxu1 %v1538_v25  ;;  %v1540_v35 = vpack.c.bf16 %v1530_v31, %v1527_v30 }
 0x69c   : > { %v1539_v36 = vpack.c.bf16 %v1522_v34, %v1519_v33  ;;  %v19208_v33 = vld [vmem:[%s19740_s17 + $0x40] sm:$0xff]   ;;  %v19207_v34 = vld [vmem:[%s21691_s2 + $0x38] sm:$0xff]  }
 0x69e   : > { %16812 = vmatprep.subr.bf16.mxu1 %v1539_v36 }
 0x69f   : > { %16813 = vmatpush3.bf16.msra.mxu1 %v1539_v36  ;;  %v19210_v36 = vld [vmem:[%s19740_s17 + $0x50] sm:$0xff]  }
 0x6a0   : > { %16814 = vmatprep.subr.bf16.mxu1 %v1540_v35 }
 0x6a3   : > { %16815 = vmatpush3.bf16.msra.mxu1 %v1540_v35  ;;  %v19209_v35 = vld [vmem:[%s19740_s17 + $0x48] sm:$0xff]  }
 0x6a4   : > { %16864 = vmatprep.subr.bf16.mxu1 %v19216_v1 }
 0x6a6   : > { %16817 = vmatmul.mubr.bf16.vlgmr.msra.gmra.mrb[48].mxu1 %v19887_v14  ;;  %v19199_v14 = vld [vmem:[%s21693_s4 + $0x38] sm:$0xff]  }
 0x6a7   : > { %16820 = vmatprep.mubr.bf16.mxu1 %v19891_v15  ;;  %16846 = vmatprep.subr.bf16.mxu0 %v19199_v14  ;;  %v19200_v15 = vld [vmem:[%s21691_s2] sm:$0xff]  }
 0x6a8   : > { %16847 = vmatpush3.bf16.msra.mxu0 %v19199_v14  ;;  %16865 = vmatpush3.bf16.msra.mxu1 %v19216_v1  ;;  %v19223_v14 = vld [vmem:[%s21695_s6 + $0x38] sm:$0xff]  }
 0x6a9   : > { %16896 = vmatprep.subr.bf16.mxu0 %v19200_v15  ;;  %16866 = vmatprep.subr.bf16.mxu1 %v19217_v42 }
 0x6ac   : > { %16867 = vmatpush3.bf16.msra.mxu1 %v19217_v42 }
 0x6ad   : > { %16868 = vmatprep.subr.bf16.mxu1 %v19218_v43 }
 0x6ae   : > { %16821 = vmatmul.mubr.bf16.gmra.mrb[52].mxu1 %v19659_v37  ;;  %v19211_v37 = vld [vmem:[%s19740_s17 + $0x58] sm:$0xff]  }
 0x6af   : > { %16824 = vmatprep.mubr.bf16.mxu1 %v19660_v38  ;;  %v19212_v38 = vld [vmem:[%s19740_s17 + $0x60] sm:$0xff]  }
 0x6b0   : > { %16869 = vmatpush3.bf16.msra.mxu1 %v19218_v43 }
 0x6b1   : > { %16870 = vmatprep.subr.bf16.mxu1 %v19219_v44 }
 0x6b4   : > { %16871 = vmatpush3.bf16.msra.mxu1 %v19219_v44 }
 0x6b5   : > { %16872 = vmatprep.subr.bf16.mxu1 %v19220_v45 }
 0x6b6   : > { %16825 = vmatmul.mubr.bf16.gmra.mrb[56].mxu1 %v19661_v39  ;;  %v19213_v39 = vld [vmem:[%s19740_s17 + $0x68] sm:$0xff]  }
 0x6b7   : > { %16828 = vmatprep.mubr.bf16.mxu1 %v19662_v40  ;;  %v19214_v40 = vld [vmem:[%s19740_s17 + $0x70] sm:$0xff]  }
 0x6b8   : > { %16873 = vmatpush3.bf16.msra.mxu1 %v19220_v45 }
 0x6b9   : > { %16874 = vmatprep.subr.bf16.mxu1 %v19221_v46 }
 0x6bc   : > { %16875 = vmatpush3.bf16.msra.mxu1 %v19221_v46 }
 0x6bd   : > { %16876 = vmatprep.subr.bf16.mxu1 %v19222_v0 }
 0x6be   : > { %16829 = vmatmul.mubr.bf16.gmra.mrb[60].mxu1 %v19663_v41  ;;  %v19215_v41 = vld [vmem:[%s19740_s17 + $0x78] sm:$0xff]  }
 0x6c0   : > { %16877 = vmatpush3.bf16.msra.mxu1 %v19222_v0 }
 0x6c1   : > { %16878 = vmatprep.subr.bf16.mxu1 %v19223_v14 }
 0x6c4   : > { %16879 = vmatpush3.bf16.msra.mxu1 %v19223_v14 }
 0x779   : > { %v16818_v47 = vpop.f32.mrb[48].mxu1 }
 0x77a   : > { %v1575_v48 = vpop.f32.mrb[49].mxu1  ;;  %v1640_v50 = vmax.f32 %v16818_v47, 0.0 }
 0x77b   : > { %v16819_v49 = vpop.f32.mrb[50].mxu1  ;;  %v1638_v53 = vmax.f32 %v1575_v48, 0.0 }
 0x77c   : > { %v1641_v51 = vmax.f32 %v16819_v49, 0.0  ;;  %v1578_v52 = vpop.f32.mrb[51].mxu1 }
 0x77d   : > { %v1639_v54 = vmax.f32 %v1578_v52, 0.0 }
 0x77e   : > { %v1655_v55 = vpack.c.bf16 %v1641_v51, %v1640_v50 }
 0x77f   : > { %v1654_v56 = vpack.c.bf16 %v1639_v54, %v1638_v53 }
 0x781   : > { %v16822_v58 = vpop.f32.mrb[52].mxu1  ;;  %16848 = vmatprep.mubr.bf16.mxu0 %v1654_v56 }
 0x782   : > { %v1591_v59 = vpop.f32.mrb[53].mxu1  ;;  %16849 = vmatmul.mubr.bf16.vlgmr.msra.gmra.mrb[64].mxu0 %v1655_v55  ;;  %v1644_v61 = vmax.f32 %v16822_v58, 0.0 }
 0x783   : > { %v16823_v60 = vpop.f32.mrb[54].mxu1  ;;  %16897 = vmatpush3.bf16.msra.mxu0 %v19200_v15  ;;  %v1642_v9 = vmax.f32 %v1591_v59, 0.0  ;;  %v14090_v15 = vld [vmem:[%s21694_s5] ss:$0 sm:$0xff] }
 0x784   : > { %v1645_v62 = vmax.f32 %v16823_v60, 0.0  ;;  %v1594_v63 = vpop.f32.mrb[55].mxu1  ;;  %16898 = vmatprep.subr.bf16.mxu0 %v19201_v57 }
 0x785   : > { %v1643_v10 = vmax.f32 %v1594_v63, 0.0 }
 0x786   : > { %v1657_v11 = vpack.c.bf16 %v1645_v62, %v1644_v61 }
 0x787   : > { %16899 = vmatpush3.bf16.msra.mxu0 %v19201_v57  ;;  %v1656_v12 = vpack.c.bf16 %v1643_v10, %v1642_v9 }
 0x788   : > { %16900 = vmatprep.subr.bf16.mxu0 %v19202_v8 }
 0x789   : > { %v16826_v16 = vpop.f32.mrb[56].mxu1  ;;  %16852 = vmatprep.mubr.bf16.mxu0 %v1656_v12 }
 0x78a   : > { %v1607_v2 = vpop.f32.mrb[57].mxu1  ;;  %16853 = vmatmul.mubr.bf16.gmra.mrb[68].mxu0 %v1657_v11  ;;  %v1648_v4 = vmax.f32 %v16826_v16, 0.0 }
 0x78b   : > { %v16827_v3 = vpop.f32.mrb[58].mxu1  ;;  %16901 = vmatpush3.bf16.msra.mxu0 %v19202_v8  ;;  %v1646_v6 = vmax.f32 %v1607_v2, 0.0 }
 0x78c   : > { %v1649_v17 = vmax.f32 %v16827_v3, 0.0  ;;  %v1610_v5 = vpop.f32.mrb[59].mxu1  ;;  %16902 = vmatprep.subr.bf16.mxu0 %v19203_v13 }
 0x78d   : > { %v1647_v19 = vmax.f32 %v1610_v5, 0.0 }
 0x78e   : > { %v1659_v7 = vpack.c.bf16 %v1649_v17, %v1648_v4 }
 0x78f   : > { %16903 = vmatpush3.bf16.msra.mxu0 %v19203_v13  ;;  %v1658_v20 = vpack.c.bf16 %v1647_v19, %v1646_v6 }
 0x790   : > { %16904 = vmatprep.subr.bf16.mxu0 %v19204_v18 }
 0x791   : > { %v16830_v22 = vpop.f32.mrb[60].mxu1  ;;  %16856 = vmatprep.mubr.bf16.mxu0 %v1658_v20 }
 0x792   : > { %v1623_v23 = vpop.f32.mrb[61].mxu1  ;;  %16857 = vmatmul.mubr.bf16.gmra.mrb[72].mxu0 %v1659_v7  ;;  %v1652_v25 = vmax.f32 %v16830_v22, 0.0 }
 0x793   : > { %v16831_v24 = vpop.f32.mrb[62].mxu1  ;;  %16905 = vmatpush3.bf16.msra.mxu0 %v19204_v18  ;;  %v1650_v29 = vmax.f32 %v1623_v23, 0.0 }
 0x794   : > { %v1653_v26 = vmax.f32 %v16831_v24, 0.0  ;;  %v1626_v27 = vpop.f32.mrb[63].mxu1  ;;  %16906 = vmatprep.subr.bf16.mxu0 %v19205_v21 }
 0x795   : > { %v1651_v30 = vmax.f32 %v1626_v27, 0.0 }
 0x796   : > { %v1661_v31 = vpack.c.bf16 %v1653_v26, %v1652_v25 }
 0x797   : > { %16907 = vmatpush3.bf16.msra.mxu0 %v19205_v21  ;;  %v1660_v32 = vpack.c.bf16 %v1651_v30, %v1650_v29 }
 0x798   : > { %16908 = vmatprep.subr.bf16.mxu0 %v19206_v28 }
 0x799   : > { %16860 = vmatprep.mubr.bf16.mxu0 %v1660_v32 }
 0x79a   : > { %16861 = vmatmul.mubr.bf16.gmra.mrb[76].mxu0 %v1661_v31 }
 0x79b   : > { %16909 = vmatpush3.bf16.msra.mxu0 %v19206_v28  ;;  %16912 = vmatprep.mubr.bf16.mxu0 %v19208_v33 }
 0x79c   : > { %16910 = vmatprep.subr.bf16.mxu0 %v19207_v34 }
 0x79f   : > { %16911 = vmatpush3.bf16.msra.mxu0 %v19207_v34 }
 0x7a2   : > { %16913 = vmatmul.mubr.bf16.vlgmr.msra.gmra.mrb[80].mxu0 %v19209_v35 }
 0x7a3   : > { %16916 = vmatprep.mubr.bf16.mxu0 %v19210_v36 }
 0x7aa   : > { %16917 = vmatmul.mubr.bf16.gmra.mrb[84].mxu0 %v19211_v37  ;;  %v14140_v37 = vld [vmem:[%s21692_s3] ss:$0 sm:$0xff] }
 0x7ab   : > { %16920 = vmatprep.mubr.bf16.mxu0 %v19212_v38 }
 0x7b2   : > { %16921 = vmatmul.mubr.bf16.gmra.mrb[88].mxu0 %v19213_v39  ;;  %v20003_v39 = vld [vmem:[%s19755_s26 + $0x40] sm:$0xff]  }
 0x7b3   : > { %16924 = vmatprep.mubr.bf16.mxu0 %v19214_v40 }
 0x7ba   : > { %16925 = vmatmul.mubr.bf16.gmra.mrb[92].mxu0 %v19215_v41 }
 0x855   : > { %v16850_v1 = vpop.f32.mrb[64].mxu0 }
 0x856   : > { %v1776_v42 = vadd.f32 %v16850_v1, %v14090_v15  ;;  %v1767_v43 = vpop.f32.mrb[65].mxu0 }
 0x857   : > { %v1768_v44 = vadd.f32 %v14090_v15, %v1767_v43  ;;  %v16851_v45 = vpop.f32.mrb[66].mxu0 }
 0x858   : > { %v1779_v46 = vadd.f32 %v16851_v45, %v14090_v15  ;;  %v1770_v47 = vpop.f32.mrb[67].mxu0  ;;  %v1832_v49 = vmax.f32 %v1776_v42, 0.0 }
 0x859   : > { %v1771_v48 = vadd.f32 %v14090_v15, %v1770_v47  ;;  %v1830_v51 = vmax.f32 %v1768_v44, 0.0 }
 0x85a   : > { %v1833_v50 = vmax.f32 %v1779_v46, 0.0 }
 0x85b   : > { %v1831_v52 = vmax.f32 %v1771_v48, 0.0 }
 0x85c   : > { %v1847_v53 = vpack.c.bf16 %v1833_v50, %v1832_v49 }
 0x85d   : > { %v16854_v54 = vpop.f32.mrb[68].mxu0  ;;  %v1846_v55 = vpack.c.bf16 %v1831_v52, %v1830_v51 }
 0x85e   : > { %v1792_v56 = vadd.f32 %v16854_v54, %v14090_v15  ;;  %v1783_v57 = vpop.f32.mrb[69].mxu0 }
 0x85f   : > { %v1784_v58 = vadd.f32 %v14090_v15, %v1783_v57  ;;  %v16855_v59 = vpop.f32.mrb[70].mxu0  ;;  %16880 = vmatprep.mubr.bf16.mxu1 %v1846_v55 }
 0x860   : > { %v1795_v60 = vadd.f32 %v16855_v59, %v14090_v15  ;;  %v1786_v61 = vpop.f32.mrb[71].mxu0  ;;  %16881 = vmatmul.mubr.bf16.vlgmr.msra.gmra.mrb[64].mxu1 %v1847_v53  ;;  %v1836_v63 = vmax.f32 %v1792_v56, 0.0 }
 0x861   : > { %v1787_v62 = vadd.f32 %v14090_v15, %v1786_v61  ;;  %v1834_v9 = vmax.f32 %v1784_v58, 0.0 }
 0x862   : > { %v1837_v8 = vmax.f32 %v1795_v60, 0.0 }
 0x863   : > { %v1835_v10 = vmax.f32 %v1787_v62, 0.0 }
 0x864   : > { %v1849_v11 = vpack.c.bf16 %v1837_v8, %v1836_v63 }
 0x865   : > { %v16858_v12 = vpop.f32.mrb[72].mxu0  ;;  %v1848_v13 = vpack.c.bf16 %v1835_v10, %v1834_v9 }
 0x866   : > { %v1808_v16 = vadd.f32 %v16858_v12, %v14090_v15  ;;  %v1799_v2 = vpop.f32.mrb[73].mxu0 }
 0x867   : > { %v1800_v3 = vadd.f32 %v14090_v15, %v1799_v2  ;;  %v16859_v4 = vpop.f32.mrb[74].mxu0  ;;  %16884 = vmatprep.mubr.bf16.mxu1 %v1848_v13 }
 0x868   : > { %v1811_v17 = vadd.f32 %v16859_v4, %v14090_v15  ;;  %v1802_v5 = vpop.f32.mrb[75].mxu0  ;;  %16885 = vmatmul.mubr.bf16.gmra.mrb[68].mxu1 %v1849_v11  ;;  %v1840_v6 = vmax.f32 %v1808_v16, 0.0 }
 0x869   : > { %v1803_v18 = vadd.f32 %v14090_v15, %v1802_v5  ;;  %v1838_v7 = vmax.f32 %v1800_v3, 0.0  ;;  %v20007_v5 = vld [vmem:[%s19755_s26 + $0x48] sm:$0xff]  }
 0x86a   : > { %v1841_v19 = vmax.f32 %v1811_v17, 0.0 }
 0x86b   : > { %v1839_v20 = vmax.f32 %v1803_v18, 0.0  ;;  %v20010_v18 = vld [vmem:[%s19755_s26 + $0x50] sm:$0xff]  }
 0x86c   : > { %v1851_v21 = vpack.c.bf16 %v1841_v19, %v1840_v6  ;;  %v20015_v6 = vld [vmem:[%s19755_s26 + $0x58] sm:$0xff]   ;;  %v20018_v19 = vld [vmem:[%s19755_s26 + $0x60] sm:$0xff]  }
 0x86d   : > { %v16862_v22 = vpop.f32.mrb[76].mxu0  ;;  %v1850_v23 = vpack.c.bf16 %v1839_v20, %v1838_v7  ;;  %v20023_v7 = vld [vmem:[%s19755_s26 + $0x68] sm:$0xff]   ;;  %v20026_v20 = vld [vmem:[%s19755_s26 + $0x70] sm:$0xff]  }
 0x86e   : > { %v1824_v24 = vadd.f32 %v16862_v22, %v14090_v15  ;;  %v1815_v25 = vpop.f32.mrb[77].mxu0  ;;  %v19232_v22 = vld [vmem:[%s21691_s2 + $0x40] sm:$0xff]  }
 0x86f   : > { %v1816_v26 = vadd.f32 %v14090_v15, %v1815_v25  ;;  %v16863_v27 = vpop.f32.mrb[78].mxu0  ;;  %16888 = vmatprep.mubr.bf16.mxu1 %v1850_v23  ;;  %v19233_v23 = vld [vmem:[%s21691_s2 + $0x48] sm:$0xff]   ;;  %16960 = vmatprep.subr.bf16.mxu0 %v19232_v22  ;;  %v19235_v25 = vld [vmem:[%s21691_s2 + $0x58] sm:$0xff]  }
 0x870   : > { %v1827_v28 = vadd.f32 %v16863_v27, %v14090_v15  ;;  %v1818_v29 = vpop.f32.mrb[79].mxu0  ;;  %16889 = vmatmul.mubr.bf16.gmra.mrb[72].mxu1 %v1851_v21  ;;  %v1844_v31 = vmax.f32 %v1824_v24, 0.0  ;;  %v20031_v21 = vld [vmem:[%s19755_s26 + $0x78] sm:$0xff]   ;;  %16961 = vmatpush3.bf16.msra.mxu0 %v19232_v22  ;;  %v19234_v24 = vld [vmem:[%s21691_s2 + $0x50] sm:$0xff]   ;;  %v19237_v27 = vld [vmem:[%s21691_s2 + $0x68] sm:$0xff]  }
 0x871   : > { %v1819_v30 = vadd.f32 %v14090_v15, %v1818_v29  ;;  %v1842_v33 = vmax.f32 %v1816_v26, 0.0  ;;  %16962 = vmatprep.subr.bf16.mxu0 %v19233_v23  ;;  %v19236_v26 = vld [vmem:[%s21691_s2 + $0x60] sm:$0xff]   ;;  %v19239_v29 = vld [vmem:[%s21691_s2 + $0x78] sm:$0xff]  }
 0x872   : > { %v1845_v32 = vmax.f32 %v1827_v28, 0.0  ;;  %v19238_v28 = vld [vmem:[%s21691_s2 + $0x70] sm:$0xff]  }
 0x873   : > { %v1843_v34 = vmax.f32 %v1819_v30, 0.0  ;;  %v14099_v30 = vld [vmem:[%s21696_s7] ss:$0 sm:$0xff] }
 0x874   : > { %v1853_v35 = vpack.c.bf16 %v1845_v32, %v1844_v31  ;;  %16963 = vmatpush3.bf16.msra.mxu0 %v19233_v23 }
 0x875   : > { %v16914_v36 = vpop.f32.mrb[80].mxu0  ;;  %v1852_v38 = vpack.c.bf16 %v1843_v34, %v1842_v33  ;;  %16964 = vmatprep.subr.bf16.mxu0 %v19234_v24 }
 0x876   : > { %v2225_v40 = vpop.f32.mrb[81].mxu0  ;;  %v2234_v0 = vadd.f32 %v16914_v36, %v14140_v37 }
 0x877   : > { %16892 = vmatprep.mubr.bf16.mxu1 %v1852_v38  ;;  %v16915_v41 = vpop.f32.mrb[82].mxu0  ;;  %v2226_v1 = vadd.f32 %v14140_v37, %v2225_v40 }
 0x878   : > { %v2237_v14 = vadd.f32 %v16915_v41, %v14140_v37  ;;  %16893 = vmatmul.mubr.bf16.gmra.mrb[76].mxu1 %v1853_v35  ;;  %v2228_v15 = vpop.f32.mrb[83].mxu0  ;;  %16965 = vmatpush3.bf16.msra.mxu0 %v19234_v24 }
 0x879   : > { %v2229_v42 = vadd.f32 %v14140_v37, %v2228_v15  ;;  %16944 = vmatprep.mubr.bf16.mxu1 %v20003_v39  ;;  %16966 = vmatprep.subr.bf16.mxu0 %v19235_v25 }
 0x87a   : > { %v2289_v43 = vpack.c.bf16 %v2237_v14, %v2234_v0 }
 0x87b   : > { %v2288_v44 = vpack.c.bf16 %v2229_v42, %v2226_v1 }
 0x87c   : > { %16967 = vmatpush3.bf16.msra.mxu0 %v19235_v25 }
 0x87d   : > { %v16918_v45 = vpop.f32.mrb[84].mxu0  ;;  %16928 = vmatprep.subr.bf16.mxu1 %v2288_v44  ;;  %16968 = vmatprep.subr.bf16.mxu0 %v19236_v26 }
 0x87e   : > { %v2241_v46 = vpop.f32.mrb[85].mxu0  ;;  %16929 = vmatpush3.bf16.msra.mxu1 %v2288_v44  ;;  %v2250_v48 = vadd.f32 %v16918_v45, %v14140_v37 }
 0x87f   : > { %v16919_v47 = vpop.f32.mrb[86].mxu0  ;;  %16930 = vmatprep.subr.bf16.mxu1 %v2289_v43  ;;  %v2242_v51 = vadd.f32 %v14140_v37, %v2241_v46 }
 0x880   : > { %v2253_v49 = vadd.f32 %v16919_v47, %v14140_v37  ;;  %v2244_v50 = vpop.f32.mrb[87].mxu0  ;;  %16969 = vmatpush3.bf16.msra.mxu0 %v19236_v26 }
 0x881   : > { %v2245_v52 = vadd.f32 %v14140_v37, %v2244_v50  ;;  %16970 = vmatprep.subr.bf16.mxu0 %v19237_v27 }
 0x882   : > { %16931 = vmatpush3.bf16.msra.mxu1 %v2289_v43  ;;  %v2291_v53 = vpack.c.bf16 %v2253_v49, %v2250_v48 }
 0x883   : > { %v2290_v54 = vpack.c.bf16 %v2245_v52, %v2242_v51 }
 0x884   : > { %16971 = vmatpush3.bf16.msra.mxu0 %v19237_v27 }
 0x885   : > { %v16922_v55 = vpop.f32.mrb[88].mxu0  ;;  %16932 = vmatprep.subr.bf16.mxu1 %v2290_v54  ;;  %16972 = vmatprep.subr.bf16.mxu0 %v19238_v28 }
 0x886   : > { %v2257_v56 = vpop.f32.mrb[89].mxu0  ;;  %16933 = vmatpush3.bf16.msra.mxu1 %v2290_v54  ;;  %v2266_v58 = vadd.f32 %v16922_v55, %v14140_v37 }
 0x887   : > { %v16923_v57 = vpop.f32.mrb[90].mxu0  ;;  %16934 = vmatprep.subr.bf16.mxu1 %v2291_v53  ;;  %v2258_v61 = vadd.f32 %v14140_v37, %v2257_v56 }
 0x888   : > { %v2269_v59 = vadd.f32 %v16923_v57, %v14140_v37  ;;  %v2260_v60 = vpop.f32.mrb[91].mxu0  ;;  %16973 = vmatpush3.bf16.msra.mxu0 %v19238_v28 }
 0x889   : > { %v2261_v62 = vadd.f32 %v14140_v37, %v2260_v60  ;;  %16974 = vmatprep.subr.bf16.mxu0 %v19239_v29 }
 0x88a   : > { %16935 = vmatpush3.bf16.msra.mxu1 %v2291_v53  ;;  %v2293_v63 = vpack.c.bf16 %v2269_v59, %v2266_v58 }
 0x88b   : > { %v2292_v8 = vpack.c.bf16 %v2261_v62, %v2258_v61 }
 0x88c   : > { %16975 = vmatpush3.bf16.msra.mxu0 %v19239_v29 }
 0x88d   : > { %v16926_v9 = vpop.f32.mrb[92].mxu0  ;;  %16936 = vmatprep.subr.bf16.mxu1 %v2292_v8 }
 0x88e   : > { %v2273_v10 = vpop.f32.mrb[93].mxu0  ;;  %16937 = vmatpush3.bf16.msra.mxu1 %v2292_v8  ;;  %v2282_v12 = vadd.f32 %v16926_v9, %v14140_v37 }
 0x88f   : > { %v16927_v11 = vpop.f32.mrb[94].mxu0  ;;  %16938 = vmatprep.subr.bf16.mxu1 %v2293_v63  ;;  %v2274_v2 = vadd.f32 %v14140_v37, %v2273_v10 }
 0x890   : > { %v2285_v13 = vadd.f32 %v16927_v11, %v14140_v37  ;;  %v2276_v16 = vpop.f32.mrb[95].mxu0 }
 0x891   : > { %v2277_v3 = vadd.f32 %v14140_v37, %v2276_v16 }
 0x892   : > { %16939 = vmatpush3.bf16.msra.mxu1 %v2293_v63  ;;  %v2295_v4 = vpack.c.bf16 %v2285_v13, %v2282_v12 }
 0x893   : > { %v2294_v17 = vpack.c.bf16 %v2277_v3, %v2274_v2 }
 0x895   : > { %16940 = vmatprep.subr.bf16.mxu1 %v2294_v17 }
 0x896   : > { %16941 = vmatpush3.bf16.msra.mxu1 %v2294_v17 }
 0x897   : > { %16942 = vmatprep.subr.bf16.mxu1 %v2295_v4 }
 0x89a   : > { %16943 = vmatpush3.bf16.msra.mxu1 %v2295_v4 }
 0x89d   : > { %16945 = vmatmul.mubr.bf16.vlgmr.msra.gmra.mrb[80].mxu1 %v20007_v5 }
 0x89e   : > { %16948 = vmatprep.mubr.bf16.mxu1 %v20010_v18 }
 0x8a5   : > { %16949 = vmatmul.mubr.bf16.gmra.mrb[84].mxu1 %v20015_v6 }
 0x8a6   : > { %16952 = vmatprep.mubr.bf16.mxu1 %v20018_v19 }
 0x8ad   : > { %16953 = vmatmul.mubr.bf16.gmra.mrb[88].mxu1 %v20023_v7 }
 0x8ae   : > { %16956 = vmatprep.mubr.bf16.mxu1 %v20026_v20 }
 0x8b5   : > { %16957 = vmatmul.mubr.bf16.gmra.mrb[92].mxu1 %v20031_v21 }
 0x8b6   : > { %17008 = vmatprep.mubr.bf16.mxu1 %v20003_v39 }
 0x933   : > { %v16882_v31 = vpop.f32.mrb[64].mxu1 }
 0x934   : > { %v1968_v32 = vadd.f32 %v16882_v31, %v14099_v30  ;;  %v1959_v33 = vpop.f32.mrb[65].mxu1 }
 0x935   : > { %v1960_v34 = vadd.f32 %v14099_v30, %v1959_v33  ;;  %v16883_v35 = vpop.f32.mrb[66].mxu1 }
 0x936   : > { %2024 = vst [vmem:[%s20066_s14 + $0x10] sm:$0xff] %v1968_v32  ;;  %v1971_v36 = vadd.f32 %v16883_v35, %v14099_v30  ;;  %v1962_v37 = vpop.f32.mrb[67].mxu1 }
 0x937   : > { %2022 = vst [vmem:[%s20066_s14] sm:$0xff] %v1960_v34  ;;  %v1963_v38 = vadd.f32 %v14099_v30, %v1962_v37 }
 0x938   : > { %2025 = vst [vmem:[%s20066_s14 + $0x18] sm:$0xff] %v1971_v36 }
 0x939   : > { %2023 = vst [vmem:[%s20066_s14 + $0x8] sm:$0xff] %v1963_v38 }
 0x93b   : > { %v16886_v40 = vpop.f32.mrb[68].mxu1 }
 0x93c   : > { %v1984_v41 = vadd.f32 %v16886_v40, %v14099_v30  ;;  %v1975_v0 = vpop.f32.mrb[69].mxu1 }
 0x93d   : > { %v1976_v14 = vadd.f32 %v14099_v30, %v1975_v0  ;;  %v16887_v15 = vpop.f32.mrb[70].mxu1 }
 0x93e   : > { %2028 = vst [vmem:[%s20066_s14 + $0x30] sm:$0xff] %v1984_v41  ;;  %v1987_v1 = vadd.f32 %v16887_v15, %v14099_v30  ;;  %v1978_v42 = vpop.f32.mrb[71].mxu1 }
 0x93f   : > { %2026 = vst [vmem:[%s20066_s14 + $0x20] sm:$0xff] %v1976_v14  ;;  %v1979_v43 = vadd.f32 %v14099_v30, %v1978_v42 }
 0x940   : > { %2029 = vst [vmem:[%s20066_s14 + $0x38] sm:$0xff] %v1987_v1 }
 0x941   : > { %2027 = vst [vmem:[%s20066_s14 + $0x28] sm:$0xff] %v1979_v43 }
 0x943   : > { %v16890_v44 = vpop.f32.mrb[72].mxu1 }
 0x944   : > { %v2000_v45 = vadd.f32 %v16890_v44, %v14099_v30  ;;  %v1991_v46 = vpop.f32.mrb[73].mxu1  ;;  %v19240_v44 = vld [vmem:[%s21691_s2 + $0x80] sm:$0xff]  }
 0x945   : > { %v1992_v47 = vadd.f32 %v14099_v30, %v1991_v46  ;;  %v16891_v48 = vpop.f32.mrb[74].mxu1  ;;  %17024 = vmatprep.subr.bf16.mxu0 %v19240_v44  ;;  %v19242_v46 = vld [vmem:[%s21691_s2 + $0x90] sm:$0xff]  }
 0x946   : > { %2032 = vst [vmem:[%s20066_s14 + $0x50] sm:$0xff] %v2000_v45  ;;  %v2003_v49 = vadd.f32 %v16891_v48, %v14099_v30  ;;  %v1994_v50 = vpop.f32.mrb[75].mxu1  ;;  %v19241_v45 = vld [vmem:[%s21691_s2 + $0x88] sm:$0xff]   ;;  %v19244_v48 = vld [vmem:[%s21691_s2 + $0xa0] sm:$0xff]  }
 0x947   : > { %2030 = vst [vmem:[%s20066_s14 + $0x40] sm:$0xff] %v1992_v47  ;;  %v1995_v51 = vadd.f32 %v14099_v30, %v1994_v50  ;;  %v19243_v47 = vld [vmem:[%s21691_s2 + $0x98] sm:$0xff]  }
 0x948   : > { %2033 = vst [vmem:[%s20066_s14 + $0x58] sm:$0xff] %v2003_v49  ;;  %v19245_v49 = vld [vmem:[%s21691_s2 + $0xa8] sm:$0xff]  }
 0x949   : > { %2031 = vst [vmem:[%s20066_s14 + $0x48] sm:$0xff] %v1995_v51  ;;  %v14182_v51 = vld [vmem:[%s21692_s3 + $0x1] ss:$0 sm:$0xff] }
 0x94b   : > { %v16894_v52 = vpop.f32.mrb[76].mxu1 }
 0x94c   : > { %v2016_v53 = vadd.f32 %v16894_v52, %v14099_v30  ;;  %v2007_v54 = vpop.f32.mrb[77].mxu1 }
 0x94d   : > { %v2008_v55 = vadd.f32 %v14099_v30, %v2007_v54  ;;  %v16895_v56 = vpop.f32.mrb[78].mxu1 }
 0x94e   : > { %2036 = vst [vmem:[%s20066_s14 + $0x70] sm:$0xff] %v2016_v53  ;;  %v2019_v57 = vadd.f32 %v16895_v56, %v14099_v30  ;;  %v2010_v58 = vpop.f32.mrb[79].mxu1 }
 0x94f   : > { %2034 = vst [vmem:[%s20066_s14 + $0x60] sm:$0xff] %v2008_v55  ;;  %v2011_v59 = vadd.f32 %v14099_v30, %v2010_v58 }
 0x950   : > { %2037 = vst [vmem:[%s20066_s14 + $0x78] sm:$0xff] %v2019_v57 }
 0x951   : > { %2035 = vst [vmem:[%s20066_s14 + $0x68] sm:$0xff] %v2011_v59 }
 0x970   : > { %v16946_v60 = vpop.f32.mrb[80].mxu1 }
 0x971   : > { %v2378_v61 = vpop.f32.mrb[81].mxu1  ;;  %v2443_v63 = vmax.f32 %v16946_v60, 0.0 }
 0x972   : > { %v16947_v62 = vpop.f32.mrb[82].mxu1  ;;  %v2441_v10 = vmax.f32 %v2378_v61, 0.0 }
 0x973   : > { %v2444_v8 = vmax.f32 %v16947_v62, 0.0  ;;  %v2381_v9 = vpop.f32.mrb[83].mxu1 }
 0x974   : > { %v2442_v11 = vmax.f32 %v2381_v9, 0.0 }
 0x975   : > { %v2458_v12 = vpack.c.bf16 %v2444_v8, %v2443_v63 }
 0x976   : > { %v2457_v13 = vpack.c.bf16 %v2442_v11, %v2441_v10 }
 0x978   : > { %v16950_v16 = vpop.f32.mrb[84].mxu1  ;;  %16976 = vmatprep.mubr.bf16.mxu0 %v2457_v13 }
 0x979   : > { %v2394_v2 = vpop.f32.mrb[85].mxu1  ;;  %16977 = vmatmul.mubr.bf16.vlgmr.msra.gmra.mrb[96].mxu0 %v2458_v12  ;;  %v2447_v4 = vmax.f32 %v16950_v16, 0.0 }
 0x97a   : > { %v16951_v3 = vpop.f32.mrb[86].mxu1  ;;  %v2445_v23 = vmax.f32 %v2394_v2, 0.0  ;;  %17025 = vmatpush3.bf16.msra.mxu0 %v19240_v44 }
 0x97b   : > { %v2448_v17 = vmax.f32 %v16951_v3, 0.0  ;;  %v2397_v22 = vpop.f32.mrb[87].mxu1  ;;  %17026 = vmatprep.subr.bf16.mxu0 %v19241_v45 }
 0x97c   : > { %v2446_v24 = vmax.f32 %v2397_v22, 0.0 }
 0x97d   : > { %v2460_v25 = vpack.c.bf16 %v2448_v17, %v2447_v4 }
 0x97e   : > { %v2459_v26 = vpack.c.bf16 %v2446_v24, %v2445_v23  ;;  %17027 = vmatpush3.bf16.msra.mxu0 %v19241_v45 }
 0x97f   : > { %17028 = vmatprep.subr.bf16.mxu0 %v19242_v46 }
 0x980   : > { %v16954_v27 = vpop.f32.mrb[88].mxu1  ;;  %16980 = vmatprep.mubr.bf16.mxu0 %v2459_v26 }
 0x981   : > { %v2410_v28 = vpop.f32.mrb[89].mxu1  ;;  %16981 = vmatmul.mubr.bf16.gmra.mrb[100].mxu0 %v2460_v25  ;;  %v2451_v30 = vmax.f32 %v16954_v27, 0.0 }
 0x982   : > { %v16955_v29 = vpop.f32.mrb[90].mxu1  ;;  %v2449_v33 = vmax.f32 %v2410_v28, 0.0  ;;  %17029 = vmatpush3.bf16.msra.mxu0 %v19242_v46 }
 0x983   : > { %v2452_v31 = vmax.f32 %v16955_v29, 0.0  ;;  %v2413_v32 = vpop.f32.mrb[91].mxu1  ;;  %17030 = vmatprep.subr.bf16.mxu0 %v19243_v47 }
 0x984   : > { %v2450_v34 = vmax.f32 %v2413_v32, 0.0 }
 0x985   : > { %v2462_v35 = vpack.c.bf16 %v2452_v31, %v2451_v30 }
 0x986   : > { %v2461_v36 = vpack.c.bf16 %v2450_v34, %v2449_v33  ;;  %17031 = vmatpush3.bf16.msra.mxu0 %v19243_v47 }
 0x987   : > { %17032 = vmatprep.subr.bf16.mxu0 %v19244_v48 }
 0x988   : > { %v16958_v37 = vpop.f32.mrb[92].mxu1  ;;  %16984 = vmatprep.mubr.bf16.mxu0 %v2461_v36 }
 0x989   : > { %v2426_v38 = vpop.f32.mrb[93].mxu1  ;;  %16985 = vmatmul.mubr.bf16.gmra.mrb[104].mxu0 %v2462_v35  ;;  %v2455_v41 = vmax.f32 %v16958_v37, 0.0 }
 0x98a   : > { %v16959_v40 = vpop.f32.mrb[94].mxu1  ;;  %v2453_v15 = vmax.f32 %v2426_v38, 0.0  ;;  %17033 = vmatpush3.bf16.msra.mxu0 %v19244_v48  ;;  %v19246_v38 = vld [vmem:[%s21691_s2 + $0xb0] sm:$0xff]  }
 0x98b   : > { %v2456_v0 = vmax.f32 %v16959_v40, 0.0  ;;  %v2429_v14 = vpop.f32.mrb[95].mxu1  ;;  %17034 = vmatprep.subr.bf16.mxu0 %v19245_v49  ;;  %v19247_v40 = vld [vmem:[%s21691_s2 + $0xb8] sm:$0xff]  }
 0x98c   : > { %v2454_v1 = vmax.f32 %v2429_v14, 0.0 }
 0x98d   : > { %v2464_v42 = vpack.c.bf16 %v2456_v0, %v2455_v41 }
 0x98e   : > { %v2463_v43 = vpack.c.bf16 %v2454_v1, %v2453_v15  ;;  %17035 = vmatpush3.bf16.msra.mxu0 %v19245_v49 }
 0x98f   : > { %17036 = vmatprep.subr.bf16.mxu0 %v19246_v38 }
 0x990   : > { %16988 = vmatprep.mubr.bf16.mxu0 %v2463_v43 }
 0x991   : > { %16989 = vmatmul.mubr.bf16.gmra.mrb[108].mxu0 %v2464_v42 }
 0x992   : > { %17037 = vmatpush3.bf16.msra.mxu0 %v19246_v38 }
 0x993   : > { %17038 = vmatprep.subr.bf16.mxu0 %v19247_v40 }
 0x996   : > { %17039 = vmatpush3.bf16.msra.mxu0 %v19247_v40 }
 0xa4c   : > { %v16978_v50 = vpop.f32.mrb[96].mxu0 }
 0xa4d   : > { %v2570_v52 = vpop.f32.mrb[97].mxu0  ;;  %v2579_v54 = vadd.f32 %v16978_v50, %v14182_v51 }
 0xa4e   : > { %v16979_v53 = vpop.f32.mrb[98].mxu0  ;;  %v2571_v57 = vadd.f32 %v14182_v51, %v2570_v52 }
 0xa4f   : > { %v2582_v55 = vadd.f32 %v16979_v53, %v14182_v51  ;;  %v2573_v56 = vpop.f32.mrb[99].mxu0 }
 0xa50   : > { %v2574_v58 = vadd.f32 %v14182_v51, %v2573_v56 }
 0xa51   : > { %v2634_v59 = vpack.c.bf16 %v2582_v55, %v2579_v54 }
 0xa52   : > { %v2633_v60 = vpack.c.bf16 %v2574_v58, %v2571_v57 }
 0xa54   : > { %v16982_v61 = vpop.f32.mrb[100].mxu0  ;;  %16992 = vmatprep.subr.bf16.mxu1 %v2633_v60 }
 0xa55   : > { %v2586_v62 = vpop.f32.mrb[101].mxu0  ;;  %16993 = vmatpush3.bf16.msra.mxu1 %v2633_v60  ;;  %v2595_v8 = vadd.f32 %v16982_v61, %v14182_v51 }
 0xa56   : > { %v16983_v63 = vpop.f32.mrb[102].mxu0  ;;  %16994 = vmatprep.subr.bf16.mxu1 %v2634_v59  ;;  %v2587_v11 = vadd.f32 %v14182_v51, %v2586_v62 }
 0xa57   : > { %v2598_v9 = vadd.f32 %v16983_v63, %v14182_v51  ;;  %v2589_v10 = vpop.f32.mrb[103].mxu0 }
 0xa58   : > { %v2590_v12 = vadd.f32 %v14182_v51, %v2589_v10 }
 0xa59   : > { %16995 = vmatpush3.bf16.msra.mxu1 %v2634_v59  ;;  %v2636_v13 = vpack.c.bf16 %v2598_v9, %v2595_v8 }
 0xa5a   : > { %v2635_v16 = vpack.c.bf16 %v2590_v12, %v2587_v11 }
 0xa5c   : > { %v16986_v2 = vpop.f32.mrb[104].mxu0  ;;  %16996 = vmatprep.subr.bf16.mxu1 %v2635_v16 }
 0xa5d   : > { %v2602_v3 = vpop.f32.mrb[105].mxu0  ;;  %16997 = vmatpush3.bf16.msra.mxu1 %v2635_v16  ;;  %v2611_v17 = vadd.f32 %v16986_v2, %v14182_v51 }
 0xa5e   : > { %v16987_v4 = vpop.f32.mrb[106].mxu0  ;;  %16998 = vmatprep.subr.bf16.mxu1 %v2636_v13  ;;  %v2603_v24 = vadd.f32 %v14182_v51, %v2602_v3 }
 0xa5f   : > { %v2614_v22 = vadd.f32 %v16987_v4, %v14182_v51  ;;  %v2605_v23 = vpop.f32.mrb[107].mxu0 }
 0xa60   : > { %v2606_v25 = vadd.f32 %v14182_v51, %v2605_v23 }
 0xa61   : > { %16999 = vmatpush3.bf16.msra.mxu1 %v2636_v13  ;;  %v2638_v26 = vpack.c.bf16 %v2614_v22, %v2611_v17 }
 0xa62   : > { %v2637_v27 = vpack.c.bf16 %v2606_v25, %v2603_v24  ;;  %v19248_v24 = vld [vmem:[%s21691_s2 + $0xc0] sm:$0xff]   ;;  %v19249_v25 = vld [vmem:[%s21691_s2 + $0xc8] sm:$0xff]  }
 0xa63   : > { %17088 = vmatprep.subr.bf16.mxu0 %v19248_v24 }
 0xa64   : > { %v16990_v28 = vpop.f32.mrb[108].mxu0  ;;  %17000 = vmatprep.subr.bf16.mxu1 %v2637_v27 }
 0xa65   : > { %v2618_v29 = vpop.f32.mrb[109].mxu0  ;;  %17001 = vmatpush3.bf16.msra.mxu1 %v2637_v27  ;;  %v2627_v31 = vadd.f32 %v16990_v28, %v14182_v51  ;;  %v19251_v27 = vld [vmem:[%s21691_s2 + $0xd8] sm:$0xff]   ;;  %v19252_v28 = vld [vmem:[%s21691_s2 + $0xe0] sm:$0xff]  }
 0xa66   : > { %v16991_v30 = vpop.f32.mrb[110].mxu0  ;;  %17002 = vmatprep.subr.bf16.mxu1 %v2638_v26  ;;  %v2619_v34 = vadd.f32 %v14182_v51, %v2618_v29  ;;  %v19253_v29 = vld [vmem:[%s21691_s2 + $0xe8] sm:$0xff]  }
 0xa67   : > { %v2630_v32 = vadd.f32 %v16991_v30, %v14182_v51  ;;  %v2621_v33 = vpop.f32.mrb[111].mxu0 }
 0xa68   : > { %v2622_v35 = vadd.f32 %v14182_v51, %v2621_v33 }
 0xa69   : > { %17003 = vmatpush3.bf16.msra.mxu1 %v2638_v26  ;;  %v2640_v36 = vpack.c.bf16 %v2630_v32, %v2627_v31  ;;  %v19250_v26 = vld [vmem:[%s21691_s2 + $0xd0] sm:$0xff]   ;;  %v14208_v31 = vld [vmem:[%s21692_s3 + $0x2] ss:$0 sm:$0xff] }
 0xa6a   : > { %v2639_v37 = vpack.c.bf16 %v2622_v35, %v2619_v34 }
 0xa6c   : > { %17004 = vmatprep.subr.bf16.mxu1 %v2639_v37 }
 0xa6d   : > { %17005 = vmatpush3.bf16.msra.mxu1 %v2639_v37 }
 0xa6e   : > { %17006 = vmatprep.subr.bf16.mxu1 %v2640_v36 }
 0xa71   : > { %17007 = vmatpush3.bf16.msra.mxu1 %v2640_v36 }
 0xa74   : > { %17009 = vmatmul.mubr.bf16.vlgmr.msra.gmra.mrb[96].mxu1 %v20007_v5 }
 0xa75   : > { %17012 = vmatprep.mubr.bf16.mxu1 %v20010_v18 }
 0xa7c   : > { %17013 = vmatmul.mubr.bf16.gmra.mrb[100].mxu1 %v20015_v6 }
 0xa7d   : > { %17016 = vmatprep.mubr.bf16.mxu1 %v20018_v19 }
 0xa84   : > { %17017 = vmatmul.mubr.bf16.gmra.mrb[104].mxu1 %v20023_v7 }
 0xa85   : > { %17020 = vmatprep.mubr.bf16.mxu1 %v20026_v20 }
 0xa8c   : > { %17021 = vmatmul.mubr.bf16.gmra.mrb[108].mxu1 %v20031_v21 }
 0xa8d   : > { %17072 = vmatprep.mubr.bf16.mxu1 %v20003_v39 }
 0xb47   : > { %v17010_v41 = vpop.f32.mrb[96].mxu1 }
 0xb48   : > { %v2675_v0 = vpop.f32.mrb[97].mxu1  ;;  %v2740_v15 = vmax.f32 %v17010_v41, 0.0 }
 0xb49   : > { %v17011_v14 = vpop.f32.mrb[98].mxu1  ;;  %v2738_v43 = vmax.f32 %v2675_v0, 0.0 }
 0xb4a   : > { %v2741_v1 = vmax.f32 %v17011_v14, 0.0  ;;  %v2678_v42 = vpop.f32.mrb[99].mxu1 }
 0xb4b   : > { %v2739_v44 = vmax.f32 %v2678_v42, 0.0 }
 0xb4c   : > { %v2755_v45 = vpack.c.bf16 %v2741_v1, %v2740_v15 }
 0xb4d   : > { %v2754_v46 = vpack.c.bf16 %v2739_v44, %v2738_v43 }
 0xb4f   : > { %v17014_v47 = vpop.f32.mrb[100].mxu1  ;;  %17040 = vmatprep.mubr.bf16.mxu0 %v2754_v46 }
 0xb50   : > { %v2691_v48 = vpop.f32.mrb[101].mxu1  ;;  %17041 = vmatmul.mubr.bf16.vlgmr.msra.gmra.mrb[112].mxu0 %v2755_v45  ;;  %v2744_v50 = vmax.f32 %v17014_v47, 0.0 }
 0xb51   : > { %v17015_v49 = vpop.f32.mrb[102].mxu1  ;;  %v2742_v53 = vmax.f32 %v2691_v48, 0.0  ;;  %17089 = vmatpush3.bf16.msra.mxu0 %v19248_v24 }
 0xb52   : > { %v2745_v51 = vmax.f32 %v17015_v49, 0.0  ;;  %v2694_v52 = vpop.f32.mrb[103].mxu1  ;;  %17090 = vmatprep.subr.bf16.mxu0 %v19249_v25 }
 0xb53   : > { %v2743_v54 = vmax.f32 %v2694_v52, 0.0 }
 0xb54   : > { %v2757_v55 = vpack.c.bf16 %v2745_v51, %v2744_v50 }
 0xb55   : > { %v2756_v56 = vpack.c.bf16 %v2743_v54, %v2742_v53  ;;  %17091 = vmatpush3.bf16.msra.mxu0 %v19249_v25 }
 0xb56   : > { %17092 = vmatprep.subr.bf16.mxu0 %v19250_v26 }
 0xb57   : > { %v17018_v57 = vpop.f32.mrb[104].mxu1  ;;  %17044 = vmatprep.mubr.bf16.mxu0 %v2756_v56 }
 0xb58   : > { %v2707_v58 = vpop.f32.mrb[105].mxu1  ;;  %17045 = vmatmul.mubr.bf16.gmra.mrb[116].mxu0 %v2757_v55  ;;  %v2748_v60 = vmax.f32 %v17018_v57, 0.0 }
 0xb59   : > { %v17019_v59 = vpop.f32.mrb[106].mxu1  ;;  %v2746_v63 = vmax.f32 %v2707_v58, 0.0  ;;  %17093 = vmatpush3.bf16.msra.mxu0 %v19250_v26 }
 0xb5a   : > { %v2749_v61 = vmax.f32 %v17019_v59, 0.0  ;;  %v2710_v62 = vpop.f32.mrb[107].mxu1  ;;  %17094 = vmatprep.subr.bf16.mxu0 %v19251_v27 }
 0xb5b   : > { %v2747_v8 = vmax.f32 %v2710_v62, 0.0 }
 0xb5c   : > { %v2759_v9 = vpack.c.bf16 %v2749_v61, %v2748_v60 }
 0xb5d   : > { %v2758_v10 = vpack.c.bf16 %v2747_v8, %v2746_v63  ;;  %17095 = vmatpush3.bf16.msra.mxu0 %v19251_v27 }
 0xb5e   : > { %17096 = vmatprep.subr.bf16.mxu0 %v19252_v28 }
 0xb5f   : > { %v17022_v11 = vpop.f32.mrb[108].mxu1  ;;  %17048 = vmatprep.mubr.bf16.mxu0 %v2758_v10 }
 0xb60   : > { %v2723_v12 = vpop.f32.mrb[109].mxu1  ;;  %17049 = vmatmul.mubr.bf16.gmra.mrb[120].mxu0 %v2759_v9  ;;  %v2752_v16 = vmax.f32 %v17022_v11, 0.0 }
 0xb61   : > { %v17023_v13 = vpop.f32.mrb[110].mxu1  ;;  %v2750_v4 = vmax.f32 %v2723_v12, 0.0  ;;  %17097 = vmatpush3.bf16.msra.mxu0 %v19252_v28  ;;  %v19254_v12 = vld [vmem:[%s21691_s2 + $0xf0] sm:$0xff]  }
 0xb62   : > { %v2753_v2 = vmax.f32 %v17023_v13, 0.0  ;;  %v2726_v3 = vpop.f32.mrb[111].mxu1  ;;  %17098 = vmatprep.subr.bf16.mxu0 %v19253_v29  ;;  %v19255_v13 = vld [vmem:[%s21691_s2 + $0xf8] sm:$0xff]  }
 0xb63   : > { %v2751_v17 = vmax.f32 %v2726_v3, 0.0 }
 0xb64   : > { %v2761_v22 = vpack.c.bf16 %v2753_v2, %v2752_v16 }
 0xb65   : > { %v2760_v23 = vpack.c.bf16 %v2751_v17, %v2750_v4  ;;  %17099 = vmatpush3.bf16.msra.mxu0 %v19253_v29 }
 0xb66   : > { %17100 = vmatprep.subr.bf16.mxu0 %v19254_v12 }
 0xb67   : > { %17052 = vmatprep.mubr.bf16.mxu0 %v2760_v23 }
 0xb68   : > { %17053 = vmatmul.mubr.bf16.gmra.mrb[124].mxu0 %v2761_v22 }
 0xb69   : > { %17101 = vmatpush3.bf16.msra.mxu0 %v19254_v12 }
 0xb6a   : > { %17102 = vmatprep.subr.bf16.mxu0 %v19255_v13 }
 0xb6d   : > { %17103 = vmatpush3.bf16.msra.mxu0 %v19255_v13 }
 0xc23   : > { %v17042_v30 = vpop.f32.mrb[112].mxu0 }
 0xc24   : > { %v2867_v32 = vpop.f32.mrb[113].mxu0  ;;  %v2876_v34 = vadd.f32 %v17042_v30, %v14208_v31 }
 0xc25   : > { %v17043_v33 = vpop.f32.mrb[114].mxu0  ;;  %v2868_v37 = vadd.f32 %v14208_v31, %v2867_v32 }
 0xc26   : > { %v2879_v35 = vadd.f32 %v17043_v33, %v14208_v31  ;;  %v2870_v36 = vpop.f32.mrb[115].mxu0 }
 0xc27   : > { %v2871_v38 = vadd.f32 %v14208_v31, %v2870_v36 }
 0xc28   : > { %v2931_v40 = vpack.c.bf16 %v2879_v35, %v2876_v34 }
 0xc29   : > { %v2930_v41 = vpack.c.bf16 %v2871_v38, %v2868_v37 }
 0xc2b   : > { %v17046_v0 = vpop.f32.mrb[116].mxu0  ;;  %17056 = vmatprep.subr.bf16.mxu1 %v2930_v41 }
 0xc2c   : > { %v2883_v14 = vpop.f32.mrb[117].mxu0  ;;  %17057 = vmatpush3.bf16.msra.mxu1 %v2930_v41  ;;  %v2892_v1 = vadd.f32 %v17046_v0, %v14208_v31 }
 0xc2d   : > { %v17047_v15 = vpop.f32.mrb[118].mxu0  ;;  %17058 = vmatprep.subr.bf16.mxu1 %v2931_v40  ;;  %v2884_v44 = vadd.f32 %v14208_v31, %v2883_v14 }
 0xc2e   : > { %v2895_v42 = vadd.f32 %v17047_v15, %v14208_v31  ;;  %v2886_v43 = vpop.f32.mrb[119].mxu0 }
 0xc2f   : > { %v2887_v45 = vadd.f32 %v14208_v31, %v2886_v43 }
 0xc30   : > { %17059 = vmatpush3.bf16.msra.mxu1 %v2931_v40  ;;  %v2933_v46 = vpack.c.bf16 %v2895_v42, %v2892_v1 }
 0xc31   : > { %v2932_v47 = vpack.c.bf16 %v2887_v45, %v2884_v44 }
 0xc33   : > { %v17050_v48 = vpop.f32.mrb[120].mxu0  ;;  %17060 = vmatprep.subr.bf16.mxu1 %v2932_v47 }
 0xc34   : > { %v2899_v49 = vpop.f32.mrb[121].mxu0  ;;  %17061 = vmatpush3.bf16.msra.mxu1 %v2932_v47  ;;  %v2908_v51 = vadd.f32 %v17050_v48, %v14208_v31 }
 0xc35   : > { %v17051_v50 = vpop.f32.mrb[122].mxu0  ;;  %17062 = vmatprep.subr.bf16.mxu1 %v2933_v46  ;;  %v2900_v54 = vadd.f32 %v14208_v31, %v2899_v49 }
 0xc36   : > { %v2911_v52 = vadd.f32 %v17051_v50, %v14208_v31  ;;  %v2902_v53 = vpop.f32.mrb[123].mxu0 }
 0xc37   : > { %v2903_v55 = vadd.f32 %v14208_v31, %v2902_v53  ;;  %v19256_v53 = vld [vmem:[%s21693_s4] sm:$0xff]  }
 0xc38   : > { %17063 = vmatpush3.bf16.msra.mxu1 %v2933_v46  ;;  %v2935_v56 = vpack.c.bf16 %v2911_v52, %v2908_v51  ;;  %17152 = vmatprep.subr.bf16.mxu0 %v19256_v53 }
 0xc39   : > { %v2934_v57 = vpack.c.bf16 %v2903_v55, %v2900_v54  ;;  %v19257_v54 = vld [vmem:[%s21693_s4 + $0x8] sm:$0xff]   ;;  %v19258_v55 = vld [vmem:[%s21693_s4 + $0x10] sm:$0xff]  }
 0xc3b   : > { %v17054_v58 = vpop.f32.mrb[124].mxu0  ;;  %17064 = vmatprep.subr.bf16.mxu1 %v2934_v57 }
 0xc3c   : > { %v2915_v59 = vpop.f32.mrb[125].mxu0  ;;  %17065 = vmatpush3.bf16.msra.mxu1 %v2934_v57  ;;  %v2924_v61 = vadd.f32 %v17054_v58, %v14208_v31  ;;  %v19260_v57 = vld [vmem:[%s21693_s4 + $0x20] sm:$0xff]   ;;  %v19261_v58 = vld [vmem:[%s21693_s4 + $0x28] sm:$0xff]  }
 0xc3d   : > { %v17055_v60 = vpop.f32.mrb[126].mxu0  ;;  %17066 = vmatprep.subr.bf16.mxu1 %v2935_v56  ;;  %v2916_v8 = vadd.f32 %v14208_v31, %v2915_v59 }
 0xc3e   : > { %v2927_v62 = vadd.f32 %v17055_v60, %v14208_v31  ;;  %v2918_v63 = vpop.f32.mrb[127].mxu0  ;;  %v14234_v60 = vld [vmem:[%s21692_s3 + $0x3] ss:$0 sm:$0xff] }
 0xc3f   : > { %v2919_v9 = vadd.f32 %v14208_v31, %v2918_v63 }
 0xc40   : > { %17067 = vmatpush3.bf16.msra.mxu1 %v2935_v56  ;;  %v2937_v10 = vpack.c.bf16 %v2927_v62, %v2924_v61  ;;  %v19259_v56 = vld [vmem:[%s21693_s4 + $0x18] sm:$0xff]  }
 0xc41   : > { %v2936_v11 = vpack.c.bf16 %v2919_v9, %v2916_v8 }
 0xc43   : > { %17068 = vmatprep.subr.bf16.mxu1 %v2936_v11 }
 0xc44   : > { %17069 = vmatpush3.bf16.msra.mxu1 %v2936_v11 }
 0xc45   : > { %17070 = vmatprep.subr.bf16.mxu1 %v2937_v10 }
 0xc48   : > { %17071 = vmatpush3.bf16.msra.mxu1 %v2937_v10 }
 0xc4b   : > { %17073 = vmatmul.mubr.bf16.vlgmr.msra.gmra.mrb[112].mxu1 %v20007_v5 }
 0xc4c   : > { %17076 = vmatprep.mubr.bf16.mxu1 %v20010_v18 }
 0xc53   : > { %17077 = vmatmul.mubr.bf16.gmra.mrb[116].mxu1 %v20015_v6 }
 0xc54   : > { %17080 = vmatprep.mubr.bf16.mxu1 %v20018_v19 }
 0xc5b   : > { %17081 = vmatmul.mubr.bf16.gmra.mrb[120].mxu1 %v20023_v7 }
 0xc5c   : > { %17084 = vmatprep.mubr.bf16.mxu1 %v20026_v20 }
 0xc63   : > { %17085 = vmatmul.mubr.bf16.gmra.mrb[124].mxu1 %v20031_v21 }
 0xc64   : > { %17136 = vmatprep.mubr.bf16.mxu1 %v20003_v39 }
 0xd1e   : > { %v17074_v16 = vpop.f32.mrb[112].mxu1 }
 0xd1f   : > { %v2972_v2 = vpop.f32.mrb[113].mxu1  ;;  %v3037_v4 = vmax.f32 %v17074_v16, 0.0 }
 0xd20   : > { %v17075_v3 = vpop.f32.mrb[114].mxu1  ;;  %v3035_v23 = vmax.f32 %v2972_v2, 0.0 }
 0xd21   : > { %v3038_v17 = vmax.f32 %v17075_v3, 0.0  ;;  %v2975_v22 = vpop.f32.mrb[115].mxu1 }
 0xd22   : > { %v3036_v39 = vmax.f32 %v2975_v22, 0.0 }
 0xd23   : > { %v3052_v24 = vpack.c.bf16 %v3038_v17, %v3037_v4 }
 0xd24   : > { %v3051_v25 = vpack.c.bf16 %v3036_v39, %v3035_v23 }
 0xd26   : > { %v17078_v26 = vpop.f32.mrb[116].mxu1  ;;  %17104 = vmatprep.mubr.bf16.mxu0 %v3051_v25 }
 0xd27   : > { %v2988_v27 = vpop.f32.mrb[117].mxu1  ;;  %17105 = vmatmul.mubr.bf16.vlgmr.msra.gmra.mrb[128].mxu0 %v3052_v24  ;;  %v3041_v29 = vmax.f32 %v17078_v26, 0.0 }
 0xd28   : > { %v17079_v28 = vpop.f32.mrb[118].mxu1  ;;  %v3039_v32 = vmax.f32 %v2988_v27, 0.0  ;;  %17153 = vmatpush3.bf16.msra.mxu0 %v19256_v53 }
 0xd29   : > { %v3042_v30 = vmax.f32 %v17079_v28, 0.0  ;;  %v2991_v31 = vpop.f32.mrb[119].mxu1  ;;  %17154 = vmatprep.subr.bf16.mxu0 %v19257_v54 }
 0xd2a   : > { %v3040_v33 = vmax.f32 %v2991_v31, 0.0 }
 0xd2b   : > { %v3054_v34 = vpack.c.bf16 %v3042_v30, %v3041_v29 }
 0xd2c   : > { %v3053_v35 = vpack.c.bf16 %v3040_v33, %v3039_v32  ;;  %17155 = vmatpush3.bf16.msra.mxu0 %v19257_v54 }
 0xd2d   : > { %17156 = vmatprep.subr.bf16.mxu0 %v19258_v55 }
 0xd2e   : > { %v17082_v36 = vpop.f32.mrb[120].mxu1  ;;  %17108 = vmatprep.mubr.bf16.mxu0 %v3053_v35 }
 0xd2f   : > { %v3004_v37 = vpop.f32.mrb[121].mxu1  ;;  %17109 = vmatmul.mubr.bf16.gmra.mrb[132].mxu0 %v3054_v34  ;;  %v3045_v40 = vmax.f32 %v17082_v36, 0.0 }
 0xd30   : > { %v17083_v38 = vpop.f32.mrb[122].mxu1  ;;  %v3043_v14 = vmax.f32 %v3004_v37, 0.0  ;;  %17157 = vmatpush3.bf16.msra.mxu0 %v19258_v55  ;;  %v19265_v55 = vld [vmem:[%s21691_s2 + $0x8] sm:$0xff]  }
 0xd31   : > { %v3046_v41 = vmax.f32 %v17083_v38, 0.0  ;;  %v3007_v0 = vpop.f32.mrb[123].mxu1  ;;  %17158 = vmatprep.subr.bf16.mxu0 %v19259_v56 }
 0xd32   : > { %v3044_v15 = vmax.f32 %v3007_v0, 0.0 }
 0xd33   : > { %v3056_v1 = vpack.c.bf16 %v3046_v41, %v3045_v40 }
 0xd34   : > { %v3055_v42 = vpack.c.bf16 %v3044_v15, %v3043_v14  ;;  %17159 = vmatpush3.bf16.msra.mxu0 %v19259_v56 }
 0xd35   : > { %17160 = vmatprep.subr.bf16.mxu0 %v19260_v57 }
 0xd36   : > { %v17086_v43 = vpop.f32.mrb[124].mxu1  ;;  %17112 = vmatprep.mubr.bf16.mxu0 %v3055_v42 }
 0xd37   : > { %v3020_v44 = vpop.f32.mrb[125].mxu1  ;;  %17113 = vmatmul.mubr.bf16.gmra.mrb[136].mxu0 %v3056_v1  ;;  %v3049_v46 = vmax.f32 %v17086_v43, 0.0  ;;  %v19262_v43 = vld [vmem:[%s21693_s4 + $0x30] sm:$0xff]  }
 0xd38   : > { %v17087_v45 = vpop.f32.mrb[126].mxu1  ;;  %v3047_v49 = vmax.f32 %v3020_v44, 0.0  ;;  %17161 = vmatpush3.bf16.msra.mxu0 %v19260_v57  ;;  %v19285_v44 = vld [vmem:[%s21695_s6 + $0x28] sm:$0xff]  }
 0xd39   : > { %v3050_v47 = vmax.f32 %v17087_v45, 0.0  ;;  %v3023_v48 = vpop.f32.mrb[127].mxu1  ;;  %17162 = vmatprep.subr.bf16.mxu0 %v19261_v58 }
 0xd3a   : > { %v3048_v50 = vmax.f32 %v3023_v48, 0.0 }
 0xd3b   : > { %v3058_v51 = vpack.c.bf16 %v3050_v47, %v3049_v46 }
 0xd3c   : > { %v3057_v52 = vpack.c.bf16 %v3048_v50, %v3047_v49  ;;  %17163 = vmatpush3.bf16.msra.mxu0 %v19261_v58 }
 0xd3d   : > { %17164 = vmatprep.subr.bf16.mxu0 %v19262_v43 }
 0xd3e   : > { %17116 = vmatprep.mubr.bf16.mxu0 %v3057_v52 }
 0xd3f   : > { %17117 = vmatmul.mubr.bf16.gmra.mrb[140].mxu0 %v3058_v51 }
 0xd40   : > { %17165 = vmatpush3.bf16.msra.mxu0 %v19262_v43  ;;  %v19286_v43 = vld [vmem:[%s21695_s6 + $0x30] sm:$0xff]  }
 0xdfa   : > { %v17106_v59 = vpop.f32.mrb[128].mxu0 }
 0xdfb   : > { %v3164_v61 = vpop.f32.mrb[129].mxu0  ;;  %v3173_v63 = vadd.f32 %v17106_v59, %v14234_v60 }
 0xdfc   : > { %v17107_v62 = vpop.f32.mrb[130].mxu0  ;;  %v3165_v10 = vadd.f32 %v14234_v60, %v3164_v61 }
 0xdfd   : > { %v3176_v8 = vadd.f32 %v17107_v62, %v14234_v60  ;;  %v3167_v9 = vpop.f32.mrb[131].mxu0  ;;  %v19266_v62 = vld [vmem:[%s21691_s2 + $0x10] sm:$0xff]  }
 0xdfe   : > { %v3168_v11 = vadd.f32 %v14234_v60, %v3167_v9 }
 0xdff   : > { %v3228_v12 = vpack.c.bf16 %v3176_v8, %v3173_v63 }
 0xe00   : > { %v3227_v13 = vpack.c.bf16 %v3168_v11, %v3165_v10  ;;  %v19267_v11 = vld [vmem:[%s21691_s2 + $0x18] sm:$0xff]  }
 0xe02   : > { %v17110_v16 = vpop.f32.mrb[132].mxu0  ;;  %17120 = vmatprep.subr.bf16.mxu1 %v3227_v13 }
 0xe03   : > { %v3180_v2 = vpop.f32.mrb[133].mxu0  ;;  %17121 = vmatpush3.bf16.msra.mxu1 %v3227_v13  ;;  %v3189_v4 = vadd.f32 %v17110_v16, %v14234_v60 }
 0xe04   : > { %v17111_v3 = vpop.f32.mrb[134].mxu0  ;;  %17122 = vmatprep.subr.bf16.mxu1 %v3228_v12  ;;  %v3181_v23 = vadd.f32 %v14234_v60, %v3180_v2 }
 0xe05   : > { %v3192_v17 = vadd.f32 %v17111_v3, %v14234_v60  ;;  %v3183_v22 = vpop.f32.mrb[135].mxu0 }
 0xe06   : > { %v3184_v39 = vadd.f32 %v14234_v60, %v3183_v22 }
 0xe07   : > { %17123 = vmatpush3.bf16.msra.mxu1 %v3228_v12  ;;  %v3230_v24 = vpack.c.bf16 %v3192_v17, %v3189_v4  ;;  %v19268_v17 = vld [vmem:[%s21691_s2 + $0x20] sm:$0xff]  }
 0xe08   : > { %v3229_v25 = vpack.c.bf16 %v3184_v39, %v3181_v23 }
 0xe0a   : > { %v17114_v26 = vpop.f32.mrb[136].mxu0  ;;  %17124 = vmatprep.subr.bf16.mxu1 %v3229_v25 }
 0xe0b   : > { %v3196_v27 = vpop.f32.mrb[137].mxu0  ;;  %17125 = vmatpush3.bf16.msra.mxu1 %v3229_v25  ;;  %v3205_v29 = vadd.f32 %v17114_v26, %v14234_v60  ;;  %v19269_v25 = vld [vmem:[%s21691_s2 + $0x28] sm:$0xff]  }
 0xe0c   : > { %v17115_v28 = vpop.f32.mrb[138].mxu0  ;;  %17126 = vmatprep.subr.bf16.mxu1 %v3230_v24  ;;  %v3197_v32 = vadd.f32 %v14234_v60, %v3196_v27 }
 0xe0d   : > { %v3208_v30 = vadd.f32 %v17115_v28, %v14234_v60  ;;  %v3199_v31 = vpop.f32.mrb[139].mxu0 }
 0xe0e   : > { %v3200_v33 = vadd.f32 %v14234_v60, %v3199_v31 }
 0xe0f   : > { %17127 = vmatpush3.bf16.msra.mxu1 %v3230_v24  ;;  %v3232_v34 = vpack.c.bf16 %v3208_v30, %v3205_v29 }
 0xe10   : > { %v3231_v35 = vpack.c.bf16 %v3200_v33, %v3197_v32  ;;  %v19270_v32 = vld [vmem:[%s21691_s2 + $0x30] sm:$0xff]  }
 0xe12   : > { %v17118_v36 = vpop.f32.mrb[140].mxu0  ;;  %17128 = vmatprep.subr.bf16.mxu1 %v3231_v35 }
 0xe13   : > { %v3212_v37 = vpop.f32.mrb[141].mxu0  ;;  %17129 = vmatpush3.bf16.msra.mxu1 %v3231_v35  ;;  %v3221_v40 = vadd.f32 %v17118_v36, %v14234_v60 }
 0xe14   : > { %v17119_v38 = vpop.f32.mrb[142].mxu0  ;;  %17130 = vmatprep.subr.bf16.mxu1 %v3232_v34  ;;  %v3213_v14 = vadd.f32 %v14234_v60, %v3212_v37  ;;  %v19272_v37 = vld [vmem:[%s19740_s17 + $0x80] sm:$0xff]  }
 0xe15   : > { %v3224_v41 = vadd.f32 %v17119_v38, %v14234_v60  ;;  %v3215_v0 = vpop.f32.mrb[143].mxu0  ;;  %v19271_v38 = vld [vmem:[%s21691_s2 + $0x38] sm:$0xff]  }
 0xe16   : > { %v3216_v15 = vadd.f32 %v14234_v60, %v3215_v0  ;;  %v19275_v0 = vld [vmem:[%s19740_s17 + $0x98] sm:$0xff]  }
 0xe17   : > { %17131 = vmatpush3.bf16.msra.mxu1 %v3232_v34  ;;  %v3234_v1 = vpack.c.bf16 %v3224_v41, %v3221_v40  ;;  %v19273_v40 = vld [vmem:[%s19740_s17 + $0x88] sm:$0xff]   ;;  %v19274_v41 = vld [vmem:[%s19740_s17 + $0x90] sm:$0xff]  }
 0xe18   : > { %v3233_v42 = vpack.c.bf16 %v3216_v15, %v3213_v14  ;;  %v19276_v14 = vld [vmem:[%s19740_s17 + $0xa0] sm:$0xff]   ;;  %v19277_v15 = vld [vmem:[%s19740_s17 + $0xa8] sm:$0xff]  }
 0xe1a   : > { %17132 = vmatprep.subr.bf16.mxu1 %v3233_v42 }
 0xe1b   : > { %17133 = vmatpush3.bf16.msra.mxu1 %v3233_v42  ;;  %v19279_v42 = vld [vmem:[%s19740_s17 + $0xb8] sm:$0xff]  }
 0xe1c   : > { %17134 = vmatprep.subr.bf16.mxu1 %v3234_v1 }
 0xe1f   : > { %17135 = vmatpush3.bf16.msra.mxu1 %v3234_v1  ;;  %v19278_v1 = vld [vmem:[%s19740_s17 + $0xb0] sm:$0xff]  }
 0xe22   : > { %17137 = vmatmul.mubr.bf16.vlgmr.msra.gmra.mrb[128].mxu1 %v20007_v5  ;;  %v19263_v5 = vld [vmem:[%s21693_s4 + $0x38] sm:$0xff]  }
 0xe23   : > { %17140 = vmatprep.mubr.bf16.mxu1 %v20010_v18  ;;  %17166 = vmatprep.subr.bf16.mxu0 %v19263_v5  ;;  %v19264_v18 = vld [vmem:[%s21691_s2] sm:$0xff]  }
 0xe24   : > { %17167 = vmatpush3.bf16.msra.mxu0 %v19263_v5  ;;  %v19287_v5 = vld [vmem:[%s21695_s6 + $0x38] sm:$0xff]  }
 0xe25   : > { %17216 = vmatprep.subr.bf16.mxu0 %v19264_v18 }
 0xe2a   : > { %17141 = vmatmul.mubr.bf16.gmra.mrb[132].mxu1 %v20015_v6  ;;  %v19280_v6 = vld [vmem:[%s21695_s6] sm:$0xff]  }
 0xe2b   : > { %17144 = vmatprep.mubr.bf16.mxu1 %v20018_v19  ;;  %v19281_v19 = vld [vmem:[%s21695_s6 + $0x8] sm:$0xff]   ;;  %17184 = vmatprep.subr.bf16.mxu1 %v19280_v6 }
 0xe2c   : > { %17185 = vmatpush3.bf16.msra.mxu1 %v19280_v6 }
 0xe2d   : > { %17186 = vmatprep.subr.bf16.mxu1 %v19281_v19 }
 0xe30   : > { %17187 = vmatpush3.bf16.msra.mxu1 %v19281_v19 }
 0xe32   : > { %17145 = vmatmul.mubr.bf16.gmra.mrb[136].mxu1 %v20023_v7  ;;  %v19282_v7 = vld [vmem:[%s21695_s6 + $0x10] sm:$0xff]  }
 0xe33   : > { %17148 = vmatprep.mubr.bf16.mxu1 %v20026_v20  ;;  %17188 = vmatprep.subr.bf16.mxu1 %v19282_v7  ;;  %v19283_v20 = vld [vmem:[%s21695_s6 + $0x18] sm:$0xff]  }
 0xe34   : > { %17189 = vmatpush3.bf16.msra.mxu1 %v19282_v7 }
 0xe35   : > { %17190 = vmatprep.subr.bf16.mxu1 %v19283_v20 }
 0xe38   : > { %17191 = vmatpush3.bf16.msra.mxu1 %v19283_v20 }
 0xe3a   : > { %17149 = vmatmul.mubr.bf16.gmra.mrb[140].mxu1 %v20031_v21  ;;  %v19284_v21 = vld [vmem:[%s21695_s6 + $0x20] sm:$0xff]  }
 0xe3b   : > { %17192 = vmatprep.subr.bf16.mxu1 %v19284_v21 }
 0xe3c   : > { %17193 = vmatpush3.bf16.msra.mxu1 %v19284_v21 }
 0xe3d   : > { %17194 = vmatprep.subr.bf16.mxu1 %v19285_v44 }
 0xe40   : > { %17195 = vmatpush3.bf16.msra.mxu1 %v19285_v44 }
 0xe41   : > { %17196 = vmatprep.subr.bf16.mxu1 %v19286_v43 }
 0xe44   : > { %17197 = vmatpush3.bf16.msra.mxu1 %v19286_v43 }
 0xe45   : > { %17198 = vmatprep.subr.bf16.mxu1 %v19287_v5 }
 0xe48   : > { %17199 = vmatpush3.bf16.msra.mxu1 %v19287_v5 }
 0xef5   : > { %v17138_v45 = vpop.f32.mrb[128].mxu1 }
 0xef6   : > { %v3269_v46 = vpop.f32.mrb[129].mxu1  ;;  %v3334_v48 = vmax.f32 %v17138_v45, 0.0 }
 0xef7   : > { %v17139_v47 = vpop.f32.mrb[130].mxu1  ;;  %v3332_v51 = vmax.f32 %v3269_v46, 0.0 }
 0xef8   : > { %v3335_v49 = vmax.f32 %v17139_v47, 0.0  ;;  %v3272_v50 = vpop.f32.mrb[131].mxu1 }
 0xef9   : > { %v3333_v52 = vmax.f32 %v3272_v50, 0.0 }
 0xefa   : > { %v3349_v53 = vpack.c.bf16 %v3335_v49, %v3334_v48 }
 0xefb   : > { %v3348_v54 = vpack.c.bf16 %v3333_v52, %v3332_v51 }
 0xefd   : > { %v17142_v56 = vpop.f32.mrb[132].mxu1  ;;  %17168 = vmatprep.mubr.bf16.mxu0 %v3348_v54 }
 0xefe   : > { %v3285_v57 = vpop.f32.mrb[133].mxu1  ;;  %17169 = vmatmul.mubr.bf16.vlgmr.msra.gmra.mrb[144].mxu0 %v3349_v53  ;;  %v3338_v59 = vmax.f32 %v17142_v56, 0.0 }
 0xeff   : > { %v17143_v58 = vpop.f32.mrb[134].mxu1  ;;  %17217 = vmatpush3.bf16.msra.mxu0 %v19264_v18  ;;  %v3336_v63 = vmax.f32 %v3285_v57, 0.0  ;;  %v14243_v18 = vld [vmem:[%s21694_s5] ss:$0 sm:$0xff] }
 0xf00   : > { %v3339_v60 = vmax.f32 %v17143_v58, 0.0  ;;  %v3288_v61 = vpop.f32.mrb[135].mxu1  ;;  %17218 = vmatprep.subr.bf16.mxu0 %v19265_v55 }
 0xf01   : > { %v3337_v8 = vmax.f32 %v3288_v61, 0.0 }
 0xf02   : > { %v3351_v9 = vpack.c.bf16 %v3339_v60, %v3338_v59 }
 0xf03   : > { %17219 = vmatpush3.bf16.msra.mxu0 %v19265_v55  ;;  %v3350_v10 = vpack.c.bf16 %v3337_v8, %v3336_v63 }
 0xf04   : > { %17220 = vmatprep.subr.bf16.mxu0 %v19266_v62 }
 0xf05   : > { %v17146_v12 = vpop.f32.mrb[136].mxu1  ;;  %17172 = vmatprep.mubr.bf16.mxu0 %v3350_v10 }
 0xf06   : > { %v3301_v13 = vpop.f32.mrb[137].mxu1  ;;  %17173 = vmatmul.mubr.bf16.gmra.mrb[148].mxu0 %v3351_v9  ;;  %v3342_v2 = vmax.f32 %v17146_v12, 0.0 }
 0xf07   : > { %v17147_v16 = vpop.f32.mrb[138].mxu1  ;;  %17221 = vmatpush3.bf16.msra.mxu0 %v19266_v62  ;;  %v3340_v22 = vmax.f32 %v3301_v13, 0.0 }
 0xf08   : > { %v3343_v3 = vmax.f32 %v17147_v16, 0.0  ;;  %v3304_v4 = vpop.f32.mrb[139].mxu1  ;;  %17222 = vmatprep.subr.bf16.mxu0 %v19267_v11 }
 0xf09   : > { %v3341_v23 = vmax.f32 %v3304_v4, 0.0 }
 0xf0a   : > { %v3353_v39 = vpack.c.bf16 %v3343_v3, %v3342_v2 }
 0xf0b   : > { %17223 = vmatpush3.bf16.msra.mxu0 %v19267_v11  ;;  %v3352_v24 = vpack.c.bf16 %v3341_v23, %v3340_v22 }
 0xf0c   : > { %17224 = vmatprep.subr.bf16.mxu0 %v19268_v17 }
 0xf0d   : > { %v17150_v26 = vpop.f32.mrb[140].mxu1  ;;  %17176 = vmatprep.mubr.bf16.mxu0 %v3352_v24 }
 0xf0e   : > { %v3317_v27 = vpop.f32.mrb[141].mxu1  ;;  %17177 = vmatmul.mubr.bf16.gmra.mrb[152].mxu0 %v3353_v39  ;;  %v3346_v29 = vmax.f32 %v17150_v26, 0.0 }
 0xf0f   : > { %v17151_v28 = vpop.f32.mrb[142].mxu1  ;;  %17225 = vmatpush3.bf16.msra.mxu0 %v19268_v17  ;;  %v3344_v33 = vmax.f32 %v3317_v27, 0.0 }
 0xf10   : > { %v3347_v30 = vmax.f32 %v17151_v28, 0.0  ;;  %v3320_v31 = vpop.f32.mrb[143].mxu1  ;;  %17226 = vmatprep.subr.bf16.mxu0 %v19269_v25 }
 0xf11   : > { %v3345_v34 = vmax.f32 %v3320_v31, 0.0 }
 0xf12   : > { %v3355_v35 = vpack.c.bf16 %v3347_v30, %v3346_v29 }
 0xf13   : > { %17227 = vmatpush3.bf16.msra.mxu0 %v19269_v25  ;;  %v3354_v36 = vpack.c.bf16 %v3345_v34, %v3344_v33 }
 0xf14   : > { %17228 = vmatprep.subr.bf16.mxu0 %v19270_v32 }
 0xf15   : > { %17180 = vmatprep.mubr.bf16.mxu0 %v3354_v36 }
 0xf16   : > { %17181 = vmatmul.mubr.bf16.gmra.mrb[156].mxu0 %v3355_v35 }
 0xf17   : > { %17229 = vmatpush3.bf16.msra.mxu0 %v19270_v32  ;;  %17232 = vmatprep.mubr.bf16.mxu0 %v19272_v37 }
 0xf18   : > { %17230 = vmatprep.subr.bf16.mxu0 %v19271_v38 }
 0xf1b   : > { %17231 = vmatpush3.bf16.msra.mxu0 %v19271_v38 }
 0xf1e   : > { %17233 = vmatmul.mubr.bf16.vlgmr.msra.gmra.mrb[160].mxu0 %v19273_v40 }
 0xf1f   : > { %17236 = vmatprep.mubr.bf16.mxu0 %v19274_v41 }
 0xf26   : > { %17237 = vmatmul.mubr.bf16.gmra.mrb[164].mxu0 %v19275_v0  ;;  %v14309_v0 = vld [vmem:[%s21692_s3] ss:$0 sm:$0xff] }
 0xf27   : > { %17240 = vmatprep.mubr.bf16.mxu0 %v19276_v14 }
 0xf2e   : > { %17241 = vmatmul.mubr.bf16.gmra.mrb[168].mxu0 %v19277_v15  ;;  %v20251_v15 = vld [vmem:[%s19755_s26 + $0x80] sm:$0xff]  }
 0xf2f   : > { %17244 = vmatprep.mubr.bf16.mxu0 %v19278_v1 }
 0xf36   : > { %17245 = vmatmul.mubr.bf16.gmra.mrb[172].mxu0 %v19279_v42 }
 0xfd1   : > { %v17170_v6 = vpop.f32.mrb[144].mxu0 }
 0xfd2   : > { %v3470_v19 = vadd.f32 %v17170_v6, %v14243_v18  ;;  %v3461_v7 = vpop.f32.mrb[145].mxu0 }
 0xfd3   : > { %v3462_v20 = vadd.f32 %v14243_v18, %v3461_v7  ;;  %v17171_v21 = vpop.f32.mrb[146].mxu0 }
 0xfd4   : > { %v3473_v44 = vadd.f32 %v17171_v21, %v14243_v18  ;;  %v3464_v45 = vpop.f32.mrb[147].mxu0  ;;  %v3526_v47 = vmax.f32 %v3470_v19, 0.0 }
 0xfd5   : > { %v3465_v46 = vadd.f32 %v14243_v18, %v3464_v45  ;;  %v3524_v49 = vmax.f32 %v3462_v20, 0.0 }
 0xfd6   : > { %v3527_v48 = vmax.f32 %v3473_v44, 0.0 }
 0xfd7   : > { %v3525_v50 = vmax.f32 %v3465_v46, 0.0 }
 0xfd8   : > { %v3541_v51 = vpack.c.bf16 %v3527_v48, %v3526_v47 }
 0xfd9   : > { %v17174_v52 = vpop.f32.mrb[148].mxu0  ;;  %v3540_v53 = vpack.c.bf16 %v3525_v50, %v3524_v49 }
 0xfda   : > { %v3486_v54 = vadd.f32 %v17174_v52, %v14243_v18  ;;  %v3477_v55 = vpop.f32.mrb[149].mxu0 }
 0xfdb   : > { %v3478_v56 = vadd.f32 %v14243_v18, %v3477_v55  ;;  %v17175_v57 = vpop.f32.mrb[150].mxu0  ;;  %17200 = vmatprep.mubr.bf16.mxu1 %v3540_v53 }
 0xfdc   : > { %v3489_v58 = vadd.f32 %v17175_v57, %v14243_v18  ;;  %v3480_v59 = vpop.f32.mrb[151].mxu0  ;;  %17201 = vmatmul.mubr.bf16.vlgmr.msra.gmra.mrb[144].mxu1 %v3541_v51  ;;  %v3530_v61 = vmax.f32 %v3486_v54, 0.0 }
 0xfdd   : > { %v3481_v60 = vadd.f32 %v14243_v18, %v3480_v59  ;;  %v3528_v63 = vmax.f32 %v3478_v56, 0.0 }
 0xfde   : > { %v3531_v62 = vmax.f32 %v3489_v58, 0.0 }
 0xfdf   : > { %v3529_v8 = vmax.f32 %v3481_v60, 0.0 }
 0xfe0   : > { %v3543_v9 = vpack.c.bf16 %v3531_v62, %v3530_v61 }
 0xfe1   : > { %v17178_v10 = vpop.f32.mrb[152].mxu0  ;;  %v3542_v11 = vpack.c.bf16 %v3529_v8, %v3528_v63 }
 0xfe2   : > { %v3502_v12 = vadd.f32 %v17178_v10, %v14243_v18  ;;  %v3493_v13 = vpop.f32.mrb[153].mxu0 }
 0xfe3   : > { %v3494_v16 = vadd.f32 %v14243_v18, %v3493_v13  ;;  %v17179_v2 = vpop.f32.mrb[154].mxu0  ;;  %17204 = vmatprep.mubr.bf16.mxu1 %v3542_v11 }
 0xfe4   : > { %v3505_v3 = vadd.f32 %v17179_v2, %v14243_v18  ;;  %v3496_v4 = vpop.f32.mrb[155].mxu0  ;;  %17205 = vmatmul.mubr.bf16.gmra.mrb[148].mxu1 %v3543_v9  ;;  %v3534_v22 = vmax.f32 %v3502_v12, 0.0 }
 0xfe5   : > { %v3497_v17 = vadd.f32 %v14243_v18, %v3496_v4  ;;  %v3532_v39 = vmax.f32 %v3494_v16, 0.0  ;;  %v20255_v4 = vld [vmem:[%s19755_s26 + $0x88] sm:$0xff]  }
 0xfe6   : > { %v3535_v23 = vmax.f32 %v3505_v3, 0.0 }
 0xfe7   : > { %v3533_v24 = vmax.f32 %v3497_v17, 0.0  ;;  %v20258_v17 = vld [vmem:[%s19755_s26 + $0x90] sm:$0xff]  }
 0xfe8   : > { %v3545_v25 = vpack.c.bf16 %v3535_v23, %v3534_v22  ;;  %v20263_v22 = vld [vmem:[%s19755_s26 + $0x98] sm:$0xff]   ;;  %v20266_v23 = vld [vmem:[%s19755_s26 + $0xa0] sm:$0xff]  }
 0xfe9   : > { %v17182_v26 = vpop.f32.mrb[156].mxu0  ;;  %v3544_v27 = vpack.c.bf16 %v3533_v24, %v3532_v39  ;;  %v20271_v39 = vld [vmem:[%s19755_s26 + $0xa8] sm:$0xff]   ;;  %v20274_v24 = vld [vmem:[%s19755_s26 + $0xb0] sm:$0xff]  }
 0xfea   : > { %v3518_v28 = vadd.f32 %v17182_v26, %v14243_v18  ;;  %v3509_v29 = vpop.f32.mrb[157].mxu0  ;;  %v19296_v26 = vld [vmem:[%s21691_s2 + $0x40] sm:$0xff]  }
 0xfeb   : > { %v3510_v30 = vadd.f32 %v14243_v18, %v3509_v29  ;;  %v17183_v31 = vpop.f32.mrb[158].mxu0  ;;  %17208 = vmatprep.mubr.bf16.mxu1 %v3544_v27  ;;  %v19297_v27 = vld [vmem:[%s21691_s2 + $0x48] sm:$0xff]   ;;  %17280 = vmatprep.subr.bf16.mxu0 %v19296_v26  ;;  %v19299_v29 = vld [vmem:[%s21691_s2 + $0x58] sm:$0xff]  }
 0xfec   : > { %v3521_v32 = vadd.f32 %v17183_v31, %v14243_v18  ;;  %v3512_v33 = vpop.f32.mrb[159].mxu0  ;;  %17209 = vmatmul.mubr.bf16.gmra.mrb[152].mxu1 %v3545_v25  ;;  %v3538_v35 = vmax.f32 %v3518_v28, 0.0  ;;  %v20279_v25 = vld [vmem:[%s19755_s26 + $0xb8] sm:$0xff]   ;;  %17281 = vmatpush3.bf16.msra.mxu0 %v19296_v26  ;;  %v19298_v28 = vld [vmem:[%s21691_s2 + $0x50] sm:$0xff]   ;;  %v19301_v31 = vld [vmem:[%s21691_s2 + $0x68] sm:$0xff]  }
 0xfed   : > { %v3513_v34 = vadd.f32 %v14243_v18, %v3512_v33  ;;  %v3536_v37 = vmax.f32 %v3510_v30, 0.0  ;;  %17282 = vmatprep.subr.bf16.mxu0 %v19297_v27  ;;  %v19300_v30 = vld [vmem:[%s21691_s2 + $0x60] sm:$0xff]   ;;  %v19303_v33 = vld [vmem:[%s21691_s2 + $0x78] sm:$0xff]  }
 0xfee   : > { %v3539_v36 = vmax.f32 %v3521_v32, 0.0  ;;  %v19302_v32 = vld [vmem:[%s21691_s2 + $0x70] sm:$0xff]  }
 0xfef   : > { %v3537_v38 = vmax.f32 %v3513_v34, 0.0  ;;  %v14252_v34 = vld [vmem:[%s21696_s7] ss:$0 sm:$0xff] }
 0xff0   : > { %v3547_v40 = vpack.c.bf16 %v3539_v36, %v3538_v35  ;;  %17283 = vmatpush3.bf16.msra.mxu0 %v19297_v27 }
 0xff1   : > { %v17234_v41 = vpop.f32.mrb[160].mxu0  ;;  %v3546_v14 = vpack.c.bf16 %v3537_v38, %v3536_v37  ;;  %17284 = vmatprep.subr.bf16.mxu0 %v19298_v28 }
 0xff2   : > { %v3920_v1 = vpop.f32.mrb[161].mxu0  ;;  %v3929_v43 = vadd.f32 %v17234_v41, %v14309_v0 }
 0xff3   : > { %17212 = vmatprep.mubr.bf16.mxu1 %v3546_v14  ;;  %v17235_v42 = vpop.f32.mrb[162].mxu0  ;;  %v3921_v6 = vadd.f32 %v14309_v0, %v3920_v1 }
 0xff4   : > { %v3932_v5 = vadd.f32 %v17235_v42, %v14309_v0  ;;  %17213 = vmatmul.mubr.bf16.gmra.mrb[156].mxu1 %v3547_v40  ;;  %v3923_v18 = vpop.f32.mrb[163].mxu0  ;;  %17285 = vmatpush3.bf16.msra.mxu0 %v19298_v28 }
 0xff5   : > { %v3924_v19 = vadd.f32 %v14309_v0, %v3923_v18  ;;  %17264 = vmatprep.mubr.bf16.mxu1 %v20251_v15  ;;  %17286 = vmatprep.subr.bf16.mxu0 %v19299_v29 }
 0xff6   : > { %v3984_v7 = vpack.c.bf16 %v3932_v5, %v3929_v43 }
 0xff7   : > { %v3983_v20 = vpack.c.bf16 %v3924_v19, %v3921_v6 }
 0xff8   : > { %17287 = vmatpush3.bf16.msra.mxu0 %v19299_v29 }
 0xff9   : > { %v17238_v21 = vpop.f32.mrb[164].mxu0  ;;  %17248 = vmatprep.subr.bf16.mxu1 %v3983_v20  ;;  %17288 = vmatprep.subr.bf16.mxu0 %v19300_v30 }
 0xffa   : > { %v3936_v44 = vpop.f32.mrb[165].mxu0  ;;  %17249 = vmatpush3.bf16.msra.mxu1 %v3983_v20  ;;  %v3945_v46 = vadd.f32 %v17238_v21, %v14309_v0 }
 0xffb   : > { %v17239_v45 = vpop.f32.mrb[166].mxu0  ;;  %17250 = vmatprep.subr.bf16.mxu1 %v3984_v7  ;;  %v3937_v49 = vadd.f32 %v14309_v0, %v3936_v44 }
 0xffc   : > { %v3948_v47 = vadd.f32 %v17239_v45, %v14309_v0  ;;  %v3939_v48 = vpop.f32.mrb[167].mxu0  ;;  %17289 = vmatpush3.bf16.msra.mxu0 %v19300_v30 }
 0xffd   : > { %v3940_v50 = vadd.f32 %v14309_v0, %v3939_v48  ;;  %17290 = vmatprep.subr.bf16.mxu0 %v19301_v31 }
 0xffe   : > { %17251 = vmatpush3.bf16.msra.mxu1 %v3984_v7  ;;  %v3986_v51 = vpack.c.bf16 %v3948_v47, %v3945_v46 }
 0xfff   : > { %v3985_v52 = vpack.c.bf16 %v3940_v50, %v3937_v49 }
0x1000   : > { %17291 = vmatpush3.bf16.msra.mxu0 %v19301_v31 }
0x1001   : > { %v17242_v53 = vpop.f32.mrb[168].mxu0  ;;  %17252 = vmatprep.subr.bf16.mxu1 %v3985_v52  ;;  %17292 = vmatprep.subr.bf16.mxu0 %v19302_v32 }
0x1002   : > { %v3952_v54 = vpop.f32.mrb[169].mxu0  ;;  %17253 = vmatpush3.bf16.msra.mxu1 %v3985_v52  ;;  %v3961_v56 = vadd.f32 %v17242_v53, %v14309_v0 }
0x1003   : > { %v17243_v55 = vpop.f32.mrb[170].mxu0  ;;  %17254 = vmatprep.subr.bf16.mxu1 %v3986_v51  ;;  %v3953_v59 = vadd.f32 %v14309_v0, %v3952_v54 }
0x1004   : > { %v3964_v57 = vadd.f32 %v17243_v55, %v14309_v0  ;;  %v3955_v58 = vpop.f32.mrb[171].mxu0  ;;  %17293 = vmatpush3.bf16.msra.mxu0 %v19302_v32 }
0x1005   : > { %v3956_v60 = vadd.f32 %v14309_v0, %v3955_v58  ;;  %17294 = vmatprep.subr.bf16.mxu0 %v19303_v33 }
0x1006   : > { %17255 = vmatpush3.bf16.msra.mxu1 %v3986_v51  ;;  %v3988_v61 = vpack.c.bf16 %v3964_v57, %v3961_v56 }
0x1007   : > { %v3987_v62 = vpack.c.bf16 %v3956_v60, %v3953_v59 }
0x1008   : > { %17295 = vmatpush3.bf16.msra.mxu0 %v19303_v33 }
0x1009   : > { %v17246_v63 = vpop.f32.mrb[172].mxu0  ;;  %17256 = vmatprep.subr.bf16.mxu1 %v3987_v62 }
0x100a   : > { %v3968_v8 = vpop.f32.mrb[173].mxu0  ;;  %17257 = vmatpush3.bf16.msra.mxu1 %v3987_v62  ;;  %v3977_v10 = vadd.f32 %v17246_v63, %v14309_v0 }
0x100b   : > { %v17247_v9 = vpop.f32.mrb[174].mxu0  ;;  %17258 = vmatprep.subr.bf16.mxu1 %v3988_v61  ;;  %v3969_v13 = vadd.f32 %v14309_v0, %v3968_v8 }
0x100c   : > { %v3980_v11 = vadd.f32 %v17247_v9, %v14309_v0  ;;  %v3971_v12 = vpop.f32.mrb[175].mxu0 }
0x100d   : > { %v3972_v16 = vadd.f32 %v14309_v0, %v3971_v12 }
0x100e   : > { %17259 = vmatpush3.bf16.msra.mxu1 %v3988_v61  ;;  %v3990_v2 = vpack.c.bf16 %v3980_v11, %v3977_v10 }
0x100f   : > { %v3989_v3 = vpack.c.bf16 %v3972_v16, %v3969_v13 }
0x1011   : > { %17260 = vmatprep.subr.bf16.mxu1 %v3989_v3 }
0x1012   : > { %17261 = vmatpush3.bf16.msra.mxu1 %v3989_v3 }
0x1013   : > { %17262 = vmatprep.subr.bf16.mxu1 %v3990_v2 }
0x1016   : > { %17263 = vmatpush3.bf16.msra.mxu1 %v3990_v2 }
0x1019   : > { %17265 = vmatmul.mubr.bf16.vlgmr.msra.gmra.mrb[160].mxu1 %v20255_v4 }
0x101a   : > { %17268 = vmatprep.mubr.bf16.mxu1 %v20258_v17 }
0x1021   : > { %17269 = vmatmul.mubr.bf16.gmra.mrb[164].mxu1 %v20263_v22 }
0x1022   : > { %17272 = vmatprep.mubr.bf16.mxu1 %v20266_v23 }
0x1029   : > { %17273 = vmatmul.mubr.bf16.gmra.mrb[168].mxu1 %v20271_v39 }
0x102a   : > { %17276 = vmatprep.mubr.bf16.mxu1 %v20274_v24 }
0x1031   : > { %17277 = vmatmul.mubr.bf16.gmra.mrb[172].mxu1 %v20279_v25 }
0x1032   : > { %17328 = vmatprep.mubr.bf16.mxu1 %v20251_v15 }
0x10af   : > { %v17202_v35 = vpop.f32.mrb[144].mxu1 }
0x10b0   : > { %v3662_v36 = vadd.f32 %v17202_v35, %v14252_v34  ;;  %v3653_v37 = vpop.f32.mrb[145].mxu1 }
0x10b1   : > { %v3654_v38 = vadd.f32 %v14252_v34, %v3653_v37  ;;  %v17203_v40 = vpop.f32.mrb[146].mxu1 }
0x10b2   : > { %14263 = vst [vmem:[%s20066_s14 + $0x90] sm:$0xff] %v3662_v36  ;;  %v3665_v41 = vadd.f32 %v17203_v40, %v14252_v34  ;;  %v3656_v0 = vpop.f32.mrb[147].mxu1 }
0x10b3   : > { %14261 = vst [vmem:[%s20066_s14 + $0x80] sm:$0xff] %v3654_v38  ;;  %v3657_v14 = vadd.f32 %v14252_v34, %v3656_v0 }
0x10b4   : > { %14264 = vst [vmem:[%s20066_s14 + $0x98] sm:$0xff] %v3665_v41 }
0x10b5   : > { %14262 = vst [vmem:[%s20066_s14 + $0x88] sm:$0xff] %v3657_v14 }
0x10b7   : > { %v17206_v1 = vpop.f32.mrb[148].mxu1 }
0x10b8   : > { %v3678_v42 = vadd.f32 %v17206_v1, %v14252_v34  ;;  %v3669_v43 = vpop.f32.mrb[149].mxu1 }
0x10b9   : > { %v3670_v5 = vadd.f32 %v14252_v34, %v3669_v43  ;;  %v17207_v18 = vpop.f32.mrb[150].mxu1 }
0x10ba   : > { %14267 = vst [vmem:[%s20066_s14 + $0xb0] sm:$0xff] %v3678_v42  ;;  %v3681_v6 = vadd.f32 %v17207_v18, %v14252_v34  ;;  %v3672_v19 = vpop.f32.mrb[151].mxu1 }
0x10bb   : > { %14265 = vst [vmem:[%s20066_s14 + $0xa0] sm:$0xff] %v3670_v5  ;;  %v3673_v7 = vadd.f32 %v14252_v34, %v3672_v19 }
0x10bc   : > { %14268 = vst [vmem:[%s20066_s14 + $0xb8] sm:$0xff] %v3681_v6 }
0x10bd   : > { %14266 = vst [vmem:[%s20066_s14 + $0xa8] sm:$0xff] %v3673_v7 }
0x10bf   : > { %v17210_v20 = vpop.f32.mrb[152].mxu1 }
0x10c0   : > { %v3694_v21 = vadd.f32 %v17210_v20, %v14252_v34  ;;  %v3685_v44 = vpop.f32.mrb[153].mxu1  ;;  %v19304_v20 = vld [vmem:[%s21691_s2 + $0x80] sm:$0xff]  }
0x10c1   : > { %v3686_v45 = vadd.f32 %v14252_v34, %v3685_v44  ;;  %v17211_v46 = vpop.f32.mrb[154].mxu1  ;;  %17344 = vmatprep.subr.bf16.mxu0 %v19304_v20  ;;  %v19306_v44 = vld [vmem:[%s21691_s2 + $0x90] sm:$0xff]  }
0x10c2   : > { %14271 = vst [vmem:[%s20066_s14 + $0xd0] sm:$0xff] %v3694_v21  ;;  %v3697_v47 = vadd.f32 %v17211_v46, %v14252_v34  ;;  %v3688_v48 = vpop.f32.mrb[155].mxu1  ;;  %v19305_v21 = vld [vmem:[%s21691_s2 + $0x88] sm:$0xff]   ;;  %v19308_v46 = vld [vmem:[%s21691_s2 + $0xa0] sm:$0xff]  }
0x10c3   : > { %14269 = vst [vmem:[%s20066_s14 + $0xc0] sm:$0xff] %v3686_v45  ;;  %v3689_v49 = vadd.f32 %v14252_v34, %v3688_v48  ;;  %v19307_v45 = vld [vmem:[%s21691_s2 + $0x98] sm:$0xff]  }
0x10c4   : > { %14272 = vst [vmem:[%s20066_s14 + $0xd8] sm:$0xff] %v3697_v47  ;;  %v19309_v47 = vld [vmem:[%s21691_s2 + $0xa8] sm:$0xff]  }
0x10c5   : > { %14270 = vst [vmem:[%s20066_s14 + $0xc8] sm:$0xff] %v3689_v49  ;;  %v14351_v49 = vld [vmem:[%s21692_s3 + $0x1] ss:$0 sm:$0xff] }
0x10c7   : > { %v17214_v50 = vpop.f32.mrb[156].mxu1 }
0x10c8   : > { %v3710_v51 = vadd.f32 %v17214_v50, %v14252_v34  ;;  %v3701_v52 = vpop.f32.mrb[157].mxu1 }
0x10c9   : > { %v3702_v53 = vadd.f32 %v14252_v34, %v3701_v52  ;;  %v17215_v54 = vpop.f32.mrb[158].mxu1 }
0x10ca   : > { %14275 = vst [vmem:[%s20066_s14 + $0xf0] sm:$0xff] %v3710_v51  ;;  %v3713_v55 = vadd.f32 %v17215_v54, %v14252_v34  ;;  %v3704_v56 = vpop.f32.mrb[159].mxu1 }
0x10cb   : > { %14273 = vst [vmem:[%s20066_s14 + $0xe0] sm:$0xff] %v3702_v53  ;;  %v3705_v57 = vadd.f32 %v14252_v34, %v3704_v56 }
0x10cc   : > { %14276 = vst [vmem:[%s20066_s14 + $0xf8] sm:$0xff] %v3713_v55 }
0x10cd   : > { %14274 = vst [vmem:[%s20066_s14 + $0xe8] sm:$0xff] %v3705_v57 }
0x10ec   : > { %v17266_v58 = vpop.f32.mrb[160].mxu1 }
0x10ed   : > { %v4073_v59 = vpop.f32.mrb[161].mxu1  ;;  %v4138_v61 = vmax.f32 %v17266_v58, 0.0 }
0x10ee   : > { %v17267_v60 = vpop.f32.mrb[162].mxu1  ;;  %v4136_v8 = vmax.f32 %v4073_v59, 0.0 }
0x10ef   : > { %v4139_v62 = vmax.f32 %v17267_v60, 0.0  ;;  %v4076_v63 = vpop.f32.mrb[163].mxu1 }
0x10f0   : > { %v4137_v9 = vmax.f32 %v4076_v63, 0.0 }
0x10f1   : > { %v4153_v10 = vpack.c.bf16 %v4139_v62, %v4138_v61 }
0x10f2   : > { %v4152_v11 = vpack.c.bf16 %v4137_v9, %v4136_v8 }
0x10f4   : > { %v17270_v12 = vpop.f32.mrb[164].mxu1  ;;  %17296 = vmatprep.mubr.bf16.mxu0 %v4152_v11 }
0x10f5   : > { %v4089_v13 = vpop.f32.mrb[165].mxu1  ;;  %17297 = vmatmul.mubr.bf16.vlgmr.msra.gmra.mrb[176].mxu0 %v4153_v10  ;;  %v4142_v2 = vmax.f32 %v17270_v12, 0.0 }
0x10f6   : > { %v17271_v16 = vpop.f32.mrb[166].mxu1  ;;  %v4140_v27 = vmax.f32 %v4089_v13, 0.0  ;;  %17345 = vmatpush3.bf16.msra.mxu0 %v19304_v20 }
0x10f7   : > { %v4143_v3 = vmax.f32 %v17271_v16, 0.0  ;;  %v4092_v26 = vpop.f32.mrb[167].mxu1  ;;  %17346 = vmatprep.subr.bf16.mxu0 %v19305_v21 }
0x10f8   : > { %v4141_v28 = vmax.f32 %v4092_v26, 0.0 }
0x10f9   : > { %v4155_v29 = vpack.c.bf16 %v4143_v3, %v4142_v2 }
0x10fa   : > { %v4154_v30 = vpack.c.bf16 %v4141_v28, %v4140_v27  ;;  %17347 = vmatpush3.bf16.msra.mxu0 %v19305_v21 }
0x10fb   : > { %17348 = vmatprep.subr.bf16.mxu0 %v19306_v44 }
0x10fc   : > { %v17274_v31 = vpop.f32.mrb[168].mxu1  ;;  %17300 = vmatprep.mubr.bf16.mxu0 %v4154_v30 }
0x10fd   : > { %v4105_v32 = vpop.f32.mrb[169].mxu1  ;;  %17301 = vmatmul.mubr.bf16.gmra.mrb[180].mxu0 %v4155_v29  ;;  %v4146_v34 = vmax.f32 %v17274_v31, 0.0 }
0x10fe   : > { %v17275_v33 = vpop.f32.mrb[170].mxu1  ;;  %v4144_v37 = vmax.f32 %v4105_v32, 0.0  ;;  %17349 = vmatpush3.bf16.msra.mxu0 %v19306_v44 }
0x10ff   : > { %v4147_v35 = vmax.f32 %v17275_v33, 0.0  ;;  %v4108_v36 = vpop.f32.mrb[171].mxu1  ;;  %17350 = vmatprep.subr.bf16.mxu0 %v19307_v45 }
0x1100   : > { %v4145_v38 = vmax.f32 %v4108_v36, 0.0 }
0x1101   : > { %v4157_v40 = vpack.c.bf16 %v4147_v35, %v4146_v34 }
0x1102   : > { %v4156_v41 = vpack.c.bf16 %v4145_v38, %v4144_v37  ;;  %17351 = vmatpush3.bf16.msra.mxu0 %v19307_v45 }
0x1103   : > { %17352 = vmatprep.subr.bf16.mxu0 %v19308_v46 }
0x1104   : > { %v17278_v0 = vpop.f32.mrb[172].mxu1  ;;  %17304 = vmatprep.mubr.bf16.mxu0 %v4156_v41 }
0x1105   : > { %v4121_v14 = vpop.f32.mrb[173].mxu1  ;;  %17305 = vmatmul.mubr.bf16.gmra.mrb[184].mxu0 %v4157_v40  ;;  %v4150_v42 = vmax.f32 %v17278_v0, 0.0 }
0x1106   : > { %v17279_v1 = vpop.f32.mrb[174].mxu1  ;;  %v4148_v18 = vmax.f32 %v4121_v14, 0.0  ;;  %17353 = vmatpush3.bf16.msra.mxu0 %v19308_v46  ;;  %v19310_v14 = vld [vmem:[%s21691_s2 + $0xb0] sm:$0xff]  }
0x1107   : > { %v4151_v43 = vmax.f32 %v17279_v1, 0.0  ;;  %v4124_v5 = vpop.f32.mrb[175].mxu1  ;;  %17354 = vmatprep.subr.bf16.mxu0 %v19309_v47  ;;  %v19311_v1 = vld [vmem:[%s21691_s2 + $0xb8] sm:$0xff]  }
0x1108   : > { %v4149_v6 = vmax.f32 %v4124_v5, 0.0 }
0x1109   : > { %v4159_v19 = vpack.c.bf16 %v4151_v43, %v4150_v42 }
0x110a   : > { %v4158_v7 = vpack.c.bf16 %v4149_v6, %v4148_v18  ;;  %17355 = vmatpush3.bf16.msra.mxu0 %v19309_v47 }
0x110b   : > { %17356 = vmatprep.subr.bf16.mxu0 %v19310_v14 }
0x110c   : > { %17308 = vmatprep.mubr.bf16.mxu0 %v4158_v7 }
0x110d   : > { %17309 = vmatmul.mubr.bf16.gmra.mrb[188].mxu0 %v4159_v19 }
0x110e   : > { %17357 = vmatpush3.bf16.msra.mxu0 %v19310_v14 }
0x110f   : > { %17358 = vmatprep.subr.bf16.mxu0 %v19311_v1 }
0x1112   : > { %17359 = vmatpush3.bf16.msra.mxu0 %v19311_v1 }
0x11c8   : > { %v17298_v48 = vpop.f32.mrb[176].mxu0 }
0x11c9   : > { %v4265_v50 = vpop.f32.mrb[177].mxu0  ;;  %v4274_v52 = vadd.f32 %v17298_v48, %v14351_v49 }
0x11ca   : > { %v17299_v51 = vpop.f32.mrb[178].mxu0  ;;  %v4266_v55 = vadd.f32 %v14351_v49, %v4265_v50 }
0x11cb   : > { %v4277_v53 = vadd.f32 %v17299_v51, %v14351_v49  ;;  %v4268_v54 = vpop.f32.mrb[179].mxu0 }
0x11cc   : > { %v4269_v56 = vadd.f32 %v14351_v49, %v4268_v54 }
0x11cd   : > { %v4329_v57 = vpack.c.bf16 %v4277_v53, %v4274_v52 }
0x11ce   : > { %v4328_v58 = vpack.c.bf16 %v4269_v56, %v4266_v55 }
0x11d0   : > { %v17302_v59 = vpop.f32.mrb[180].mxu0  ;;  %17312 = vmatprep.subr.bf16.mxu1 %v4328_v58 }
0x11d1   : > { %v4281_v60 = vpop.f32.mrb[181].mxu0  ;;  %17313 = vmatpush3.bf16.msra.mxu1 %v4328_v58  ;;  %v4290_v62 = vadd.f32 %v17302_v59, %v14351_v49 }
0x11d2   : > { %v17303_v61 = vpop.f32.mrb[182].mxu0  ;;  %17314 = vmatprep.subr.bf16.mxu1 %v4329_v57  ;;  %v4282_v9 = vadd.f32 %v14351_v49, %v4281_v60 }
0x11d3   : > { %v4293_v63 = vadd.f32 %v17303_v61, %v14351_v49  ;;  %v4284_v8 = vpop.f32.mrb[183].mxu0 }
0x11d4   : > { %v4285_v10 = vadd.f32 %v14351_v49, %v4284_v8 }
0x11d5   : > { %17315 = vmatpush3.bf16.msra.mxu1 %v4329_v57  ;;  %v4331_v11 = vpack.c.bf16 %v4293_v63, %v4290_v62 }
0x11d6   : > { %v4330_v12 = vpack.c.bf16 %v4285_v10, %v4282_v9 }
0x11d8   : > { %v17306_v13 = vpop.f32.mrb[184].mxu0  ;;  %17316 = vmatprep.subr.bf16.mxu1 %v4330_v12 }
0x11d9   : > { %v4297_v16 = vpop.f32.mrb[185].mxu0  ;;  %17317 = vmatpush3.bf16.msra.mxu1 %v4330_v12  ;;  %v4306_v3 = vadd.f32 %v17306_v13, %v14351_v49 }
0x11da   : > { %v17307_v2 = vpop.f32.mrb[186].mxu0  ;;  %17318 = vmatprep.subr.bf16.mxu1 %v4331_v11  ;;  %v4298_v28 = vadd.f32 %v14351_v49, %v4297_v16 }
0x11db   : > { %v4309_v26 = vadd.f32 %v17307_v2, %v14351_v49  ;;  %v4300_v27 = vpop.f32.mrb[187].mxu0 }
0x11dc   : > { %v4301_v29 = vadd.f32 %v14351_v49, %v4300_v27 }
0x11dd   : > { %17319 = vmatpush3.bf16.msra.mxu1 %v4331_v11  ;;  %v4333_v30 = vpack.c.bf16 %v4309_v26, %v4306_v3 }
0x11de   : > { %v4332_v31 = vpack.c.bf16 %v4301_v29, %v4298_v28  ;;  %v19312_v28 = vld [vmem:[%s21691_s2 + $0xc0] sm:$0xff]   ;;  %v19313_v29 = vld [vmem:[%s21691_s2 + $0xc8] sm:$0xff]  }
0x11df   : > { %17408 = vmatprep.subr.bf16.mxu0 %v19312_v28 }
0x11e0   : > { %v17310_v32 = vpop.f32.mrb[188].mxu0  ;;  %17320 = vmatprep.subr.bf16.mxu1 %v4332_v31 }
0x11e1   : > { %v4313_v33 = vpop.f32.mrb[189].mxu0  ;;  %17321 = vmatpush3.bf16.msra.mxu1 %v4332_v31  ;;  %v4322_v35 = vadd.f32 %v17310_v32, %v14351_v49  ;;  %v19315_v31 = vld [vmem:[%s21691_s2 + $0xd8] sm:$0xff]   ;;  %v19316_v32 = vld [vmem:[%s21691_s2 + $0xe0] sm:$0xff]  }
0x11e2   : > { %v17311_v34 = vpop.f32.mrb[190].mxu0  ;;  %17322 = vmatprep.subr.bf16.mxu1 %v4333_v30  ;;  %v4314_v38 = vadd.f32 %v14351_v49, %v4313_v33  ;;  %v19317_v33 = vld [vmem:[%s21691_s2 + $0xe8] sm:$0xff]  }
0x11e3   : > { %v4325_v36 = vadd.f32 %v17311_v34, %v14351_v49  ;;  %v4316_v37 = vpop.f32.mrb[191].mxu0 }
0x11e4   : > { %v4317_v40 = vadd.f32 %v14351_v49, %v4316_v37 }
0x11e5   : > { %17323 = vmatpush3.bf16.msra.mxu1 %v4333_v30  ;;  %v4335_v41 = vpack.c.bf16 %v4325_v36, %v4322_v35  ;;  %v19314_v30 = vld [vmem:[%s21691_s2 + $0xd0] sm:$0xff]   ;;  %v14377_v35 = vld [vmem:[%s21692_s3 + $0x2] ss:$0 sm:$0xff] }
0x11e6   : > { %v4334_v0 = vpack.c.bf16 %v4317_v40, %v4314_v38 }
0x11e8   : > { %17324 = vmatprep.subr.bf16.mxu1 %v4334_v0 }
0x11e9   : > { %17325 = vmatpush3.bf16.msra.mxu1 %v4334_v0 }
0x11ea   : > { %17326 = vmatprep.subr.bf16.mxu1 %v4335_v41 }
0x11ed   : > { %17327 = vmatpush3.bf16.msra.mxu1 %v4335_v41 }
0x11f0   : > { %17329 = vmatmul.mubr.bf16.vlgmr.msra.gmra.mrb[176].mxu1 %v20255_v4 }
0x11f1   : > { %17332 = vmatprep.mubr.bf16.mxu1 %v20258_v17 }
0x11f8   : > { %17333 = vmatmul.mubr.bf16.gmra.mrb[180].mxu1 %v20263_v22 }
0x11f9   : > { %17336 = vmatprep.mubr.bf16.mxu1 %v20266_v23 }
0x1200   : > { %17337 = vmatmul.mubr.bf16.gmra.mrb[184].mxu1 %v20271_v39 }
0x1201   : > { %17340 = vmatprep.mubr.bf16.mxu1 %v20274_v24 }
0x1208   : > { %17341 = vmatmul.mubr.bf16.gmra.mrb[188].mxu1 %v20279_v25 }
0x1209   : > { %17392 = vmatprep.mubr.bf16.mxu1 %v20251_v15 }
0x12c3   : > { %v17330_v42 = vpop.f32.mrb[176].mxu1 }
0x12c4   : > { %v4370_v43 = vpop.f32.mrb[177].mxu1  ;;  %v4435_v18 = vmax.f32 %v17330_v42, 0.0 }
0x12c5   : > { %v17331_v5 = vpop.f32.mrb[178].mxu1  ;;  %v4433_v7 = vmax.f32 %v4370_v43, 0.0 }
0x12c6   : > { %v4436_v6 = vmax.f32 %v17331_v5, 0.0  ;;  %v4373_v19 = vpop.f32.mrb[179].mxu1 }
0x12c7   : > { %v4434_v20 = vmax.f32 %v4373_v19, 0.0 }
0x12c8   : > { %v4450_v21 = vpack.c.bf16 %v4436_v6, %v4435_v18 }
0x12c9   : > { %v4449_v44 = vpack.c.bf16 %v4434_v20, %v4433_v7 }
0x12cb   : > { %v17334_v45 = vpop.f32.mrb[180].mxu1  ;;  %17360 = vmatprep.mubr.bf16.mxu0 %v4449_v44 }
0x12cc   : > { %v4386_v46 = vpop.f32.mrb[181].mxu1  ;;  %17361 = vmatmul.mubr.bf16.vlgmr.msra.gmra.mrb[192].mxu0 %v4450_v21  ;;  %v4439_v48 = vmax.f32 %v17334_v45, 0.0 }
0x12cd   : > { %v17335_v47 = vpop.f32.mrb[182].mxu1  ;;  %v4437_v51 = vmax.f32 %v4386_v46, 0.0  ;;  %17409 = vmatpush3.bf16.msra.mxu0 %v19312_v28 }
0x12ce   : > { %v4440_v49 = vmax.f32 %v17335_v47, 0.0  ;;  %v4389_v50 = vpop.f32.mrb[183].mxu1  ;;  %17410 = vmatprep.subr.bf16.mxu0 %v19313_v29 }
0x12cf   : > { %v4438_v52 = vmax.f32 %v4389_v50, 0.0 }
0x12d0   : > { %v4452_v53 = vpack.c.bf16 %v4440_v49, %v4439_v48 }
0x12d1   : > { %v4451_v54 = vpack.c.bf16 %v4438_v52, %v4437_v51  ;;  %17411 = vmatpush3.bf16.msra.mxu0 %v19313_v29 }
0x12d2   : > { %17412 = vmatprep.subr.bf16.mxu0 %v19314_v30 }
0x12d3   : > { %v17338_v55 = vpop.f32.mrb[184].mxu1  ;;  %17364 = vmatprep.mubr.bf16.mxu0 %v4451_v54 }
0x12d4   : > { %v4402_v56 = vpop.f32.mrb[185].mxu1  ;;  %17365 = vmatmul.mubr.bf16.gmra.mrb[196].mxu0 %v4452_v53  ;;  %v4443_v58 = vmax.f32 %v17338_v55, 0.0 }
0x12d5   : > { %v17339_v57 = vpop.f32.mrb[186].mxu1  ;;  %v4441_v61 = vmax.f32 %v4402_v56, 0.0  ;;  %17413 = vmatpush3.bf16.msra.mxu0 %v19314_v30 }
0x12d6   : > { %v4444_v59 = vmax.f32 %v17339_v57, 0.0  ;;  %v4405_v60 = vpop.f32.mrb[187].mxu1  ;;  %17414 = vmatprep.subr.bf16.mxu0 %v19315_v31 }
0x12d7   : > { %v4442_v62 = vmax.f32 %v4405_v60, 0.0 }
0x12d8   : > { %v4454_v63 = vpack.c.bf16 %v4444_v59, %v4443_v58 }
0x12d9   : > { %v4453_v8 = vpack.c.bf16 %v4442_v62, %v4441_v61  ;;  %17415 = vmatpush3.bf16.msra.mxu0 %v19315_v31 }
0x12da   : > { %17416 = vmatprep.subr.bf16.mxu0 %v19316_v32 }
0x12db   : > { %v17342_v9 = vpop.f32.mrb[188].mxu1  ;;  %17368 = vmatprep.mubr.bf16.mxu0 %v4453_v8 }
0x12dc   : > { %v4418_v10 = vpop.f32.mrb[189].mxu1  ;;  %17369 = vmatmul.mubr.bf16.gmra.mrb[200].mxu0 %v4454_v63  ;;  %v4447_v12 = vmax.f32 %v17342_v9, 0.0 }
0x12dd   : > { %v17343_v11 = vpop.f32.mrb[190].mxu1  ;;  %v4445_v2 = vmax.f32 %v4418_v10, 0.0  ;;  %17417 = vmatpush3.bf16.msra.mxu0 %v19316_v32  ;;  %v19318_v10 = vld [vmem:[%s21691_s2 + $0xf0] sm:$0xff]  }
0x12de   : > { %v4448_v13 = vmax.f32 %v17343_v11, 0.0  ;;  %v4421_v16 = vpop.f32.mrb[191].mxu1  ;;  %17418 = vmatprep.subr.bf16.mxu0 %v19317_v33  ;;  %v19319_v11 = vld [vmem:[%s21691_s2 + $0xf8] sm:$0xff]  }
0x12df   : > { %v4446_v3 = vmax.f32 %v4421_v16, 0.0 }
0x12e0   : > { %v4456_v26 = vpack.c.bf16 %v4448_v13, %v4447_v12 }
0x12e1   : > { %v4455_v27 = vpack.c.bf16 %v4446_v3, %v4445_v2  ;;  %17419 = vmatpush3.bf16.msra.mxu0 %v19317_v33 }
0x12e2   : > { %17420 = vmatprep.subr.bf16.mxu0 %v19318_v10 }
0x12e3   : > { %17372 = vmatprep.mubr.bf16.mxu0 %v4455_v27 }
0x12e4   : > { %17373 = vmatmul.mubr.bf16.gmra.mrb[204].mxu0 %v4456_v26 }
0x12e5   : > { %17421 = vmatpush3.bf16.msra.mxu0 %v19318_v10 }
0x12e6   : > { %17422 = vmatprep.subr.bf16.mxu0 %v19319_v11 }
0x12e9   : > { %17423 = vmatpush3.bf16.msra.mxu0 %v19319_v11 }
0x139f   : > { %v17362_v34 = vpop.f32.mrb[192].mxu0 }
0x13a0   : > { %v4562_v36 = vpop.f32.mrb[193].mxu0  ;;  %v4571_v38 = vadd.f32 %v17362_v34, %v14377_v35 }
0x13a1   : > { %v17363_v37 = vpop.f32.mrb[194].mxu0  ;;  %v4563_v0 = vadd.f32 %v14377_v35, %v4562_v36 }
0x13a2   : > { %v4574_v40 = vadd.f32 %v17363_v37, %v14377_v35  ;;  %v4565_v41 = vpop.f32.mrb[195].mxu0 }
0x13a3   : > { %v4566_v14 = vadd.f32 %v14377_v35, %v4565_v41 }
0x13a4   : > { %v4626_v1 = vpack.c.bf16 %v4574_v40, %v4571_v38 }
0x13a5   : > { %v4625_v42 = vpack.c.bf16 %v4566_v14, %v4563_v0 }
0x13a7   : > { %v17366_v43 = vpop.f32.mrb[196].mxu0  ;;  %17376 = vmatprep.subr.bf16.mxu1 %v4625_v42 }
0x13a8   : > { %v4578_v5 = vpop.f32.mrb[197].mxu0  ;;  %17377 = vmatpush3.bf16.msra.mxu1 %v4625_v42  ;;  %v4587_v6 = vadd.f32 %v17366_v43, %v14377_v35 }
0x13a9   : > { %v17367_v18 = vpop.f32.mrb[198].mxu0  ;;  %17378 = vmatprep.subr.bf16.mxu1 %v4626_v1  ;;  %v4579_v20 = vadd.f32 %v14377_v35, %v4578_v5 }
0x13aa   : > { %v4590_v19 = vadd.f32 %v17367_v18, %v14377_v35  ;;  %v4581_v7 = vpop.f32.mrb[199].mxu0 }
0x13ab   : > { %v4582_v21 = vadd.f32 %v14377_v35, %v4581_v7 }
0x13ac   : > { %17379 = vmatpush3.bf16.msra.mxu1 %v4626_v1  ;;  %v4628_v44 = vpack.c.bf16 %v4590_v19, %v4587_v6 }
0x13ad   : > { %v4627_v45 = vpack.c.bf16 %v4582_v21, %v4579_v20 }
0x13af   : > { %v17370_v46 = vpop.f32.mrb[200].mxu0  ;;  %17380 = vmatprep.subr.bf16.mxu1 %v4627_v45 }
0x13b0   : > { %v4594_v47 = vpop.f32.mrb[201].mxu0  ;;  %17381 = vmatpush3.bf16.msra.mxu1 %v4627_v45  ;;  %v4603_v49 = vadd.f32 %v17370_v46, %v14377_v35 }
0x13b1   : > { %v17371_v48 = vpop.f32.mrb[202].mxu0  ;;  %17382 = vmatprep.subr.bf16.mxu1 %v4628_v44  ;;  %v4595_v52 = vadd.f32 %v14377_v35, %v4594_v47 }
0x13b2   : > { %v4606_v50 = vadd.f32 %v17371_v48, %v14377_v35  ;;  %v4597_v51 = vpop.f32.mrb[203].mxu0 }
0x13b3   : > { %v4598_v53 = vadd.f32 %v14377_v35, %v4597_v51  ;;  %v19320_v51 = vld [vmem:[%s21693_s4] sm:$0xff]  }
0x13b4   : > { %17383 = vmatpush3.bf16.msra.mxu1 %v4628_v44  ;;  %v4630_v54 = vpack.c.bf16 %v4606_v50, %v4603_v49  ;;  %17472 = vmatprep.subr.bf16.mxu0 %v19320_v51 }
0x13b5   : > { %v4629_v55 = vpack.c.bf16 %v4598_v53, %v4595_v52  ;;  %v19321_v52 = vld [vmem:[%s21693_s4 + $0x8] sm:$0xff]   ;;  %v19322_v53 = vld [vmem:[%s21693_s4 + $0x10] sm:$0xff]  }
0x13b7   : > { %v17374_v56 = vpop.f32.mrb[204].mxu0  ;;  %17384 = vmatprep.subr.bf16.mxu1 %v4629_v55 }
0x13b8   : > { %v4610_v57 = vpop.f32.mrb[205].mxu0  ;;  %17385 = vmatpush3.bf16.msra.mxu1 %v4629_v55  ;;  %v4619_v59 = vadd.f32 %v17374_v56, %v14377_v35  ;;  %v19324_v55 = vld [vmem:[%s21693_s4 + $0x20] sm:$0xff]   ;;  %v19325_v56 = vld [vmem:[%s21693_s4 + $0x28] sm:$0xff]  }
0x13b9   : > { %v17375_v58 = vpop.f32.mrb[206].mxu0  ;;  %17386 = vmatprep.subr.bf16.mxu1 %v4630_v54  ;;  %v4611_v62 = vadd.f32 %v14377_v35, %v4610_v57 }
0x13ba   : > { %v4622_v60 = vadd.f32 %v17375_v58, %v14377_v35  ;;  %v4613_v61 = vpop.f32.mrb[207].mxu0  ;;  %v14403_v58 = vld [vmem:[%s21692_s3 + $0x3] ss:$0 sm:$0xff] }
0x13bb   : > { %v4614_v63 = vadd.f32 %v14377_v35, %v4613_v61 }
0x13bc   : > { %17387 = vmatpush3.bf16.msra.mxu1 %v4630_v54  ;;  %v4632_v8 = vpack.c.bf16 %v4622_v60, %v4619_v59  ;;  %v19323_v54 = vld [vmem:[%s21693_s4 + $0x18] sm:$0xff]  }
0x13bd   : > { %v4631_v9 = vpack.c.bf16 %v4614_v63, %v4611_v62 }
0x13bf   : > { %17388 = vmatprep.subr.bf16.mxu1 %v4631_v9 }
0x13c0   : > { %17389 = vmatpush3.bf16.msra.mxu1 %v4631_v9 }
0x13c1   : > { %17390 = vmatprep.subr.bf16.mxu1 %v4632_v8 }
0x13c4   : > { %17391 = vmatpush3.bf16.msra.mxu1 %v4632_v8 }
0x13c7   : > { %17393 = vmatmul.mubr.bf16.vlgmr.msra.gmra.mrb[192].mxu1 %v20255_v4 }
0x13c8   : > { %17396 = vmatprep.mubr.bf16.mxu1 %v20258_v17 }
0x13cf   : > { %17397 = vmatmul.mubr.bf16.gmra.mrb[196].mxu1 %v20263_v22 }
0x13d0   : > { %17400 = vmatprep.mubr.bf16.mxu1 %v20266_v23 }
0x13d7   : > { %17401 = vmatmul.mubr.bf16.gmra.mrb[200].mxu1 %v20271_v39 }
0x13d8   : > { %17404 = vmatprep.mubr.bf16.mxu1 %v20274_v24 }
0x13df   : > { %17405 = vmatmul.mubr.bf16.gmra.mrb[204].mxu1 %v20279_v25 }
0x13e0   : > { %17456 = vmatprep.mubr.bf16.mxu1 %v20251_v15 }
0x149a   : > { %v17394_v12 = vpop.f32.mrb[192].mxu1 }
0x149b   : > { %v4667_v13 = vpop.f32.mrb[193].mxu1  ;;  %v4732_v2 = vmax.f32 %v17394_v12, 0.0 }
0x149c   : > { %v17395_v16 = vpop.f32.mrb[194].mxu1  ;;  %v4730_v27 = vmax.f32 %v4667_v13, 0.0 }
0x149d   : > { %v4733_v3 = vmax.f32 %v17395_v16, 0.0  ;;  %v4670_v26 = vpop.f32.mrb[195].mxu1 }
0x149e   : > { %v4731_v15 = vmax.f32 %v4670_v26, 0.0 }
0x149f   : > { %v4747_v28 = vpack.c.bf16 %v4733_v3, %v4732_v2 }
0x14a0   : > { %v4746_v29 = vpack.c.bf16 %v4731_v15, %v4730_v27 }
0x14a2   : > { %v17398_v30 = vpop.f32.mrb[196].mxu1  ;;  %17424 = vmatprep.mubr.bf16.mxu0 %v4746_v29 }
0x14a3   : > { %v4683_v31 = vpop.f32.mrb[197].mxu1  ;;  %17425 = vmatmul.mubr.bf16.vlgmr.msra.gmra.mrb[208].mxu0 %v4747_v28  ;;  %v4736_v33 = vmax.f32 %v17398_v30, 0.0 }
0x14a4   : > { %v17399_v32 = vpop.f32.mrb[198].mxu1  ;;  %v4734_v36 = vmax.f32 %v4683_v31, 0.0  ;;  %17473 = vmatpush3.bf16.msra.mxu0 %v19320_v51 }
0x14a5   : > { %v4737_v34 = vmax.f32 %v17399_v32, 0.0  ;;  %v4686_v35 = vpop.f32.mrb[199].mxu1  ;;  %17474 = vmatprep.subr.bf16.mxu0 %v19321_v52 }
0x14a6   : > { %v4735_v37 = vmax.f32 %v4686_v35, 0.0 }
0x14a7   : > { %v4749_v38 = vpack.c.bf16 %v4737_v34, %v4736_v33 }
0x14a8   : > { %v4748_v40 = vpack.c.bf16 %v4735_v37, %v4734_v36  ;;  %17475 = vmatpush3.bf16.msra.mxu0 %v19321_v52 }
0x14a9   : > { %17476 = vmatprep.subr.bf16.mxu0 %v19322_v53 }
0x14aa   : > { %v17402_v41 = vpop.f32.mrb[200].mxu1  ;;  %17428 = vmatprep.mubr.bf16.mxu0 %v4748_v40 }
0x14ab   : > { %v4699_v0 = vpop.f32.mrb[201].mxu1  ;;  %17429 = vmatmul.mubr.bf16.gmra.mrb[212].mxu0 %v4749_v38  ;;  %v4740_v1 = vmax.f32 %v17402_v41, 0.0 }
0x14ac   : > { %v17403_v14 = vpop.f32.mrb[202].mxu1  ;;  %v4738_v5 = vmax.f32 %v4699_v0, 0.0  ;;  %17477 = vmatpush3.bf16.msra.mxu0 %v19322_v53  ;;  %v19329_v53 = vld [vmem:[%s21691_s2 + $0x8] sm:$0xff]  }
0x14ad   : > { %v4741_v42 = vmax.f32 %v17403_v14, 0.0  ;;  %v4702_v43 = vpop.f32.mrb[203].mxu1  ;;  %17478 = vmatprep.subr.bf16.mxu0 %v19323_v54 }
0x14ae   : > { %v4739_v18 = vmax.f32 %v4702_v43, 0.0 }
0x14af   : > { %v4751_v6 = vpack.c.bf16 %v4741_v42, %v4740_v1 }
0x14b0   : > { %v4750_v19 = vpack.c.bf16 %v4739_v18, %v4738_v5  ;;  %17479 = vmatpush3.bf16.msra.mxu0 %v19323_v54 }
0x14b1   : > { %17480 = vmatprep.subr.bf16.mxu0 %v19324_v55 }
0x14b2   : > { %v17406_v7 = vpop.f32.mrb[204].mxu1  ;;  %17432 = vmatprep.mubr.bf16.mxu0 %v4750_v19 }
0x14b3   : > { %v4715_v20 = vpop.f32.mrb[205].mxu1  ;;  %17433 = vmatmul.mubr.bf16.gmra.mrb[216].mxu0 %v4751_v6  ;;  %v4744_v44 = vmax.f32 %v17406_v7, 0.0  ;;  %v19326_v7 = vld [vmem:[%s21693_s4 + $0x30] sm:$0xff]  }
0x14b4   : > { %v17407_v21 = vpop.f32.mrb[206].mxu1  ;;  %v4742_v47 = vmax.f32 %v4715_v20, 0.0  ;;  %17481 = vmatpush3.bf16.msra.mxu0 %v19324_v55  ;;  %v19349_v20 = vld [vmem:[%s21695_s6 + $0x28] sm:$0xff]  }
0x14b5   : > { %v4745_v45 = vmax.f32 %v17407_v21, 0.0  ;;  %v4718_v46 = vpop.f32.mrb[207].mxu1  ;;  %17482 = vmatprep.subr.bf16.mxu0 %v19325_v56 }
0x14b6   : > { %v4743_v48 = vmax.f32 %v4718_v46, 0.0 }
0x14b7   : > { %v4753_v49 = vpack.c.bf16 %v4745_v45, %v4744_v44 }
0x14b8   : > { %v4752_v50 = vpack.c.bf16 %v4743_v48, %v4742_v47  ;;  %17483 = vmatpush3.bf16.msra.mxu0 %v19325_v56 }
0x14b9   : > { %17484 = vmatprep.subr.bf16.mxu0 %v19326_v7 }
0x14ba   : > { %17436 = vmatprep.mubr.bf16.mxu0 %v4752_v50 }
0x14bb   : > { %17437 = vmatmul.mubr.bf16.gmra.mrb[220].mxu0 %v4753_v49 }
0x14bc   : > { %17485 = vmatpush3.bf16.msra.mxu0 %v19326_v7  ;;  %v19350_v7 = vld [vmem:[%s21695_s6 + $0x30] sm:$0xff]  }
0x1576   : > { %v17426_v57 = vpop.f32.mrb[208].mxu0 }
0x1577   : > { %v4859_v59 = vpop.f32.mrb[209].mxu0  ;;  %v4868_v61 = vadd.f32 %v17426_v57, %v14403_v58 }
0x1578   : > { %v17427_v60 = vpop.f32.mrb[210].mxu0  ;;  %v4860_v8 = vadd.f32 %v14403_v58, %v4859_v59 }
0x1579   : > { %v4871_v62 = vadd.f32 %v17427_v60, %v14403_v58  ;;  %v4862_v63 = vpop.f32.mrb[211].mxu0  ;;  %v19330_v60 = vld [vmem:[%s21691_s2 + $0x10] sm:$0xff]  }
0x157a   : > { %v4863_v9 = vadd.f32 %v14403_v58, %v4862_v63 }
0x157b   : > { %v4923_v10 = vpack.c.bf16 %v4871_v62, %v4868_v61 }
0x157c   : > { %v4922_v11 = vpack.c.bf16 %v4863_v9, %v4860_v8  ;;  %v19331_v9 = vld [vmem:[%s21691_s2 + $0x18] sm:$0xff]  }
0x157e   : > { %v17430_v12 = vpop.f32.mrb[212].mxu0  ;;  %17440 = vmatprep.subr.bf16.mxu1 %v4922_v11 }
0x157f   : > { %v4875_v13 = vpop.f32.mrb[213].mxu0  ;;  %17441 = vmatpush3.bf16.msra.mxu1 %v4922_v11  ;;  %v4884_v2 = vadd.f32 %v17430_v12, %v14403_v58 }
0x1580   : > { %v17431_v16 = vpop.f32.mrb[214].mxu0  ;;  %17442 = vmatprep.subr.bf16.mxu1 %v4923_v10  ;;  %v4876_v27 = vadd.f32 %v14403_v58, %v4875_v13 }
0x1581   : > { %v4887_v3 = vadd.f32 %v17431_v16, %v14403_v58  ;;  %v4878_v26 = vpop.f32.mrb[215].mxu0 }
0x1582   : > { %v4879_v15 = vadd.f32 %v14403_v58, %v4878_v26 }
0x1583   : > { %17443 = vmatpush3.bf16.msra.mxu1 %v4923_v10  ;;  %v4925_v28 = vpack.c.bf16 %v4887_v3, %v4884_v2  ;;  %v19332_v3 = vld [vmem:[%s21691_s2 + $0x20] sm:$0xff]  }
0x1584   : > { %v4924_v29 = vpack.c.bf16 %v4879_v15, %v4876_v27 }
0x1586   : > { %v17434_v30 = vpop.f32.mrb[216].mxu0  ;;  %17444 = vmatprep.subr.bf16.mxu1 %v4924_v29 }
0x1587   : > { %v4891_v31 = vpop.f32.mrb[217].mxu0  ;;  %17445 = vmatpush3.bf16.msra.mxu1 %v4924_v29  ;;  %v4900_v33 = vadd.f32 %v17434_v30, %v14403_v58  ;;  %v19333_v29 = vld [vmem:[%s21691_s2 + $0x28] sm:$0xff]  }
0x1588   : > { %v17435_v32 = vpop.f32.mrb[218].mxu0  ;;  %17446 = vmatprep.subr.bf16.mxu1 %v4925_v28  ;;  %v4892_v36 = vadd.f32 %v14403_v58, %v4891_v31 }
0x1589   : > { %v4903_v34 = vadd.f32 %v17435_v32, %v14403_v58  ;;  %v4894_v35 = vpop.f32.mrb[219].mxu0 }
0x158a   : > { %v4895_v37 = vadd.f32 %v14403_v58, %v4894_v35 }
0x158b   : > { %17447 = vmatpush3.bf16.msra.mxu1 %v4925_v28  ;;  %v4927_v38 = vpack.c.bf16 %v4903_v34, %v4900_v33 }
0x158c   : > { %v4926_v40 = vpack.c.bf16 %v4895_v37, %v4892_v36  ;;  %v19334_v36 = vld [vmem:[%s21691_s2 + $0x30] sm:$0xff]  }
0x158e   : > { %v17438_v41 = vpop.f32.mrb[220].mxu0  ;;  %17448 = vmatprep.subr.bf16.mxu1 %v4926_v40 }
0x158f   : > { %v4907_v0 = vpop.f32.mrb[221].mxu0  ;;  %17449 = vmatpush3.bf16.msra.mxu1 %v4926_v40  ;;  %v4916_v1 = vadd.f32 %v17438_v41, %v14403_v58 }
0x1590   : > { %v17439_v14 = vpop.f32.mrb[222].mxu0  ;;  %17450 = vmatprep.subr.bf16.mxu1 %v4927_v38  ;;  %v4908_v5 = vadd.f32 %v14403_v58, %v4907_v0  ;;  %v19336_v0 = vld [vmem:[%s19740_s17 + $0xc0] sm:$0xff]  }
0x1591   : > { %v4919_v42 = vadd.f32 %v17439_v14, %v14403_v58  ;;  %v4910_v43 = vpop.f32.mrb[223].mxu0  ;;  %v19335_v14 = vld [vmem:[%s21691_s2 + $0x38] sm:$0xff]  }
0x1592   : > { %v4911_v18 = vadd.f32 %v14403_v58, %v4910_v43  ;;  %v19339_v43 = vld [vmem:[%s19740_s17 + $0xd8] sm:$0xff]  }
0x1593   : > { %17451 = vmatpush3.bf16.msra.mxu1 %v4927_v38  ;;  %v4929_v6 = vpack.c.bf16 %v4919_v42, %v4916_v1  ;;  %v19337_v1 = vld [vmem:[%s19740_s17 + $0xc8] sm:$0xff]   ;;  %v19338_v42 = vld [vmem:[%s19740_s17 + $0xd0] sm:$0xff]  }
0x1594   : > { %v4928_v19 = vpack.c.bf16 %v4911_v18, %v4908_v5  ;;  %v19340_v5 = vld [vmem:[%s19740_s17 + $0xe0] sm:$0xff]   ;;  %v19341_v18 = vld [vmem:[%s19740_s17 + $0xe8] sm:$0xff]  }
0x1596   : > { %17452 = vmatprep.subr.bf16.mxu1 %v4928_v19 }
0x1597   : > { %17453 = vmatpush3.bf16.msra.mxu1 %v4928_v19  ;;  %v19343_v19 = vld [vmem:[%s19740_s17 + $0xf8] sm:$0xff]  }
0x1598   : > { %17454 = vmatprep.subr.bf16.mxu1 %v4929_v6 }
0x159b   : > { %17455 = vmatpush3.bf16.msra.mxu1 %v4929_v6  ;;  %v19342_v6 = vld [vmem:[%s19740_s17 + $0xf0] sm:$0xff]  }
0x159e   : > { %17457 = vmatmul.mubr.bf16.vlgmr.msra.gmra.mrb[208].mxu1 %v20255_v4  ;;  %v19327_v4 = vld [vmem:[%s21693_s4 + $0x38] sm:$0xff]  }
0x159f   : > { %17460 = vmatprep.mubr.bf16.mxu1 %v20258_v17  ;;  %17486 = vmatprep.subr.bf16.mxu0 %v19327_v4  ;;  %v19328_v17 = vld [vmem:[%s21691_s2] sm:$0xff]  }
0x15a0   : > { %17487 = vmatpush3.bf16.msra.mxu0 %v19327_v4  ;;  %v19351_v4 = vld [vmem:[%s21695_s6 + $0x38] sm:$0xff]  }
0x15a1   : > { %17536 = vmatprep.subr.bf16.mxu0 %v19328_v17 }
0x15a6   : > { %17461 = vmatmul.mubr.bf16.gmra.mrb[212].mxu1 %v20263_v22  ;;  %v19344_v22 = vld [vmem:[%s21695_s6] sm:$0xff]  }
0x15a7   : > { %17464 = vmatprep.mubr.bf16.mxu1 %v20266_v23  ;;  %v19345_v23 = vld [vmem:[%s21695_s6 + $0x8] sm:$0xff]   ;;  %17504 = vmatprep.subr.bf16.mxu1 %v19344_v22 }
0x15a8   : > { %17505 = vmatpush3.bf16.msra.mxu1 %v19344_v22 }
0x15a9   : > { %17506 = vmatprep.subr.bf16.mxu1 %v19345_v23 }
0x15ac   : > { %17507 = vmatpush3.bf16.msra.mxu1 %v19345_v23 }
0x15ae   : > { %17465 = vmatmul.mubr.bf16.gmra.mrb[216].mxu1 %v20271_v39  ;;  %v19346_v39 = vld [vmem:[%s21695_s6 + $0x10] sm:$0xff]  }
0x15af   : > { %17468 = vmatprep.mubr.bf16.mxu1 %v20274_v24  ;;  %17508 = vmatprep.subr.bf16.mxu1 %v19346_v39  ;;  %v19347_v24 = vld [vmem:[%s21695_s6 + $0x18] sm:$0xff]  }
0x15b0   : > { %17509 = vmatpush3.bf16.msra.mxu1 %v19346_v39 }
0x15b1   : > { %17510 = vmatprep.subr.bf16.mxu1 %v19347_v24 }
0x15b4   : > { %17511 = vmatpush3.bf16.msra.mxu1 %v19347_v24 }
0x15b6   : > { %17469 = vmatmul.mubr.bf16.gmra.mrb[220].mxu1 %v20279_v25  ;;  %v19348_v25 = vld [vmem:[%s21695_s6 + $0x20] sm:$0xff]  }
0x15b7   : > { %17512 = vmatprep.subr.bf16.mxu1 %v19348_v25 }
0x15b8   : > { %17513 = vmatpush3.bf16.msra.mxu1 %v19348_v25 }
0x15b9   : > { %17514 = vmatprep.subr.bf16.mxu1 %v19349_v20 }
0x15bc   : > { %17515 = vmatpush3.bf16.msra.mxu1 %v19349_v20 }
0x15bd   : > { %17516 = vmatprep.subr.bf16.mxu1 %v19350_v7 }
0x15c0   : > { %17517 = vmatpush3.bf16.msra.mxu1 %v19350_v7 }
0x15c1   : > { %17518 = vmatprep.subr.bf16.mxu1 %v19351_v4 }
0x15c4   : > { %17519 = vmatpush3.bf16.msra.mxu1 %v19351_v4 }
0x1671   : > { %v17458_v21 = vpop.f32.mrb[208].mxu1 }
0x1672   : > { %v4964_v44 = vpop.f32.mrb[209].mxu1  ;;  %v5029_v46 = vmax.f32 %v17458_v21, 0.0 }
0x1673   : > { %v17459_v45 = vpop.f32.mrb[210].mxu1  ;;  %v5027_v49 = vmax.f32 %v4964_v44, 0.0 }
0x1674   : > { %v5030_v47 = vmax.f32 %v17459_v45, 0.0  ;;  %v4967_v48 = vpop.f32.mrb[211].mxu1 }
0x1675   : > { %v5028_v50 = vmax.f32 %v4967_v48, 0.0 }
0x1676   : > { %v5044_v51 = vpack.c.bf16 %v5030_v47, %v5029_v46 }
0x1677   : > { %v5043_v52 = vpack.c.bf16 %v5028_v50, %v5027_v49 }
0x1679   : > { %v17462_v54 = vpop.f32.mrb[212].mxu1  ;;  %17488 = vmatprep.mubr.bf16.mxu0 %v5043_v52 }
0x167a   : > { %v4980_v55 = vpop.f32.mrb[213].mxu1  ;;  %17489 = vmatmul.mubr.bf16.vlgmr.msra.gmra.mrb[224].mxu0 %v5044_v51  ;;  %v5033_v57 = vmax.f32 %v17462_v54, 0.0 }
0x167b   : > { %v17463_v56 = vpop.f32.mrb[214].mxu1  ;;  %17537 = vmatpush3.bf16.msra.mxu0 %v19328_v17  ;;  %v5031_v61 = vmax.f32 %v4980_v55, 0.0  ;;  %v14412_v17 = vld [vmem:[%s21694_s5] ss:$0 sm:$0xff] }
0x167c   : > { %v5034_v58 = vmax.f32 %v17463_v56, 0.0  ;;  %v4983_v59 = vpop.f32.mrb[215].mxu1  ;;  %17538 = vmatprep.subr.bf16.mxu0 %v19329_v53 }
0x167d   : > { %v5032_v62 = vmax.f32 %v4983_v59, 0.0 }
0x167e   : > { %v5046_v63 = vpack.c.bf16 %v5034_v58, %v5033_v57 }
0x167f   : > { %17539 = vmatpush3.bf16.msra.mxu0 %v19329_v53  ;;  %v5045_v8 = vpack.c.bf16 %v5032_v62, %v5031_v61 }
0x1680   : > { %17540 = vmatprep.subr.bf16.mxu0 %v19330_v60 }
0x1681   : > { %v17466_v10 = vpop.f32.mrb[216].mxu1  ;;  %17492 = vmatprep.mubr.bf16.mxu0 %v5045_v8 }
0x1682   : > { %v4996_v11 = vpop.f32.mrb[217].mxu1  ;;  %17493 = vmatmul.mubr.bf16.gmra.mrb[228].mxu0 %v5046_v63  ;;  %v5037_v13 = vmax.f32 %v17466_v10, 0.0 }
0x1683   : > { %v17467_v12 = vpop.f32.mrb[218].mxu1  ;;  %17541 = vmatpush3.bf16.msra.mxu0 %v19330_v60  ;;  %v5035_v26 = vmax.f32 %v4996_v11, 0.0 }
0x1684   : > { %v5038_v16 = vmax.f32 %v17467_v12, 0.0  ;;  %v4999_v2 = vpop.f32.mrb[219].mxu1  ;;  %17542 = vmatprep.subr.bf16.mxu0 %v19331_v9 }
0x1685   : > { %v5036_v27 = vmax.f32 %v4999_v2, 0.0 }
0x1686   : > { %v5048_v15 = vpack.c.bf16 %v5038_v16, %v5037_v13 }
0x1687   : > { %17543 = vmatpush3.bf16.msra.mxu0 %v19331_v9  ;;  %v5047_v28 = vpack.c.bf16 %v5036_v27, %v5035_v26 }
0x1688   : > { %17544 = vmatprep.subr.bf16.mxu0 %v19332_v3 }
0x1689   : > { %v17470_v30 = vpop.f32.mrb[220].mxu1  ;;  %17496 = vmatprep.mubr.bf16.mxu0 %v5047_v28 }
0x168a   : > { %v5012_v31 = vpop.f32.mrb[221].mxu1  ;;  %17497 = vmatmul.mubr.bf16.gmra.mrb[232].mxu0 %v5048_v15  ;;  %v5041_v33 = vmax.f32 %v17470_v30, 0.0 }
0x168b   : > { %v17471_v32 = vpop.f32.mrb[222].mxu1  ;;  %17545 = vmatpush3.bf16.msra.mxu0 %v19332_v3  ;;  %v5039_v37 = vmax.f32 %v5012_v31, 0.0 }
0x168c   : > { %v5042_v34 = vmax.f32 %v17471_v32, 0.0  ;;  %v5015_v35 = vpop.f32.mrb[223].mxu1  ;;  %17546 = vmatprep.subr.bf16.mxu0 %v19333_v29 }
0x168d   : > { %v5040_v38 = vmax.f32 %v5015_v35, 0.0 }
0x168e   : > { %v5050_v40 = vpack.c.bf16 %v5042_v34, %v5041_v33 }
0x168f   : > { %17547 = vmatpush3.bf16.msra.mxu0 %v19333_v29  ;;  %v5049_v41 = vpack.c.bf16 %v5040_v38, %v5039_v37 }
0x1690   : > { %17548 = vmatprep.subr.bf16.mxu0 %v19334_v36 }
0x1691   : > { %17500 = vmatprep.mubr.bf16.mxu0 %v5049_v41 }
0x1692   : > { %17501 = vmatmul.mubr.bf16.gmra.mrb[236].mxu0 %v5050_v40 }
0x1693   : > { %17549 = vmatpush3.bf16.msra.mxu0 %v19334_v36  ;;  %17552 = vmatprep.mubr.bf16.mxu0 %v19336_v0 }
0x1694   : > { %17550 = vmatprep.subr.bf16.mxu0 %v19335_v14 }
0x1697   : > { %17551 = vmatpush3.bf16.msra.mxu0 %v19335_v14 }
0x169a   : > { %17553 = vmatmul.mubr.bf16.vlgmr.msra.gmra.mrb[240].mxu0 %v19337_v1 }
0x169b   : > { %17556 = vmatprep.mubr.bf16.mxu0 %v19338_v42 }
0x16a2   : > { %17557 = vmatmul.mubr.bf16.gmra.mrb[244].mxu0 %v19339_v43  ;;  %v14478_v43 = vld [vmem:[%s21692_s3] ss:$0 sm:$0xff] }
0x16a3   : > { %17560 = vmatprep.mubr.bf16.mxu0 %v19340_v5 }
0x16aa   : > { %17561 = vmatmul.mubr.bf16.gmra.mrb[248].mxu0 %v19341_v18  ;;  %v20493_v18 = vld [vmem:[%s19755_s26 + $0xc0] sm:$0xff]  }
0x16ab   : > { %17564 = vmatprep.mubr.bf16.mxu0 %v19342_v6 }
0x16b2   : > { %17565 = vmatmul.mubr.bf16.gmra.mrb[252].mxu0 %v19343_v19 }
0x174d   : > { %v17490_v22 = vpop.f32.mrb[224].mxu0 }
0x174e   : > { %v5165_v23 = vadd.f32 %v17490_v22, %v14412_v17  ;;  %v5156_v39 = vpop.f32.mrb[225].mxu0 }
0x174f   : > { %v5157_v24 = vadd.f32 %v14412_v17, %v5156_v39  ;;  %v17491_v25 = vpop.f32.mrb[226].mxu0 }
0x1750   : > { %v5168_v20 = vadd.f32 %v17491_v25, %v14412_v17  ;;  %v5159_v21 = vpop.f32.mrb[227].mxu0  ;;  %v5221_v45 = vmax.f32 %v5165_v23, 0.0 }
0x1751   : > { %v5160_v44 = vadd.f32 %v14412_v17, %v5159_v21  ;;  %v5219_v47 = vmax.f32 %v5157_v24, 0.0 }
0x1752   : > { %v5222_v46 = vmax.f32 %v5168_v20, 0.0 }
0x1753   : > { %v5220_v48 = vmax.f32 %v5160_v44, 0.0 }
0x1754   : > { %v5236_v49 = vpack.c.bf16 %v5222_v46, %v5221_v45 }
0x1755   : > { %v17494_v50 = vpop.f32.mrb[228].mxu0  ;;  %v5235_v51 = vpack.c.bf16 %v5220_v48, %v5219_v47 }
0x1756   : > { %v5181_v52 = vadd.f32 %v17494_v50, %v14412_v17  ;;  %v5172_v53 = vpop.f32.mrb[229].mxu0 }
0x1757   : > { %v5173_v54 = vadd.f32 %v14412_v17, %v5172_v53  ;;  %v17495_v55 = vpop.f32.mrb[230].mxu0  ;;  %17520 = vmatprep.mubr.bf16.mxu1 %v5235_v51 }
0x1758   : > { %v5184_v56 = vadd.f32 %v17495_v55, %v14412_v17  ;;  %v5175_v57 = vpop.f32.mrb[231].mxu0  ;;  %17521 = vmatmul.mubr.bf16.vlgmr.msra.gmra.mrb[224].mxu1 %v5236_v49  ;;  %v5225_v59 = vmax.f32 %v5181_v52, 0.0 }
0x1759   : > { %v5176_v58 = vadd.f32 %v14412_v17, %v5175_v57  ;;  %v5223_v61 = vmax.f32 %v5173_v54, 0.0 }
0x175a   : > { %v5226_v60 = vmax.f32 %v5184_v56, 0.0 }
0x175b   : > { %v5224_v62 = vmax.f32 %v5176_v58, 0.0 }
0x175c   : > { %v5238_v63 = vpack.c.bf16 %v5226_v60, %v5225_v59 }
0x175d   : > { %v17498_v8 = vpop.f32.mrb[232].mxu0  ;;  %v5237_v9 = vpack.c.bf16 %v5224_v62, %v5223_v61 }
0x175e   : > { %v5197_v10 = vadd.f32 %v17498_v8, %v14412_v17  ;;  %v5188_v11 = vpop.f32.mrb[233].mxu0 }
0x175f   : > { %v5189_v12 = vadd.f32 %v14412_v17, %v5188_v11  ;;  %v17499_v13 = vpop.f32.mrb[234].mxu0  ;;  %17524 = vmatprep.mubr.bf16.mxu1 %v5237_v9 }
0x1760   : > { %v5200_v16 = vadd.f32 %v17499_v13, %v14412_v17  ;;  %v5191_v2 = vpop.f32.mrb[235].mxu0  ;;  %17525 = vmatmul.mubr.bf16.gmra.mrb[228].mxu1 %v5238_v63  ;;  %v5229_v26 = vmax.f32 %v5197_v10, 0.0 }
0x1761   : > { %v5192_v3 = vadd.f32 %v14412_v17, %v5191_v2  ;;  %v5227_v15 = vmax.f32 %v5189_v12, 0.0  ;;  %v20497_v2 = vld [vmem:[%s19755_s26 + $0xc8] sm:$0xff]  }
0x1762   : > { %v5230_v27 = vmax.f32 %v5200_v16, 0.0 }
0x1763   : > { %v5228_v28 = vmax.f32 %v5192_v3, 0.0  ;;  %v20500_v3 = vld [vmem:[%s19755_s26 + $0xd0] sm:$0xff]  }
0x1764   : > { %v5240_v29 = vpack.c.bf16 %v5230_v27, %v5229_v26  ;;  %v20505_v26 = vld [vmem:[%s19755_s26 + $0xd8] sm:$0xff]   ;;  %v20508_v27 = vld [vmem:[%s19755_s26 + $0xe0] sm:$0xff]  }
0x1765   : > { %v17502_v30 = vpop.f32.mrb[236].mxu0  ;;  %v5239_v31 = vpack.c.bf16 %v5228_v28, %v5227_v15  ;;  %v20513_v15 = vld [vmem:[%s19755_s26 + $0xe8] sm:$0xff]   ;;  %v20516_v28 = vld [vmem:[%s19755_s26 + $0xf0] sm:$0xff]  }
0x1766   : > { %v5213_v32 = vadd.f32 %v17502_v30, %v14412_v17  ;;  %v5204_v33 = vpop.f32.mrb[237].mxu0  ;;  %v19360_v30 = vld [vmem:[%s21691_s2 + $0x40] sm:$0xff]  }
0x1767   : > { %v5205_v34 = vadd.f32 %v14412_v17, %v5204_v33  ;;  %v17503_v35 = vpop.f32.mrb[238].mxu0  ;;  %17528 = vmatprep.mubr.bf16.mxu1 %v5239_v31  ;;  %v19361_v31 = vld [vmem:[%s21691_s2 + $0x48] sm:$0xff]   ;;  %17600 = vmatprep.subr.bf16.mxu0 %v19360_v30  ;;  %v19363_v33 = vld [vmem:[%s21691_s2 + $0x58] sm:$0xff]  }
0x1768   : > { %v5216_v36 = vadd.f32 %v17503_v35, %v14412_v17  ;;  %v5207_v37 = vpop.f32.mrb[239].mxu0  ;;  %17529 = vmatmul.mubr.bf16.gmra.mrb[232].mxu1 %v5240_v29  ;;  %v5233_v40 = vmax.f32 %v5213_v32, 0.0  ;;  %v20521_v29 = vld [vmem:[%s19755_s26 + $0xf8] sm:$0xff]   ;;  %17601 = vmatpush3.bf16.msra.mxu0 %v19360_v30  ;;  %v19362_v32 = vld [vmem:[%s21691_s2 + $0x50] sm:$0xff]   ;;  %v19365_v35 = vld [vmem:[%s21691_s2 + $0x68] sm:$0xff]  }
0x1769   : > { %v5208_v38 = vadd.f32 %v14412_v17, %v5207_v37  ;;  %v5231_v0 = vmax.f32 %v5205_v34, 0.0  ;;  %17602 = vmatprep.subr.bf16.mxu0 %v19361_v31  ;;  %v19364_v34 = vld [vmem:[%s21691_s2 + $0x60] sm:$0xff]   ;;  %v19367_v37 = vld [vmem:[%s21691_s2 + $0x78] sm:$0xff]  }
0x176a   : > { %v5234_v41 = vmax.f32 %v5216_v36, 0.0  ;;  %v19366_v36 = vld [vmem:[%s21691_s2 + $0x70] sm:$0xff]  }
0x176b   : > { %v5232_v14 = vmax.f32 %v5208_v38, 0.0  ;;  %v14421_v38 = vld [vmem:[%s21696_s7] ss:$0 sm:$0xff] }
0x176c   : > { %v5242_v1 = vpack.c.bf16 %v5234_v41, %v5233_v40  ;;  %17603 = vmatpush3.bf16.msra.mxu0 %v19361_v31 }
0x176d   : > { %v17554_v42 = vpop.f32.mrb[240].mxu0  ;;  %v5241_v5 = vpack.c.bf16 %v5232_v14, %v5231_v0  ;;  %17604 = vmatprep.subr.bf16.mxu0 %v19362_v32 }
0x176e   : > { %v5615_v6 = vpop.f32.mrb[241].mxu0  ;;  %v5624_v7 = vadd.f32 %v17554_v42, %v14478_v43 }
0x176f   : > { %17532 = vmatprep.mubr.bf16.mxu1 %v5241_v5  ;;  %v17555_v19 = vpop.f32.mrb[242].mxu0  ;;  %v5616_v22 = vadd.f32 %v14478_v43, %v5615_v6 }
0x1770   : > { %v5627_v4 = vadd.f32 %v17555_v19, %v14478_v43  ;;  %17533 = vmatmul.mubr.bf16.gmra.mrb[236].mxu1 %v5242_v1  ;;  %v5618_v17 = vpop.f32.mrb[243].mxu0  ;;  %17605 = vmatpush3.bf16.msra.mxu0 %v19362_v32 }
0x1771   : > { %v5619_v23 = vadd.f32 %v14478_v43, %v5618_v17  ;;  %17584 = vmatprep.mubr.bf16.mxu1 %v20493_v18  ;;  %17606 = vmatprep.subr.bf16.mxu0 %v19363_v33 }
0x1772   : > { %v5679_v39 = vpack.c.bf16 %v5627_v4, %v5624_v7 }
0x1773   : > { %v5678_v24 = vpack.c.bf16 %v5619_v23, %v5616_v22 }
0x1774   : > { %17607 = vmatpush3.bf16.msra.mxu0 %v19363_v33 }
0x1775   : > { %v17558_v25 = vpop.f32.mrb[244].mxu0  ;;  %17568 = vmatprep.subr.bf16.mxu1 %v5678_v24  ;;  %17608 = vmatprep.subr.bf16.mxu0 %v19364_v34 }
0x1776   : > { %v5631_v20 = vpop.f32.mrb[245].mxu0  ;;  %17569 = vmatpush3.bf16.msra.mxu1 %v5678_v24  ;;  %v5640_v44 = vadd.f32 %v17558_v25, %v14478_v43 }
0x1777   : > { %v17559_v21 = vpop.f32.mrb[246].mxu0  ;;  %17570 = vmatprep.subr.bf16.mxu1 %v5679_v39  ;;  %v5632_v47 = vadd.f32 %v14478_v43, %v5631_v20 }
0x1778   : > { %v5643_v45 = vadd.f32 %v17559_v21, %v14478_v43  ;;  %v5634_v46 = vpop.f32.mrb[247].mxu0  ;;  %17609 = vmatpush3.bf16.msra.mxu0 %v19364_v34 }
0x1779   : > { %v5635_v48 = vadd.f32 %v14478_v43, %v5634_v46  ;;  %17610 = vmatprep.subr.bf16.mxu0 %v19365_v35 }
0x177a   : > { %17571 = vmatpush3.bf16.msra.mxu1 %v5679_v39  ;;  %v5681_v49 = vpack.c.bf16 %v5643_v45, %v5640_v44 }
0x177b   : > { %v5680_v50 = vpack.c.bf16 %v5635_v48, %v5632_v47 }
0x177c   : > { %17611 = vmatpush3.bf16.msra.mxu0 %v19365_v35 }
0x177d   : > { %v17562_v51 = vpop.f32.mrb[248].mxu0  ;;  %17572 = vmatprep.subr.bf16.mxu1 %v5680_v50  ;;  %17612 = vmatprep.subr.bf16.mxu0 %v19366_v36 }
0x177e   : > { %v5647_v52 = vpop.f32.mrb[249].mxu0  ;;  %17573 = vmatpush3.bf16.msra.mxu1 %v5680_v50  ;;  %v5656_v54 = vadd.f32 %v17562_v51, %v14478_v43 }
0x177f   : > { %v17563_v53 = vpop.f32.mrb[250].mxu0  ;;  %17574 = vmatprep.subr.bf16.mxu1 %v5681_v49  ;;  %v5648_v57 = vadd.f32 %v14478_v43, %v5647_v52 }
0x1780   : > { %v5659_v55 = vadd.f32 %v17563_v53, %v14478_v43  ;;  %v5650_v56 = vpop.f32.mrb[251].mxu0  ;;  %17613 = vmatpush3.bf16.msra.mxu0 %v19366_v36 }
0x1781   : > { %v5651_v58 = vadd.f32 %v14478_v43, %v5650_v56  ;;  %17614 = vmatprep.subr.bf16.mxu0 %v19367_v37 }
0x1782   : > { %17575 = vmatpush3.bf16.msra.mxu1 %v5681_v49  ;;  %v5683_v59 = vpack.c.bf16 %v5659_v55, %v5656_v54 }
0x1783   : > { %v5682_v60 = vpack.c.bf16 %v5651_v58, %v5648_v57 }
0x1784   : > { %17615 = vmatpush3.bf16.msra.mxu0 %v19367_v37 }
0x1785   : > { %v17566_v61 = vpop.f32.mrb[252].mxu0  ;;  %17576 = vmatprep.subr.bf16.mxu1 %v5682_v60 }
0x1786   : > { %v5663_v62 = vpop.f32.mrb[253].mxu0  ;;  %17577 = vmatpush3.bf16.msra.mxu1 %v5682_v60  ;;  %v5672_v8 = vadd.f32 %v17566_v61, %v14478_v43 }
0x1787   : > { %v17567_v63 = vpop.f32.mrb[254].mxu0  ;;  %17578 = vmatprep.subr.bf16.mxu1 %v5683_v59  ;;  %v5664_v11 = vadd.f32 %v14478_v43, %v5663_v62 }
0x1788   : > { %v5675_v9 = vadd.f32 %v17567_v63, %v14478_v43  ;;  %v5666_v10 = vpop.f32.mrb[255].mxu0 }
0x1789   : > { %v5667_v12 = vadd.f32 %v14478_v43, %v5666_v10 }
0x178a   : > { %17579 = vmatpush3.bf16.msra.mxu1 %v5683_v59  ;;  %v5685_v13 = vpack.c.bf16 %v5675_v9, %v5672_v8 }
0x178b   : > { %v5684_v16 = vpack.c.bf16 %v5667_v12, %v5664_v11 }
0x178d   : > { %17580 = vmatprep.subr.bf16.mxu1 %v5684_v16 }
0x178e   : > { %17581 = vmatpush3.bf16.msra.mxu1 %v5684_v16 }
0x178f   : > { %17582 = vmatprep.subr.bf16.mxu1 %v5685_v13 }
0x1792   : > { %17583 = vmatpush3.bf16.msra.mxu1 %v5685_v13 }
0x1795   : > { %17585 = vmatmul.mubr.bf16.vlgmr.msra.gmra.mrb[240].mxu1 %v20497_v2 }
0x1796   : > { %17588 = vmatprep.mubr.bf16.mxu1 %v20500_v3 }
0x179d   : > { %17589 = vmatmul.mubr.bf16.gmra.mrb[244].mxu1 %v20505_v26 }
0x179e   : > { %17592 = vmatprep.mubr.bf16.mxu1 %v20508_v27 }
0x17a5   : > { %17593 = vmatmul.mubr.bf16.gmra.mrb[248].mxu1 %v20513_v15 }
0x17a6   : > { %17596 = vmatprep.mubr.bf16.mxu1 %v20516_v28 }
0x17ad   : > { %17597 = vmatmul.mubr.bf16.gmra.mrb[252].mxu1 %v20521_v29 }
0x17ae   : > { %17648 = vmatprep.mubr.bf16.mxu1 %v20493_v18 }
0x182b   : > { %v17522_v40 = vpop.f32.mrb[224].mxu1 }
0x182c   : > { %v5357_v41 = vadd.f32 %v17522_v40, %v14421_v38  ;;  %v5348_v0 = vpop.f32.mrb[225].mxu1 }
0x182d   : > { %v5349_v14 = vadd.f32 %v14421_v38, %v5348_v0  ;;  %v17523_v1 = vpop.f32.mrb[226].mxu1 }
0x182e   : > { %14432 = vst [vmem:[%s20066_s14 + $0x110] sm:$0xff] %v5357_v41  ;;  %v5360_v42 = vadd.f32 %v17523_v1, %v14421_v38  ;;  %v5351_v43 = vpop.f32.mrb[227].mxu1 }
0x182f   : > { %14430 = vst [vmem:[%s20066_s14 + $0x100] sm:$0xff] %v5349_v14  ;;  %v5352_v5 = vadd.f32 %v14421_v38, %v5351_v43 }
0x1830   : > { %14433 = vst [vmem:[%s20066_s14 + $0x118] sm:$0xff] %v5360_v42 }
0x1831   : > { %14431 = vst [vmem:[%s20066_s14 + $0x108] sm:$0xff] %v5352_v5 }
0x1833   : > { %v17526_v6 = vpop.f32.mrb[228].mxu1 }
0x1834   : > { %v5373_v19 = vadd.f32 %v17526_v6, %v14421_v38  ;;  %v5364_v7 = vpop.f32.mrb[229].mxu1 }
0x1835   : > { %v5365_v4 = vadd.f32 %v14421_v38, %v5364_v7  ;;  %v17527_v17 = vpop.f32.mrb[230].mxu1 }
0x1836   : > { %14436 = vst [vmem:[%s20066_s14 + $0x130] sm:$0xff] %v5373_v19  ;;  %v5376_v22 = vadd.f32 %v17527_v17, %v14421_v38  ;;  %v5367_v23 = vpop.f32.mrb[231].mxu1 }
0x1837   : > { %14434 = vst [vmem:[%s20066_s14 + $0x120] sm:$0xff] %v5365_v4  ;;  %v5368_v39 = vadd.f32 %v14421_v38, %v5367_v23 }
0x1838   : > { %14437 = vst [vmem:[%s20066_s14 + $0x138] sm:$0xff] %v5376_v22 }
0x1839   : > { %14435 = vst [vmem:[%s20066_s14 + $0x128] sm:$0xff] %v5368_v39 }
0x183b   : > { %v17530_v24 = vpop.f32.mrb[232].mxu1 }
0x183c   : > { %v5389_v25 = vadd.f32 %v17530_v24, %v14421_v38  ;;  %v5380_v20 = vpop.f32.mrb[233].mxu1  ;;  %v19368_v24 = vld [vmem:[%s21691_s2 + $0x80] sm:$0xff]  }
0x183d   : > { %v5381_v21 = vadd.f32 %v14421_v38, %v5380_v20  ;;  %v17531_v44 = vpop.f32.mrb[234].mxu1  ;;  %17664 = vmatprep.subr.bf16.mxu0 %v19368_v24  ;;  %v19370_v20 = vld [vmem:[%s21691_s2 + $0x90] sm:$0xff]  }
0x183e   : > { %14440 = vst [vmem:[%s20066_s14 + $0x150] sm:$0xff] %v5389_v25  ;;  %v5392_v45 = vadd.f32 %v17531_v44, %v14421_v38  ;;  %v5383_v46 = vpop.f32.mrb[235].mxu1  ;;  %v19369_v25 = vld [vmem:[%s21691_s2 + $0x88] sm:$0xff]   ;;  %v19372_v44 = vld [vmem:[%s21691_s2 + $0xa0] sm:$0xff]  }
0x183f   : > { %14438 = vst [vmem:[%s20066_s14 + $0x140] sm:$0xff] %v5381_v21  ;;  %v5384_v47 = vadd.f32 %v14421_v38, %v5383_v46  ;;  %v19371_v21 = vld [vmem:[%s21691_s2 + $0x98] sm:$0xff]  }
0x1840   : > { %14441 = vst [vmem:[%s20066_s14 + $0x158] sm:$0xff] %v5392_v45  ;;  %v19373_v45 = vld [vmem:[%s21691_s2 + $0xa8] sm:$0xff]  }
0x1841   : > { %14439 = vst [vmem:[%s20066_s14 + $0x148] sm:$0xff] %v5384_v47  ;;  %v14520_v47 = vld [vmem:[%s21692_s3 + $0x1] ss:$0 sm:$0xff] }
0x1843   : > { %v17534_v48 = vpop.f32.mrb[236].mxu1 }
0x1844   : > { %v5405_v49 = vadd.f32 %v17534_v48, %v14421_v38  ;;  %v5396_v50 = vpop.f32.mrb[237].mxu1 }
0x1845   : > { %v5397_v51 = vadd.f32 %v14421_v38, %v5396_v50  ;;  %v17535_v52 = vpop.f32.mrb[238].mxu1 }
0x1846   : > { %14444 = vst [vmem:[%s20066_s14 + $0x170] sm:$0xff] %v5405_v49  ;;  %v5408_v53 = vadd.f32 %v17535_v52, %v14421_v38  ;;  %v5399_v54 = vpop.f32.mrb[239].mxu1 }
0x1847   : > { %14442 = vst [vmem:[%s20066_s14 + $0x160] sm:$0xff] %v5397_v51  ;;  %v5400_v55 = vadd.f32 %v14421_v38, %v5399_v54 }
0x1848   : > { %14445 = vst [vmem:[%s20066_s14 + $0x178] sm:$0xff] %v5408_v53 }
0x1849   : > { %14443 = vst [vmem:[%s20066_s14 + $0x168] sm:$0xff] %v5400_v55 }
0x1868   : > { %v17586_v56 = vpop.f32.mrb[240].mxu1 }
0x1869   : > { %v5768_v57 = vpop.f32.mrb[241].mxu1  ;;  %v5833_v59 = vmax.f32 %v17586_v56, 0.0 }
0x186a   : > { %v17587_v58 = vpop.f32.mrb[242].mxu1  ;;  %v5831_v62 = vmax.f32 %v5768_v57, 0.0 }
0x186b   : > { %v5834_v60 = vmax.f32 %v17587_v58, 0.0  ;;  %v5771_v61 = vpop.f32.mrb[243].mxu1 }
0x186c   : > { %v5832_v63 = vmax.f32 %v5771_v61, 0.0 }
0x186d   : > { %v5848_v8 = vpack.c.bf16 %v5834_v60, %v5833_v59 }
0x186e   : > { %v5847_v9 = vpack.c.bf16 %v5832_v63, %v5831_v62 }
0x1870   : > { %v17590_v10 = vpop.f32.mrb[244].mxu1  ;;  %17616 = vmatprep.mubr.bf16.mxu0 %v5847_v9 }
0x1871   : > { %v5784_v11 = vpop.f32.mrb[245].mxu1  ;;  %17617 = vmatmul.mubr.bf16.vlgmr.msra.gmra.mrb[0].mxu0 %v5848_v8  ;;  %v5837_v13 = vmax.f32 %v17590_v10, 0.0 }
0x1872   : > { %v17591_v12 = vpop.f32.mrb[246].mxu1  ;;  %v5835_v31 = vmax.f32 %v5784_v11, 0.0  ;;  %17665 = vmatpush3.bf16.msra.mxu0 %v19368_v24 }
0x1873   : > { %v5838_v16 = vmax.f32 %v17591_v12, 0.0  ;;  %v5787_v30 = vpop.f32.mrb[247].mxu1  ;;  %17666 = vmatprep.subr.bf16.mxu0 %v19369_v25 }
0x1874   : > { %v5836_v32 = vmax.f32 %v5787_v30, 0.0 }
0x1875   : > { %v5850_v33 = vpack.c.bf16 %v5838_v16, %v5837_v13 }
0x1876   : > { %v5849_v34 = vpack.c.bf16 %v5836_v32, %v5835_v31  ;;  %17667 = vmatpush3.bf16.msra.mxu0 %v19369_v25 }
0x1877   : > { %17668 = vmatprep.subr.bf16.mxu0 %v19370_v20 }
0x1878   : > { %v17594_v35 = vpop.f32.mrb[248].mxu1  ;;  %17620 = vmatprep.mubr.bf16.mxu0 %v5849_v34 }
0x1879   : > { %v5800_v36 = vpop.f32.mrb[249].mxu1  ;;  %17621 = vmatmul.mubr.bf16.gmra.mrb[4].mxu0 %v5850_v33  ;;  %v5841_v38 = vmax.f32 %v17594_v35, 0.0 }
0x187a   : > { %v17595_v37 = vpop.f32.mrb[250].mxu1  ;;  %v5839_v0 = vmax.f32 %v5800_v36, 0.0  ;;  %17669 = vmatpush3.bf16.msra.mxu0 %v19370_v20 }
0x187b   : > { %v5842_v40 = vmax.f32 %v17595_v37, 0.0  ;;  %v5803_v41 = vpop.f32.mrb[251].mxu1  ;;  %17670 = vmatprep.subr.bf16.mxu0 %v19371_v21 }
0x187c   : > { %v5840_v14 = vmax.f32 %v5803_v41, 0.0 }
0x187d   : > { %v5852_v1 = vpack.c.bf16 %v5842_v40, %v5841_v38 }
0x187e   : > { %v5851_v42 = vpack.c.bf16 %v5840_v14, %v5839_v0  ;;  %17671 = vmatpush3.bf16.msra.mxu0 %v19371_v21 }
0x187f   : > { %17672 = vmatprep.subr.bf16.mxu0 %v19372_v44 }
0x1880   : > { %v17598_v43 = vpop.f32.mrb[252].mxu1  ;;  %17624 = vmatprep.mubr.bf16.mxu0 %v5851_v42 }
0x1881   : > { %v5816_v5 = vpop.f32.mrb[253].mxu1  ;;  %17625 = vmatmul.mubr.bf16.gmra.mrb[8].mxu0 %v5852_v1  ;;  %v5845_v19 = vmax.f32 %v17598_v43, 0.0 }
0x1882   : > { %v17599_v6 = vpop.f32.mrb[254].mxu1  ;;  %v5843_v17 = vmax.f32 %v5816_v5, 0.0  ;;  %17673 = vmatpush3.bf16.msra.mxu0 %v19372_v44  ;;  %v19374_v5 = vld [vmem:[%s21691_s2 + $0xb0] sm:$0xff]  }
0x1883   : > { %v5846_v7 = vmax.f32 %v17599_v6, 0.0  ;;  %v5819_v4 = vpop.f32.mrb[255].mxu1  ;;  %17674 = vmatprep.subr.bf16.mxu0 %v19373_v45  ;;  %v19375_v6 = vld [vmem:[%s21691_s2 + $0xb8] sm:$0xff]  }
0x1884   : > { %v5844_v22 = vmax.f32 %v5819_v4, 0.0 }
0x1885   : > { %v5854_v23 = vpack.c.bf16 %v5846_v7, %v5845_v19 }
0x1886   : > { %v5853_v39 = vpack.c.bf16 %v5844_v22, %v5843_v17  ;;  %17675 = vmatpush3.bf16.msra.mxu0 %v19373_v45 }
0x1887   : > { %17676 = vmatprep.subr.bf16.mxu0 %v19374_v5 }
0x1888   : > { %17628 = vmatprep.mubr.bf16.mxu0 %v5853_v39 }
0x1889   : > { %17629 = vmatmul.mubr.bf16.gmra.mrb[12].mxu0 %v5854_v23 }
0x188a   : > { %17677 = vmatpush3.bf16.msra.mxu0 %v19374_v5 }
0x188b   : > { %17678 = vmatprep.subr.bf16.mxu0 %v19375_v6 }
0x188e   : > { %17679 = vmatpush3.bf16.msra.mxu0 %v19375_v6 }
0x1944   : > { %v17618_v46 = vpop.f32.mrb[0].mxu0 }
0x1945   : > { %v5960_v48 = vpop.f32.mrb[1].mxu0  ;;  %v5969_v50 = vadd.f32 %v17618_v46, %v14520_v47 }
0x1946   : > { %v17619_v49 = vpop.f32.mrb[2].mxu0  ;;  %v5961_v53 = vadd.f32 %v14520_v47, %v5960_v48 }
0x1947   : > { %v5972_v51 = vadd.f32 %v17619_v49, %v14520_v47  ;;  %v5963_v52 = vpop.f32.mrb[3].mxu0 }
0x1948   : > { %v5964_v54 = vadd.f32 %v14520_v47, %v5963_v52 }
0x1949   : > { %v6024_v55 = vpack.c.bf16 %v5972_v51, %v5969_v50 }
0x194a   : > { %v6023_v56 = vpack.c.bf16 %v5964_v54, %v5961_v53 }
0x194c   : > { %v17622_v57 = vpop.f32.mrb[4].mxu0  ;;  %17632 = vmatprep.subr.bf16.mxu1 %v6023_v56 }
0x194d   : > { %v5976_v58 = vpop.f32.mrb[5].mxu0  ;;  %17633 = vmatpush3.bf16.msra.mxu1 %v6023_v56  ;;  %v5985_v60 = vadd.f32 %v17622_v57, %v14520_v47 }
0x194e   : > { %v17623_v59 = vpop.f32.mrb[6].mxu0  ;;  %17634 = vmatprep.subr.bf16.mxu1 %v6024_v55  ;;  %v5977_v63 = vadd.f32 %v14520_v47, %v5976_v58 }
0x194f   : > { %v5988_v61 = vadd.f32 %v17623_v59, %v14520_v47  ;;  %v5979_v62 = vpop.f32.mrb[7].mxu0 }
0x1950   : > { %v5980_v8 = vadd.f32 %v14520_v47, %v5979_v62 }
0x1951   : > { %17635 = vmatpush3.bf16.msra.mxu1 %v6024_v55  ;;  %v6026_v9 = vpack.c.bf16 %v5988_v61, %v5985_v60 }
0x1952   : > { %v6025_v10 = vpack.c.bf16 %v5980_v8, %v5977_v63 }
0x1954   : > { %v17626_v11 = vpop.f32.mrb[8].mxu0  ;;  %17636 = vmatprep.subr.bf16.mxu1 %v6025_v10 }
0x1955   : > { %v5992_v12 = vpop.f32.mrb[9].mxu0  ;;  %17637 = vmatpush3.bf16.msra.mxu1 %v6025_v10  ;;  %v6001_v16 = vadd.f32 %v17626_v11, %v14520_v47 }
0x1956   : > { %v17627_v13 = vpop.f32.mrb[10].mxu0  ;;  %17638 = vmatprep.subr.bf16.mxu1 %v6026_v9  ;;  %v5993_v32 = vadd.f32 %v14520_v47, %v5992_v12 }
0x1957   : > { %v6004_v30 = vadd.f32 %v17627_v13, %v14520_v47  ;;  %v5995_v31 = vpop.f32.mrb[11].mxu0 }
0x1958   : > { %v5996_v33 = vadd.f32 %v14520_v47, %v5995_v31 }
0x1959   : > { %17639 = vmatpush3.bf16.msra.mxu1 %v6026_v9  ;;  %v6028_v34 = vpack.c.bf16 %v6004_v30, %v6001_v16 }
0x195a   : > { %v6027_v35 = vpack.c.bf16 %v5996_v33, %v5993_v32  ;;  %v19376_v32 = vld [vmem:[%s21691_s2 + $0xc0] sm:$0xff]   ;;  %v19377_v33 = vld [vmem:[%s21691_s2 + $0xc8] sm:$0xff]  }
0x195b   : > { %17728 = vmatprep.subr.bf16.mxu0 %v19376_v32 }
0x195c   : > { %v17630_v36 = vpop.f32.mrb[12].mxu0  ;;  %17640 = vmatprep.subr.bf16.mxu1 %v6027_v35 }
0x195d   : > { %v6008_v37 = vpop.f32.mrb[13].mxu0  ;;  %17641 = vmatpush3.bf16.msra.mxu1 %v6027_v35  ;;  %v6017_v40 = vadd.f32 %v17630_v36, %v14520_v47  ;;  %v19379_v35 = vld [vmem:[%s21691_s2 + $0xd8] sm:$0xff]   ;;  %v19380_v36 = vld [vmem:[%s21691_s2 + $0xe0] sm:$0xff]  }
0x195e   : > { %v17631_v38 = vpop.f32.mrb[14].mxu0  ;;  %17642 = vmatprep.subr.bf16.mxu1 %v6028_v34  ;;  %v6009_v14 = vadd.f32 %v14520_v47, %v6008_v37  ;;  %v19381_v37 = vld [vmem:[%s21691_s2 + $0xe8] sm:$0xff]  }
0x195f   : > { %v6020_v41 = vadd.f32 %v17631_v38, %v14520_v47  ;;  %v6011_v0 = vpop.f32.mrb[15].mxu0 }
0x1960   : > { %v6012_v1 = vadd.f32 %v14520_v47, %v6011_v0 }
0x1961   : > { %17643 = vmatpush3.bf16.msra.mxu1 %v6028_v34  ;;  %v6030_v42 = vpack.c.bf16 %v6020_v41, %v6017_v40  ;;  %v19378_v34 = vld [vmem:[%s21691_s2 + $0xd0] sm:$0xff]   ;;  %v14546_v40 = vld [vmem:[%s21692_s3 + $0x2] ss:$0 sm:$0xff] }
0x1962   : > { %v6029_v43 = vpack.c.bf16 %v6012_v1, %v6009_v14 }
0x1964   : > { %17644 = vmatprep.subr.bf16.mxu1 %v6029_v43 }
0x1965   : > { %17645 = vmatpush3.bf16.msra.mxu1 %v6029_v43 }
0x1966   : > { %17646 = vmatprep.subr.bf16.mxu1 %v6030_v42 }
0x1969   : > { %17647 = vmatpush3.bf16.msra.mxu1 %v6030_v42 }
0x196c   : > { %17649 = vmatmul.mubr.bf16.vlgmr.msra.gmra.mrb[0].mxu1 %v20497_v2 }
0x196d   : > { %17652 = vmatprep.mubr.bf16.mxu1 %v20500_v3 }
0x1974   : > { %17653 = vmatmul.mubr.bf16.gmra.mrb[4].mxu1 %v20505_v26 }
0x1975   : > { %17656 = vmatprep.mubr.bf16.mxu1 %v20508_v27 }
0x197c   : > { %17657 = vmatmul.mubr.bf16.gmra.mrb[8].mxu1 %v20513_v15 }
0x197d   : > { %17660 = vmatprep.mubr.bf16.mxu1 %v20516_v28 }
0x1984   : > { %17661 = vmatmul.mubr.bf16.gmra.mrb[12].mxu1 %v20521_v29 }
0x1985   : > { %17712 = vmatprep.mubr.bf16.mxu1 %v20493_v18 }
0x1a3f   : > { %v17650_v19 = vpop.f32.mrb[0].mxu1 }
0x1a40   : > { %v6065_v7 = vpop.f32.mrb[1].mxu1  ;;  %v6130_v17 = vmax.f32 %v17650_v19, 0.0 }
0x1a41   : > { %v17651_v4 = vpop.f32.mrb[2].mxu1  ;;  %v6128_v39 = vmax.f32 %v6065_v7, 0.0 }
0x1a42   : > { %v6131_v22 = vmax.f32 %v17651_v4, 0.0  ;;  %v6068_v23 = vpop.f32.mrb[3].mxu1 }
0x1a43   : > { %v6129_v24 = vmax.f32 %v6068_v23, 0.0 }
0x1a44   : > { %v6145_v25 = vpack.c.bf16 %v6131_v22, %v6130_v17 }
0x1a45   : > { %v6144_v20 = vpack.c.bf16 %v6129_v24, %v6128_v39 }
0x1a47   : > { %v17654_v21 = vpop.f32.mrb[4].mxu1  ;;  %17680 = vmatprep.mubr.bf16.mxu0 %v6144_v20 }
0x1a48   : > { %v6081_v44 = vpop.f32.mrb[5].mxu1  ;;  %17681 = vmatmul.mubr.bf16.vlgmr.msra.gmra.mrb[16].mxu0 %v6145_v25  ;;  %v6134_v46 = vmax.f32 %v17654_v21, 0.0 }
0x1a49   : > { %v17655_v45 = vpop.f32.mrb[6].mxu1  ;;  %v6132_v49 = vmax.f32 %v6081_v44, 0.0  ;;  %17729 = vmatpush3.bf16.msra.mxu0 %v19376_v32 }
0x1a4a   : > { %v6135_v47 = vmax.f32 %v17655_v45, 0.0  ;;  %v6084_v48 = vpop.f32.mrb[7].mxu1  ;;  %17730 = vmatprep.subr.bf16.mxu0 %v19377_v33 }
0x1a4b   : > { %v6133_v50 = vmax.f32 %v6084_v48, 0.0 }
0x1a4c   : > { %v6147_v51 = vpack.c.bf16 %v6135_v47, %v6134_v46 }
0x1a4d   : > { %v6146_v52 = vpack.c.bf16 %v6133_v50, %v6132_v49  ;;  %17731 = vmatpush3.bf16.msra.mxu0 %v19377_v33 }
0x1a4e   : > { %17732 = vmatprep.subr.bf16.mxu0 %v19378_v34 }
0x1a4f   : > { %v17658_v53 = vpop.f32.mrb[8].mxu1  ;;  %17684 = vmatprep.mubr.bf16.mxu0 %v6146_v52 }
0x1a50   : > { %v6097_v54 = vpop.f32.mrb[9].mxu1  ;;  %17685 = vmatmul.mubr.bf16.gmra.mrb[20].mxu0 %v6147_v51  ;;  %v6138_v56 = vmax.f32 %v17658_v53, 0.0 }
0x1a51   : > { %v17659_v55 = vpop.f32.mrb[10].mxu1  ;;  %v6136_v59 = vmax.f32 %v6097_v54, 0.0  ;;  %17733 = vmatpush3.bf16.msra.mxu0 %v19378_v34 }
0x1a52   : > { %v6139_v57 = vmax.f32 %v17659_v55, 0.0  ;;  %v6100_v58 = vpop.f32.mrb[11].mxu1  ;;  %17734 = vmatprep.subr.bf16.mxu0 %v19379_v35 }
0x1a53   : > { %v6137_v60 = vmax.f32 %v6100_v58, 0.0 }
0x1a54   : > { %v6149_v61 = vpack.c.bf16 %v6139_v57, %v6138_v56 }
0x1a55   : > { %v6148_v62 = vpack.c.bf16 %v6137_v60, %v6136_v59  ;;  %17735 = vmatpush3.bf16.msra.mxu0 %v19379_v35 }
0x1a56   : > { %17736 = vmatprep.subr.bf16.mxu0 %v19380_v36 }
0x1a57   : > { %v17662_v63 = vpop.f32.mrb[12].mxu1  ;;  %17688 = vmatprep.mubr.bf16.mxu0 %v6148_v62 }
0x1a58   : > { %v6113_v8 = vpop.f32.mrb[13].mxu1  ;;  %17689 = vmatmul.mubr.bf16.gmra.mrb[24].mxu0 %v6149_v61  ;;  %v6142_v10 = vmax.f32 %v17662_v63, 0.0 }
0x1a59   : > { %v17663_v9 = vpop.f32.mrb[14].mxu1  ;;  %v6140_v13 = vmax.f32 %v6113_v8, 0.0  ;;  %17737 = vmatpush3.bf16.msra.mxu0 %v19380_v36  ;;  %v19382_v8 = vld [vmem:[%s21691_s2 + $0xf0] sm:$0xff]  }
0x1a5a   : > { %v6143_v11 = vmax.f32 %v17663_v9, 0.0  ;;  %v6116_v12 = vpop.f32.mrb[15].mxu1  ;;  %17738 = vmatprep.subr.bf16.mxu0 %v19381_v37  ;;  %v19383_v9 = vld [vmem:[%s21691_s2 + $0xf8] sm:$0xff]  }
0x1a5b   : > { %v6141_v16 = vmax.f32 %v6116_v12, 0.0 }
0x1a5c   : > { %v6151_v30 = vpack.c.bf16 %v6143_v11, %v6142_v10 }
0x1a5d   : > { %v6150_v31 = vpack.c.bf16 %v6141_v16, %v6140_v13  ;;  %17739 = vmatpush3.bf16.msra.mxu0 %v19381_v37 }
0x1a5e   : > { %17740 = vmatprep.subr.bf16.mxu0 %v19382_v8 }
0x1a5f   : > { %17692 = vmatprep.mubr.bf16.mxu0 %v6150_v31 }
0x1a60   : > { %17693 = vmatmul.mubr.bf16.gmra.mrb[28].mxu0 %v6151_v30 }
0x1a61   : > { %17741 = vmatpush3.bf16.msra.mxu0 %v19382_v8 }
0x1a62   : > { %17742 = vmatprep.subr.bf16.mxu0 %v19383_v9 }
0x1a65   : > { %17743 = vmatpush3.bf16.msra.mxu0 %v19383_v9 }
0x1b1b   : > { %v17682_v38 = vpop.f32.mrb[16].mxu0 }
0x1b1c   : > { %v6257_v41 = vpop.f32.mrb[17].mxu0  ;;  %v6266_v14 = vadd.f32 %v17682_v38, %v14546_v40 }
0x1b1d   : > { %v17683_v0 = vpop.f32.mrb[18].mxu0  ;;  %v6258_v43 = vadd.f32 %v14546_v40, %v6257_v41 }
0x1b1e   : > { %v6269_v1 = vadd.f32 %v17683_v0, %v14546_v40  ;;  %v6260_v42 = vpop.f32.mrb[19].mxu0 }
0x1b1f   : > { %v6261_v5 = vadd.f32 %v14546_v40, %v6260_v42 }
0x1b20   : > { %v6321_v6 = vpack.c.bf16 %v6269_v1, %v6266_v14 }
0x1b21   : > { %v6320_v19 = vpack.c.bf16 %v6261_v5, %v6258_v43 }
0x1b23   : > { %v17686_v7 = vpop.f32.mrb[20].mxu0  ;;  %17696 = vmatprep.subr.bf16.mxu1 %v6320_v19 }
0x1b24   : > { %v6273_v4 = vpop.f32.mrb[21].mxu0  ;;  %17697 = vmatpush3.bf16.msra.mxu1 %v6320_v19  ;;  %v6282_v22 = vadd.f32 %v17686_v7, %v14546_v40 }
0x1b25   : > { %v17687_v17 = vpop.f32.mrb[22].mxu0  ;;  %17698 = vmatprep.subr.bf16.mxu1 %v6321_v6  ;;  %v6274_v24 = vadd.f32 %v14546_v40, %v6273_v4 }
0x1b26   : > { %v6285_v23 = vadd.f32 %v17687_v17, %v14546_v40  ;;  %v6276_v39 = vpop.f32.mrb[23].mxu0 }
0x1b27   : > { %v6277_v25 = vadd.f32 %v14546_v40, %v6276_v39 }
0x1b28   : > { %17699 = vmatpush3.bf16.msra.mxu1 %v6321_v6  ;;  %v6323_v20 = vpack.c.bf16 %v6285_v23, %v6282_v22 }
0x1b29   : > { %v6322_v21 = vpack.c.bf16 %v6277_v25, %v6274_v24 }
0x1b2b   : > { %v17690_v44 = vpop.f32.mrb[24].mxu0  ;;  %17700 = vmatprep.subr.bf16.mxu1 %v6322_v21 }
0x1b2c   : > { %v6289_v45 = vpop.f32.mrb[25].mxu0  ;;  %17701 = vmatpush3.bf16.msra.mxu1 %v6322_v21  ;;  %v6298_v47 = vadd.f32 %v17690_v44, %v14546_v40 }
0x1b2d   : > { %v17691_v46 = vpop.f32.mrb[26].mxu0  ;;  %17702 = vmatprep.subr.bf16.mxu1 %v6323_v20  ;;  %v6290_v50 = vadd.f32 %v14546_v40, %v6289_v45 }
0x1b2e   : > { %v6301_v48 = vadd.f32 %v17691_v46, %v14546_v40  ;;  %v6292_v49 = vpop.f32.mrb[27].mxu0 }
0x1b2f   : > { %v6293_v51 = vadd.f32 %v14546_v40, %v6292_v49  ;;  %v19384_v49 = vld [vmem:[%s21693_s4] sm:$0xff]  }
0x1b30   : > { %17703 = vmatpush3.bf16.msra.mxu1 %v6323_v20  ;;  %v6325_v52 = vpack.c.bf16 %v6301_v48, %v6298_v47  ;;  %17792 = vmatprep.subr.bf16.mxu0 %v19384_v49 }
0x1b31   : > { %v6324_v53 = vpack.c.bf16 %v6293_v51, %v6290_v50  ;;  %v19385_v50 = vld [vmem:[%s21693_s4 + $0x8] sm:$0xff]   ;;  %v19386_v51 = vld [vmem:[%s21693_s4 + $0x10] sm:$0xff]  }
0x1b33   : > { %v17694_v54 = vpop.f32.mrb[28].mxu0  ;;  %17704 = vmatprep.subr.bf16.mxu1 %v6324_v53 }
0x1b34   : > { %v6305_v55 = vpop.f32.mrb[29].mxu0  ;;  %17705 = vmatpush3.bf16.msra.mxu1 %v6324_v53  ;;  %v6314_v57 = vadd.f32 %v17694_v54, %v14546_v40  ;;  %v19388_v53 = vld [vmem:[%s21693_s4 + $0x20] sm:$0xff]   ;;  %v19389_v54 = vld [vmem:[%s21693_s4 + $0x28] sm:$0xff]  }
0x1b35   : > { %v17695_v56 = vpop.f32.mrb[30].mxu0  ;;  %17706 = vmatprep.subr.bf16.mxu1 %v6325_v52  ;;  %v6306_v60 = vadd.f32 %v14546_v40, %v6305_v55 }
0x1b36   : > { %v6317_v58 = vadd.f32 %v17695_v56, %v14546_v40  ;;  %v6308_v59 = vpop.f32.mrb[31].mxu0  ;;  %v14572_v56 = vld [vmem:[%s21692_s3 + $0x3] ss:$0 sm:$0xff] }
0x1b37   : > { %v6309_v61 = vadd.f32 %v14546_v40, %v6308_v59 }
0x1b38   : > { %17707 = vmatpush3.bf16.msra.mxu1 %v6325_v52  ;;  %v6327_v62 = vpack.c.bf16 %v6317_v58, %v6314_v57  ;;  %v19387_v52 = vld [vmem:[%s21693_s4 + $0x18] sm:$0xff]  }
0x1b39   : > { %v6326_v63 = vpack.c.bf16 %v6309_v61, %v6306_v60 }
0x1b3b   : > { %17708 = vmatprep.subr.bf16.mxu1 %v6326_v63 }
0x1b3c   : > { %17709 = vmatpush3.bf16.msra.mxu1 %v6326_v63 }
0x1b3d   : > { %17710 = vmatprep.subr.bf16.mxu1 %v6327_v62 }
0x1b40   : > { %17711 = vmatpush3.bf16.msra.mxu1 %v6327_v62 }
0x1b43   : > { %17713 = vmatmul.mubr.bf16.vlgmr.msra.gmra.mrb[16].mxu1 %v20497_v2 }
0x1b44   : > { %17716 = vmatprep.mubr.bf16.mxu1 %v20500_v3 }
0x1b4b   : > { %17717 = vmatmul.mubr.bf16.gmra.mrb[20].mxu1 %v20505_v26 }
0x1b4c   : > { %17720 = vmatprep.mubr.bf16.mxu1 %v20508_v27 }
0x1b53   : > { %17721 = vmatmul.mubr.bf16.gmra.mrb[24].mxu1 %v20513_v15 }
0x1b54   : > { %17724 = vmatprep.mubr.bf16.mxu1 %v20516_v28 }
0x1b5b   : > { %17725 = vmatmul.mubr.bf16.gmra.mrb[28].mxu1 %v20521_v29 }
0x1b5c   : > { %17776 = vmatprep.mubr.bf16.mxu1 %v20493_v18 }
0x1c16   : > { %v17714_v10 = vpop.f32.mrb[16].mxu1 }
0x1c17   : > { %v6362_v11 = vpop.f32.mrb[17].mxu1  ;;  %v6427_v13 = vmax.f32 %v17714_v10, 0.0 }
0x1c18   : > { %v17715_v12 = vpop.f32.mrb[18].mxu1  ;;  %v6425_v31 = vmax.f32 %v6362_v11, 0.0 }
0x1c19   : > { %v6428_v16 = vmax.f32 %v17715_v12, 0.0  ;;  %v6365_v30 = vpop.f32.mrb[19].mxu1 }
0x1c1a   : > { %v6426_v18 = vmax.f32 %v6365_v30, 0.0 }
0x1c1b   : > { %v6442_v32 = vpack.c.bf16 %v6428_v16, %v6427_v13 }
0x1c1c   : > { %v6441_v33 = vpack.c.bf16 %v6426_v18, %v6425_v31 }
0x1c1e   : > { %v17718_v34 = vpop.f32.mrb[20].mxu1  ;;  %17744 = vmatprep.mubr.bf16.mxu0 %v6441_v33 }
0x1c1f   : > { %v6378_v35 = vpop.f32.mrb[21].mxu1  ;;  %17745 = vmatmul.mubr.bf16.vlgmr.msra.gmra.mrb[32].mxu0 %v6442_v32  ;;  %v6431_v37 = vmax.f32 %v17718_v34, 0.0 }
0x1c20   : > { %v17719_v36 = vpop.f32.mrb[22].mxu1  ;;  %v6429_v41 = vmax.f32 %v6378_v35, 0.0  ;;  %17793 = vmatpush3.bf16.msra.mxu0 %v19384_v49 }
0x1c21   : > { %v6432_v38 = vmax.f32 %v17719_v36, 0.0  ;;  %v6381_v40 = vpop.f32.mrb[23].mxu1  ;;  %17794 = vmatprep.subr.bf16.mxu0 %v19385_v50 }
0x1c22   : > { %v6430_v0 = vmax.f32 %v6381_v40, 0.0 }
0x1c23   : > { %v6444_v14 = vpack.c.bf16 %v6432_v38, %v6431_v37 }
0x1c24   : > { %v6443_v1 = vpack.c.bf16 %v6430_v0, %v6429_v41  ;;  %17795 = vmatpush3.bf16.msra.mxu0 %v19385_v50 }
0x1c25   : > { %17796 = vmatprep.subr.bf16.mxu0 %v19386_v51 }
0x1c26   : > { %v17722_v42 = vpop.f32.mrb[24].mxu1  ;;  %17748 = vmatprep.mubr.bf16.mxu0 %v6443_v1 }
0x1c27   : > { %v6394_v43 = vpop.f32.mrb[25].mxu1  ;;  %17749 = vmatmul.mubr.bf16.gmra.mrb[36].mxu0 %v6444_v14  ;;  %v6435_v6 = vmax.f32 %v17722_v42, 0.0 }
0x1c28   : > { %v17723_v5 = vpop.f32.mrb[26].mxu1  ;;  %v6433_v4 = vmax.f32 %v6394_v43, 0.0  ;;  %17797 = vmatpush3.bf16.msra.mxu0 %v19386_v51  ;;  %v19393_v51 = vld [vmem:[%s21691_s2 + $0x8] sm:$0xff]  }
0x1c29   : > { %v6436_v19 = vmax.f32 %v17723_v5, 0.0  ;;  %v6397_v7 = vpop.f32.mrb[27].mxu1  ;;  %17798 = vmatprep.subr.bf16.mxu0 %v19387_v52 }
0x1c2a   : > { %v6434_v17 = vmax.f32 %v6397_v7, 0.0 }
0x1c2b   : > { %v6446_v22 = vpack.c.bf16 %v6436_v19, %v6435_v6 }
0x1c2c   : > { %v6445_v23 = vpack.c.bf16 %v6434_v17, %v6433_v4  ;;  %17799 = vmatpush3.bf16.msra.mxu0 %v19387_v52 }
0x1c2d   : > { %17800 = vmatprep.subr.bf16.mxu0 %v19388_v53 }
0x1c2e   : > { %v17726_v39 = vpop.f32.mrb[28].mxu1  ;;  %17752 = vmatprep.mubr.bf16.mxu0 %v6445_v23 }
0x1c2f   : > { %v6410_v24 = vpop.f32.mrb[29].mxu1  ;;  %17753 = vmatmul.mubr.bf16.gmra.mrb[40].mxu0 %v6446_v22  ;;  %v6439_v20 = vmax.f32 %v17726_v39, 0.0  ;;  %v19390_v39 = vld [vmem:[%s21693_s4 + $0x30] sm:$0xff]  }
0x1c30   : > { %v17727_v25 = vpop.f32.mrb[30].mxu1  ;;  %v6437_v45 = vmax.f32 %v6410_v24, 0.0  ;;  %17801 = vmatpush3.bf16.msra.mxu0 %v19388_v53  ;;  %v19413_v24 = vld [vmem:[%s21695_s6 + $0x28] sm:$0xff]  }
0x1c31   : > { %v6440_v21 = vmax.f32 %v17727_v25, 0.0  ;;  %v6413_v44 = vpop.f32.mrb[31].mxu1  ;;  %17802 = vmatprep.subr.bf16.mxu0 %v19389_v54 }
0x1c32   : > { %v6438_v46 = vmax.f32 %v6413_v44, 0.0 }
0x1c33   : > { %v6448_v47 = vpack.c.bf16 %v6440_v21, %v6439_v20 }
0x1c34   : > { %v6447_v48 = vpack.c.bf16 %v6438_v46, %v6437_v45  ;;  %17803 = vmatpush3.bf16.msra.mxu0 %v19389_v54 }
0x1c35   : > { %17804 = vmatprep.subr.bf16.mxu0 %v19390_v39 }
0x1c36   : > { %17756 = vmatprep.mubr.bf16.mxu0 %v6447_v48 }
0x1c37   : > { %17757 = vmatmul.mubr.bf16.gmra.mrb[44].mxu0 %v6448_v47 }
0x1c38   : > { %17805 = vmatpush3.bf16.msra.mxu0 %v19390_v39  ;;  %v19414_v39 = vld [vmem:[%s21695_s6 + $0x30] sm:$0xff]  }
0x1cf2   : > { %v17746_v55 = vpop.f32.mrb[32].mxu0 }
0x1cf3   : > { %v6554_v57 = vpop.f32.mrb[33].mxu0  ;;  %v6563_v59 = vadd.f32 %v17746_v55, %v14572_v56 }
0x1cf4   : > { %v17747_v58 = vpop.f32.mrb[34].mxu0  ;;  %v6555_v62 = vadd.f32 %v14572_v56, %v6554_v57 }
0x1cf5   : > { %v6566_v60 = vadd.f32 %v17747_v58, %v14572_v56  ;;  %v6557_v61 = vpop.f32.mrb[35].mxu0  ;;  %v19394_v58 = vld [vmem:[%s21691_s2 + $0x10] sm:$0xff]  }
0x1cf6   : > { %v6558_v63 = vadd.f32 %v14572_v56, %v6557_v61 }
0x1cf7   : > { %v6618_v8 = vpack.c.bf16 %v6566_v60, %v6563_v59 }
0x1cf8   : > { %v6617_v9 = vpack.c.bf16 %v6558_v63, %v6555_v62  ;;  %v19395_v63 = vld [vmem:[%s21691_s2 + $0x18] sm:$0xff]  }
0x1cfa   : > { %v17750_v10 = vpop.f32.mrb[36].mxu0  ;;  %17760 = vmatprep.subr.bf16.mxu1 %v6617_v9 }
0x1cfb   : > { %v6570_v11 = vpop.f32.mrb[37].mxu0  ;;  %17761 = vmatpush3.bf16.msra.mxu1 %v6617_v9  ;;  %v6579_v13 = vadd.f32 %v17750_v10, %v14572_v56 }
0x1cfc   : > { %v17751_v12 = vpop.f32.mrb[38].mxu0  ;;  %17762 = vmatprep.subr.bf16.mxu1 %v6618_v8  ;;  %v6571_v31 = vadd.f32 %v14572_v56, %v6570_v11 }
0x1cfd   : > { %v6582_v16 = vadd.f32 %v17751_v12, %v14572_v56  ;;  %v6573_v30 = vpop.f32.mrb[39].mxu0 }
0x1cfe   : > { %v6574_v18 = vadd.f32 %v14572_v56, %v6573_v30 }
0x1cff   : > { %17763 = vmatpush3.bf16.msra.mxu1 %v6618_v8  ;;  %v6620_v32 = vpack.c.bf16 %v6582_v16, %v6579_v13  ;;  %v19396_v16 = vld [vmem:[%s21691_s2 + $0x20] sm:$0xff]  }
0x1d00   : > { %v6619_v33 = vpack.c.bf16 %v6574_v18, %v6571_v31 }
0x1d02   : > { %v17754_v34 = vpop.f32.mrb[40].mxu0  ;;  %17764 = vmatprep.subr.bf16.mxu1 %v6619_v33 }
0x1d03   : > { %v6586_v35 = vpop.f32.mrb[41].mxu0  ;;  %17765 = vmatpush3.bf16.msra.mxu1 %v6619_v33  ;;  %v6595_v37 = vadd.f32 %v17754_v34, %v14572_v56  ;;  %v19397_v33 = vld [vmem:[%s21691_s2 + $0x28] sm:$0xff]  }
0x1d04   : > { %v17755_v36 = vpop.f32.mrb[42].mxu0  ;;  %17766 = vmatprep.subr.bf16.mxu1 %v6620_v32  ;;  %v6587_v41 = vadd.f32 %v14572_v56, %v6586_v35 }
0x1d05   : > { %v6598_v38 = vadd.f32 %v17755_v36, %v14572_v56  ;;  %v6589_v40 = vpop.f32.mrb[43].mxu0 }
0x1d06   : > { %v6590_v0 = vadd.f32 %v14572_v56, %v6589_v40 }
0x1d07   : > { %17767 = vmatpush3.bf16.msra.mxu1 %v6620_v32  ;;  %v6622_v14 = vpack.c.bf16 %v6598_v38, %v6595_v37 }
0x1d08   : > { %v6621_v1 = vpack.c.bf16 %v6590_v0, %v6587_v41  ;;  %v19398_v41 = vld [vmem:[%s21691_s2 + $0x30] sm:$0xff]  }
0x1d0a   : > { %v17758_v42 = vpop.f32.mrb[44].mxu0  ;;  %17768 = vmatprep.subr.bf16.mxu1 %v6621_v1 }
0x1d0b   : > { %v6602_v43 = vpop.f32.mrb[45].mxu0  ;;  %17769 = vmatpush3.bf16.msra.mxu1 %v6621_v1  ;;  %v6611_v6 = vadd.f32 %v17758_v42, %v14572_v56 }
0x1d0c   : > { %v17759_v5 = vpop.f32.mrb[46].mxu0  ;;  %17770 = vmatprep.subr.bf16.mxu1 %v6622_v14  ;;  %v6603_v4 = vadd.f32 %v14572_v56, %v6602_v43  ;;  %v19400_v43 = vld [vmem:[%s19740_s17 + $0x100] sm:$0xff]  }
0x1d0d   : > { %v6614_v19 = vadd.f32 %v17759_v5, %v14572_v56  ;;  %v6605_v7 = vpop.f32.mrb[47].mxu0  ;;  %v19399_v5 = vld [vmem:[%s21691_s2 + $0x38] sm:$0xff]  }
0x1d0e   : > { %v6606_v17 = vadd.f32 %v14572_v56, %v6605_v7  ;;  %v19403_v7 = vld [vmem:[%s19740_s17 + $0x118] sm:$0xff]  }
0x1d0f   : > { %17771 = vmatpush3.bf16.msra.mxu1 %v6622_v14  ;;  %v6624_v22 = vpack.c.bf16 %v6614_v19, %v6611_v6  ;;  %v19401_v6 = vld [vmem:[%s19740_s17 + $0x108] sm:$0xff]   ;;  %v19402_v19 = vld [vmem:[%s19740_s17 + $0x110] sm:$0xff]  }
0x1d10   : > { %v6623_v23 = vpack.c.bf16 %v6606_v17, %v6603_v4  ;;  %v19404_v4 = vld [vmem:[%s19740_s17 + $0x120] sm:$0xff]   ;;  %v19405_v17 = vld [vmem:[%s19740_s17 + $0x128] sm:$0xff]  }
0x1d12   : > { %17772 = vmatprep.subr.bf16.mxu1 %v6623_v23 }
0x1d13   : > { %17773 = vmatpush3.bf16.msra.mxu1 %v6623_v23  ;;  %v19407_v23 = vld [vmem:[%s19740_s17 + $0x138] sm:$0xff]  }
0x1d14   : > { %17774 = vmatprep.subr.bf16.mxu1 %v6624_v22 }
0x1d17   : > { %17775 = vmatpush3.bf16.msra.mxu1 %v6624_v22  ;;  %v19406_v22 = vld [vmem:[%s19740_s17 + $0x130] sm:$0xff]  }
0x1d1a   : > { %17777 = vmatmul.mubr.bf16.vlgmr.msra.gmra.mrb[32].mxu1 %v20497_v2  ;;  %v19391_v2 = vld [vmem:[%s21693_s4 + $0x38] sm:$0xff]  }
0x1d1b   : > { %17780 = vmatprep.mubr.bf16.mxu1 %v20500_v3  ;;  %17806 = vmatprep.subr.bf16.mxu0 %v19391_v2  ;;  %v19392_v3 = vld [vmem:[%s21691_s2] sm:$0xff]  }
0x1d1c   : > { %17807 = vmatpush3.bf16.msra.mxu0 %v19391_v2  ;;  %v19415_v2 = vld [vmem:[%s21695_s6 + $0x38] sm:$0xff]  }
0x1d1d   : > { %17856 = vmatprep.subr.bf16.mxu0 %v19392_v3 }
0x1d22   : > { %17781 = vmatmul.mubr.bf16.gmra.mrb[36].mxu1 %v20505_v26  ;;  %v19408_v26 = vld [vmem:[%s21695_s6] sm:$0xff]  }
0x1d23   : > { %17784 = vmatprep.mubr.bf16.mxu1 %v20508_v27  ;;  %v19409_v27 = vld [vmem:[%s21695_s6 + $0x8] sm:$0xff]   ;;  %17824 = vmatprep.subr.bf16.mxu1 %v19408_v26 }
0x1d24   : > { %17825 = vmatpush3.bf16.msra.mxu1 %v19408_v26 }
0x1d25   : > { %17826 = vmatprep.subr.bf16.mxu1 %v19409_v27 }
0x1d28   : > { %17827 = vmatpush3.bf16.msra.mxu1 %v19409_v27 }
0x1d2a   : > { %17785 = vmatmul.mubr.bf16.gmra.mrb[40].mxu1 %v20513_v15  ;;  %v19410_v15 = vld [vmem:[%s21695_s6 + $0x10] sm:$0xff]  }
0x1d2b   : > { %17788 = vmatprep.mubr.bf16.mxu1 %v20516_v28  ;;  %17828 = vmatprep.subr.bf16.mxu1 %v19410_v15  ;;  %v19411_v28 = vld [vmem:[%s21695_s6 + $0x18] sm:$0xff]  }
0x1d2c   : > { %17829 = vmatpush3.bf16.msra.mxu1 %v19410_v15 }
0x1d2d   : > { %17830 = vmatprep.subr.bf16.mxu1 %v19411_v28 }
0x1d30   : > { %17831 = vmatpush3.bf16.msra.mxu1 %v19411_v28 }
0x1d32   : > { %17789 = vmatmul.mubr.bf16.gmra.mrb[44].mxu1 %v20521_v29  ;;  %v19412_v29 = vld [vmem:[%s21695_s6 + $0x20] sm:$0xff]  }
0x1d33   : > { %17832 = vmatprep.subr.bf16.mxu1 %v19412_v29 }
0x1d34   : > { %17833 = vmatpush3.bf16.msra.mxu1 %v19412_v29 }
0x1d35   : > { %17834 = vmatprep.subr.bf16.mxu1 %v19413_v24 }
0x1d38   : > { %17835 = vmatpush3.bf16.msra.mxu1 %v19413_v24 }
0x1d39   : > { %17836 = vmatprep.subr.bf16.mxu1 %v19414_v39 }
0x1d3c   : > { %17837 = vmatpush3.bf16.msra.mxu1 %v19414_v39 }
0x1d3d   : > { %17838 = vmatprep.subr.bf16.mxu1 %v19415_v2 }
0x1d40   : > { %17839 = vmatpush3.bf16.msra.mxu1 %v19415_v2 }
0x1ded   : > { %v17778_v25 = vpop.f32.mrb[32].mxu1 }
0x1dee   : > { %v6659_v20 = vpop.f32.mrb[33].mxu1  ;;  %v6724_v44 = vmax.f32 %v17778_v25, 0.0 }
0x1def   : > { %v17779_v21 = vpop.f32.mrb[34].mxu1  ;;  %v6722_v47 = vmax.f32 %v6659_v20, 0.0 }
0x1df0   : > { %v6725_v45 = vmax.f32 %v17779_v21, 0.0  ;;  %v6662_v46 = vpop.f32.mrb[35].mxu1 }
0x1df1   : > { %v6723_v48 = vmax.f32 %v6662_v46, 0.0 }
0x1df2   : > { %v6739_v49 = vpack.c.bf16 %v6725_v45, %v6724_v44 }
0x1df3   : > { %v6738_v50 = vpack.c.bf16 %v6723_v48, %v6722_v47 }
0x1df5   : > { %v17782_v52 = vpop.f32.mrb[36].mxu1  ;;  %17808 = vmatprep.mubr.bf16.mxu0 %v6738_v50 }
0x1df6   : > { %v6675_v53 = vpop.f32.mrb[37].mxu1  ;;  %17809 = vmatmul.mubr.bf16.vlgmr.msra.gmra.mrb[48].mxu0 %v6739_v49  ;;  %v6728_v55 = vmax.f32 %v17782_v52, 0.0 }
0x1df7   : > { %v17783_v54 = vpop.f32.mrb[38].mxu1  ;;  %17857 = vmatpush3.bf16.msra.mxu0 %v19392_v3  ;;  %v6726_v59 = vmax.f32 %v6675_v53, 0.0  ;;  %v14581_v3 = vld [vmem:[%s21694_s5] ss:$0 sm:$0xff] }
0x1df8   : > { %v6729_v56 = vmax.f32 %v17783_v54, 0.0  ;;  %v6678_v57 = vpop.f32.mrb[39].mxu1  ;;  %17858 = vmatprep.subr.bf16.mxu0 %v19393_v51 }
0x1df9   : > { %v6727_v60 = vmax.f32 %v6678_v57, 0.0 }
0x1dfa   : > { %v6741_v61 = vpack.c.bf16 %v6729_v56, %v6728_v55 }
0x1dfb   : > { %17859 = vmatpush3.bf16.msra.mxu0 %v19393_v51  ;;  %v6740_v62 = vpack.c.bf16 %v6727_v60, %v6726_v59 }
0x1dfc   : > { %17860 = vmatprep.subr.bf16.mxu0 %v19394_v58 }
0x1dfd   : > { %v17786_v8 = vpop.f32.mrb[40].mxu1  ;;  %17812 = vmatprep.mubr.bf16.mxu0 %v6740_v62 }
0x1dfe   : > { %v6691_v9 = vpop.f32.mrb[41].mxu1  ;;  %17813 = vmatmul.mubr.bf16.gmra.mrb[52].mxu0 %v6741_v61  ;;  %v6732_v11 = vmax.f32 %v17786_v8, 0.0 }
0x1dff   : > { %v17787_v10 = vpop.f32.mrb[42].mxu1  ;;  %17861 = vmatpush3.bf16.msra.mxu0 %v19394_v58  ;;  %v6730_v30 = vmax.f32 %v6691_v9, 0.0 }
0x1e00   : > { %v6733_v12 = vmax.f32 %v17787_v10, 0.0  ;;  %v6694_v13 = vpop.f32.mrb[43].mxu1  ;;  %17862 = vmatprep.subr.bf16.mxu0 %v19395_v63 }
0x1e01   : > { %v6731_v31 = vmax.f32 %v6694_v13, 0.0 }
0x1e02   : > { %v6743_v18 = vpack.c.bf16 %v6733_v12, %v6732_v11 }
0x1e03   : > { %17863 = vmatpush3.bf16.msra.mxu0 %v19395_v63  ;;  %v6742_v32 = vpack.c.bf16 %v6731_v31, %v6730_v30 }
0x1e04   : > { %17864 = vmatprep.subr.bf16.mxu0 %v19396_v16 }
0x1e05   : > { %v17790_v34 = vpop.f32.mrb[44].mxu1  ;;  %17816 = vmatprep.mubr.bf16.mxu0 %v6742_v32 }
0x1e06   : > { %v6707_v35 = vpop.f32.mrb[45].mxu1  ;;  %17817 = vmatmul.mubr.bf16.gmra.mrb[56].mxu0 %v6743_v18  ;;  %v6736_v37 = vmax.f32 %v17790_v34, 0.0 }
0x1e07   : > { %v17791_v36 = vpop.f32.mrb[46].mxu1  ;;  %17865 = vmatpush3.bf16.msra.mxu0 %v19396_v16  ;;  %v6734_v0 = vmax.f32 %v6707_v35, 0.0 }
0x1e08   : > { %v6737_v38 = vmax.f32 %v17791_v36, 0.0  ;;  %v6710_v40 = vpop.f32.mrb[47].mxu1  ;;  %17866 = vmatprep.subr.bf16.mxu0 %v19397_v33 }
0x1e09   : > { %v6735_v14 = vmax.f32 %v6710_v40, 0.0 }
0x1e0a   : > { %v6745_v1 = vpack.c.bf16 %v6737_v38, %v6736_v37 }
0x1e0b   : > { %17867 = vmatpush3.bf16.msra.mxu0 %v19397_v33  ;;  %v6744_v42 = vpack.c.bf16 %v6735_v14, %v6734_v0 }
0x1e0c   : > { %17868 = vmatprep.subr.bf16.mxu0 %v19398_v41 }
0x1e0d   : > { %17820 = vmatprep.mubr.bf16.mxu0 %v6744_v42 }
0x1e0e   : > { %17821 = vmatmul.mubr.bf16.gmra.mrb[60].mxu0 %v6745_v1 }
0x1e0f   : > { %17869 = vmatpush3.bf16.msra.mxu0 %v19398_v41  ;;  %17872 = vmatprep.mubr.bf16.mxu0 %v19400_v43 }
0x1e10   : > { %17870 = vmatprep.subr.bf16.mxu0 %v19399_v5 }
0x1e13   : > { %17871 = vmatpush3.bf16.msra.mxu0 %v19399_v5 }
0x1e16   : > { %17873 = vmatmul.mubr.bf16.vlgmr.msra.gmra.mrb[64].mxu0 %v19401_v6 }
0x1e17   : > { %17876 = vmatprep.mubr.bf16.mxu0 %v19402_v19 }
0x1e1e   : > { %17877 = vmatmul.mubr.bf16.gmra.mrb[68].mxu0 %v19403_v7  ;;  %v14647_v7 = vld [vmem:[%s21692_s3] ss:$0 sm:$0xff] }
0x1e1f   : > { %17880 = vmatprep.mubr.bf16.mxu0 %v19404_v4 }
0x1e26   : > { %17881 = vmatmul.mubr.bf16.gmra.mrb[72].mxu0 %v19405_v17  ;;  %v20735_v17 = vld [vmem:[%s19755_s26 + $0x100] sm:$0xff]  }
0x1e27   : > { %17884 = vmatprep.mubr.bf16.mxu0 %v19406_v22 }
0x1e2e   : > { %17885 = vmatmul.mubr.bf16.gmra.mrb[76].mxu0 %v19407_v23 }
0x1ec9   : > { %v17810_v26 = vpop.f32.mrb[48].mxu0 }
0x1eca   : > { %v6860_v27 = vadd.f32 %v17810_v26, %v14581_v3  ;;  %v6851_v15 = vpop.f32.mrb[49].mxu0 }
0x1ecb   : > { %v6852_v28 = vadd.f32 %v14581_v3, %v6851_v15  ;;  %v17811_v29 = vpop.f32.mrb[50].mxu0 }
0x1ecc   : > { %v6863_v24 = vadd.f32 %v17811_v29, %v14581_v3  ;;  %v6854_v25 = vpop.f32.mrb[51].mxu0  ;;  %v6916_v21 = vmax.f32 %v6860_v27, 0.0 }
0x1ecd   : > { %v6855_v20 = vadd.f32 %v14581_v3, %v6854_v25  ;;  %v6914_v45 = vmax.f32 %v6852_v28, 0.0 }
0x1ece   : > { %v6917_v44 = vmax.f32 %v6863_v24, 0.0 }
0x1ecf   : > { %v6915_v46 = vmax.f32 %v6855_v20, 0.0 }
0x1ed0   : > { %v6931_v47 = vpack.c.bf16 %v6917_v44, %v6916_v21 }
0x1ed1   : > { %v17814_v48 = vpop.f32.mrb[52].mxu0  ;;  %v6930_v49 = vpack.c.bf16 %v6915_v46, %v6914_v45 }
0x1ed2   : > { %v6876_v50 = vadd.f32 %v17814_v48, %v14581_v3  ;;  %v6867_v51 = vpop.f32.mrb[53].mxu0 }
0x1ed3   : > { %v6868_v52 = vadd.f32 %v14581_v3, %v6867_v51  ;;  %v17815_v53 = vpop.f32.mrb[54].mxu0  ;;  %17840 = vmatprep.mubr.bf16.mxu1 %v6930_v49 }
0x1ed4   : > { %v6879_v54 = vadd.f32 %v17815_v53, %v14581_v3  ;;  %v6870_v55 = vpop.f32.mrb[55].mxu0  ;;  %17841 = vmatmul.mubr.bf16.vlgmr.msra.gmra.mrb[48].mxu1 %v6931_v47  ;;  %v6920_v57 = vmax.f32 %v6876_v50, 0.0 }
0x1ed5   : > { %v6871_v56 = vadd.f32 %v14581_v3, %v6870_v55  ;;  %v6918_v59 = vmax.f32 %v6868_v52, 0.0 }
0x1ed6   : > { %v6921_v58 = vmax.f32 %v6879_v54, 0.0 }
0x1ed7   : > { %v6919_v60 = vmax.f32 %v6871_v56, 0.0 }
0x1ed8   : > { %v6933_v61 = vpack.c.bf16 %v6921_v58, %v6920_v57 }
0x1ed9   : > { %v17818_v62 = vpop.f32.mrb[56].mxu0  ;;  %v6932_v63 = vpack.c.bf16 %v6919_v60, %v6918_v59 }
0x1eda   : > { %v6892_v8 = vadd.f32 %v17818_v62, %v14581_v3  ;;  %v6883_v9 = vpop.f32.mrb[57].mxu0 }
0x1edb   : > { %v6884_v10 = vadd.f32 %v14581_v3, %v6883_v9  ;;  %v17819_v11 = vpop.f32.mrb[58].mxu0  ;;  %17844 = vmatprep.mubr.bf16.mxu1 %v6932_v63 }
0x1edc   : > { %v6895_v12 = vadd.f32 %v17819_v11, %v14581_v3  ;;  %v6886_v13 = vpop.f32.mrb[59].mxu0  ;;  %17845 = vmatmul.mubr.bf16.gmra.mrb[52].mxu1 %v6933_v61  ;;  %v6924_v30 = vmax.f32 %v6892_v8, 0.0 }
0x1edd   : > { %v6887_v16 = vadd.f32 %v14581_v3, %v6886_v13  ;;  %v6922_v18 = vmax.f32 %v6884_v10, 0.0  ;;  %v20739_v13 = vld [vmem:[%s19755_s26 + $0x108] sm:$0xff]  }
0x1ede   : > { %v6925_v31 = vmax.f32 %v6895_v12, 0.0 }
0x1edf   : > { %v6923_v32 = vmax.f32 %v6887_v16, 0.0  ;;  %v20742_v16 = vld [vmem:[%s19755_s26 + $0x110] sm:$0xff]  }
0x1ee0   : > { %v6935_v33 = vpack.c.bf16 %v6925_v31, %v6924_v30  ;;  %v20747_v30 = vld [vmem:[%s19755_s26 + $0x118] sm:$0xff]   ;;  %v20750_v31 = vld [vmem:[%s19755_s26 + $0x120] sm:$0xff]  }
0x1ee1   : > { %v17822_v34 = vpop.f32.mrb[60].mxu0  ;;  %v6934_v35 = vpack.c.bf16 %v6923_v32, %v6922_v18  ;;  %v20755_v18 = vld [vmem:[%s19755_s26 + $0x128] sm:$0xff]   ;;  %v20758_v32 = vld [vmem:[%s19755_s26 + $0x130] sm:$0xff]  }
0x1ee2   : > { %v6908_v36 = vadd.f32 %v17822_v34, %v14581_v3  ;;  %v6899_v37 = vpop.f32.mrb[61].mxu0  ;;  %v19424_v34 = vld [vmem:[%s21691_s2 + $0x40] sm:$0xff]  }
0x1ee3   : > { %v6900_v38 = vadd.f32 %v14581_v3, %v6899_v37  ;;  %v17823_v40 = vpop.f32.mrb[62].mxu0  ;;  %17848 = vmatprep.mubr.bf16.mxu1 %v6934_v35  ;;  %v19425_v35 = vld [vmem:[%s21691_s2 + $0x48] sm:$0xff]   ;;  %17920 = vmatprep.subr.bf16.mxu0 %v19424_v34  ;;  %v19427_v37 = vld [vmem:[%s21691_s2 + $0x58] sm:$0xff]  }
0x1ee4   : > { %v6911_v41 = vadd.f32 %v17823_v40, %v14581_v3  ;;  %v6902_v0 = vpop.f32.mrb[63].mxu0  ;;  %17849 = vmatmul.mubr.bf16.gmra.mrb[56].mxu1 %v6935_v33  ;;  %v6928_v1 = vmax.f32 %v6908_v36, 0.0  ;;  %v20763_v33 = vld [vmem:[%s19755_s26 + $0x138] sm:$0xff]   ;;  %17921 = vmatpush3.bf16.msra.mxu0 %v19424_v34  ;;  %v19426_v36 = vld [vmem:[%s21691_s2 + $0x50] sm:$0xff]   ;;  %v19429_v40 = vld [vmem:[%s21691_s2 + $0x68] sm:$0xff]  }
0x1ee5   : > { %v6903_v14 = vadd.f32 %v14581_v3, %v6902_v0  ;;  %v6926_v43 = vmax.f32 %v6900_v38, 0.0  ;;  %17922 = vmatprep.subr.bf16.mxu0 %v19425_v35  ;;  %v19428_v38 = vld [vmem:[%s21691_s2 + $0x60] sm:$0xff]   ;;  %v19431_v0 = vld [vmem:[%s21691_s2 + $0x78] sm:$0xff]  }
0x1ee6   : > { %v6929_v42 = vmax.f32 %v6911_v41, 0.0  ;;  %v19430_v41 = vld [vmem:[%s21691_s2 + $0x70] sm:$0xff]  }
0x1ee7   : > { %v6927_v5 = vmax.f32 %v6903_v14, 0.0  ;;  %v14590_v14 = vld [vmem:[%s21696_s7] ss:$0 sm:$0xff] }
0x1ee8   : > { %v6937_v6 = vpack.c.bf16 %v6929_v42, %v6928_v1  ;;  %17923 = vmatpush3.bf16.msra.mxu0 %v19425_v35 }
0x1ee9   : > { %v17874_v19 = vpop.f32.mrb[64].mxu0  ;;  %v6936_v4 = vpack.c.bf16 %v6927_v5, %v6926_v43  ;;  %17924 = vmatprep.subr.bf16.mxu0 %v19426_v36 }
0x1eea   : > { %v7310_v22 = vpop.f32.mrb[65].mxu0  ;;  %v7319_v39 = vadd.f32 %v17874_v19, %v14647_v7 }
0x1eeb   : > { %17852 = vmatprep.mubr.bf16.mxu1 %v6936_v4  ;;  %v17875_v23 = vpop.f32.mrb[66].mxu0  ;;  %v7311_v26 = vadd.f32 %v14647_v7, %v7310_v22 }
0x1eec   : > { %v7322_v2 = vadd.f32 %v17875_v23, %v14647_v7  ;;  %17853 = vmatmul.mubr.bf16.gmra.mrb[60].mxu1 %v6937_v6  ;;  %v7313_v3 = vpop.f32.mrb[67].mxu0  ;;  %17925 = vmatpush3.bf16.msra.mxu0 %v19426_v36 }
0x1eed   : > { %v7314_v27 = vadd.f32 %v14647_v7, %v7313_v3  ;;  %17904 = vmatprep.mubr.bf16.mxu1 %v20735_v17  ;;  %17926 = vmatprep.subr.bf16.mxu0 %v19427_v37 }
0x1eee   : > { %v7374_v15 = vpack.c.bf16 %v7322_v2, %v7319_v39 }
0x1eef   : > { %v7373_v28 = vpack.c.bf16 %v7314_v27, %v7311_v26 }
0x1ef0   : > { %17927 = vmatpush3.bf16.msra.mxu0 %v19427_v37 }
0x1ef1   : > { %v17878_v29 = vpop.f32.mrb[68].mxu0  ;;  %17888 = vmatprep.subr.bf16.mxu1 %v7373_v28  ;;  %17928 = vmatprep.subr.bf16.mxu0 %v19428_v38 }
0x1ef2   : > { %v7326_v24 = vpop.f32.mrb[69].mxu0  ;;  %17889 = vmatpush3.bf16.msra.mxu1 %v7373_v28  ;;  %v7335_v20 = vadd.f32 %v17878_v29, %v14647_v7 }
0x1ef3   : > { %v17879_v25 = vpop.f32.mrb[70].mxu0  ;;  %17890 = vmatprep.subr.bf16.mxu1 %v7374_v15  ;;  %v7327_v45 = vadd.f32 %v14647_v7, %v7326_v24 }
0x1ef4   : > { %v7338_v21 = vadd.f32 %v17879_v25, %v14647_v7  ;;  %v7329_v44 = vpop.f32.mrb[71].mxu0  ;;  %17929 = vmatpush3.bf16.msra.mxu0 %v19428_v38 }
0x1ef5   : > { %v7330_v46 = vadd.f32 %v14647_v7, %v7329_v44  ;;  %17930 = vmatprep.subr.bf16.mxu0 %v19429_v40 }
0x1ef6   : > { %17891 = vmatpush3.bf16.msra.mxu1 %v7374_v15  ;;  %v7376_v47 = vpack.c.bf16 %v7338_v21, %v7335_v20 }
0x1ef7   : > { %v7375_v48 = vpack.c.bf16 %v7330_v46, %v7327_v45 }
0x1ef8   : > { %17931 = vmatpush3.bf16.msra.mxu0 %v19429_v40 }
0x1ef9   : > { %v17882_v49 = vpop.f32.mrb[72].mxu0  ;;  %17892 = vmatprep.subr.bf16.mxu1 %v7375_v48  ;;  %17932 = vmatprep.subr.bf16.mxu0 %v19430_v41 }
0x1efa   : > { %v7342_v50 = vpop.f32.mrb[73].mxu0  ;;  %17893 = vmatpush3.bf16.msra.mxu1 %v7375_v48  ;;  %v7351_v52 = vadd.f32 %v17882_v49, %v14647_v7 }
0x1efb   : > { %v17883_v51 = vpop.f32.mrb[74].mxu0  ;;  %17894 = vmatprep.subr.bf16.mxu1 %v7376_v47  ;;  %v7343_v55 = vadd.f32 %v14647_v7, %v7342_v50 }
0x1efc   : > { %v7354_v53 = vadd.f32 %v17883_v51, %v14647_v7  ;;  %v7345_v54 = vpop.f32.mrb[75].mxu0  ;;  %17933 = vmatpush3.bf16.msra.mxu0 %v19430_v41 }
0x1efd   : > { %v7346_v56 = vadd.f32 %v14647_v7, %v7345_v54  ;;  %17934 = vmatprep.subr.bf16.mxu0 %v19431_v0 }
0x1efe   : > { %17895 = vmatpush3.bf16.msra.mxu1 %v7376_v47  ;;  %v7378_v57 = vpack.c.bf16 %v7354_v53, %v7351_v52 }
0x1eff   : > { %v7377_v58 = vpack.c.bf16 %v7346_v56, %v7343_v55 }
0x1f00   : > { %17935 = vmatpush3.bf16.msra.mxu0 %v19431_v0 }
0x1f01   : > { %v17886_v59 = vpop.f32.mrb[76].mxu0  ;;  %17896 = vmatprep.subr.bf16.mxu1 %v7377_v58 }
0x1f02   : > { %v7358_v60 = vpop.f32.mrb[77].mxu0  ;;  %17897 = vmatpush3.bf16.msra.mxu1 %v7377_v58  ;;  %v7367_v62 = vadd.f32 %v17886_v59, %v14647_v7 }
0x1f03   : > { %v17887_v61 = vpop.f32.mrb[78].mxu0  ;;  %17898 = vmatprep.subr.bf16.mxu1 %v7378_v57  ;;  %v7359_v9 = vadd.f32 %v14647_v7, %v7358_v60 }
0x1f04   : > { %v7370_v63 = vadd.f32 %v17887_v61, %v14647_v7  ;;  %v7361_v8 = vpop.f32.mrb[79].mxu0 }
0x1f05   : > { %v7362_v10 = vadd.f32 %v14647_v7, %v7361_v8 }
0x1f06   : > { %17899 = vmatpush3.bf16.msra.mxu1 %v7378_v57  ;;  %v7380_v11 = vpack.c.bf16 %v7370_v63, %v7367_v62 }
0x1f07   : > { %v7379_v12 = vpack.c.bf16 %v7362_v10, %v7359_v9 }
0x1f09   : > { %17900 = vmatprep.subr.bf16.mxu1 %v7379_v12 }
0x1f0a   : > { %17901 = vmatpush3.bf16.msra.mxu1 %v7379_v12 }
0x1f0b   : > { %17902 = vmatprep.subr.bf16.mxu1 %v7380_v11 }
0x1f0e   : > { %17903 = vmatpush3.bf16.msra.mxu1 %v7380_v11 }
0x1f11   : > { %17905 = vmatmul.mubr.bf16.vlgmr.msra.gmra.mrb[64].mxu1 %v20739_v13 }
0x1f12   : > { %17908 = vmatprep.mubr.bf16.mxu1 %v20742_v16 }
0x1f19   : > { %17909 = vmatmul.mubr.bf16.gmra.mrb[68].mxu1 %v20747_v30 }
0x1f1a   : > { %17912 = vmatprep.mubr.bf16.mxu1 %v20750_v31 }
0x1f21   : > { %17913 = vmatmul.mubr.bf16.gmra.mrb[72].mxu1 %v20755_v18 }
0x1f22   : > { %17916 = vmatprep.mubr.bf16.mxu1 %v20758_v32 }
0x1f29   : > { %17917 = vmatmul.mubr.bf16.gmra.mrb[76].mxu1 %v20763_v33 }
0x1f2a   : > { %17968 = vmatprep.mubr.bf16.mxu1 %v20735_v17 }
0x1fa7   : > { %v17842_v1 = vpop.f32.mrb[48].mxu1 }
0x1fa8   : > { %v7052_v42 = vadd.f32 %v17842_v1, %v14590_v14  ;;  %v7043_v43 = vpop.f32.mrb[49].mxu1 }
0x1fa9   : > { %v7044_v5 = vadd.f32 %v14590_v14, %v7043_v43  ;;  %v17843_v6 = vpop.f32.mrb[50].mxu1 }
0x1faa   : > { %14601 = vst [vmem:[%s20066_s14 + $0x190] sm:$0xff] %v7052_v42  ;;  %v7055_v19 = vadd.f32 %v17843_v6, %v14590_v14  ;;  %v7046_v7 = vpop.f32.mrb[51].mxu1 }
0x1fab   : > { %14599 = vst [vmem:[%s20066_s14 + $0x180] sm:$0xff] %v7044_v5  ;;  %v7047_v4 = vadd.f32 %v14590_v14, %v7046_v7 }
0x1fac   : > { %14602 = vst [vmem:[%s20066_s14 + $0x198] sm:$0xff] %v7055_v19 }
0x1fad   : > { %14600 = vst [vmem:[%s20066_s14 + $0x188] sm:$0xff] %v7047_v4 }
0x1faf   : > { %v17846_v22 = vpop.f32.mrb[52].mxu1 }
0x1fb0   : > { %v7068_v23 = vadd.f32 %v17846_v22, %v14590_v14  ;;  %v7059_v39 = vpop.f32.mrb[53].mxu1 }
0x1fb1   : > { %v7060_v2 = vadd.f32 %v14590_v14, %v7059_v39  ;;  %v17847_v3 = vpop.f32.mrb[54].mxu1 }
0x1fb2   : > { %14605 = vst [vmem:[%s20066_s14 + $0x1b0] sm:$0xff] %v7068_v23  ;;  %v7071_v26 = vadd.f32 %v17847_v3, %v14590_v14  ;;  %v7062_v27 = vpop.f32.mrb[55].mxu1 }
0x1fb3   : > { %14603 = vst [vmem:[%s20066_s14 + $0x1a0] sm:$0xff] %v7060_v2  ;;  %v7063_v15 = vadd.f32 %v14590_v14, %v7062_v27 }
0x1fb4   : > { %14606 = vst [vmem:[%s20066_s14 + $0x1b8] sm:$0xff] %v7071_v26 }
0x1fb5   : > { %14604 = vst [vmem:[%s20066_s14 + $0x1a8] sm:$0xff] %v7063_v15 }
0x1fb7   : > { %v17850_v28 = vpop.f32.mrb[56].mxu1 }
0x1fb8   : > { %v7084_v29 = vadd.f32 %v17850_v28, %v14590_v14  ;;  %v7075_v24 = vpop.f32.mrb[57].mxu1  ;;  %v19432_v28 = vld [vmem:[%s21691_s2 + $0x80] sm:$0xff]  }
0x1fb9   : > { %v7076_v25 = vadd.f32 %v14590_v14, %v7075_v24  ;;  %v17851_v20 = vpop.f32.mrb[58].mxu1  ;;  %17984 = vmatprep.subr.bf16.mxu0 %v19432_v28  ;;  %v19434_v24 = vld [vmem:[%s21691_s2 + $0x90] sm:$0xff]  }
0x1fba   : > { %14609 = vst [vmem:[%s20066_s14 + $0x1d0] sm:$0xff] %v7084_v29  ;;  %v7087_v21 = vadd.f32 %v17851_v20, %v14590_v14  ;;  %v7078_v44 = vpop.f32.mrb[59].mxu1  ;;  %v19433_v29 = vld [vmem:[%s21691_s2 + $0x88] sm:$0xff]   ;;  %v19436_v20 = vld [vmem:[%s21691_s2 + $0xa0] sm:$0xff]  }
0x1fbb   : > { %14607 = vst [vmem:[%s20066_s14 + $0x1c0] sm:$0xff] %v7076_v25  ;;  %v7079_v45 = vadd.f32 %v14590_v14, %v7078_v44  ;;  %v19435_v25 = vld [vmem:[%s21691_s2 + $0x98] sm:$0xff]  }
0x1fbc   : > { %14610 = vst [vmem:[%s20066_s14 + $0x1d8] sm:$0xff] %v7087_v21  ;;  %v19437_v21 = vld [vmem:[%s21691_s2 + $0xa8] sm:$0xff]  }
0x1fbd   : > { %14608 = vst [vmem:[%s20066_s14 + $0x1c8] sm:$0xff] %v7079_v45  ;;  %v14689_v45 = vld [vmem:[%s21692_s3 + $0x1] ss:$0 sm:$0xff] }
0x1fbf   : > { %v17854_v46 = vpop.f32.mrb[60].mxu1 }
0x1fc0   : > { %v7100_v47 = vadd.f32 %v17854_v46, %v14590_v14  ;;  %v7091_v48 = vpop.f32.mrb[61].mxu1 }
0x1fc1   : > { %v7092_v49 = vadd.f32 %v14590_v14, %v7091_v48  ;;  %v17855_v50 = vpop.f32.mrb[62].mxu1 }
0x1fc2   : > { %14613 = vst [vmem:[%s20066_s14 + $0x1f0] sm:$0xff] %v7100_v47  ;;  %v7103_v51 = vadd.f32 %v17855_v50, %v14590_v14  ;;  %v7094_v52 = vpop.f32.mrb[63].mxu1 }
0x1fc3   : > { %14611 = vst [vmem:[%s20066_s14 + $0x1e0] sm:$0xff] %v7092_v49  ;;  %v7095_v53 = vadd.f32 %v14590_v14, %v7094_v52 }
0x1fc4   : > { %14614 = vst [vmem:[%s20066_s14 + $0x1f8] sm:$0xff] %v7103_v51 }
0x1fc5   : > { %14612 = vst [vmem:[%s20066_s14 + $0x1e8] sm:$0xff] %v7095_v53 }
0x1fe4   : > { %v17906_v54 = vpop.f32.mrb[64].mxu1 }
0x1fe5   : > { %v7463_v55 = vpop.f32.mrb[65].mxu1  ;;  %v7528_v57 = vmax.f32 %v17906_v54, 0.0 }
0x1fe6   : > { %v17907_v56 = vpop.f32.mrb[66].mxu1  ;;  %v7526_v60 = vmax.f32 %v7463_v55, 0.0 }
0x1fe7   : > { %v7529_v58 = vmax.f32 %v17907_v56, 0.0  ;;  %v7466_v59 = vpop.f32.mrb[67].mxu1 }
0x1fe8   : > { %v7527_v61 = vmax.f32 %v7466_v59, 0.0 }
0x1fe9   : > { %v7543_v62 = vpack.c.bf16 %v7529_v58, %v7528_v57 }
0x1fea   : > { %v7542_v63 = vpack.c.bf16 %v7527_v61, %v7526_v60 }
0x1fec   : > { %v17910_v8 = vpop.f32.mrb[68].mxu1  ;;  %17936 = vmatprep.mubr.bf16.mxu0 %v7542_v63 }
0x1fed   : > { %v7479_v9 = vpop.f32.mrb[69].mxu1  ;;  %17937 = vmatmul.mubr.bf16.vlgmr.msra.gmra.mrb[80].mxu0 %v7543_v62  ;;  %v7532_v11 = vmax.f32 %v17910_v8, 0.0 }
0x1fee   : > { %v17911_v10 = vpop.f32.mrb[70].mxu1  ;;  %v7530_v35 = vmax.f32 %v7479_v9, 0.0  ;;  %17985 = vmatpush3.bf16.msra.mxu0 %v19432_v28 }
0x1fef   : > { %v7533_v12 = vmax.f32 %v17911_v10, 0.0  ;;  %v7482_v34 = vpop.f32.mrb[71].mxu1  ;;  %17986 = vmatprep.subr.bf16.mxu0 %v19433_v29 }
0x1ff0   : > { %v7531_v36 = vmax.f32 %v7482_v34, 0.0 }
0x1ff1   : > { %v7545_v37 = vpack.c.bf16 %v7533_v12, %v7532_v11 }
0x1ff2   : > { %v7544_v38 = vpack.c.bf16 %v7531_v36, %v7530_v35  ;;  %17987 = vmatpush3.bf16.msra.mxu0 %v19433_v29 }
0x1ff3   : > { %17988 = vmatprep.subr.bf16.mxu0 %v19434_v24 }
0x1ff4   : > { %v17914_v40 = vpop.f32.mrb[72].mxu1  ;;  %17940 = vmatprep.mubr.bf16.mxu0 %v7544_v38 }
0x1ff5   : > { %v7495_v41 = vpop.f32.mrb[73].mxu1  ;;  %17941 = vmatmul.mubr.bf16.gmra.mrb[84].mxu0 %v7545_v37  ;;  %v7536_v14 = vmax.f32 %v17914_v40, 0.0 }
0x1ff6   : > { %v17915_v0 = vpop.f32.mrb[74].mxu1  ;;  %v7534_v43 = vmax.f32 %v7495_v41, 0.0  ;;  %17989 = vmatpush3.bf16.msra.mxu0 %v19434_v24 }
0x1ff7   : > { %v7537_v1 = vmax.f32 %v17915_v0, 0.0  ;;  %v7498_v42 = vpop.f32.mrb[75].mxu1  ;;  %17990 = vmatprep.subr.bf16.mxu0 %v19435_v25 }
0x1ff8   : > { %v7535_v5 = vmax.f32 %v7498_v42, 0.0 }
0x1ff9   : > { %v7547_v6 = vpack.c.bf16 %v7537_v1, %v7536_v14 }
0x1ffa   : > { %v7546_v19 = vpack.c.bf16 %v7535_v5, %v7534_v43  ;;  %17991 = vmatpush3.bf16.msra.mxu0 %v19435_v25 }
0x1ffb   : > { %17992 = vmatprep.subr.bf16.mxu0 %v19436_v20 }
0x1ffc   : > { %v17918_v7 = vpop.f32.mrb[76].mxu1  ;;  %17944 = vmatprep.mubr.bf16.mxu0 %v7546_v19 }
0x1ffd   : > { %v7511_v4 = vpop.f32.mrb[77].mxu1  ;;  %17945 = vmatmul.mubr.bf16.gmra.mrb[88].mxu0 %v7547_v6  ;;  %v7540_v23 = vmax.f32 %v17918_v7, 0.0 }
0x1ffe   : > { %v17919_v22 = vpop.f32.mrb[78].mxu1  ;;  %v7538_v3 = vmax.f32 %v7511_v4, 0.0  ;;  %17993 = vmatpush3.bf16.msra.mxu0 %v19436_v20  ;;  %v19438_v4 = vld [vmem:[%s21691_s2 + $0xb0] sm:$0xff]  }
0x1fff   : > { %v7541_v39 = vmax.f32 %v17919_v22, 0.0  ;;  %v7514_v2 = vpop.f32.mrb[79].mxu1  ;;  %17994 = vmatprep.subr.bf16.mxu0 %v19437_v21  ;;  %v19439_v22 = vld [vmem:[%s21691_s2 + $0xb8] sm:$0xff]  }
0x2000   : > { %v7539_v26 = vmax.f32 %v7514_v2, 0.0 }
0x2001   : > { %v7549_v27 = vpack.c.bf16 %v7541_v39, %v7540_v23 }
0x2002   : > { %v7548_v15 = vpack.c.bf16 %v7539_v26, %v7538_v3  ;;  %17995 = vmatpush3.bf16.msra.mxu0 %v19437_v21 }
0x2003   : > { %17996 = vmatprep.subr.bf16.mxu0 %v19438_v4 }
0x2004   : > { %17948 = vmatprep.mubr.bf16.mxu0 %v7548_v15 }
0x2005   : > { %17949 = vmatmul.mubr.bf16.gmra.mrb[92].mxu0 %v7549_v27 }
0x2006   : > { %17997 = vmatpush3.bf16.msra.mxu0 %v19438_v4 }
0x2007   : > { %17998 = vmatprep.subr.bf16.mxu0 %v19439_v22 }
0x200a   : > { %17999 = vmatpush3.bf16.msra.mxu0 %v19439_v22 }
0x20c0   : > { %v17938_v44 = vpop.f32.mrb[80].mxu0 }
0x20c1   : > { %v7655_v46 = vpop.f32.mrb[81].mxu0  ;;  %v7664_v48 = vadd.f32 %v17938_v44, %v14689_v45 }
0x20c2   : > { %v17939_v47 = vpop.f32.mrb[82].mxu0  ;;  %v7656_v51 = vadd.f32 %v14689_v45, %v7655_v46 }
0x20c3   : > { %v7667_v49 = vadd.f32 %v17939_v47, %v14689_v45  ;;  %v7658_v50 = vpop.f32.mrb[83].mxu0 }
0x20c4   : > { %v7659_v52 = vadd.f32 %v14689_v45, %v7658_v50 }
0x20c5   : > { %v7719_v53 = vpack.c.bf16 %v7667_v49, %v7664_v48 }
0x20c6   : > { %v7718_v54 = vpack.c.bf16 %v7659_v52, %v7656_v51 }
0x20c8   : > { %v17942_v55 = vpop.f32.mrb[84].mxu0  ;;  %17952 = vmatprep.subr.bf16.mxu1 %v7718_v54 }
0x20c9   : > { %v7671_v56 = vpop.f32.mrb[85].mxu0  ;;  %17953 = vmatpush3.bf16.msra.mxu1 %v7718_v54  ;;  %v7680_v58 = vadd.f32 %v17942_v55, %v14689_v45 }
0x20ca   : > { %v17943_v57 = vpop.f32.mrb[86].mxu0  ;;  %17954 = vmatprep.subr.bf16.mxu1 %v7719_v53  ;;  %v7672_v61 = vadd.f32 %v14689_v45, %v7671_v56 }
0x20cb   : > { %v7683_v59 = vadd.f32 %v17943_v57, %v14689_v45  ;;  %v7674_v60 = vpop.f32.mrb[87].mxu0 }
0x20cc   : > { %v7675_v62 = vadd.f32 %v14689_v45, %v7674_v60 }
0x20cd   : > { %17955 = vmatpush3.bf16.msra.mxu1 %v7719_v53  ;;  %v7721_v63 = vpack.c.bf16 %v7683_v59, %v7680_v58 }
0x20ce   : > { %v7720_v8 = vpack.c.bf16 %v7675_v62, %v7672_v61 }
0x20d0   : > { %v17946_v9 = vpop.f32.mrb[88].mxu0  ;;  %17956 = vmatprep.subr.bf16.mxu1 %v7720_v8 }
0x20d1   : > { %v7687_v10 = vpop.f32.mrb[89].mxu0  ;;  %17957 = vmatpush3.bf16.msra.mxu1 %v7720_v8  ;;  %v7696_v12 = vadd.f32 %v17946_v9, %v14689_v45 }
0x20d2   : > { %v17947_v11 = vpop.f32.mrb[90].mxu0  ;;  %17958 = vmatprep.subr.bf16.mxu1 %v7721_v63  ;;  %v7688_v36 = vadd.f32 %v14689_v45, %v7687_v10 }
0x20d3   : > { %v7699_v34 = vadd.f32 %v17947_v11, %v14689_v45  ;;  %v7690_v35 = vpop.f32.mrb[91].mxu0 }
0x20d4   : > { %v7691_v37 = vadd.f32 %v14689_v45, %v7690_v35 }
0x20d5   : > { %17959 = vmatpush3.bf16.msra.mxu1 %v7721_v63  ;;  %v7723_v38 = vpack.c.bf16 %v7699_v34, %v7696_v12 }
0x20d6   : > { %v7722_v40 = vpack.c.bf16 %v7691_v37, %v7688_v36  ;;  %v19440_v36 = vld [vmem:[%s21691_s2 + $0xc0] sm:$0xff]   ;;  %v19441_v37 = vld [vmem:[%s21691_s2 + $0xc8] sm:$0xff]  }
0x20d7   : > { %18048 = vmatprep.subr.bf16.mxu0 %v19440_v36 }
0x20d8   : > { %v17950_v41 = vpop.f32.mrb[92].mxu0  ;;  %17960 = vmatprep.subr.bf16.mxu1 %v7722_v40 }
0x20d9   : > { %v7703_v0 = vpop.f32.mrb[93].mxu0  ;;  %17961 = vmatpush3.bf16.msra.mxu1 %v7722_v40  ;;  %v7712_v1 = vadd.f32 %v17950_v41, %v14689_v45  ;;  %v19443_v40 = vld [vmem:[%s21691_s2 + $0xd8] sm:$0xff]   ;;  %v19444_v41 = vld [vmem:[%s21691_s2 + $0xe0] sm:$0xff]  }
0x20da   : > { %v17951_v14 = vpop.f32.mrb[94].mxu0  ;;  %17962 = vmatprep.subr.bf16.mxu1 %v7723_v38  ;;  %v7704_v5 = vadd.f32 %v14689_v45, %v7703_v0  ;;  %v19445_v0 = vld [vmem:[%s21691_s2 + $0xe8] sm:$0xff]  }
0x20db   : > { %v7715_v42 = vadd.f32 %v17951_v14, %v14689_v45  ;;  %v7706_v43 = vpop.f32.mrb[95].mxu0 }
0x20dc   : > { %v7707_v6 = vadd.f32 %v14689_v45, %v7706_v43 }
0x20dd   : > { %17963 = vmatpush3.bf16.msra.mxu1 %v7723_v38  ;;  %v7725_v19 = vpack.c.bf16 %v7715_v42, %v7712_v1  ;;  %v19442_v38 = vld [vmem:[%s21691_s2 + $0xd0] sm:$0xff]   ;;  %v14715_v1 = vld [vmem:[%s21692_s3 + $0x2] ss:$0 sm:$0xff] }
0x20de   : > { %v7724_v7 = vpack.c.bf16 %v7707_v6, %v7704_v5 }
0x20e0   : > { %17964 = vmatprep.subr.bf16.mxu1 %v7724_v7 }
0x20e1   : > { %17965 = vmatpush3.bf16.msra.mxu1 %v7724_v7 }
0x20e2   : > { %17966 = vmatprep.subr.bf16.mxu1 %v7725_v19 }
0x20e5   : > { %17967 = vmatpush3.bf16.msra.mxu1 %v7725_v19 }
0x20e8   : > { %17969 = vmatmul.mubr.bf16.vlgmr.msra.gmra.mrb[80].mxu1 %v20739_v13 }
0x20e9   : > { %17972 = vmatprep.mubr.bf16.mxu1 %v20742_v16 }
0x20f0   : > { %17973 = vmatmul.mubr.bf16.gmra.mrb[84].mxu1 %v20747_v30 }
0x20f1   : > { %17976 = vmatprep.mubr.bf16.mxu1 %v20750_v31 }
0x20f8   : > { %17977 = vmatmul.mubr.bf16.gmra.mrb[88].mxu1 %v20755_v18 }
0x20f9   : > { %17980 = vmatprep.mubr.bf16.mxu1 %v20758_v32 }
0x2100   : > { %17981 = vmatmul.mubr.bf16.gmra.mrb[92].mxu1 %v20763_v33 }
0x2101   : > { %18032 = vmatprep.mubr.bf16.mxu1 %v20735_v17 }
0x21bb   : > { %v17970_v23 = vpop.f32.mrb[80].mxu1 }
0x21bc   : > { %v7760_v39 = vpop.f32.mrb[81].mxu1  ;;  %v7825_v3 = vmax.f32 %v17970_v23, 0.0 }
0x21bd   : > { %v17971_v2 = vpop.f32.mrb[82].mxu1  ;;  %v7823_v15 = vmax.f32 %v7760_v39, 0.0 }
0x21be   : > { %v7826_v26 = vmax.f32 %v17971_v2, 0.0  ;;  %v7763_v27 = vpop.f32.mrb[83].mxu1 }
0x21bf   : > { %v7824_v28 = vmax.f32 %v7763_v27, 0.0 }
0x21c0   : > { %v7840_v29 = vpack.c.bf16 %v7826_v26, %v7825_v3 }
0x21c1   : > { %v7839_v24 = vpack.c.bf16 %v7824_v28, %v7823_v15 }
0x21c3   : > { %v17974_v25 = vpop.f32.mrb[84].mxu1  ;;  %18000 = vmatprep.mubr.bf16.mxu0 %v7839_v24 }
0x21c4   : > { %v7776_v20 = vpop.f32.mrb[85].mxu1  ;;  %18001 = vmatmul.mubr.bf16.vlgmr.msra.gmra.mrb[96].mxu0 %v7840_v29  ;;  %v7829_v44 = vmax.f32 %v17974_v25, 0.0 }
0x21c5   : > { %v17975_v21 = vpop.f32.mrb[86].mxu1  ;;  %v7827_v47 = vmax.f32 %v7776_v20, 0.0  ;;  %18049 = vmatpush3.bf16.msra.mxu0 %v19440_v36 }
0x21c6   : > { %v7830_v45 = vmax.f32 %v17975_v21, 0.0  ;;  %v7779_v46 = vpop.f32.mrb[87].mxu1  ;;  %18050 = vmatprep.subr.bf16.mxu0 %v19441_v37 }
0x21c7   : > { %v7828_v48 = vmax.f32 %v7779_v46, 0.0 }
0x21c8   : > { %v7842_v49 = vpack.c.bf16 %v7830_v45, %v7829_v44 }
0x21c9   : > { %v7841_v50 = vpack.c.bf16 %v7828_v48, %v7827_v47  ;;  %18051 = vmatpush3.bf16.msra.mxu0 %v19441_v37 }
0x21ca   : > { %18052 = vmatprep.subr.bf16.mxu0 %v19442_v38 }
0x21cb   : > { %v17978_v51 = vpop.f32.mrb[88].mxu1  ;;  %18004 = vmatprep.mubr.bf16.mxu0 %v7841_v50 }
0x21cc   : > { %v7792_v52 = vpop.f32.mrb[89].mxu1  ;;  %18005 = vmatmul.mubr.bf16.gmra.mrb[100].mxu0 %v7842_v49  ;;  %v7833_v54 = vmax.f32 %v17978_v51, 0.0 }
0x21cd   : > { %v17979_v53 = vpop.f32.mrb[90].mxu1  ;;  %v7831_v57 = vmax.f32 %v7792_v52, 0.0  ;;  %18053 = vmatpush3.bf16.msra.mxu0 %v19442_v38 }
0x21ce   : > { %v7834_v55 = vmax.f32 %v17979_v53, 0.0  ;;  %v7795_v56 = vpop.f32.mrb[91].mxu1  ;;  %18054 = vmatprep.subr.bf16.mxu0 %v19443_v40 }
0x21cf   : > { %v7832_v58 = vmax.f32 %v7795_v56, 0.0 }
0x21d0   : > { %v7844_v59 = vpack.c.bf16 %v7834_v55, %v7833_v54 }
0x21d1   : > { %v7843_v60 = vpack.c.bf16 %v7832_v58, %v7831_v57  ;;  %18055 = vmatpush3.bf16.msra.mxu0 %v19443_v40 }
0x21d2   : > { %18056 = vmatprep.subr.bf16.mxu0 %v19444_v41 }
0x21d3   : > { %v17982_v61 = vpop.f32.mrb[92].mxu1  ;;  %18008 = vmatprep.mubr.bf16.mxu0 %v7843_v60 }
0x21d4   : > { %v7808_v62 = vpop.f32.mrb[93].mxu1  ;;  %18009 = vmatmul.mubr.bf16.gmra.mrb[104].mxu0 %v7844_v59  ;;  %v7837_v8 = vmax.f32 %v17982_v61, 0.0 }
0x21d5   : > { %v17983_v63 = vpop.f32.mrb[94].mxu1  ;;  %v7835_v11 = vmax.f32 %v7808_v62, 0.0  ;;  %18057 = vmatpush3.bf16.msra.mxu0 %v19444_v41  ;;  %v19446_v62 = vld [vmem:[%s21691_s2 + $0xf0] sm:$0xff]  }
0x21d6   : > { %v7838_v9 = vmax.f32 %v17983_v63, 0.0  ;;  %v7811_v10 = vpop.f32.mrb[95].mxu1  ;;  %18058 = vmatprep.subr.bf16.mxu0 %v19445_v0  ;;  %v19447_v63 = vld [vmem:[%s21691_s2 + $0xf8] sm:$0xff]  }
0x21d7   : > { %v7836_v12 = vmax.f32 %v7811_v10, 0.0 }
0x21d8   : > { %v7846_v34 = vpack.c.bf16 %v7838_v9, %v7837_v8 }
0x21d9   : > { %v7845_v35 = vpack.c.bf16 %v7836_v12, %v7835_v11  ;;  %18059 = vmatpush3.bf16.msra.mxu0 %v19445_v0 }
0x21da   : > { %18060 = vmatprep.subr.bf16.mxu0 %v19446_v62 }
0x21db   : > { %18012 = vmatprep.mubr.bf16.mxu0 %v7845_v35 }
0x21dc   : > { %18013 = vmatmul.mubr.bf16.gmra.mrb[108].mxu0 %v7846_v34 }
0x21dd   : > { %18061 = vmatpush3.bf16.msra.mxu0 %v19446_v62 }
0x21de   : > { %18062 = vmatprep.subr.bf16.mxu0 %v19447_v63 }
0x21e1   : > { %18063 = vmatpush3.bf16.msra.mxu0 %v19447_v63 }
0x2297   : > { %v18002_v14 = vpop.f32.mrb[96].mxu0 }
0x2298   : > { %v7952_v42 = vpop.f32.mrb[97].mxu0  ;;  %v7961_v5 = vadd.f32 %v18002_v14, %v14715_v1 }
0x2299   : > { %v18003_v43 = vpop.f32.mrb[98].mxu0  ;;  %v7953_v7 = vadd.f32 %v14715_v1, %v7952_v42 }
0x229a   : > { %v7964_v6 = vadd.f32 %v18003_v43, %v14715_v1  ;;  %v7955_v19 = vpop.f32.mrb[99].mxu0 }
0x229b   : > { %v7956_v4 = vadd.f32 %v14715_v1, %v7955_v19 }
0x229c   : > { %v8016_v22 = vpack.c.bf16 %v7964_v6, %v7961_v5 }
0x229d   : > { %v8015_v23 = vpack.c.bf16 %v7956_v4, %v7953_v7 }
0x229f   : > { %v18006_v39 = vpop.f32.mrb[100].mxu0  ;;  %18016 = vmatprep.subr.bf16.mxu1 %v8015_v23 }
0x22a0   : > { %v7968_v2 = vpop.f32.mrb[101].mxu0  ;;  %18017 = vmatpush3.bf16.msra.mxu1 %v8015_v23  ;;  %v7977_v26 = vadd.f32 %v18006_v39, %v14715_v1 }
0x22a1   : > { %v18007_v3 = vpop.f32.mrb[102].mxu0  ;;  %18018 = vmatprep.subr.bf16.mxu1 %v8016_v22  ;;  %v7969_v28 = vadd.f32 %v14715_v1, %v7968_v2 }
0x22a2   : > { %v7980_v27 = vadd.f32 %v18007_v3, %v14715_v1  ;;  %v7971_v15 = vpop.f32.mrb[103].mxu0 }
0x22a3   : > { %v7972_v29 = vadd.f32 %v14715_v1, %v7971_v15 }
0x22a4   : > { %18019 = vmatpush3.bf16.msra.mxu1 %v8016_v22  ;;  %v8018_v24 = vpack.c.bf16 %v7980_v27, %v7977_v26 }
0x22a5   : > { %v8017_v25 = vpack.c.bf16 %v7972_v29, %v7969_v28 }
0x22a7   : > { %v18010_v20 = vpop.f32.mrb[104].mxu0  ;;  %18020 = vmatprep.subr.bf16.mxu1 %v8017_v25 }
0x22a8   : > { %v7984_v21 = vpop.f32.mrb[105].mxu0  ;;  %18021 = vmatpush3.bf16.msra.mxu1 %v8017_v25  ;;  %v7993_v45 = vadd.f32 %v18010_v20, %v14715_v1 }
0x22a9   : > { %v18011_v44 = vpop.f32.mrb[106].mxu0  ;;  %18022 = vmatprep.subr.bf16.mxu1 %v8018_v24  ;;  %v7985_v48 = vadd.f32 %v14715_v1, %v7984_v21 }
0x22aa   : > { %v7996_v46 = vadd.f32 %v18011_v44, %v14715_v1  ;;  %v7987_v47 = vpop.f32.mrb[107].mxu0 }
0x22ab   : > { %v7988_v49 = vadd.f32 %v14715_v1, %v7987_v47  ;;  %v19448_v47 = vld [vmem:[%s21693_s4] sm:$0xff]  }
0x22ac   : > { %18023 = vmatpush3.bf16.msra.mxu1 %v8018_v24  ;;  %v8020_v50 = vpack.c.bf16 %v7996_v46, %v7993_v45  ;;  %18112 = vmatprep.subr.bf16.mxu0 %v19448_v47 }
0x22ad   : > { %v8019_v51 = vpack.c.bf16 %v7988_v49, %v7985_v48  ;;  %v19449_v48 = vld [vmem:[%s21693_s4 + $0x8] sm:$0xff]   ;;  %v19450_v49 = vld [vmem:[%s21693_s4 + $0x10] sm:$0xff]  }
0x22af   : > { %v18014_v52 = vpop.f32.mrb[108].mxu0  ;;  %18024 = vmatprep.subr.bf16.mxu1 %v8019_v51 }
0x22b0   : > { %v8000_v53 = vpop.f32.mrb[109].mxu0  ;;  %18025 = vmatpush3.bf16.msra.mxu1 %v8019_v51  ;;  %v8009_v55 = vadd.f32 %v18014_v52, %v14715_v1  ;;  %v19452_v51 = vld [vmem:[%s21693_s4 + $0x20] sm:$0xff]   ;;  %v19453_v52 = vld [vmem:[%s21693_s4 + $0x28] sm:$0xff]  }
0x22b1   : > { %v18015_v54 = vpop.f32.mrb[110].mxu0  ;;  %18026 = vmatprep.subr.bf16.mxu1 %v8020_v50  ;;  %v8001_v58 = vadd.f32 %v14715_v1, %v8000_v53 }
0x22b2   : > { %v8012_v56 = vadd.f32 %v18015_v54, %v14715_v1  ;;  %v8003_v57 = vpop.f32.mrb[111].mxu0  ;;  %v14741_v54 = vld [vmem:[%s21692_s3 + $0x3] ss:$0 sm:$0xff] }
0x22b3   : > { %v8004_v59 = vadd.f32 %v14715_v1, %v8003_v57 }
0x22b4   : > { %18027 = vmatpush3.bf16.msra.mxu1 %v8020_v50  ;;  %v8022_v60 = vpack.c.bf16 %v8012_v56, %v8009_v55  ;;  %v19451_v50 = vld [vmem:[%s21693_s4 + $0x18] sm:$0xff]  }
0x22b5   : > { %v8021_v61 = vpack.c.bf16 %v8004_v59, %v8001_v58 }
0x22b7   : > { %18028 = vmatprep.subr.bf16.mxu1 %v8021_v61 }
0x22b8   : > { %18029 = vmatpush3.bf16.msra.mxu1 %v8021_v61 }
0x22b9   : > { %18030 = vmatprep.subr.bf16.mxu1 %v8022_v60 }
0x22bc   : > { %18031 = vmatpush3.bf16.msra.mxu1 %v8022_v60 }
0x22bf   : > { %18033 = vmatmul.mubr.bf16.vlgmr.msra.gmra.mrb[96].mxu1 %v20739_v13 }
0x22c0   : > { %18036 = vmatprep.mubr.bf16.mxu1 %v20742_v16 }
0x22c7   : > { %18037 = vmatmul.mubr.bf16.gmra.mrb[100].mxu1 %v20747_v30 }
0x22c8   : > { %18040 = vmatprep.mubr.bf16.mxu1 %v20750_v31 }
0x22cf   : > { %18041 = vmatmul.mubr.bf16.gmra.mrb[104].mxu1 %v20755_v18 }
0x22d0   : > { %18044 = vmatprep.mubr.bf16.mxu1 %v20758_v32 }
0x22d7   : > { %18045 = vmatmul.mubr.bf16.gmra.mrb[108].mxu1 %v20763_v33 }
0x22d8   : > { %18096 = vmatprep.mubr.bf16.mxu1 %v20735_v17 }
0x2392   : > { %v18034_v8 = vpop.f32.mrb[96].mxu1 }
0x2393   : > { %v8057_v9 = vpop.f32.mrb[97].mxu1  ;;  %v8122_v11 = vmax.f32 %v18034_v8, 0.0 }
0x2394   : > { %v18035_v10 = vpop.f32.mrb[98].mxu1  ;;  %v8120_v35 = vmax.f32 %v8057_v9, 0.0 }
0x2395   : > { %v8123_v12 = vmax.f32 %v18035_v10, 0.0  ;;  %v8060_v34 = vpop.f32.mrb[99].mxu1 }
0x2396   : > { %v8121_v17 = vmax.f32 %v8060_v34, 0.0 }
0x2397   : > { %v8137_v36 = vpack.c.bf16 %v8123_v12, %v8122_v11 }
0x2398   : > { %v8136_v37 = vpack.c.bf16 %v8121_v17, %v8120_v35 }
0x239a   : > { %v18038_v38 = vpop.f32.mrb[100].mxu1  ;;  %18064 = vmatprep.mubr.bf16.mxu0 %v8136_v37 }
0x239b   : > { %v8073_v40 = vpop.f32.mrb[101].mxu1  ;;  %18065 = vmatmul.mubr.bf16.vlgmr.msra.gmra.mrb[112].mxu0 %v8137_v36  ;;  %v8126_v0 = vmax.f32 %v18038_v38, 0.0 }
0x239c   : > { %v18039_v41 = vpop.f32.mrb[102].mxu1  ;;  %v8124_v42 = vmax.f32 %v8073_v40, 0.0  ;;  %18113 = vmatpush3.bf16.msra.mxu0 %v19448_v47 }
0x239d   : > { %v8127_v14 = vmax.f32 %v18039_v41, 0.0  ;;  %v8076_v1 = vpop.f32.mrb[103].mxu1  ;;  %18114 = vmatprep.subr.bf16.mxu0 %v19449_v48 }
0x239e   : > { %v8125_v43 = vmax.f32 %v8076_v1, 0.0 }
0x239f   : > { %v8139_v5 = vpack.c.bf16 %v8127_v14, %v8126_v0 }
0x23a0   : > { %v8138_v6 = vpack.c.bf16 %v8125_v43, %v8124_v42  ;;  %18115 = vmatpush3.bf16.msra.mxu0 %v19449_v48 }
0x23a1   : > { %18116 = vmatprep.subr.bf16.mxu0 %v19450_v49 }
0x23a2   : > { %v18042_v19 = vpop.f32.mrb[104].mxu1  ;;  %18068 = vmatprep.mubr.bf16.mxu0 %v8138_v6 }
0x23a3   : > { %v8089_v7 = vpop.f32.mrb[105].mxu1  ;;  %18069 = vmatmul.mubr.bf16.gmra.mrb[116].mxu0 %v8139_v5  ;;  %v8130_v22 = vmax.f32 %v18042_v19, 0.0 }
0x23a4   : > { %v18043_v4 = vpop.f32.mrb[106].mxu1  ;;  %v8128_v2 = vmax.f32 %v8089_v7, 0.0  ;;  %18117 = vmatpush3.bf16.msra.mxu0 %v19450_v49  ;;  %v19457_v49 = vld [vmem:[%s21691_s2 + $0x8] sm:$0xff]  }
0x23a5   : > { %v8131_v23 = vmax.f32 %v18043_v4, 0.0  ;;  %v8092_v39 = vpop.f32.mrb[107].mxu1  ;;  %18118 = vmatprep.subr.bf16.mxu0 %v19451_v50 }
0x23a6   : > { %v8129_v3 = vmax.f32 %v8092_v39, 0.0 }
0x23a7   : > { %v8141_v26 = vpack.c.bf16 %v8131_v23, %v8130_v22 }
0x23a8   : > { %v8140_v27 = vpack.c.bf16 %v8129_v3, %v8128_v2  ;;  %18119 = vmatpush3.bf16.msra.mxu0 %v19451_v50 }
0x23a9   : > { %18120 = vmatprep.subr.bf16.mxu0 %v19452_v51 }
0x23aa   : > { %v18046_v15 = vpop.f32.mrb[108].mxu1  ;;  %18072 = vmatprep.mubr.bf16.mxu0 %v8140_v27 }
0x23ab   : > { %v8105_v28 = vpop.f32.mrb[109].mxu1  ;;  %18073 = vmatmul.mubr.bf16.gmra.mrb[120].mxu0 %v8141_v26  ;;  %v8134_v24 = vmax.f32 %v18046_v15, 0.0  ;;  %v19454_v15 = vld [vmem:[%s21693_s4 + $0x30] sm:$0xff]  }
0x23ac   : > { %v18047_v29 = vpop.f32.mrb[110].mxu1  ;;  %v8132_v21 = vmax.f32 %v8105_v28, 0.0  ;;  %18121 = vmatpush3.bf16.msra.mxu0 %v19452_v51  ;;  %v19477_v28 = vld [vmem:[%s21695_s6 + $0x28] sm:$0xff]  }
0x23ad   : > { %v8135_v25 = vmax.f32 %v18047_v29, 0.0  ;;  %v8108_v20 = vpop.f32.mrb[111].mxu1  ;;  %18122 = vmatprep.subr.bf16.mxu0 %v19453_v52 }
0x23ae   : > { %v8133_v44 = vmax.f32 %v8108_v20, 0.0 }
0x23af   : > { %v8143_v45 = vpack.c.bf16 %v8135_v25, %v8134_v24 }
0x23b0   : > { %v8142_v46 = vpack.c.bf16 %v8133_v44, %v8132_v21  ;;  %18123 = vmatpush3.bf16.msra.mxu0 %v19453_v52 }
0x23b1   : > { %18124 = vmatprep.subr.bf16.mxu0 %v19454_v15 }
0x23b2   : > { %18076 = vmatprep.mubr.bf16.mxu0 %v8142_v46 }
0x23b3   : > { %18077 = vmatmul.mubr.bf16.gmra.mrb[124].mxu0 %v8143_v45 }
0x23b4   : > { %18125 = vmatpush3.bf16.msra.mxu0 %v19454_v15  ;;  %v19478_v15 = vld [vmem:[%s21695_s6 + $0x30] sm:$0xff]  }
0x246e   : > { %v18066_v53 = vpop.f32.mrb[112].mxu0 }
0x246f   : > { %v8249_v55 = vpop.f32.mrb[113].mxu0  ;;  %v8258_v57 = vadd.f32 %v18066_v53, %v14741_v54 }
0x2470   : > { %v18067_v56 = vpop.f32.mrb[114].mxu0  ;;  %v8250_v60 = vadd.f32 %v14741_v54, %v8249_v55 }
0x2471   : > { %v8261_v58 = vadd.f32 %v18067_v56, %v14741_v54  ;;  %v8252_v59 = vpop.f32.mrb[115].mxu0  ;;  %v19458_v56 = vld [vmem:[%s21691_s2 + $0x10] sm:$0xff]  }
0x2472   : > { %v8253_v61 = vadd.f32 %v14741_v54, %v8252_v59 }
0x2473   : > { %v8313_v62 = vpack.c.bf16 %v8261_v58, %v8258_v57 }
0x2474   : > { %v8312_v63 = vpack.c.bf16 %v8253_v61, %v8250_v60  ;;  %v19459_v61 = vld [vmem:[%s21691_s2 + $0x18] sm:$0xff]  }
0x2476   : > { %v18070_v8 = vpop.f32.mrb[116].mxu0  ;;  %18080 = vmatprep.subr.bf16.mxu1 %v8312_v63 }
0x2477   : > { %v8265_v9 = vpop.f32.mrb[117].mxu0  ;;  %18081 = vmatpush3.bf16.msra.mxu1 %v8312_v63  ;;  %v8274_v11 = vadd.f32 %v18070_v8, %v14741_v54 }
0x2478   : > { %v18071_v10 = vpop.f32.mrb[118].mxu0  ;;  %18082 = vmatprep.subr.bf16.mxu1 %v8313_v62  ;;  %v8266_v35 = vadd.f32 %v14741_v54, %v8265_v9 }
0x2479   : > { %v8277_v12 = vadd.f32 %v18071_v10, %v14741_v54  ;;  %v8268_v34 = vpop.f32.mrb[119].mxu0 }
0x247a   : > { %v8269_v17 = vadd.f32 %v14741_v54, %v8268_v34 }
0x247b   : > { %18083 = vmatpush3.bf16.msra.mxu1 %v8313_v62  ;;  %v8315_v36 = vpack.c.bf16 %v8277_v12, %v8274_v11  ;;  %v19460_v12 = vld [vmem:[%s21691_s2 + $0x20] sm:$0xff]  }
0x247c   : > { %v8314_v37 = vpack.c.bf16 %v8269_v17, %v8266_v35 }
0x247e   : > { %v18074_v38 = vpop.f32.mrb[120].mxu0  ;;  %18084 = vmatprep.subr.bf16.mxu1 %v8314_v37 }
0x247f   : > { %v8281_v40 = vpop.f32.mrb[121].mxu0  ;;  %18085 = vmatpush3.bf16.msra.mxu1 %v8314_v37  ;;  %v8290_v0 = vadd.f32 %v18074_v38, %v14741_v54  ;;  %v19461_v37 = vld [vmem:[%s21691_s2 + $0x28] sm:$0xff]  }
0x2480   : > { %v18075_v41 = vpop.f32.mrb[122].mxu0  ;;  %18086 = vmatprep.subr.bf16.mxu1 %v8315_v36  ;;  %v8282_v42 = vadd.f32 %v14741_v54, %v8281_v40 }
0x2481   : > { %v8293_v14 = vadd.f32 %v18075_v41, %v14741_v54  ;;  %v8284_v1 = vpop.f32.mrb[123].mxu0 }
0x2482   : > { %v8285_v43 = vadd.f32 %v14741_v54, %v8284_v1 }
0x2483   : > { %18087 = vmatpush3.bf16.msra.mxu1 %v8315_v36  ;;  %v8317_v5 = vpack.c.bf16 %v8293_v14, %v8290_v0 }
0x2484   : > { %v8316_v6 = vpack.c.bf16 %v8285_v43, %v8282_v42  ;;  %v19462_v42 = vld [vmem:[%s21691_s2 + $0x30] sm:$0xff]  }
0x2486   : > { %v18078_v19 = vpop.f32.mrb[124].mxu0  ;;  %18088 = vmatprep.subr.bf16.mxu1 %v8316_v6 }
0x2487   : > { %v8297_v7 = vpop.f32.mrb[125].mxu0  ;;  %18089 = vmatpush3.bf16.msra.mxu1 %v8316_v6  ;;  %v8306_v22 = vadd.f32 %v18078_v19, %v14741_v54 }
0x2488   : > { %v18079_v4 = vpop.f32.mrb[126].mxu0  ;;  %18090 = vmatprep.subr.bf16.mxu1 %v8317_v5  ;;  %v8298_v2 = vadd.f32 %v14741_v54, %v8297_v7  ;;  %v19464_v7 = vld [vmem:[%s19740_s17 + $0x140] sm:$0xff]  }
0x2489   : > { %v8309_v23 = vadd.f32 %v18079_v4, %v14741_v54  ;;  %v8300_v39 = vpop.f32.mrb[127].mxu0  ;;  %v19463_v4 = vld [vmem:[%s21691_s2 + $0x38] sm:$0xff]  }
0x248a   : > { %v8301_v3 = vadd.f32 %v14741_v54, %v8300_v39  ;;  %v19467_v39 = vld [vmem:[%s19740_s17 + $0x158] sm:$0xff]  }
0x248b   : > { %18091 = vmatpush3.bf16.msra.mxu1 %v8317_v5  ;;  %v8319_v26 = vpack.c.bf16 %v8309_v23, %v8306_v22  ;;  %v19465_v22 = vld [vmem:[%s19740_s17 + $0x148] sm:$0xff]   ;;  %v19466_v23 = vld [vmem:[%s19740_s17 + $0x150] sm:$0xff]  }
0x248c   : > { %v8318_v27 = vpack.c.bf16 %v8301_v3, %v8298_v2  ;;  %v19468_v2 = vld [vmem:[%s19740_s17 + $0x160] sm:$0xff]   ;;  %v19469_v3 = vld [vmem:[%s19740_s17 + $0x168] sm:$0xff]  }
0x248e   : > { %18092 = vmatprep.subr.bf16.mxu1 %v8318_v27 }
0x248f   : > { %18093 = vmatpush3.bf16.msra.mxu1 %v8318_v27  ;;  %v19471_v27 = vld [vmem:[%s19740_s17 + $0x178] sm:$0xff]  }
0x2490   : > { %18094 = vmatprep.subr.bf16.mxu1 %v8319_v26 }
0x2493   : > { %18095 = vmatpush3.bf16.msra.mxu1 %v8319_v26  ;;  %v19470_v26 = vld [vmem:[%s19740_s17 + $0x170] sm:$0xff]  }
0x2496   : > { %18097 = vmatmul.mubr.bf16.vlgmr.msra.gmra.mrb[112].mxu1 %v20739_v13  ;;  %v19455_v13 = vld [vmem:[%s21693_s4 + $0x38] sm:$0xff]  }
0x2497   : > { %18100 = vmatprep.mubr.bf16.mxu1 %v20742_v16  ;;  %18126 = vmatprep.subr.bf16.mxu0 %v19455_v13  ;;  %v19456_v16 = vld [vmem:[%s21691_s2] sm:$0xff]  }
0x2498   : > { %18127 = vmatpush3.bf16.msra.mxu0 %v19455_v13  ;;  %v19479_v13 = vld [vmem:[%s21695_s6 + $0x38] sm:$0xff]  }
0x2499   : > { %18176 = vmatprep.subr.bf16.mxu0 %v19456_v16 }
0x249e   : > { %18101 = vmatmul.mubr.bf16.gmra.mrb[116].mxu1 %v20747_v30  ;;  %v19472_v30 = vld [vmem:[%s21695_s6] sm:$0xff]  }
0x249f   : > { %18104 = vmatprep.mubr.bf16.mxu1 %v20750_v31  ;;  %v19473_v31 = vld [vmem:[%s21695_s6 + $0x8] sm:$0xff]   ;;  %18144 = vmatprep.subr.bf16.mxu1 %v19472_v30 }
0x24a0   : > { %18145 = vmatpush3.bf16.msra.mxu1 %v19472_v30 }
0x24a1   : > { %18146 = vmatprep.subr.bf16.mxu1 %v19473_v31 }
0x24a4   : > { %18147 = vmatpush3.bf16.msra.mxu1 %v19473_v31 }
0x24a6   : > { %18105 = vmatmul.mubr.bf16.gmra.mrb[120].mxu1 %v20755_v18  ;;  %v19474_v18 = vld [vmem:[%s21695_s6 + $0x10] sm:$0xff]  }
0x24a7   : > { %18108 = vmatprep.mubr.bf16.mxu1 %v20758_v32  ;;  %18148 = vmatprep.subr.bf16.mxu1 %v19474_v18  ;;  %v19475_v32 = vld [vmem:[%s21695_s6 + $0x18] sm:$0xff]  }
0x24a8   : > { %18149 = vmatpush3.bf16.msra.mxu1 %v19474_v18 }
0x24a9   : > { %18150 = vmatprep.subr.bf16.mxu1 %v19475_v32 }
0x24ac   : > { %18151 = vmatpush3.bf16.msra.mxu1 %v19475_v32 }
0x24ae   : > { %18109 = vmatmul.mubr.bf16.gmra.mrb[124].mxu1 %v20763_v33  ;;  %v19476_v33 = vld [vmem:[%s21695_s6 + $0x20] sm:$0xff]  }
0x24af   : > { %18152 = vmatprep.subr.bf16.mxu1 %v19476_v33 }
0x24b0   : > { %18153 = vmatpush3.bf16.msra.mxu1 %v19476_v33 }
0x24b1   : > { %18154 = vmatprep.subr.bf16.mxu1 %v19477_v28 }
0x24b4   : > { %18155 = vmatpush3.bf16.msra.mxu1 %v19477_v28 }
0x24b5   : > { %18156 = vmatprep.subr.bf16.mxu1 %v19478_v15 }
0x24b8   : > { %18157 = vmatpush3.bf16.msra.mxu1 %v19478_v15 }
0x24b9   : > { %18158 = vmatprep.subr.bf16.mxu1 %v19479_v13 }
0x24bc   : > { %18159 = vmatpush3.bf16.msra.mxu1 %v19479_v13 }
0x2569   : > { %v18098_v29 = vpop.f32.mrb[112].mxu1 }
0x256a   : > { %v8354_v24 = vpop.f32.mrb[113].mxu1  ;;  %v8419_v20 = vmax.f32 %v18098_v29, 0.0 }
0x256b   : > { %v18099_v25 = vpop.f32.mrb[114].mxu1  ;;  %v8417_v45 = vmax.f32 %v8354_v24, 0.0 }
0x256c   : > { %v8420_v21 = vmax.f32 %v18099_v25, 0.0  ;;  %v8357_v44 = vpop.f32.mrb[115].mxu1 }
0x256d   : > { %v8418_v46 = vmax.f32 %v8357_v44, 0.0 }
0x256e   : > { %v8434_v47 = vpack.c.bf16 %v8420_v21, %v8419_v20 }
0x256f   : > { %v8433_v48 = vpack.c.bf16 %v8418_v46, %v8417_v45 }
0x2571   : > { %v18102_v50 = vpop.f32.mrb[116].mxu1  ;;  %18128 = vmatprep.mubr.bf16.mxu0 %v8433_v48 }
0x2572   : > { %v8370_v51 = vpop.f32.mrb[117].mxu1  ;;  %18129 = vmatmul.mubr.bf16.vlgmr.msra.gmra.mrb[128].mxu0 %v8434_v47  ;;  %v8423_v53 = vmax.f32 %v18102_v50, 0.0 }
0x2573   : > { %v18103_v52 = vpop.f32.mrb[118].mxu1  ;;  %18177 = vmatpush3.bf16.msra.mxu0 %v19456_v16  ;;  %v8421_v57 = vmax.f32 %v8370_v51, 0.0  ;;  %v14750_v16 = vld [vmem:[%s21694_s5] ss:$0 sm:$0xff] }
0x2574   : > { %v8424_v54 = vmax.f32 %v18103_v52, 0.0  ;;  %v8373_v55 = vpop.f32.mrb[119].mxu1  ;;  %18178 = vmatprep.subr.bf16.mxu0 %v19457_v49 }
0x2575   : > { %v8422_v58 = vmax.f32 %v8373_v55, 0.0 }
0x2576   : > { %v8436_v59 = vpack.c.bf16 %v8424_v54, %v8423_v53 }
0x2577   : > { %18179 = vmatpush3.bf16.msra.mxu0 %v19457_v49  ;;  %v8435_v60 = vpack.c.bf16 %v8422_v58, %v8421_v57 }
0x2578   : > { %18180 = vmatprep.subr.bf16.mxu0 %v19458_v56 }
0x2579   : > { %v18106_v62 = vpop.f32.mrb[120].mxu1  ;;  %18132 = vmatprep.mubr.bf16.mxu0 %v8435_v60 }
0x257a   : > { %v8386_v63 = vpop.f32.mrb[121].mxu1  ;;  %18133 = vmatmul.mubr.bf16.gmra.mrb[132].mxu0 %v8436_v59  ;;  %v8427_v9 = vmax.f32 %v18106_v62, 0.0 }
0x257b   : > { %v18107_v8 = vpop.f32.mrb[122].mxu1  ;;  %18181 = vmatpush3.bf16.msra.mxu0 %v19458_v56  ;;  %v8425_v34 = vmax.f32 %v8386_v63, 0.0 }
0x257c   : > { %v8428_v10 = vmax.f32 %v18107_v8, 0.0  ;;  %v8389_v11 = vpop.f32.mrb[123].mxu1  ;;  %18182 = vmatprep.subr.bf16.mxu0 %v19459_v61 }
0x257d   : > { %v8426_v35 = vmax.f32 %v8389_v11, 0.0 }
0x257e   : > { %v8438_v17 = vpack.c.bf16 %v8428_v10, %v8427_v9 }
0x257f   : > { %18183 = vmatpush3.bf16.msra.mxu0 %v19459_v61  ;;  %v8437_v36 = vpack.c.bf16 %v8426_v35, %v8425_v34 }
0x2580   : > { %18184 = vmatprep.subr.bf16.mxu0 %v19460_v12 }
0x2581   : > { %v18110_v38 = vpop.f32.mrb[124].mxu1  ;;  %18136 = vmatprep.mubr.bf16.mxu0 %v8437_v36 }
0x2582   : > { %v8402_v40 = vpop.f32.mrb[125].mxu1  ;;  %18137 = vmatmul.mubr.bf16.gmra.mrb[136].mxu0 %v8438_v17  ;;  %v8431_v0 = vmax.f32 %v18110_v38, 0.0 }
0x2583   : > { %v18111_v41 = vpop.f32.mrb[126].mxu1  ;;  %18185 = vmatpush3.bf16.msra.mxu0 %v19460_v12  ;;  %v8429_v43 = vmax.f32 %v8402_v40, 0.0 }
0x2584   : > { %v8432_v14 = vmax.f32 %v18111_v41, 0.0  ;;  %v8405_v1 = vpop.f32.mrb[127].mxu1  ;;  %18186 = vmatprep.subr.bf16.mxu0 %v19461_v37 }
0x2585   : > { %v8430_v5 = vmax.f32 %v8405_v1, 0.0 }
0x2586   : > { %v8440_v6 = vpack.c.bf16 %v8432_v14, %v8431_v0 }
0x2587   : > { %18187 = vmatpush3.bf16.msra.mxu0 %v19461_v37  ;;  %v8439_v19 = vpack.c.bf16 %v8430_v5, %v8429_v43 }
0x2588   : > { %18188 = vmatprep.subr.bf16.mxu0 %v19462_v42 }
0x2589   : > { %18140 = vmatprep.mubr.bf16.mxu0 %v8439_v19 }
0x258a   : > { %18141 = vmatmul.mubr.bf16.gmra.mrb[140].mxu0 %v8440_v6 }
0x258b   : > { %18189 = vmatpush3.bf16.msra.mxu0 %v19462_v42  ;;  %18192 = vmatprep.mubr.bf16.mxu0 %v19464_v7 }
0x258c   : > { %18190 = vmatprep.subr.bf16.mxu0 %v19463_v4 }
0x258f   : > { %18191 = vmatpush3.bf16.msra.mxu0 %v19463_v4 }
0x2592   : > { %18193 = vmatmul.mubr.bf16.vlgmr.msra.gmra.mrb[144].mxu0 %v19465_v22 }
0x2593   : > { %18196 = vmatprep.mubr.bf16.mxu0 %v19466_v23 }
0x259a   : > { %18197 = vmatmul.mubr.bf16.gmra.mrb[148].mxu0 %v19467_v39 }
0x259b   : > { %18200 = vmatprep.mubr.bf16.mxu0 %v19468_v2  ;;  %v14816_v2 = vld [vmem:[%s21692_s3] ss:$0 sm:$0xff] }
0x25a2   : > { %18201 = vmatmul.mubr.bf16.gmra.mrb[152].mxu0 %v19469_v3  ;;  %v20977_v3 = vld [vmem:[%s19755_s26 + $0x140] sm:$0xff]  }
0x25a3   : > { %18204 = vmatprep.mubr.bf16.mxu0 %v19470_v26 }
0x25aa   : > { %18205 = vmatmul.mubr.bf16.gmra.mrb[156].mxu0 %v19471_v27 }
0x2645   : > { %v18130_v30 = vpop.f32.mrb[128].mxu0 }
0x2646   : > { %v8555_v31 = vadd.f32 %v18130_v30, %v14750_v16  ;;  %v8546_v18 = vpop.f32.mrb[129].mxu0 }
0x2647   : > { %v8547_v32 = vadd.f32 %v14750_v16, %v8546_v18  ;;  %v18131_v33 = vpop.f32.mrb[130].mxu0 }
0x2648   : > { %v8558_v28 = vadd.f32 %v18131_v33, %v14750_v16  ;;  %v8549_v29 = vpop.f32.mrb[131].mxu0  ;;  %v8611_v25 = vmax.f32 %v8555_v31, 0.0 }
0x2649   : > { %v8550_v24 = vadd.f32 %v14750_v16, %v8549_v29  ;;  %v8609_v21 = vmax.f32 %v8547_v32, 0.0 }
0x264a   : > { %v8612_v20 = vmax.f32 %v8558_v28, 0.0 }
0x264b   : > { %v8610_v44 = vmax.f32 %v8550_v24, 0.0 }
0x264c   : > { %v8626_v45 = vpack.c.bf16 %v8612_v20, %v8611_v25 }
0x264d   : > { %v8625_v46 = vpack.c.bf16 %v8610_v44, %v8609_v21  ;;  %v18134_v47 = vpop.f32.mrb[132].mxu0 }
0x264e   : > { %v8571_v48 = vadd.f32 %v18134_v47, %v14750_v16  ;;  %v8562_v49 = vpop.f32.mrb[133].mxu0 }
0x264f   : > { %v8563_v50 = vadd.f32 %v14750_v16, %v8562_v49  ;;  %v18135_v51 = vpop.f32.mrb[134].mxu0  ;;  %18160 = vmatprep.mubr.bf16.mxu1 %v8625_v46 }
0x2650   : > { %v8574_v52 = vadd.f32 %v18135_v51, %v14750_v16  ;;  %v8565_v53 = vpop.f32.mrb[135].mxu0  ;;  %18161 = vmatmul.mubr.bf16.vlgmr.msra.gmra.mrb[128].mxu1 %v8626_v45  ;;  %v8615_v55 = vmax.f32 %v8571_v48, 0.0 }
0x2651   : > { %v8566_v54 = vadd.f32 %v14750_v16, %v8565_v53  ;;  %v8613_v57 = vmax.f32 %v8563_v50, 0.0 }
0x2652   : > { %v8616_v56 = vmax.f32 %v8574_v52, 0.0 }
0x2653   : > { %v8614_v58 = vmax.f32 %v8566_v54, 0.0 }
0x2654   : > { %v8628_v59 = vpack.c.bf16 %v8616_v56, %v8615_v55 }
0x2655   : > { %v8627_v60 = vpack.c.bf16 %v8614_v58, %v8613_v57  ;;  %v18138_v61 = vpop.f32.mrb[136].mxu0 }
0x2656   : > { %v8587_v62 = vadd.f32 %v18138_v61, %v14750_v16  ;;  %v8578_v63 = vpop.f32.mrb[137].mxu0 }
0x2657   : > { %v8579_v8 = vadd.f32 %v14750_v16, %v8578_v63  ;;  %v18139_v9 = vpop.f32.mrb[138].mxu0  ;;  %18164 = vmatprep.mubr.bf16.mxu1 %v8627_v60 }
0x2658   : > { %v8590_v10 = vadd.f32 %v18139_v9, %v14750_v16  ;;  %v8581_v11 = vpop.f32.mrb[139].mxu0  ;;  %18165 = vmatmul.mubr.bf16.gmra.mrb[132].mxu1 %v8628_v59  ;;  %v8619_v34 = vmax.f32 %v8587_v62, 0.0 }
0x2659   : > { %v8582_v12 = vadd.f32 %v14750_v16, %v8581_v11  ;;  %v8617_v17 = vmax.f32 %v8579_v8, 0.0  ;;  %v20981_v11 = vld [vmem:[%s19755_s26 + $0x148] sm:$0xff]  }
0x265a   : > { %v8620_v35 = vmax.f32 %v8590_v10, 0.0 }
0x265b   : > { %v8618_v36 = vmax.f32 %v8582_v12, 0.0  ;;  %v20984_v12 = vld [vmem:[%s19755_s26 + $0x150] sm:$0xff]  }
0x265c   : > { %v8630_v37 = vpack.c.bf16 %v8620_v35, %v8619_v34  ;;  %v20989_v34 = vld [vmem:[%s19755_s26 + $0x158] sm:$0xff]   ;;  %v20992_v35 = vld [vmem:[%s19755_s26 + $0x160] sm:$0xff]  }
0x265d   : > { %v8629_v38 = vpack.c.bf16 %v8618_v36, %v8617_v17  ;;  %v18142_v40 = vpop.f32.mrb[140].mxu0  ;;  %v20997_v17 = vld [vmem:[%s19755_s26 + $0x168] sm:$0xff]   ;;  %v21000_v36 = vld [vmem:[%s19755_s26 + $0x170] sm:$0xff]  }
0x265e   : > { %v8603_v41 = vadd.f32 %v18142_v40, %v14750_v16  ;;  %v8594_v0 = vpop.f32.mrb[141].mxu0  ;;  %v19489_v40 = vld [vmem:[%s21691_s2 + $0x48] sm:$0xff]  }
0x265f   : > { %v8595_v14 = vadd.f32 %v14750_v16, %v8594_v0  ;;  %v18143_v1 = vpop.f32.mrb[142].mxu0  ;;  %18168 = vmatprep.mubr.bf16.mxu1 %v8629_v38  ;;  %v19488_v38 = vld [vmem:[%s21691_s2 + $0x40] sm:$0xff]   ;;  %v19491_v0 = vld [vmem:[%s21691_s2 + $0x58] sm:$0xff]  }
0x2660   : > { %v8606_v42 = vadd.f32 %v18143_v1, %v14750_v16  ;;  %v8597_v43 = vpop.f32.mrb[143].mxu0  ;;  %18169 = vmatmul.mubr.bf16.gmra.mrb[136].mxu1 %v8630_v37  ;;  %v8623_v6 = vmax.f32 %v8603_v41, 0.0  ;;  %v21005_v37 = vld [vmem:[%s19755_s26 + $0x178] sm:$0xff]   ;;  %18240 = vmatprep.subr.bf16.mxu0 %v19488_v38  ;;  %v19490_v41 = vld [vmem:[%s21691_s2 + $0x50] sm:$0xff]   ;;  %v19493_v1 = vld [vmem:[%s21691_s2 + $0x68] sm:$0xff]  }
0x2661   : > { %v8598_v5 = vadd.f32 %v14750_v16, %v8597_v43  ;;  %v8621_v7 = vmax.f32 %v8595_v14, 0.0  ;;  %18241 = vmatpush3.bf16.msra.mxu0 %v19488_v38  ;;  %v19492_v14 = vld [vmem:[%s21691_s2 + $0x60] sm:$0xff]   ;;  %v19495_v43 = vld [vmem:[%s21691_s2 + $0x78] sm:$0xff]  }
0x2662   : > { %v8624_v19 = vmax.f32 %v8606_v42, 0.0  ;;  %18242 = vmatprep.subr.bf16.mxu0 %v19489_v40  ;;  %v19494_v42 = vld [vmem:[%s21691_s2 + $0x70] sm:$0xff]  }
0x2663   : > { %v8622_v4 = vmax.f32 %v8598_v5, 0.0  ;;  %v14759_v5 = vld [vmem:[%s21696_s7] ss:$0 sm:$0xff] }
0x2664   : > { %v8632_v22 = vpack.c.bf16 %v8624_v19, %v8623_v6 }
0x2665   : > { %v8631_v23 = vpack.c.bf16 %v8622_v4, %v8621_v7  ;;  %v18194_v39 = vpop.f32.mrb[144].mxu0  ;;  %18243 = vmatpush3.bf16.msra.mxu0 %v19489_v40 }
0x2666   : > { %v9005_v26 = vpop.f32.mrb[145].mxu0  ;;  %v9014_v15 = vadd.f32 %v18194_v39, %v14816_v2  ;;  %18244 = vmatprep.subr.bf16.mxu0 %v19490_v41 }
0x2667   : > { %18172 = vmatprep.mubr.bf16.mxu1 %v8631_v23  ;;  %v18195_v27 = vpop.f32.mrb[146].mxu0  ;;  %v9006_v30 = vadd.f32 %v14816_v2, %v9005_v26 }
0x2668   : > { %v9017_v13 = vadd.f32 %v18195_v27, %v14816_v2  ;;  %18173 = vmatmul.mubr.bf16.gmra.mrb[140].mxu1 %v8632_v22  ;;  %v9008_v16 = vpop.f32.mrb[147].mxu0 }
0x2669   : > { %v9009_v31 = vadd.f32 %v14816_v2, %v9008_v16  ;;  %18224 = vmatprep.mubr.bf16.mxu1 %v20977_v3  ;;  %18245 = vmatpush3.bf16.msra.mxu0 %v19490_v41 }
0x266a   : > { %v9069_v18 = vpack.c.bf16 %v9017_v13, %v9014_v15  ;;  %18246 = vmatprep.subr.bf16.mxu0 %v19491_v0 }
0x266b   : > { %v9068_v32 = vpack.c.bf16 %v9009_v31, %v9006_v30 }
0x266d   : > { %v18198_v33 = vpop.f32.mrb[148].mxu0  ;;  %18208 = vmatprep.subr.bf16.mxu1 %v9068_v32  ;;  %18247 = vmatpush3.bf16.msra.mxu0 %v19491_v0 }
0x266e   : > { %v9021_v28 = vpop.f32.mrb[149].mxu0  ;;  %18209 = vmatpush3.bf16.msra.mxu1 %v9068_v32  ;;  %v9030_v24 = vadd.f32 %v18198_v33, %v14816_v2  ;;  %18248 = vmatprep.subr.bf16.mxu0 %v19492_v14 }
0x266f   : > { %v18199_v29 = vpop.f32.mrb[150].mxu0  ;;  %18210 = vmatprep.subr.bf16.mxu1 %v9069_v18  ;;  %v9022_v21 = vadd.f32 %v14816_v2, %v9021_v28 }
0x2670   : > { %v9033_v25 = vadd.f32 %v18199_v29, %v14816_v2  ;;  %v9024_v20 = vpop.f32.mrb[151].mxu0 }
0x2671   : > { %v9025_v44 = vadd.f32 %v14816_v2, %v9024_v20  ;;  %18249 = vmatpush3.bf16.msra.mxu0 %v19492_v14 }
0x2672   : > { %v9071_v45 = vpack.c.bf16 %v9033_v25, %v9030_v24  ;;  %18211 = vmatpush3.bf16.msra.mxu1 %v9069_v18  ;;  %18250 = vmatprep.subr.bf16.mxu0 %v19493_v1 }
0x2673   : > { %v9070_v46 = vpack.c.bf16 %v9025_v44, %v9022_v21 }
0x2675   : > { %v18202_v47 = vpop.f32.mrb[152].mxu0  ;;  %18212 = vmatprep.subr.bf16.mxu1 %v9070_v46  ;;  %18251 = vmatpush3.bf16.msra.mxu0 %v19493_v1 }
0x2676   : > { %v9037_v48 = vpop.f32.mrb[153].mxu0  ;;  %18213 = vmatpush3.bf16.msra.mxu1 %v9070_v46  ;;  %v9046_v50 = vadd.f32 %v18202_v47, %v14816_v2  ;;  %18252 = vmatprep.subr.bf16.mxu0 %v19494_v42 }
0x2677   : > { %v18203_v49 = vpop.f32.mrb[154].mxu0  ;;  %18214 = vmatprep.subr.bf16.mxu1 %v9071_v45  ;;  %v9038_v53 = vadd.f32 %v14816_v2, %v9037_v48 }
0x2678   : > { %v9049_v51 = vadd.f32 %v18203_v49, %v14816_v2  ;;  %v9040_v52 = vpop.f32.mrb[155].mxu0 }
0x2679   : > { %v9041_v54 = vadd.f32 %v14816_v2, %v9040_v52  ;;  %18253 = vmatpush3.bf16.msra.mxu0 %v19494_v42 }
0x267a   : > { %v9073_v55 = vpack.c.bf16 %v9049_v51, %v9046_v50  ;;  %18215 = vmatpush3.bf16.msra.mxu1 %v9071_v45  ;;  %18254 = vmatprep.subr.bf16.mxu0 %v19495_v43 }
0x267b   : > { %v9072_v56 = vpack.c.bf16 %v9041_v54, %v9038_v53 }
0x267d   : > { %v18206_v57 = vpop.f32.mrb[156].mxu0  ;;  %18216 = vmatprep.subr.bf16.mxu1 %v9072_v56  ;;  %18255 = vmatpush3.bf16.msra.mxu0 %v19495_v43 }
0x267e   : > { %v9053_v58 = vpop.f32.mrb[157].mxu0  ;;  %18217 = vmatpush3.bf16.msra.mxu1 %v9072_v56  ;;  %v9062_v60 = vadd.f32 %v18206_v57, %v14816_v2 }
0x267f   : > { %v18207_v59 = vpop.f32.mrb[158].mxu0  ;;  %18218 = vmatprep.subr.bf16.mxu1 %v9073_v55  ;;  %v9054_v63 = vadd.f32 %v14816_v2, %v9053_v58 }
0x2680   : > { %v9065_v61 = vadd.f32 %v18207_v59, %v14816_v2  ;;  %v9056_v62 = vpop.f32.mrb[159].mxu0 }
0x2681   : > { %v9057_v8 = vadd.f32 %v14816_v2, %v9056_v62 }
0x2682   : > { %v9075_v9 = vpack.c.bf16 %v9065_v61, %v9062_v60  ;;  %18219 = vmatpush3.bf16.msra.mxu1 %v9073_v55 }
0x2683   : > { %v9074_v10 = vpack.c.bf16 %v9057_v8, %v9054_v63 }
0x2685   : > { %18220 = vmatprep.subr.bf16.mxu1 %v9074_v10 }
0x2686   : > { %18221 = vmatpush3.bf16.msra.mxu1 %v9074_v10 }
0x2687   : > { %18222 = vmatprep.subr.bf16.mxu1 %v9075_v9 }
0x268a   : > { %18223 = vmatpush3.bf16.msra.mxu1 %v9075_v9 }
0x268d   : > { %18225 = vmatmul.mubr.bf16.vlgmr.msra.gmra.mrb[144].mxu1 %v20981_v11 }
0x268e   : > { %18228 = vmatprep.mubr.bf16.mxu1 %v20984_v12 }
0x2695   : > { %18229 = vmatmul.mubr.bf16.gmra.mrb[148].mxu1 %v20989_v34 }
0x2696   : > { %18232 = vmatprep.mubr.bf16.mxu1 %v20992_v35 }
0x269d   : > { %18233 = vmatmul.mubr.bf16.gmra.mrb[152].mxu1 %v20997_v17 }
0x269e   : > { %18236 = vmatprep.mubr.bf16.mxu1 %v21000_v36 }
0x26a5   : > { %18237 = vmatmul.mubr.bf16.gmra.mrb[156].mxu1 %v21005_v37 }
0x26a6   : > { %18288 = vmatprep.mubr.bf16.mxu1 %v20977_v3 }
0x2723   : > { %v18162_v6 = vpop.f32.mrb[128].mxu1 }
0x2724   : > { %v8747_v19 = vadd.f32 %v18162_v6, %v14759_v5  ;;  %v8738_v7 = vpop.f32.mrb[129].mxu1 }
0x2725   : > { %v8739_v4 = vadd.f32 %v14759_v5, %v8738_v7  ;;  %v18163_v22 = vpop.f32.mrb[130].mxu1 }
0x2726   : > { %14770 = vst [vmem:[%s20066_s14 + $0x210] sm:$0xff] %v8747_v19  ;;  %v8750_v23 = vadd.f32 %v18163_v22, %v14759_v5  ;;  %v8741_v39 = vpop.f32.mrb[131].mxu1 }
0x2727   : > { %14768 = vst [vmem:[%s20066_s14 + $0x200] sm:$0xff] %v8739_v4  ;;  %v8742_v2 = vadd.f32 %v14759_v5, %v8741_v39 }
0x2728   : > { %14771 = vst [vmem:[%s20066_s14 + $0x218] sm:$0xff] %v8750_v23 }
0x2729   : > { %14769 = vst [vmem:[%s20066_s14 + $0x208] sm:$0xff] %v8742_v2 }
0x272b   : > { %v18166_v26 = vpop.f32.mrb[132].mxu1 }
0x272c   : > { %v8763_v27 = vadd.f32 %v18166_v26, %v14759_v5  ;;  %v8754_v15 = vpop.f32.mrb[133].mxu1 }
0x272d   : > { %v8755_v13 = vadd.f32 %v14759_v5, %v8754_v15  ;;  %v18167_v16 = vpop.f32.mrb[134].mxu1 }
0x272e   : > { %14774 = vst [vmem:[%s20066_s14 + $0x230] sm:$0xff] %v8763_v27  ;;  %v8766_v30 = vadd.f32 %v18167_v16, %v14759_v5  ;;  %v8757_v31 = vpop.f32.mrb[135].mxu1 }
0x272f   : > { %14772 = vst [vmem:[%s20066_s14 + $0x220] sm:$0xff] %v8755_v13  ;;  %v8758_v18 = vadd.f32 %v14759_v5, %v8757_v31 }
0x2730   : > { %14775 = vst [vmem:[%s20066_s14 + $0x238] sm:$0xff] %v8766_v30 }
0x2731   : > { %14773 = vst [vmem:[%s20066_s14 + $0x228] sm:$0xff] %v8758_v18 }
0x2733   : > { %v18170_v32 = vpop.f32.mrb[136].mxu1 }
0x2734   : > { %v8779_v33 = vadd.f32 %v18170_v32, %v14759_v5  ;;  %v8770_v28 = vpop.f32.mrb[137].mxu1  ;;  %v19496_v32 = vld [vmem:[%s21691_s2 + $0x80] sm:$0xff]  }
0x2735   : > { %v8771_v29 = vadd.f32 %v14759_v5, %v8770_v28  ;;  %v18171_v24 = vpop.f32.mrb[138].mxu1  ;;  %18304 = vmatprep.subr.bf16.mxu0 %v19496_v32  ;;  %v19498_v28 = vld [vmem:[%s21691_s2 + $0x90] sm:$0xff]  }
0x2736   : > { %14778 = vst [vmem:[%s20066_s14 + $0x250] sm:$0xff] %v8779_v33  ;;  %v8782_v25 = vadd.f32 %v18171_v24, %v14759_v5  ;;  %v8773_v20 = vpop.f32.mrb[139].mxu1  ;;  %v19497_v33 = vld [vmem:[%s21691_s2 + $0x88] sm:$0xff]   ;;  %v19500_v24 = vld [vmem:[%s21691_s2 + $0xa0] sm:$0xff]  }
0x2737   : > { %14776 = vst [vmem:[%s20066_s14 + $0x240] sm:$0xff] %v8771_v29  ;;  %v8774_v21 = vadd.f32 %v14759_v5, %v8773_v20  ;;  %v19499_v29 = vld [vmem:[%s21691_s2 + $0x98] sm:$0xff]  }
0x2738   : > { %14779 = vst [vmem:[%s20066_s14 + $0x258] sm:$0xff] %v8782_v25  ;;  %v19501_v25 = vld [vmem:[%s21691_s2 + $0xa8] sm:$0xff]  }
0x2739   : > { %14777 = vst [vmem:[%s20066_s14 + $0x248] sm:$0xff] %v8774_v21  ;;  %v14858_v21 = vld [vmem:[%s21692_s3 + $0x1] ss:$0 sm:$0xff] }
0x273b   : > { %v18174_v44 = vpop.f32.mrb[140].mxu1 }
0x273c   : > { %v8795_v45 = vadd.f32 %v18174_v44, %v14759_v5  ;;  %v8786_v46 = vpop.f32.mrb[141].mxu1 }
0x273d   : > { %v8787_v47 = vadd.f32 %v14759_v5, %v8786_v46  ;;  %v18175_v48 = vpop.f32.mrb[142].mxu1 }
0x273e   : > { %14782 = vst [vmem:[%s20066_s14 + $0x270] sm:$0xff] %v8795_v45  ;;  %v8798_v49 = vadd.f32 %v18175_v48, %v14759_v5  ;;  %v8789_v50 = vpop.f32.mrb[143].mxu1 }
0x273f   : > { %14780 = vst [vmem:[%s20066_s14 + $0x260] sm:$0xff] %v8787_v47  ;;  %v8790_v51 = vadd.f32 %v14759_v5, %v8789_v50 }
0x2740   : > { %14783 = vst [vmem:[%s20066_s14 + $0x278] sm:$0xff] %v8798_v49 }
0x2741   : > { %14781 = vst [vmem:[%s20066_s14 + $0x268] sm:$0xff] %v8790_v51 }
0x2760   : > { %v18226_v52 = vpop.f32.mrb[144].mxu1 }
0x2761   : > { %v9158_v53 = vpop.f32.mrb[145].mxu1  ;;  %v9223_v55 = vmax.f32 %v18226_v52, 0.0 }
0x2762   : > { %v18227_v54 = vpop.f32.mrb[146].mxu1  ;;  %v9221_v58 = vmax.f32 %v9158_v53, 0.0 }
0x2763   : > { %v9224_v56 = vmax.f32 %v18227_v54, 0.0  ;;  %v9161_v57 = vpop.f32.mrb[147].mxu1 }
0x2764   : > { %v9222_v59 = vmax.f32 %v9161_v57, 0.0 }
0x2765   : > { %v9238_v60 = vpack.c.bf16 %v9224_v56, %v9223_v55 }
0x2766   : > { %v9237_v61 = vpack.c.bf16 %v9222_v59, %v9221_v58 }
0x2768   : > { %v18230_v62 = vpop.f32.mrb[148].mxu1  ;;  %18256 = vmatprep.mubr.bf16.mxu0 %v9237_v61 }
0x2769   : > { %v9174_v63 = vpop.f32.mrb[149].mxu1  ;;  %18257 = vmatmul.mubr.bf16.vlgmr.msra.gmra.mrb[160].mxu0 %v9238_v60  ;;  %v9227_v9 = vmax.f32 %v18230_v62, 0.0 }
0x276a   : > { %v18231_v8 = vpop.f32.mrb[150].mxu1  ;;  %v9225_v40 = vmax.f32 %v9174_v63, 0.0  ;;  %18305 = vmatpush3.bf16.msra.mxu0 %v19496_v32 }
0x276b   : > { %v9228_v10 = vmax.f32 %v18231_v8, 0.0  ;;  %v9177_v38 = vpop.f32.mrb[151].mxu1  ;;  %18306 = vmatprep.subr.bf16.mxu0 %v19497_v33 }
0x276c   : > { %v9226_v41 = vmax.f32 %v9177_v38, 0.0 }
0x276d   : > { %v9240_v0 = vpack.c.bf16 %v9228_v10, %v9227_v9 }
0x276e   : > { %v9239_v14 = vpack.c.bf16 %v9226_v41, %v9225_v40  ;;  %18307 = vmatpush3.bf16.msra.mxu0 %v19497_v33 }
0x276f   : > { %18308 = vmatprep.subr.bf16.mxu0 %v19498_v28 }
0x2770   : > { %v18234_v1 = vpop.f32.mrb[152].mxu1  ;;  %18260 = vmatprep.mubr.bf16.mxu0 %v9239_v14 }
0x2771   : > { %v9190_v42 = vpop.f32.mrb[153].mxu1  ;;  %18261 = vmatmul.mubr.bf16.gmra.mrb[164].mxu0 %v9240_v0  ;;  %v9231_v5 = vmax.f32 %v18234_v1, 0.0 }
0x2772   : > { %v18235_v43 = vpop.f32.mrb[154].mxu1  ;;  %v9229_v7 = vmax.f32 %v9190_v42, 0.0  ;;  %18309 = vmatpush3.bf16.msra.mxu0 %v19498_v28 }
0x2773   : > { %v9232_v6 = vmax.f32 %v18235_v43, 0.0  ;;  %v9193_v19 = vpop.f32.mrb[155].mxu1  ;;  %18310 = vmatprep.subr.bf16.mxu0 %v19499_v29 }
0x2774   : > { %v9230_v4 = vmax.f32 %v9193_v19, 0.0 }
0x2775   : > { %v9242_v22 = vpack.c.bf16 %v9232_v6, %v9231_v5 }
0x2776   : > { %v9241_v23 = vpack.c.bf16 %v9230_v4, %v9229_v7  ;;  %18311 = vmatpush3.bf16.msra.mxu0 %v19499_v29 }
0x2777   : > { %18312 = vmatprep.subr.bf16.mxu0 %v19500_v24 }
0x2778   : > { %v18238_v39 = vpop.f32.mrb[156].mxu1  ;;  %18264 = vmatprep.mubr.bf16.mxu0 %v9241_v23 }
0x2779   : > { %v9206_v2 = vpop.f32.mrb[157].mxu1  ;;  %18265 = vmatmul.mubr.bf16.gmra.mrb[168].mxu0 %v9242_v22  ;;  %v9235_v27 = vmax.f32 %v18238_v39, 0.0 }
0x277a   : > { %v18239_v26 = vpop.f32.mrb[158].mxu1  ;;  %v9233_v16 = vmax.f32 %v9206_v2, 0.0  ;;  %18313 = vmatpush3.bf16.msra.mxu0 %v19500_v24  ;;  %v19502_v2 = vld [vmem:[%s21691_s2 + $0xb0] sm:$0xff]  }
0x277b   : > { %v9236_v15 = vmax.f32 %v18239_v26, 0.0  ;;  %v9209_v13 = vpop.f32.mrb[159].mxu1  ;;  %18314 = vmatprep.subr.bf16.mxu0 %v19501_v25  ;;  %v19503_v26 = vld [vmem:[%s21691_s2 + $0xb8] sm:$0xff]  }
0x277c   : > { %v9234_v30 = vmax.f32 %v9209_v13, 0.0 }
0x277d   : > { %v9244_v31 = vpack.c.bf16 %v9236_v15, %v9235_v27 }
0x277e   : > { %v9243_v18 = vpack.c.bf16 %v9234_v30, %v9233_v16  ;;  %18315 = vmatpush3.bf16.msra.mxu0 %v19501_v25 }
0x277f   : > { %18316 = vmatprep.subr.bf16.mxu0 %v19502_v2 }
0x2780   : > { %18268 = vmatprep.mubr.bf16.mxu0 %v9243_v18 }
0x2781   : > { %18269 = vmatmul.mubr.bf16.gmra.mrb[172].mxu0 %v9244_v31 }
0x2782   : > { %18317 = vmatpush3.bf16.msra.mxu0 %v19502_v2 }
0x2783   : > { %18318 = vmatprep.subr.bf16.mxu0 %v19503_v26 }
0x2786   : > { %18319 = vmatpush3.bf16.msra.mxu0 %v19503_v26 }
0x283c   : > { %v18258_v20 = vpop.f32.mrb[160].mxu0 }
0x283d   : > { %v9350_v44 = vpop.f32.mrb[161].mxu0  ;;  %v9359_v46 = vadd.f32 %v18258_v20, %v14858_v21 }
0x283e   : > { %v18259_v45 = vpop.f32.mrb[162].mxu0  ;;  %v9351_v49 = vadd.f32 %v14858_v21, %v9350_v44 }
0x283f   : > { %v9362_v47 = vadd.f32 %v18259_v45, %v14858_v21  ;;  %v9353_v48 = vpop.f32.mrb[163].mxu0 }
0x2840   : > { %v9354_v50 = vadd.f32 %v14858_v21, %v9353_v48 }
0x2841   : > { %v9414_v51 = vpack.c.bf16 %v9362_v47, %v9359_v46 }
0x2842   : > { %v9413_v52 = vpack.c.bf16 %v9354_v50, %v9351_v49 }
0x2844   : > { %v18262_v53 = vpop.f32.mrb[164].mxu0  ;;  %18272 = vmatprep.subr.bf16.mxu1 %v9413_v52 }
0x2845   : > { %v9366_v54 = vpop.f32.mrb[165].mxu0  ;;  %18273 = vmatpush3.bf16.msra.mxu1 %v9413_v52  ;;  %v9375_v56 = vadd.f32 %v18262_v53, %v14858_v21 }
0x2846   : > { %v18263_v55 = vpop.f32.mrb[166].mxu0  ;;  %18274 = vmatprep.subr.bf16.mxu1 %v9414_v51  ;;  %v9367_v59 = vadd.f32 %v14858_v21, %v9366_v54 }
0x2847   : > { %v9378_v57 = vadd.f32 %v18263_v55, %v14858_v21  ;;  %v9369_v58 = vpop.f32.mrb[167].mxu0 }
0x2848   : > { %v9370_v60 = vadd.f32 %v14858_v21, %v9369_v58 }
0x2849   : > { %v9416_v61 = vpack.c.bf16 %v9378_v57, %v9375_v56  ;;  %18275 = vmatpush3.bf16.msra.mxu1 %v9414_v51 }
0x284a   : > { %v9415_v62 = vpack.c.bf16 %v9370_v60, %v9367_v59 }
0x284c   : > { %v18266_v63 = vpop.f32.mrb[168].mxu0  ;;  %18276 = vmatprep.subr.bf16.mxu1 %v9415_v62 }
0x284d   : > { %v9382_v8 = vpop.f32.mrb[169].mxu0  ;;  %18277 = vmatpush3.bf16.msra.mxu1 %v9415_v62  ;;  %v9391_v10 = vadd.f32 %v18266_v63, %v14858_v21 }
0x284e   : > { %v18267_v9 = vpop.f32.mrb[170].mxu0  ;;  %18278 = vmatprep.subr.bf16.mxu1 %v9416_v61  ;;  %v9383_v41 = vadd.f32 %v14858_v21, %v9382_v8 }
0x284f   : > { %v9394_v38 = vadd.f32 %v18267_v9, %v14858_v21  ;;  %v9385_v40 = vpop.f32.mrb[171].mxu0 }
0x2850   : > { %v9386_v0 = vadd.f32 %v14858_v21, %v9385_v40 }
0x2851   : > { %v9418_v14 = vpack.c.bf16 %v9394_v38, %v9391_v10  ;;  %18279 = vmatpush3.bf16.msra.mxu1 %v9416_v61 }
0x2852   : > { %v9417_v1 = vpack.c.bf16 %v9386_v0, %v9383_v41  ;;  %v19504_v41 = vld [vmem:[%s21691_s2 + $0xc0] sm:$0xff]   ;;  %v19505_v0 = vld [vmem:[%s21691_s2 + $0xc8] sm:$0xff]  }
0x2853   : > { %18368 = vmatprep.subr.bf16.mxu0 %v19504_v41 }
0x2854   : > { %v18270_v42 = vpop.f32.mrb[172].mxu0  ;;  %18280 = vmatprep.subr.bf16.mxu1 %v9417_v1 }
0x2855   : > { %v9398_v43 = vpop.f32.mrb[173].mxu0  ;;  %18281 = vmatpush3.bf16.msra.mxu1 %v9417_v1  ;;  %v9407_v6 = vadd.f32 %v18270_v42, %v14858_v21  ;;  %v19507_v1 = vld [vmem:[%s21691_s2 + $0xd8] sm:$0xff]   ;;  %v19508_v42 = vld [vmem:[%s21691_s2 + $0xe0] sm:$0xff]  }
0x2856   : > { %v18271_v5 = vpop.f32.mrb[174].mxu0  ;;  %18282 = vmatprep.subr.bf16.mxu1 %v9418_v14  ;;  %v9399_v4 = vadd.f32 %v14858_v21, %v9398_v43  ;;  %v19509_v43 = vld [vmem:[%s21691_s2 + $0xe8] sm:$0xff]  }
0x2857   : > { %v9410_v19 = vadd.f32 %v18271_v5, %v14858_v21  ;;  %v9401_v7 = vpop.f32.mrb[175].mxu0 }
0x2858   : > { %v9402_v22 = vadd.f32 %v14858_v21, %v9401_v7 }
0x2859   : > { %v9420_v23 = vpack.c.bf16 %v9410_v19, %v9407_v6  ;;  %18283 = vmatpush3.bf16.msra.mxu1 %v9418_v14  ;;  %v19506_v14 = vld [vmem:[%s21691_s2 + $0xd0] sm:$0xff]   ;;  %v14884_v6 = vld [vmem:[%s21692_s3 + $0x2] ss:$0 sm:$0xff] }
0x285a   : > { %v9419_v39 = vpack.c.bf16 %v9402_v22, %v9399_v4 }
0x285c   : > { %18284 = vmatprep.subr.bf16.mxu1 %v9419_v39 }
0x285d   : > { %18285 = vmatpush3.bf16.msra.mxu1 %v9419_v39 }
0x285e   : > { %18286 = vmatprep.subr.bf16.mxu1 %v9420_v23 }
0x2861   : > { %18287 = vmatpush3.bf16.msra.mxu1 %v9420_v23 }
0x2864   : > { %18289 = vmatmul.mubr.bf16.vlgmr.msra.gmra.mrb[160].mxu1 %v20981_v11 }
0x2865   : > { %18292 = vmatprep.mubr.bf16.mxu1 %v20984_v12 }
0x286c   : > { %18293 = vmatmul.mubr.bf16.gmra.mrb[164].mxu1 %v20989_v34 }
0x286d   : > { %18296 = vmatprep.mubr.bf16.mxu1 %v20992_v35 }
0x2874   : > { %18297 = vmatmul.mubr.bf16.gmra.mrb[168].mxu1 %v20997_v17 }
0x2875   : > { %18300 = vmatprep.mubr.bf16.mxu1 %v21000_v36 }
0x287c   : > { %18301 = vmatmul.mubr.bf16.gmra.mrb[172].mxu1 %v21005_v37 }
0x287d   : > { %18352 = vmatprep.mubr.bf16.mxu1 %v20977_v3 }
0x2937   : > { %v18290_v27 = vpop.f32.mrb[160].mxu1 }
0x2938   : > { %v9455_v15 = vpop.f32.mrb[161].mxu1  ;;  %v9520_v16 = vmax.f32 %v18290_v27, 0.0 }
0x2939   : > { %v18291_v13 = vpop.f32.mrb[162].mxu1  ;;  %v9518_v18 = vmax.f32 %v9455_v15, 0.0 }
0x293a   : > { %v9521_v30 = vmax.f32 %v18291_v13, 0.0  ;;  %v9458_v31 = vpop.f32.mrb[163].mxu1 }
0x293b   : > { %v9519_v32 = vmax.f32 %v9458_v31, 0.0 }
0x293c   : > { %v9535_v33 = vpack.c.bf16 %v9521_v30, %v9520_v16 }
0x293d   : > { %v9534_v28 = vpack.c.bf16 %v9519_v32, %v9518_v18 }
0x293f   : > { %v18294_v29 = vpop.f32.mrb[164].mxu1  ;;  %18320 = vmatprep.mubr.bf16.mxu0 %v9534_v28 }
0x2940   : > { %v9471_v24 = vpop.f32.mrb[165].mxu1  ;;  %18321 = vmatmul.mubr.bf16.vlgmr.msra.gmra.mrb[176].mxu0 %v9535_v33  ;;  %v9524_v20 = vmax.f32 %v18294_v29, 0.0 }
0x2941   : > { %v18295_v25 = vpop.f32.mrb[166].mxu1  ;;  %v9522_v45 = vmax.f32 %v9471_v24, 0.0  ;;  %18369 = vmatpush3.bf16.msra.mxu0 %v19504_v41 }
0x2942   : > { %v9525_v21 = vmax.f32 %v18295_v25, 0.0  ;;  %v9474_v44 = vpop.f32.mrb[167].mxu1  ;;  %18370 = vmatprep.subr.bf16.mxu0 %v19505_v0 }
0x2943   : > { %v9523_v46 = vmax.f32 %v9474_v44, 0.0 }
0x2944   : > { %v9537_v47 = vpack.c.bf16 %v9525_v21, %v9524_v20 }
0x2945   : > { %v9536_v48 = vpack.c.bf16 %v9523_v46, %v9522_v45  ;;  %18371 = vmatpush3.bf16.msra.mxu0 %v19505_v0 }
0x2946   : > { %18372 = vmatprep.subr.bf16.mxu0 %v19506_v14 }
0x2947   : > { %v18298_v49 = vpop.f32.mrb[168].mxu1  ;;  %18324 = vmatprep.mubr.bf16.mxu0 %v9536_v48 }
0x2948   : > { %v9487_v50 = vpop.f32.mrb[169].mxu1  ;;  %18325 = vmatmul.mubr.bf16.gmra.mrb[180].mxu0 %v9537_v47  ;;  %v9528_v52 = vmax.f32 %v18298_v49, 0.0 }
0x2949   : > { %v18299_v51 = vpop.f32.mrb[170].mxu1  ;;  %v9526_v55 = vmax.f32 %v9487_v50, 0.0  ;;  %18373 = vmatpush3.bf16.msra.mxu0 %v19506_v14 }
0x294a   : > { %v9529_v53 = vmax.f32 %v18299_v51, 0.0  ;;  %v9490_v54 = vpop.f32.mrb[171].mxu1  ;;  %18374 = vmatprep.subr.bf16.mxu0 %v19507_v1 }
0x294b   : > { %v9527_v56 = vmax.f32 %v9490_v54, 0.0 }
0x294c   : > { %v9539_v57 = vpack.c.bf16 %v9529_v53, %v9528_v52 }
0x294d   : > { %v9538_v58 = vpack.c.bf16 %v9527_v56, %v9526_v55  ;;  %18375 = vmatpush3.bf16.msra.mxu0 %v19507_v1 }
0x294e   : > { %18376 = vmatprep.subr.bf16.mxu0 %v19508_v42 }
0x294f   : > { %v18302_v59 = vpop.f32.mrb[172].mxu1  ;;  %18328 = vmatprep.mubr.bf16.mxu0 %v9538_v58 }
0x2950   : > { %v9503_v60 = vpop.f32.mrb[173].mxu1  ;;  %18329 = vmatmul.mubr.bf16.gmra.mrb[184].mxu0 %v9539_v57  ;;  %v9532_v62 = vmax.f32 %v18302_v59, 0.0 }
0x2951   : > { %v18303_v61 = vpop.f32.mrb[174].mxu1  ;;  %v9530_v9 = vmax.f32 %v9503_v60, 0.0  ;;  %18377 = vmatpush3.bf16.msra.mxu0 %v19508_v42  ;;  %v19510_v60 = vld [vmem:[%s21691_s2 + $0xf0] sm:$0xff]  }
0x2952   : > { %v9533_v63 = vmax.f32 %v18303_v61, 0.0  ;;  %v9506_v8 = vpop.f32.mrb[175].mxu1  ;;  %18378 = vmatprep.subr.bf16.mxu0 %v19509_v43  ;;  %v19511_v61 = vld [vmem:[%s21691_s2 + $0xf8] sm:$0xff]  }
0x2953   : > { %v9531_v10 = vmax.f32 %v9506_v8, 0.0 }
0x2954   : > { %v9541_v38 = vpack.c.bf16 %v9533_v63, %v9532_v62 }
0x2955   : > { %v9540_v40 = vpack.c.bf16 %v9531_v10, %v9530_v9  ;;  %18379 = vmatpush3.bf16.msra.mxu0 %v19509_v43 }
0x2956   : > { %18380 = vmatprep.subr.bf16.mxu0 %v19510_v60 }
0x2957   : > { %18332 = vmatprep.mubr.bf16.mxu0 %v9540_v40 }
0x2958   : > { %18333 = vmatmul.mubr.bf16.gmra.mrb[188].mxu0 %v9541_v38 }
0x2959   : > { %18381 = vmatpush3.bf16.msra.mxu0 %v19510_v60 }
0x295a   : > { %18382 = vmatprep.subr.bf16.mxu0 %v19511_v61 }
0x295d   : > { %18383 = vmatpush3.bf16.msra.mxu0 %v19511_v61 }
0x2a13   : > { %v18322_v5 = vpop.f32.mrb[176].mxu0 }
0x2a14   : > { %v9647_v19 = vpop.f32.mrb[177].mxu0  ;;  %v9656_v4 = vadd.f32 %v18322_v5, %v14884_v6 }
0x2a15   : > { %v18323_v7 = vpop.f32.mrb[178].mxu0  ;;  %v9648_v39 = vadd.f32 %v14884_v6, %v9647_v19 }
0x2a16   : > { %v9659_v22 = vadd.f32 %v18323_v7, %v14884_v6  ;;  %v9650_v23 = vpop.f32.mrb[179].mxu0 }
0x2a17   : > { %v9651_v2 = vadd.f32 %v14884_v6, %v9650_v23 }
0x2a18   : > { %v9711_v26 = vpack.c.bf16 %v9659_v22, %v9656_v4 }
0x2a19   : > { %v9710_v27 = vpack.c.bf16 %v9651_v2, %v9648_v39 }
0x2a1b   : > { %v18326_v15 = vpop.f32.mrb[180].mxu0  ;;  %18336 = vmatprep.subr.bf16.mxu1 %v9710_v27 }
0x2a1c   : > { %v9663_v13 = vpop.f32.mrb[181].mxu0  ;;  %18337 = vmatpush3.bf16.msra.mxu1 %v9710_v27  ;;  %v9672_v30 = vadd.f32 %v18326_v15, %v14884_v6 }
0x2a1d   : > { %v18327_v16 = vpop.f32.mrb[182].mxu0  ;;  %18338 = vmatprep.subr.bf16.mxu1 %v9711_v26  ;;  %v9664_v32 = vadd.f32 %v14884_v6, %v9663_v13 }
0x2a1e   : > { %v9675_v31 = vadd.f32 %v18327_v16, %v14884_v6  ;;  %v9666_v18 = vpop.f32.mrb[183].mxu0 }
0x2a1f   : > { %v9667_v33 = vadd.f32 %v14884_v6, %v9666_v18 }
0x2a20   : > { %v9713_v28 = vpack.c.bf16 %v9675_v31, %v9672_v30  ;;  %18339 = vmatpush3.bf16.msra.mxu1 %v9711_v26 }
0x2a21   : > { %v9712_v29 = vpack.c.bf16 %v9667_v33, %v9664_v32 }
0x2a23   : > { %v18330_v24 = vpop.f32.mrb[184].mxu0  ;;  %18340 = vmatprep.subr.bf16.mxu1 %v9712_v29 }
0x2a24   : > { %v9679_v25 = vpop.f32.mrb[185].mxu0  ;;  %18341 = vmatpush3.bf16.msra.mxu1 %v9712_v29  ;;  %v9688_v21 = vadd.f32 %v18330_v24, %v14884_v6 }
0x2a25   : > { %v18331_v20 = vpop.f32.mrb[186].mxu0  ;;  %18342 = vmatprep.subr.bf16.mxu1 %v9713_v28  ;;  %v9680_v46 = vadd.f32 %v14884_v6, %v9679_v25 }
0x2a26   : > { %v9691_v44 = vadd.f32 %v18331_v20, %v14884_v6  ;;  %v9682_v45 = vpop.f32.mrb[187].mxu0 }
0x2a27   : > { %v9683_v47 = vadd.f32 %v14884_v6, %v9682_v45  ;;  %v19512_v45 = vld [vmem:[%s21693_s4] sm:$0xff]  }
0x2a28   : > { %v9715_v48 = vpack.c.bf16 %v9691_v44, %v9688_v21  ;;  %18343 = vmatpush3.bf16.msra.mxu1 %v9713_v28  ;;  %18432 = vmatprep.subr.bf16.mxu0 %v19512_v45 }
0x2a29   : > { %v9714_v49 = vpack.c.bf16 %v9683_v47, %v9680_v46  ;;  %v19513_v46 = vld [vmem:[%s21693_s4 + $0x8] sm:$0xff]   ;;  %v19514_v47 = vld [vmem:[%s21693_s4 + $0x10] sm:$0xff]  }
0x2a2b   : > { %v18334_v50 = vpop.f32.mrb[188].mxu0  ;;  %18344 = vmatprep.subr.bf16.mxu1 %v9714_v49 }
0x2a2c   : > { %v9695_v51 = vpop.f32.mrb[189].mxu0  ;;  %18345 = vmatpush3.bf16.msra.mxu1 %v9714_v49  ;;  %v9704_v53 = vadd.f32 %v18334_v50, %v14884_v6  ;;  %v19516_v49 = vld [vmem:[%s21693_s4 + $0x20] sm:$0xff]   ;;  %v19517_v50 = vld [vmem:[%s21693_s4 + $0x28] sm:$0xff]  }
0x2a2d   : > { %v18335_v52 = vpop.f32.mrb[190].mxu0  ;;  %18346 = vmatprep.subr.bf16.mxu1 %v9715_v48  ;;  %v9696_v56 = vadd.f32 %v14884_v6, %v9695_v51 }
0x2a2e   : > { %v9707_v54 = vadd.f32 %v18335_v52, %v14884_v6  ;;  %v9698_v55 = vpop.f32.mrb[191].mxu0  ;;  %v14910_v52 = vld [vmem:[%s21692_s3 + $0x3] ss:$0 sm:$0xff] }
0x2a2f   : > { %v9699_v57 = vadd.f32 %v14884_v6, %v9698_v55 }
0x2a30   : > { %v9717_v58 = vpack.c.bf16 %v9707_v54, %v9704_v53  ;;  %18347 = vmatpush3.bf16.msra.mxu1 %v9715_v48  ;;  %v19515_v48 = vld [vmem:[%s21693_s4 + $0x18] sm:$0xff]  }
0x2a31   : > { %v9716_v59 = vpack.c.bf16 %v9699_v57, %v9696_v56 }
0x2a33   : > { %18348 = vmatprep.subr.bf16.mxu1 %v9716_v59 }
0x2a34   : > { %18349 = vmatpush3.bf16.msra.mxu1 %v9716_v59 }
0x2a35   : > { %18350 = vmatprep.subr.bf16.mxu1 %v9717_v58 }
0x2a38   : > { %18351 = vmatpush3.bf16.msra.mxu1 %v9717_v58 }
0x2a3b   : > { %18353 = vmatmul.mubr.bf16.vlgmr.msra.gmra.mrb[176].mxu1 %v20981_v11 }
0x2a3c   : > { %18356 = vmatprep.mubr.bf16.mxu1 %v20984_v12 }
0x2a43   : > { %18357 = vmatmul.mubr.bf16.gmra.mrb[180].mxu1 %v20989_v34 }
0x2a44   : > { %18360 = vmatprep.mubr.bf16.mxu1 %v20992_v35 }
0x2a4b   : > { %18361 = vmatmul.mubr.bf16.gmra.mrb[184].mxu1 %v20997_v17 }
0x2a4c   : > { %18364 = vmatprep.mubr.bf16.mxu1 %v21000_v36 }
0x2a53   : > { %18365 = vmatmul.mubr.bf16.gmra.mrb[188].mxu1 %v21005_v37 }
0x2a54   : > { %18416 = vmatprep.mubr.bf16.mxu1 %v20977_v3 }
0x2b0e   : > { %v18354_v62 = vpop.f32.mrb[176].mxu1 }
0x2b0f   : > { %v9752_v63 = vpop.f32.mrb[177].mxu1  ;;  %v9817_v9 = vmax.f32 %v18354_v62, 0.0 }
0x2b10   : > { %v18355_v8 = vpop.f32.mrb[178].mxu1  ;;  %v9815_v40 = vmax.f32 %v9752_v63, 0.0 }
0x2b11   : > { %v9818_v10 = vmax.f32 %v18355_v8, 0.0  ;;  %v9755_v38 = vpop.f32.mrb[179].mxu1 }
0x2b12   : > { %v9816_v3 = vmax.f32 %v9755_v38, 0.0 }
0x2b13   : > { %v9832_v41 = vpack.c.bf16 %v9818_v10, %v9817_v9 }
0x2b14   : > { %v9831_v0 = vpack.c.bf16 %v9816_v3, %v9815_v40 }
0x2b16   : > { %v18358_v14 = vpop.f32.mrb[180].mxu1  ;;  %18384 = vmatprep.mubr.bf16.mxu0 %v9831_v0 }
0x2b17   : > { %v9768_v1 = vpop.f32.mrb[181].mxu1  ;;  %18385 = vmatmul.mubr.bf16.vlgmr.msra.gmra.mrb[192].mxu0 %v9832_v41  ;;  %v9821_v43 = vmax.f32 %v18358_v14, 0.0 }
0x2b18   : > { %v18359_v42 = vpop.f32.mrb[182].mxu1  ;;  %v9819_v19 = vmax.f32 %v9768_v1, 0.0  ;;  %18433 = vmatpush3.bf16.msra.mxu0 %v19512_v45 }
0x2b19   : > { %v9822_v5 = vmax.f32 %v18359_v42, 0.0  ;;  %v9771_v6 = vpop.f32.mrb[183].mxu1  ;;  %18434 = vmatprep.subr.bf16.mxu0 %v19513_v46 }
0x2b1a   : > { %v9820_v7 = vmax.f32 %v9771_v6, 0.0 }
0x2b1b   : > { %v9834_v4 = vpack.c.bf16 %v9822_v5, %v9821_v43 }
0x2b1c   : > { %v9833_v22 = vpack.c.bf16 %v9820_v7, %v9819_v19  ;;  %18435 = vmatpush3.bf16.msra.mxu0 %v19513_v46 }
0x2b1d   : > { %18436 = vmatprep.subr.bf16.mxu0 %v19514_v47 }
0x2b1e   : > { %v18362_v23 = vpop.f32.mrb[184].mxu1  ;;  %18388 = vmatprep.mubr.bf16.mxu0 %v9833_v22 }
0x2b1f   : > { %v9784_v39 = vpop.f32.mrb[185].mxu1  ;;  %18389 = vmatmul.mubr.bf16.gmra.mrb[196].mxu0 %v9834_v4  ;;  %v9825_v26 = vmax.f32 %v18362_v23, 0.0 }
0x2b20   : > { %v18363_v2 = vpop.f32.mrb[186].mxu1  ;;  %v9823_v13 = vmax.f32 %v9784_v39, 0.0  ;;  %18437 = vmatpush3.bf16.msra.mxu0 %v19514_v47  ;;  %v19521_v47 = vld [vmem:[%s21691_s2 + $0x8] sm:$0xff]  }
0x2b21   : > { %v9826_v27 = vmax.f32 %v18363_v2, 0.0  ;;  %v9787_v15 = vpop.f32.mrb[187].mxu1  ;;  %18438 = vmatprep.subr.bf16.mxu0 %v19515_v48 }
0x2b22   : > { %v9824_v16 = vmax.f32 %v9787_v15, 0.0 }
0x2b23   : > { %v9836_v30 = vpack.c.bf16 %v9826_v27, %v9825_v26 }
0x2b24   : > { %v9835_v31 = vpack.c.bf16 %v9824_v16, %v9823_v13  ;;  %18439 = vmatpush3.bf16.msra.mxu0 %v19515_v48 }
0x2b25   : > { %18440 = vmatprep.subr.bf16.mxu0 %v19516_v49 }
0x2b26   : > { %v18366_v18 = vpop.f32.mrb[188].mxu1  ;;  %18392 = vmatprep.mubr.bf16.mxu0 %v9835_v31 }
0x2b27   : > { %v9800_v32 = vpop.f32.mrb[189].mxu1  ;;  %18393 = vmatmul.mubr.bf16.gmra.mrb[200].mxu0 %v9836_v30  ;;  %v9829_v28 = vmax.f32 %v18366_v18, 0.0  ;;  %v19518_v18 = vld [vmem:[%s21693_s4 + $0x30] sm:$0xff]  }
0x2b28   : > { %v18367_v33 = vpop.f32.mrb[190].mxu1  ;;  %v9827_v25 = vmax.f32 %v9800_v32, 0.0  ;;  %18441 = vmatpush3.bf16.msra.mxu0 %v19516_v49  ;;  %v19541_v32 = vld [vmem:[%s21695_s6 + $0x28] sm:$0xff]  }
0x2b29   : > { %v9830_v29 = vmax.f32 %v18367_v33, 0.0  ;;  %v9803_v24 = vpop.f32.mrb[191].mxu1  ;;  %18442 = vmatprep.subr.bf16.mxu0 %v19517_v50 }
0x2b2a   : > { %v9828_v20 = vmax.f32 %v9803_v24, 0.0 }
0x2b2b   : > { %v9838_v21 = vpack.c.bf16 %v9830_v29, %v9829_v28 }
0x2b2c   : > { %v9837_v44 = vpack.c.bf16 %v9828_v20, %v9827_v25  ;;  %18443 = vmatpush3.bf16.msra.mxu0 %v19517_v50 }
0x2b2d   : > { %18444 = vmatprep.subr.bf16.mxu0 %v19518_v18 }
0x2b2e   : > { %18396 = vmatprep.mubr.bf16.mxu0 %v9837_v44 }
0x2b2f   : > { %18397 = vmatmul.mubr.bf16.gmra.mrb[204].mxu0 %v9838_v21 }
0x2b30   : > { %18445 = vmatpush3.bf16.msra.mxu0 %v19518_v18  ;;  %v19542_v18 = vld [vmem:[%s21695_s6 + $0x30] sm:$0xff]  }
0x2bea   : > { %v18386_v51 = vpop.f32.mrb[192].mxu0 }
0x2beb   : > { %v9944_v53 = vpop.f32.mrb[193].mxu0  ;;  %v9953_v55 = vadd.f32 %v18386_v51, %v14910_v52 }
0x2bec   : > { %v18387_v54 = vpop.f32.mrb[194].mxu0  ;;  %v9945_v58 = vadd.f32 %v14910_v52, %v9944_v53 }
0x2bed   : > { %v9956_v56 = vadd.f32 %v18387_v54, %v14910_v52  ;;  %v9947_v57 = vpop.f32.mrb[195].mxu0  ;;  %v19522_v54 = vld [vmem:[%s21691_s2 + $0x10] sm:$0xff]  }
0x2bee   : > { %v9948_v59 = vadd.f32 %v14910_v52, %v9947_v57 }
0x2bef   : > { %v10008_v60 = vpack.c.bf16 %v9956_v56, %v9953_v55 }
0x2bf0   : > { %v10007_v61 = vpack.c.bf16 %v9948_v59, %v9945_v58  ;;  %v19523_v59 = vld [vmem:[%s21691_s2 + $0x18] sm:$0xff]  }
0x2bf2   : > { %v18390_v62 = vpop.f32.mrb[196].mxu0  ;;  %18400 = vmatprep.subr.bf16.mxu1 %v10007_v61 }
0x2bf3   : > { %v9960_v63 = vpop.f32.mrb[197].mxu0  ;;  %18401 = vmatpush3.bf16.msra.mxu1 %v10007_v61  ;;  %v9969_v9 = vadd.f32 %v18390_v62, %v14910_v52 }
0x2bf4   : > { %v18391_v8 = vpop.f32.mrb[198].mxu0  ;;  %18402 = vmatprep.subr.bf16.mxu1 %v10008_v60  ;;  %v9961_v40 = vadd.f32 %v14910_v52, %v9960_v63 }
0x2bf5   : > { %v9972_v10 = vadd.f32 %v18391_v8, %v14910_v52  ;;  %v9963_v38 = vpop.f32.mrb[199].mxu0 }
0x2bf6   : > { %v9964_v3 = vadd.f32 %v14910_v52, %v9963_v38 }
0x2bf7   : > { %v10010_v41 = vpack.c.bf16 %v9972_v10, %v9969_v9  ;;  %18403 = vmatpush3.bf16.msra.mxu1 %v10008_v60  ;;  %v19524_v10 = vld [vmem:[%s21691_s2 + $0x20] sm:$0xff]  }
0x2bf8   : > { %v10009_v0 = vpack.c.bf16 %v9964_v3, %v9961_v40 }
0x2bfa   : > { %v18394_v14 = vpop.f32.mrb[200].mxu0  ;;  %18404 = vmatprep.subr.bf16.mxu1 %v10009_v0 }
0x2bfb   : > { %v9976_v1 = vpop.f32.mrb[201].mxu0  ;;  %18405 = vmatpush3.bf16.msra.mxu1 %v10009_v0  ;;  %v9985_v43 = vadd.f32 %v18394_v14, %v14910_v52  ;;  %v19525_v0 = vld [vmem:[%s21691_s2 + $0x28] sm:$0xff]  }
0x2bfc   : > { %v18395_v42 = vpop.f32.mrb[202].mxu0  ;;  %18406 = vmatprep.subr.bf16.mxu1 %v10010_v41  ;;  %v9977_v19 = vadd.f32 %v14910_v52, %v9976_v1 }
0x2bfd   : > { %v9988_v5 = vadd.f32 %v18395_v42, %v14910_v52  ;;  %v9979_v6 = vpop.f32.mrb[203].mxu0 }
0x2bfe   : > { %v9980_v7 = vadd.f32 %v14910_v52, %v9979_v6 }
0x2bff   : > { %v10012_v4 = vpack.c.bf16 %v9988_v5, %v9985_v43  ;;  %18407 = vmatpush3.bf16.msra.mxu1 %v10010_v41 }
0x2c00   : > { %v10011_v22 = vpack.c.bf16 %v9980_v7, %v9977_v19  ;;  %v19526_v19 = vld [vmem:[%s21691_s2 + $0x30] sm:$0xff]  }
0x2c02   : > { %v18398_v23 = vpop.f32.mrb[204].mxu0  ;;  %18408 = vmatprep.subr.bf16.mxu1 %v10011_v22 }
0x2c03   : > { %v9992_v39 = vpop.f32.mrb[205].mxu0  ;;  %18409 = vmatpush3.bf16.msra.mxu1 %v10011_v22  ;;  %v10001_v26 = vadd.f32 %v18398_v23, %v14910_v52 }
0x2c04   : > { %v18399_v2 = vpop.f32.mrb[206].mxu0  ;;  %18410 = vmatprep.subr.bf16.mxu1 %v10012_v4  ;;  %v9993_v13 = vadd.f32 %v14910_v52, %v9992_v39  ;;  %v19528_v39 = vld [vmem:[%s19740_s17 + $0x180] sm:$0xff]  }
0x2c05   : > { %v10004_v27 = vadd.f32 %v18399_v2, %v14910_v52  ;;  %v9995_v15 = vpop.f32.mrb[207].mxu0  ;;  %v19527_v2 = vld [vmem:[%s21691_s2 + $0x38] sm:$0xff]  }
0x2c06   : > { %v9996_v16 = vadd.f32 %v14910_v52, %v9995_v15  ;;  %v19531_v15 = vld [vmem:[%s19740_s17 + $0x198] sm:$0xff]  }
0x2c07   : > { %v10014_v30 = vpack.c.bf16 %v10004_v27, %v10001_v26  ;;  %18411 = vmatpush3.bf16.msra.mxu1 %v10012_v4  ;;  %v19529_v26 = vld [vmem:[%s19740_s17 + $0x188] sm:$0xff]   ;;  %v19530_v27 = vld [vmem:[%s19740_s17 + $0x190] sm:$0xff]  }
0x2c08   : > { %v10013_v31 = vpack.c.bf16 %v9996_v16, %v9993_v13  ;;  %v19532_v13 = vld [vmem:[%s19740_s17 + $0x1a0] sm:$0xff]   ;;  %v19533_v16 = vld [vmem:[%s19740_s17 + $0x1a8] sm:$0xff]  }
0x2c0a   : > { %18412 = vmatprep.subr.bf16.mxu1 %v10013_v31 }
0x2c0b   : > { %18413 = vmatpush3.bf16.msra.mxu1 %v10013_v31  ;;  %v19535_v31 = vld [vmem:[%s19740_s17 + $0x1b8] sm:$0xff]  }
0x2c0c   : > { %18414 = vmatprep.subr.bf16.mxu1 %v10014_v30 }
0x2c0f   : > { %18415 = vmatpush3.bf16.msra.mxu1 %v10014_v30  ;;  %v19534_v30 = vld [vmem:[%s19740_s17 + $0x1b0] sm:$0xff]  }
0x2c12   : > { %18417 = vmatmul.mubr.bf16.vlgmr.msra.gmra.mrb[192].mxu1 %v20981_v11  ;;  %v19519_v11 = vld [vmem:[%s21693_s4 + $0x38] sm:$0xff]  }
0x2c13   : > { %18420 = vmatprep.mubr.bf16.mxu1 %v20984_v12  ;;  %18446 = vmatprep.subr.bf16.mxu0 %v19519_v11  ;;  %v19520_v12 = vld [vmem:[%s21691_s2] sm:$0xff]  }
0x2c14   : > { %18447 = vmatpush3.bf16.msra.mxu0 %v19519_v11  ;;  %v19543_v11 = vld [vmem:[%s21695_s6 + $0x38] sm:$0xff]  }
0x2c15   : > { %18496 = vmatprep.subr.bf16.mxu0 %v19520_v12 }
0x2c1a   : > { %18421 = vmatmul.mubr.bf16.gmra.mrb[196].mxu1 %v20989_v34  ;;  %v19536_v34 = vld [vmem:[%s21695_s6] sm:$0xff]  }
0x2c1b   : > { %18424 = vmatprep.mubr.bf16.mxu1 %v20992_v35  ;;  %v19537_v35 = vld [vmem:[%s21695_s6 + $0x8] sm:$0xff]   ;;  %18464 = vmatprep.subr.bf16.mxu1 %v19536_v34 }
0x2c1c   : > { %18465 = vmatpush3.bf16.msra.mxu1 %v19536_v34 }
0x2c1d   : > { %18466 = vmatprep.subr.bf16.mxu1 %v19537_v35 }
0x2c20   : > { %18467 = vmatpush3.bf16.msra.mxu1 %v19537_v35 }
0x2c22   : > { %18425 = vmatmul.mubr.bf16.gmra.mrb[200].mxu1 %v20997_v17  ;;  %v19538_v17 = vld [vmem:[%s21695_s6 + $0x10] sm:$0xff]  }
0x2c23   : > { %18428 = vmatprep.mubr.bf16.mxu1 %v21000_v36  ;;  %18468 = vmatprep.subr.bf16.mxu1 %v19538_v17  ;;  %v19539_v36 = vld [vmem:[%s21695_s6 + $0x18] sm:$0xff]  }
0x2c24   : > { %18469 = vmatpush3.bf16.msra.mxu1 %v19538_v17 }
0x2c25   : > { %18470 = vmatprep.subr.bf16.mxu1 %v19539_v36 }
0x2c28   : > { %18471 = vmatpush3.bf16.msra.mxu1 %v19539_v36 }
0x2c2a   : > { %18429 = vmatmul.mubr.bf16.gmra.mrb[204].mxu1 %v21005_v37  ;;  %v19540_v37 = vld [vmem:[%s21695_s6 + $0x20] sm:$0xff]  }
0x2c2b   : > { %18472 = vmatprep.subr.bf16.mxu1 %v19540_v37 }
0x2c2c   : > { %18473 = vmatpush3.bf16.msra.mxu1 %v19540_v37 }
0x2c2d   : > { %18474 = vmatprep.subr.bf16.mxu1 %v19541_v32 }
0x2c30   : > { %18475 = vmatpush3.bf16.msra.mxu1 %v19541_v32 }
0x2c31   : > { %18476 = vmatprep.subr.bf16.mxu1 %v19542_v18 }
0x2c34   : > { %18477 = vmatpush3.bf16.msra.mxu1 %v19542_v18 }
0x2c35   : > { %18478 = vmatprep.subr.bf16.mxu1 %v19543_v11 }
0x2c38   : > { %18479 = vmatpush3.bf16.msra.mxu1 %v19543_v11 }
0x2ce5   : > { %v18418_v33 = vpop.f32.mrb[192].mxu1 }
0x2ce6   : > { %v10049_v28 = vpop.f32.mrb[193].mxu1  ;;  %v10114_v24 = vmax.f32 %v18418_v33, 0.0 }
0x2ce7   : > { %v18419_v29 = vpop.f32.mrb[194].mxu1  ;;  %v10112_v21 = vmax.f32 %v10049_v28, 0.0 }
0x2ce8   : > { %v10115_v25 = vmax.f32 %v18419_v29, 0.0  ;;  %v10052_v20 = vpop.f32.mrb[195].mxu1 }
0x2ce9   : > { %v10113_v44 = vmax.f32 %v10052_v20, 0.0 }
0x2cea   : > { %v10129_v45 = vpack.c.bf16 %v10115_v25, %v10114_v24 }
0x2ceb   : > { %v10128_v46 = vpack.c.bf16 %v10113_v44, %v10112_v21 }
0x2ced   : > { %v18422_v48 = vpop.f32.mrb[196].mxu1  ;;  %18448 = vmatprep.mubr.bf16.mxu0 %v10128_v46 }
0x2cee   : > { %v10065_v49 = vpop.f32.mrb[197].mxu1  ;;  %18449 = vmatmul.mubr.bf16.vlgmr.msra.gmra.mrb[208].mxu0 %v10129_v45  ;;  %v10118_v51 = vmax.f32 %v18422_v48, 0.0 }
0x2cef   : > { %v18423_v50 = vpop.f32.mrb[198].mxu1  ;;  %18497 = vmatpush3.bf16.msra.mxu0 %v19520_v12  ;;  %v10116_v55 = vmax.f32 %v10065_v49, 0.0  ;;  %v14919_v12 = vld [vmem:[%s21694_s5] ss:$0 sm:$0xff] }
0x2cf0   : > { %v10119_v52 = vmax.f32 %v18423_v50, 0.0  ;;  %v10068_v53 = vpop.f32.mrb[199].mxu1  ;;  %18498 = vmatprep.subr.bf16.mxu0 %v19521_v47 }
0x2cf1   : > { %v10117_v56 = vmax.f32 %v10068_v53, 0.0 }
0x2cf2   : > { %v10131_v57 = vpack.c.bf16 %v10119_v52, %v10118_v51 }
0x2cf3   : > { %v10130_v58 = vpack.c.bf16 %v10117_v56, %v10116_v55  ;;  %18499 = vmatpush3.bf16.msra.mxu0 %v19521_v47 }
0x2cf4   : > { %18500 = vmatprep.subr.bf16.mxu0 %v19522_v54 }
0x2cf5   : > { %v18426_v60 = vpop.f32.mrb[200].mxu1  ;;  %18452 = vmatprep.mubr.bf16.mxu0 %v10130_v58 }
0x2cf6   : > { %v10081_v61 = vpop.f32.mrb[201].mxu1  ;;  %18453 = vmatmul.mubr.bf16.gmra.mrb[212].mxu0 %v10131_v57  ;;  %v10122_v63 = vmax.f32 %v18426_v60, 0.0 }
0x2cf7   : > { %v18427_v62 = vpop.f32.mrb[202].mxu1  ;;  %18501 = vmatpush3.bf16.msra.mxu0 %v19522_v54  ;;  %v10120_v38 = vmax.f32 %v10081_v61, 0.0 }
0x2cf8   : > { %v10123_v8 = vmax.f32 %v18427_v62, 0.0  ;;  %v10084_v9 = vpop.f32.mrb[203].mxu1  ;;  %18502 = vmatprep.subr.bf16.mxu0 %v19523_v59 }
0x2cf9   : > { %v10121_v40 = vmax.f32 %v10084_v9, 0.0 }
0x2cfa   : > { %v10133_v3 = vpack.c.bf16 %v10123_v8, %v10122_v63 }
0x2cfb   : > { %v10132_v41 = vpack.c.bf16 %v10121_v40, %v10120_v38  ;;  %18503 = vmatpush3.bf16.msra.mxu0 %v19523_v59 }
0x2cfc   : > { %18504 = vmatprep.subr.bf16.mxu0 %v19524_v10 }
0x2cfd   : > { %v18430_v14 = vpop.f32.mrb[204].mxu1  ;;  %18456 = vmatprep.mubr.bf16.mxu0 %v10132_v41 }
0x2cfe   : > { %v10097_v1 = vpop.f32.mrb[205].mxu1  ;;  %18457 = vmatmul.mubr.bf16.gmra.mrb[216].mxu0 %v10133_v3  ;;  %v10126_v43 = vmax.f32 %v18430_v14, 0.0 }
0x2cff   : > { %v18431_v42 = vpop.f32.mrb[206].mxu1  ;;  %18505 = vmatpush3.bf16.msra.mxu0 %v19524_v10  ;;  %v10124_v7 = vmax.f32 %v10097_v1, 0.0 }
0x2d00   : > { %v10127_v5 = vmax.f32 %v18431_v42, 0.0  ;;  %v10100_v6 = vpop.f32.mrb[207].mxu1  ;;  %18506 = vmatprep.subr.bf16.mxu0 %v19525_v0 }
0x2d01   : > { %v10125_v4 = vmax.f32 %v10100_v6, 0.0 }
0x2d02   : > { %v10135_v22 = vpack.c.bf16 %v10127_v5, %v10126_v43 }
0x2d03   : > { %v10134_v23 = vpack.c.bf16 %v10125_v4, %v10124_v7  ;;  %18507 = vmatpush3.bf16.msra.mxu0 %v19525_v0 }
0x2d04   : > { %18508 = vmatprep.subr.bf16.mxu0 %v19526_v19 }
0x2d05   : > { %18460 = vmatprep.mubr.bf16.mxu0 %v10134_v23 }
0x2d06   : > { %18461 = vmatmul.mubr.bf16.gmra.mrb[220].mxu0 %v10135_v22 }
0x2d07   : > { %18509 = vmatpush3.bf16.msra.mxu0 %v19526_v19  ;;  %18512 = vmatprep.mubr.bf16.mxu0 %v19528_v39 }
0x2d08   : > { %18510 = vmatprep.subr.bf16.mxu0 %v19527_v2 }
0x2d0b   : > { %18511 = vmatpush3.bf16.msra.mxu0 %v19527_v2 }
0x2d0e   : > { %18513 = vmatmul.mubr.bf16.vlgmr.msra.gmra.mrb[224].mxu0 %v19529_v26 }
0x2d0f   : > { %18516 = vmatprep.mubr.bf16.mxu0 %v19530_v27 }
0x2d16   : > { %18517 = vmatmul.mubr.bf16.gmra.mrb[228].mxu0 %v19531_v15 }
0x2d17   : > { %18520 = vmatprep.mubr.bf16.mxu0 %v19532_v13  ;;  %v14985_v13 = vld [vmem:[%s21692_s3] ss:$0 sm:$0xff] }
0x2d1e   : > { %18521 = vmatmul.mubr.bf16.gmra.mrb[232].mxu0 %v19533_v16  ;;  %v21219_v16 = vld [vmem:[%s19755_s26 + $0x180] sm:$0xff]  }
0x2d1f   : > { %18524 = vmatprep.mubr.bf16.mxu0 %v19534_v30 }
0x2d26   : > { %18525 = vmatmul.mubr.bf16.gmra.mrb[236].mxu0 %v19535_v31 }
0x2dc1   : > { %v18450_v34 = vpop.f32.mrb[208].mxu0 }
0x2dc2   : > { %v10250_v35 = vadd.f32 %v18450_v34, %v14919_v12  ;;  %v10241_v17 = vpop.f32.mrb[209].mxu0 }
0x2dc3   : > { %v10242_v36 = vadd.f32 %v14919_v12, %v10241_v17  ;;  %v18451_v37 = vpop.f32.mrb[210].mxu0 }
0x2dc4   : > { %v10253_v32 = vadd.f32 %v18451_v37, %v14919_v12  ;;  %v10244_v33 = vpop.f32.mrb[211].mxu0  ;;  %v10306_v29 = vmax.f32 %v10250_v35, 0.0 }
0x2dc5   : > { %v10245_v28 = vadd.f32 %v14919_v12, %v10244_v33  ;;  %v10304_v25 = vmax.f32 %v10242_v36, 0.0 }
0x2dc6   : > { %v10307_v24 = vmax.f32 %v10253_v32, 0.0 }
0x2dc7   : > { %v10305_v20 = vmax.f32 %v10245_v28, 0.0 }
0x2dc8   : > { %v10321_v21 = vpack.c.bf16 %v10307_v24, %v10306_v29 }
0x2dc9   : > { %v10320_v44 = vpack.c.bf16 %v10305_v20, %v10304_v25  ;;  %v18454_v45 = vpop.f32.mrb[212].mxu0 }
0x2dca   : > { %v10266_v46 = vadd.f32 %v18454_v45, %v14919_v12  ;;  %v10257_v47 = vpop.f32.mrb[213].mxu0 }
0x2dcb   : > { %v10258_v48 = vadd.f32 %v14919_v12, %v10257_v47  ;;  %v18455_v49 = vpop.f32.mrb[214].mxu0  ;;  %18480 = vmatprep.mubr.bf16.mxu1 %v10320_v44 }
0x2dcc   : > { %v10269_v50 = vadd.f32 %v18455_v49, %v14919_v12  ;;  %v10260_v51 = vpop.f32.mrb[215].mxu0  ;;  %18481 = vmatmul.mubr.bf16.vlgmr.msra.gmra.mrb[208].mxu1 %v10321_v21  ;;  %v10310_v53 = vmax.f32 %v10266_v46, 0.0 }
0x2dcd   : > { %v10261_v52 = vadd.f32 %v14919_v12, %v10260_v51  ;;  %v10308_v55 = vmax.f32 %v10258_v48, 0.0 }
0x2dce   : > { %v10311_v54 = vmax.f32 %v10269_v50, 0.0 }
0x2dcf   : > { %v10309_v56 = vmax.f32 %v10261_v52, 0.0 }
0x2dd0   : > { %v10323_v57 = vpack.c.bf16 %v10311_v54, %v10310_v53 }
0x2dd1   : > { %v10322_v58 = vpack.c.bf16 %v10309_v56, %v10308_v55  ;;  %v18458_v59 = vpop.f32.mrb[216].mxu0 }
0x2dd2   : > { %v10282_v60 = vadd.f32 %v18458_v59, %v14919_v12  ;;  %v10273_v61 = vpop.f32.mrb[217].mxu0 }
0x2dd3   : > { %v10274_v62 = vadd.f32 %v14919_v12, %v10273_v61  ;;  %v18459_v63 = vpop.f32.mrb[218].mxu0  ;;  %18484 = vmatprep.mubr.bf16.mxu1 %v10322_v58 }
0x2dd4   : > { %v10285_v8 = vadd.f32 %v18459_v63, %v14919_v12  ;;  %v10276_v9 = vpop.f32.mrb[219].mxu0  ;;  %18485 = vmatmul.mubr.bf16.gmra.mrb[212].mxu1 %v10323_v57  ;;  %v10314_v38 = vmax.f32 %v10282_v60, 0.0 }
0x2dd5   : > { %v10277_v10 = vadd.f32 %v14919_v12, %v10276_v9  ;;  %v10312_v3 = vmax.f32 %v10274_v62, 0.0  ;;  %v21223_v9 = vld [vmem:[%s19755_s26 + $0x188] sm:$0xff]  }
0x2dd6   : > { %v10315_v40 = vmax.f32 %v10285_v8, 0.0 }
0x2dd7   : > { %v10313_v41 = vmax.f32 %v10277_v10, 0.0  ;;  %v21226_v10 = vld [vmem:[%s19755_s26 + $0x190] sm:$0xff]  }
0x2dd8   : > { %v10325_v0 = vpack.c.bf16 %v10315_v40, %v10314_v38  ;;  %v21231_v38 = vld [vmem:[%s19755_s26 + $0x198] sm:$0xff]   ;;  %v21234_v40 = vld [vmem:[%s19755_s26 + $0x1a0] sm:$0xff]  }
0x2dd9   : > { %v10324_v14 = vpack.c.bf16 %v10313_v41, %v10312_v3  ;;  %v18462_v1 = vpop.f32.mrb[220].mxu0  ;;  %v21239_v3 = vld [vmem:[%s19755_s26 + $0x1a8] sm:$0xff]   ;;  %v21242_v41 = vld [vmem:[%s19755_s26 + $0x1b0] sm:$0xff]  }
0x2dda   : > { %v10298_v42 = vadd.f32 %v18462_v1, %v14919_v12  ;;  %v10289_v43 = vpop.f32.mrb[221].mxu0  ;;  %v19553_v1 = vld [vmem:[%s21691_s2 + $0x48] sm:$0xff]  }
0x2ddb   : > { %v10290_v5 = vadd.f32 %v14919_v12, %v10289_v43  ;;  %v18463_v6 = vpop.f32.mrb[222].mxu0  ;;  %18488 = vmatprep.mubr.bf16.mxu1 %v10324_v14  ;;  %v19552_v14 = vld [vmem:[%s21691_s2 + $0x40] sm:$0xff]   ;;  %v19555_v43 = vld [vmem:[%s21691_s2 + $0x58] sm:$0xff]  }
0x2ddc   : > { %v10301_v19 = vadd.f32 %v18463_v6, %v14919_v12  ;;  %v10292_v7 = vpop.f32.mrb[223].mxu0  ;;  %18489 = vmatmul.mubr.bf16.gmra.mrb[216].mxu1 %v10325_v0  ;;  %v10318_v22 = vmax.f32 %v10298_v42, 0.0  ;;  %v21247_v0 = vld [vmem:[%s19755_s26 + $0x1b8] sm:$0xff]   ;;  %18560 = vmatprep.subr.bf16.mxu0 %v19552_v14  ;;  %v19554_v42 = vld [vmem:[%s21691_s2 + $0x50] sm:$0xff]   ;;  %v19557_v6 = vld [vmem:[%s21691_s2 + $0x68] sm:$0xff]  }
0x2ddd   : > { %v10293_v4 = vadd.f32 %v14919_v12, %v10292_v7  ;;  %v10316_v39 = vmax.f32 %v10290_v5, 0.0  ;;  %18561 = vmatpush3.bf16.msra.mxu0 %v19552_v14  ;;  %v19556_v5 = vld [vmem:[%s21691_s2 + $0x60] sm:$0xff]   ;;  %v19559_v7 = vld [vmem:[%s21691_s2 + $0x78] sm:$0xff]  }
0x2dde   : > { %v10319_v23 = vmax.f32 %v10301_v19, 0.0  ;;  %18562 = vmatprep.subr.bf16.mxu0 %v19553_v1  ;;  %v19558_v19 = vld [vmem:[%s21691_s2 + $0x70] sm:$0xff]  }
0x2ddf   : > { %v10317_v2 = vmax.f32 %v10293_v4, 0.0  ;;  %v14928_v4 = vld [vmem:[%s21696_s7] ss:$0 sm:$0xff] }
0x2de0   : > { %v10327_v26 = vpack.c.bf16 %v10319_v23, %v10318_v22 }
0x2de1   : > { %v10326_v27 = vpack.c.bf16 %v10317_v2, %v10316_v39  ;;  %v18514_v15 = vpop.f32.mrb[224].mxu0  ;;  %18563 = vmatpush3.bf16.msra.mxu0 %v19553_v1 }
0x2de2   : > { %v10700_v30 = vpop.f32.mrb[225].mxu0  ;;  %v10709_v18 = vadd.f32 %v18514_v15, %v14985_v13  ;;  %18564 = vmatprep.subr.bf16.mxu0 %v19554_v42 }
0x2de3   : > { %18492 = vmatprep.mubr.bf16.mxu1 %v10326_v27  ;;  %v18515_v31 = vpop.f32.mrb[226].mxu0  ;;  %v10701_v34 = vadd.f32 %v14985_v13, %v10700_v30 }
0x2de4   : > { %v10712_v11 = vadd.f32 %v18515_v31, %v14985_v13  ;;  %18493 = vmatmul.mubr.bf16.gmra.mrb[220].mxu1 %v10327_v26  ;;  %v10703_v12 = vpop.f32.mrb[227].mxu0 }
0x2de5   : > { %v10704_v35 = vadd.f32 %v14985_v13, %v10703_v12  ;;  %18544 = vmatprep.mubr.bf16.mxu1 %v21219_v16  ;;  %18565 = vmatpush3.bf16.msra.mxu0 %v19554_v42 }
0x2de6   : > { %v10764_v17 = vpack.c.bf16 %v10712_v11, %v10709_v18  ;;  %18566 = vmatprep.subr.bf16.mxu0 %v19555_v43 }
0x2de7   : > { %v10763_v36 = vpack.c.bf16 %v10704_v35, %v10701_v34 }
0x2de9   : > { %v18518_v37 = vpop.f32.mrb[228].mxu0  ;;  %18528 = vmatprep.subr.bf16.mxu1 %v10763_v36  ;;  %18567 = vmatpush3.bf16.msra.mxu0 %v19555_v43 }
0x2dea   : > { %v10716_v32 = vpop.f32.mrb[229].mxu0  ;;  %18529 = vmatpush3.bf16.msra.mxu1 %v10763_v36  ;;  %v10725_v28 = vadd.f32 %v18518_v37, %v14985_v13  ;;  %18568 = vmatprep.subr.bf16.mxu0 %v19556_v5 }
0x2deb   : > { %v18519_v33 = vpop.f32.mrb[230].mxu0  ;;  %18530 = vmatprep.subr.bf16.mxu1 %v10764_v17  ;;  %v10717_v25 = vadd.f32 %v14985_v13, %v10716_v32 }
0x2dec   : > { %v10728_v29 = vadd.f32 %v18519_v33, %v14985_v13  ;;  %v10719_v24 = vpop.f32.mrb[231].mxu0 }
0x2ded   : > { %v10720_v20 = vadd.f32 %v14985_v13, %v10719_v24  ;;  %18569 = vmatpush3.bf16.msra.mxu0 %v19556_v5 }
0x2dee   : > { %v10766_v21 = vpack.c.bf16 %v10728_v29, %v10725_v28  ;;  %18531 = vmatpush3.bf16.msra.mxu1 %v10764_v17  ;;  %18570 = vmatprep.subr.bf16.mxu0 %v19557_v6 }
0x2def   : > { %v10765_v44 = vpack.c.bf16 %v10720_v20, %v10717_v25 }
0x2df1   : > { %v18522_v45 = vpop.f32.mrb[232].mxu0  ;;  %18532 = vmatprep.subr.bf16.mxu1 %v10765_v44  ;;  %18571 = vmatpush3.bf16.msra.mxu0 %v19557_v6 }
0x2df2   : > { %v10732_v46 = vpop.f32.mrb[233].mxu0  ;;  %18533 = vmatpush3.bf16.msra.mxu1 %v10765_v44  ;;  %v10741_v48 = vadd.f32 %v18522_v45, %v14985_v13  ;;  %18572 = vmatprep.subr.bf16.mxu0 %v19558_v19 }
0x2df3   : > { %v18523_v47 = vpop.f32.mrb[234].mxu0  ;;  %18534 = vmatprep.subr.bf16.mxu1 %v10766_v21  ;;  %v10733_v51 = vadd.f32 %v14985_v13, %v10732_v46 }
0x2df4   : > { %v10744_v49 = vadd.f32 %v18523_v47, %v14985_v13  ;;  %v10735_v50 = vpop.f32.mrb[235].mxu0 }
0x2df5   : > { %v10736_v52 = vadd.f32 %v14985_v13, %v10735_v50  ;;  %18573 = vmatpush3.bf16.msra.mxu0 %v19558_v19 }
0x2df6   : > { %v10768_v53 = vpack.c.bf16 %v10744_v49, %v10741_v48  ;;  %18535 = vmatpush3.bf16.msra.mxu1 %v10766_v21  ;;  %18574 = vmatprep.subr.bf16.mxu0 %v19559_v7 }
0x2df7   : > { %v10767_v54 = vpack.c.bf16 %v10736_v52, %v10733_v51 }
0x2df9   : > { %v18526_v55 = vpop.f32.mrb[236].mxu0  ;;  %18536 = vmatprep.subr.bf16.mxu1 %v10767_v54  ;;  %18575 = vmatpush3.bf16.msra.mxu0 %v19559_v7 }
0x2dfa   : > { %v10748_v56 = vpop.f32.mrb[237].mxu0  ;;  %18537 = vmatpush3.bf16.msra.mxu1 %v10767_v54  ;;  %v10757_v58 = vadd.f32 %v18526_v55, %v14985_v13 }
0x2dfb   : > { %v18527_v57 = vpop.f32.mrb[238].mxu0  ;;  %18538 = vmatprep.subr.bf16.mxu1 %v10768_v53  ;;  %v10749_v61 = vadd.f32 %v14985_v13, %v10748_v56 }
0x2dfc   : > { %v10760_v59 = vadd.f32 %v18527_v57, %v14985_v13  ;;  %v10751_v60 = vpop.f32.mrb[239].mxu0 }
0x2dfd   : > { %v10752_v62 = vadd.f32 %v14985_v13, %v10751_v60 }
0x2dfe   : > { %v10770_v63 = vpack.c.bf16 %v10760_v59, %v10757_v58  ;;  %18539 = vmatpush3.bf16.msra.mxu1 %v10768_v53 }
0x2dff   : > { %v10769_v8 = vpack.c.bf16 %v10752_v62, %v10749_v61 }
0x2e01   : > { %18540 = vmatprep.subr.bf16.mxu1 %v10769_v8 }
0x2e02   : > { %18541 = vmatpush3.bf16.msra.mxu1 %v10769_v8 }
0x2e03   : > { %18542 = vmatprep.subr.bf16.mxu1 %v10770_v63 }
0x2e06   : > { %18543 = vmatpush3.bf16.msra.mxu1 %v10770_v63 }
0x2e09   : > { %18545 = vmatmul.mubr.bf16.vlgmr.msra.gmra.mrb[224].mxu1 %v21223_v9 }
0x2e0a   : > { %18548 = vmatprep.mubr.bf16.mxu1 %v21226_v10 }
0x2e11   : > { %18549 = vmatmul.mubr.bf16.gmra.mrb[228].mxu1 %v21231_v38 }
0x2e12   : > { %18552 = vmatprep.mubr.bf16.mxu1 %v21234_v40 }
0x2e19   : > { %18553 = vmatmul.mubr.bf16.gmra.mrb[232].mxu1 %v21239_v3 }
0x2e1a   : > { %18556 = vmatprep.mubr.bf16.mxu1 %v21242_v41 }
0x2e21   : > { %18557 = vmatmul.mubr.bf16.gmra.mrb[236].mxu1 %v21247_v0 }
0x2e22   : > { %18608 = vmatprep.mubr.bf16.mxu1 %v21219_v16 }
0x2e9f   : > { %v18482_v22 = vpop.f32.mrb[208].mxu1 }
0x2ea0   : > { %v10442_v23 = vadd.f32 %v18482_v22, %v14928_v4  ;;  %v10433_v39 = vpop.f32.mrb[209].mxu1 }
0x2ea1   : > { %v10434_v2 = vadd.f32 %v14928_v4, %v10433_v39  ;;  %v18483_v26 = vpop.f32.mrb[210].mxu1 }
0x2ea2   : > { %14939 = vst [vmem:[%s20066_s14 + $0x290] sm:$0xff] %v10442_v23  ;;  %v10445_v27 = vadd.f32 %v18483_v26, %v14928_v4  ;;  %v10436_v15 = vpop.f32.mrb[211].mxu1 }
0x2ea3   : > { %14937 = vst [vmem:[%s20066_s14 + $0x280] sm:$0xff] %v10434_v2  ;;  %v10437_v13 = vadd.f32 %v14928_v4, %v10436_v15 }
0x2ea4   : > { %14940 = vst [vmem:[%s20066_s14 + $0x298] sm:$0xff] %v10445_v27 }
0x2ea5   : > { %14938 = vst [vmem:[%s20066_s14 + $0x288] sm:$0xff] %v10437_v13 }
0x2ea7   : > { %v18486_v30 = vpop.f32.mrb[212].mxu1 }
0x2ea8   : > { %v10458_v31 = vadd.f32 %v18486_v30, %v14928_v4  ;;  %v10449_v18 = vpop.f32.mrb[213].mxu1 }
0x2ea9   : > { %v10450_v11 = vadd.f32 %v14928_v4, %v10449_v18  ;;  %v18487_v12 = vpop.f32.mrb[214].mxu1 }
0x2eaa   : > { %14943 = vst [vmem:[%s20066_s14 + $0x2b0] sm:$0xff] %v10458_v31  ;;  %v10461_v34 = vadd.f32 %v18487_v12, %v14928_v4  ;;  %v10452_v35 = vpop.f32.mrb[215].mxu1 }
0x2eab   : > { %14941 = vst [vmem:[%s20066_s14 + $0x2a0] sm:$0xff] %v10450_v11  ;;  %v10453_v17 = vadd.f32 %v14928_v4, %v10452_v35 }
0x2eac   : > { %14944 = vst [vmem:[%s20066_s14 + $0x2b8] sm:$0xff] %v10461_v34 }
0x2ead   : > { %14942 = vst [vmem:[%s20066_s14 + $0x2a8] sm:$0xff] %v10453_v17 }
0x2eaf   : > { %v18490_v36 = vpop.f32.mrb[216].mxu1 }
0x2eb0   : > { %v10474_v37 = vadd.f32 %v18490_v36, %v14928_v4  ;;  %v10465_v32 = vpop.f32.mrb[217].mxu1  ;;  %v19560_v36 = vld [vmem:[%s21691_s2 + $0x80] sm:$0xff]  }
0x2eb1   : > { %v10466_v33 = vadd.f32 %v14928_v4, %v10465_v32  ;;  %v18491_v28 = vpop.f32.mrb[218].mxu1  ;;  %18624 = vmatprep.subr.bf16.mxu0 %v19560_v36  ;;  %v19562_v32 = vld [vmem:[%s21691_s2 + $0x90] sm:$0xff]  }
0x2eb2   : > { %14947 = vst [vmem:[%s20066_s14 + $0x2d0] sm:$0xff] %v10474_v37  ;;  %v10477_v29 = vadd.f32 %v18491_v28, %v14928_v4  ;;  %v10468_v24 = vpop.f32.mrb[219].mxu1  ;;  %v19561_v37 = vld [vmem:[%s21691_s2 + $0x88] sm:$0xff]   ;;  %v19564_v28 = vld [vmem:[%s21691_s2 + $0xa0] sm:$0xff]  }
0x2eb3   : > { %14945 = vst [vmem:[%s20066_s14 + $0x2c0] sm:$0xff] %v10466_v33  ;;  %v10469_v25 = vadd.f32 %v14928_v4, %v10468_v24  ;;  %v19563_v33 = vld [vmem:[%s21691_s2 + $0x98] sm:$0xff]  }
0x2eb4   : > { %14948 = vst [vmem:[%s20066_s14 + $0x2d8] sm:$0xff] %v10477_v29  ;;  %v19565_v29 = vld [vmem:[%s21691_s2 + $0xa8] sm:$0xff]  }
0x2eb5   : > { %14946 = vst [vmem:[%s20066_s14 + $0x2c8] sm:$0xff] %v10469_v25  ;;  %v15027_v25 = vld [vmem:[%s21692_s3 + $0x1] ss:$0 sm:$0xff] }
0x2eb7   : > { %v18494_v20 = vpop.f32.mrb[220].mxu1 }
0x2eb8   : > { %v10490_v21 = vadd.f32 %v18494_v20, %v14928_v4  ;;  %v10481_v44 = vpop.f32.mrb[221].mxu1 }
0x2eb9   : > { %v10482_v45 = vadd.f32 %v14928_v4, %v10481_v44  ;;  %v18495_v46 = vpop.f32.mrb[222].mxu1 }
0x2eba   : > { %14951 = vst [vmem:[%s20066_s14 + $0x2f0] sm:$0xff] %v10490_v21  ;;  %v10493_v47 = vadd.f32 %v18495_v46, %v14928_v4  ;;  %v10484_v48 = vpop.f32.mrb[223].mxu1 }
0x2ebb   : > { %14949 = vst [vmem:[%s20066_s14 + $0x2e0] sm:$0xff] %v10482_v45  ;;  %v10485_v49 = vadd.f32 %v14928_v4, %v10484_v48 }
0x2ebc   : > { %14952 = vst [vmem:[%s20066_s14 + $0x2f8] sm:$0xff] %v10493_v47 }
0x2ebd   : > { %14950 = vst [vmem:[%s20066_s14 + $0x2e8] sm:$0xff] %v10485_v49 }
0x2edc   : > { %v18546_v50 = vpop.f32.mrb[224].mxu1 }
0x2edd   : > { %v10853_v51 = vpop.f32.mrb[225].mxu1  ;;  %v10918_v53 = vmax.f32 %v18546_v50, 0.0 }
0x2ede   : > { %v18547_v52 = vpop.f32.mrb[226].mxu1  ;;  %v10916_v56 = vmax.f32 %v10853_v51, 0.0 }
0x2edf   : > { %v10919_v54 = vmax.f32 %v18547_v52, 0.0  ;;  %v10856_v55 = vpop.f32.mrb[227].mxu1 }
0x2ee0   : > { %v10917_v57 = vmax.f32 %v10856_v55, 0.0 }
0x2ee1   : > { %v10933_v58 = vpack.c.bf16 %v10919_v54, %v10918_v53 }
0x2ee2   : > { %v10932_v59 = vpack.c.bf16 %v10917_v57, %v10916_v56 }
0x2ee4   : > { %v18550_v60 = vpop.f32.mrb[228].mxu1  ;;  %18576 = vmatprep.mubr.bf16.mxu0 %v10932_v59 }
0x2ee5   : > { %v10869_v61 = vpop.f32.mrb[229].mxu1  ;;  %18577 = vmatmul.mubr.bf16.vlgmr.msra.gmra.mrb[240].mxu0 %v10933_v58  ;;  %v10922_v63 = vmax.f32 %v18550_v60, 0.0 }
0x2ee6   : > { %v18551_v62 = vpop.f32.mrb[230].mxu1  ;;  %v10920_v1 = vmax.f32 %v10869_v61, 0.0  ;;  %18625 = vmatpush3.bf16.msra.mxu0 %v19560_v36 }
0x2ee7   : > { %v10923_v8 = vmax.f32 %v18551_v62, 0.0  ;;  %v10872_v14 = vpop.f32.mrb[231].mxu1  ;;  %18626 = vmatprep.subr.bf16.mxu0 %v19561_v37 }
0x2ee8   : > { %v10921_v42 = vmax.f32 %v10872_v14, 0.0 }
0x2ee9   : > { %v10935_v43 = vpack.c.bf16 %v10923_v8, %v10922_v63 }
0x2eea   : > { %v10934_v5 = vpack.c.bf16 %v10921_v42, %v10920_v1  ;;  %18627 = vmatpush3.bf16.msra.mxu0 %v19561_v37 }
0x2eeb   : > { %18628 = vmatprep.subr.bf16.mxu0 %v19562_v32 }
0x2eec   : > { %v18554_v6 = vpop.f32.mrb[232].mxu1  ;;  %18580 = vmatprep.mubr.bf16.mxu0 %v10934_v5 }
0x2eed   : > { %v10885_v19 = vpop.f32.mrb[233].mxu1  ;;  %18581 = vmatmul.mubr.bf16.gmra.mrb[244].mxu0 %v10935_v43  ;;  %v10926_v4 = vmax.f32 %v18554_v6, 0.0 }
0x2eee   : > { %v18555_v7 = vpop.f32.mrb[234].mxu1  ;;  %v10924_v39 = vmax.f32 %v10885_v19, 0.0  ;;  %18629 = vmatpush3.bf16.msra.mxu0 %v19562_v32 }
0x2eef   : > { %v10927_v22 = vmax.f32 %v18555_v7, 0.0  ;;  %v10888_v23 = vpop.f32.mrb[235].mxu1  ;;  %18630 = vmatprep.subr.bf16.mxu0 %v19563_v33 }
0x2ef0   : > { %v10925_v2 = vmax.f32 %v10888_v23, 0.0 }
0x2ef1   : > { %v10937_v26 = vpack.c.bf16 %v10927_v22, %v10926_v4 }
0x2ef2   : > { %v10936_v27 = vpack.c.bf16 %v10925_v2, %v10924_v39  ;;  %18631 = vmatpush3.bf16.msra.mxu0 %v19563_v33 }
0x2ef3   : > { %18632 = vmatprep.subr.bf16.mxu0 %v19564_v28 }
0x2ef4   : > { %v18558_v15 = vpop.f32.mrb[236].mxu1  ;;  %18584 = vmatprep.mubr.bf16.mxu0 %v10936_v27 }
0x2ef5   : > { %v10901_v13 = vpop.f32.mrb[237].mxu1  ;;  %18585 = vmatmul.mubr.bf16.gmra.mrb[248].mxu0 %v10937_v26  ;;  %v10930_v31 = vmax.f32 %v18558_v15, 0.0 }
0x2ef6   : > { %v18559_v30 = vpop.f32.mrb[238].mxu1  ;;  %v10928_v12 = vmax.f32 %v10901_v13, 0.0  ;;  %18633 = vmatpush3.bf16.msra.mxu0 %v19564_v28  ;;  %v19566_v13 = vld [vmem:[%s21691_s2 + $0xb0] sm:$0xff]  }
0x2ef7   : > { %v10931_v18 = vmax.f32 %v18559_v30, 0.0  ;;  %v10904_v11 = vpop.f32.mrb[239].mxu1  ;;  %18634 = vmatprep.subr.bf16.mxu0 %v19565_v29  ;;  %v19567_v30 = vld [vmem:[%s21691_s2 + $0xb8] sm:$0xff]  }
0x2ef8   : > { %v10929_v34 = vmax.f32 %v10904_v11, 0.0 }
0x2ef9   : > { %v10939_v35 = vpack.c.bf16 %v10931_v18, %v10930_v31 }
0x2efa   : > { %v10938_v17 = vpack.c.bf16 %v10929_v34, %v10928_v12  ;;  %18635 = vmatpush3.bf16.msra.mxu0 %v19565_v29 }
0x2efb   : > { %18636 = vmatprep.subr.bf16.mxu0 %v19566_v13 }
0x2efc   : > { %18588 = vmatprep.mubr.bf16.mxu0 %v10938_v17 }
0x2efd   : > { %18589 = vmatmul.mubr.bf16.gmra.mrb[252].mxu0 %v10939_v35 }
0x2efe   : > { %18637 = vmatpush3.bf16.msra.mxu0 %v19566_v13 }
0x2eff   : > { %18638 = vmatprep.subr.bf16.mxu0 %v19567_v30 }
0x2f02   : > { %18639 = vmatpush3.bf16.msra.mxu0 %v19567_v30 }
0x2fb8   : > { %v18578_v24 = vpop.f32.mrb[240].mxu0 }
0x2fb9   : > { %v11045_v20 = vpop.f32.mrb[241].mxu0  ;;  %v11054_v44 = vadd.f32 %v18578_v24, %v15027_v25 }
0x2fba   : > { %v18579_v21 = vpop.f32.mrb[242].mxu0  ;;  %v11046_v47 = vadd.f32 %v15027_v25, %v11045_v20 }
0x2fbb   : > { %v11057_v45 = vadd.f32 %v18579_v21, %v15027_v25  ;;  %v11048_v46 = vpop.f32.mrb[243].mxu0 }
0x2fbc   : > { %v11049_v48 = vadd.f32 %v15027_v25, %v11048_v46 }
0x2fbd   : > { %v11109_v49 = vpack.c.bf16 %v11057_v45, %v11054_v44 }
0x2fbe   : > { %v11108_v50 = vpack.c.bf16 %v11049_v48, %v11046_v47 }
0x2fc0   : > { %v18582_v51 = vpop.f32.mrb[244].mxu0  ;;  %18592 = vmatprep.subr.bf16.mxu1 %v11108_v50 }
0x2fc1   : > { %v11061_v52 = vpop.f32.mrb[245].mxu0  ;;  %18593 = vmatpush3.bf16.msra.mxu1 %v11108_v50  ;;  %v11070_v54 = vadd.f32 %v18582_v51, %v15027_v25 }
0x2fc2   : > { %v18583_v53 = vpop.f32.mrb[246].mxu0  ;;  %18594 = vmatprep.subr.bf16.mxu1 %v11109_v49  ;;  %v11062_v57 = vadd.f32 %v15027_v25, %v11061_v52 }
0x2fc3   : > { %v11073_v55 = vadd.f32 %v18583_v53, %v15027_v25  ;;  %v11064_v56 = vpop.f32.mrb[247].mxu0 }
0x2fc4   : > { %v11065_v58 = vadd.f32 %v15027_v25, %v11064_v56 }
0x2fc5   : > { %v11111_v59 = vpack.c.bf16 %v11073_v55, %v11070_v54  ;;  %18595 = vmatpush3.bf16.msra.mxu1 %v11109_v49 }
0x2fc6   : > { %v11110_v60 = vpack.c.bf16 %v11065_v58, %v11062_v57 }
0x2fc8   : > { %v18586_v61 = vpop.f32.mrb[248].mxu0  ;;  %18596 = vmatprep.subr.bf16.mxu1 %v11110_v60 }
0x2fc9   : > { %v11077_v62 = vpop.f32.mrb[249].mxu0  ;;  %18597 = vmatpush3.bf16.msra.mxu1 %v11110_v60  ;;  %v11086_v8 = vadd.f32 %v18586_v61, %v15027_v25 }
0x2fca   : > { %v18587_v63 = vpop.f32.mrb[250].mxu0  ;;  %18598 = vmatprep.subr.bf16.mxu1 %v11111_v59  ;;  %v11078_v42 = vadd.f32 %v15027_v25, %v11077_v62 }
0x2fcb   : > { %v11089_v14 = vadd.f32 %v18587_v63, %v15027_v25  ;;  %v11080_v1 = vpop.f32.mrb[251].mxu0 }
0x2fcc   : > { %v11081_v43 = vadd.f32 %v15027_v25, %v11080_v1 }
0x2fcd   : > { %v11113_v5 = vpack.c.bf16 %v11089_v14, %v11086_v8  ;;  %18599 = vmatpush3.bf16.msra.mxu1 %v11111_v59 }
0x2fce   : > { %v11112_v6 = vpack.c.bf16 %v11081_v43, %v11078_v42  ;;  %v19568_v42 = vld [vmem:[%s21691_s2 + $0xc0] sm:$0xff]   ;;  %v19569_v43 = vld [vmem:[%s21691_s2 + $0xc8] sm:$0xff]  }
0x2fcf   : > { %18688 = vmatprep.subr.bf16.mxu0 %v19568_v42 }
0x2fd0   : > { %v18590_v19 = vpop.f32.mrb[252].mxu0  ;;  %18600 = vmatprep.subr.bf16.mxu1 %v11112_v6 }
0x2fd1   : > { %v11093_v7 = vpop.f32.mrb[253].mxu0  ;;  %18601 = vmatpush3.bf16.msra.mxu1 %v11112_v6  ;;  %v11102_v22 = vadd.f32 %v18590_v19, %v15027_v25  ;;  %v19571_v6 = vld [vmem:[%s21691_s2 + $0xd8] sm:$0xff]   ;;  %v19572_v19 = vld [vmem:[%s21691_s2 + $0xe0] sm:$0xff]  }
0x2fd2   : > { %v18591_v4 = vpop.f32.mrb[254].mxu0  ;;  %18602 = vmatprep.subr.bf16.mxu1 %v11113_v5  ;;  %v11094_v2 = vadd.f32 %v15027_v25, %v11093_v7  ;;  %v19573_v7 = vld [vmem:[%s21691_s2 + $0xe8] sm:$0xff]  }
0x2fd3   : > { %v11105_v23 = vadd.f32 %v18591_v4, %v15027_v25  ;;  %v11096_v39 = vpop.f32.mrb[255].mxu0 }
0x2fd4   : > { %v11097_v26 = vadd.f32 %v15027_v25, %v11096_v39 }
0x2fd5   : > { %v11115_v27 = vpack.c.bf16 %v11105_v23, %v11102_v22  ;;  %18603 = vmatpush3.bf16.msra.mxu1 %v11113_v5  ;;  %v19570_v5 = vld [vmem:[%s21691_s2 + $0xd0] sm:$0xff]   ;;  %v15053_v22 = vld [vmem:[%s21692_s3 + $0x2] ss:$0 sm:$0xff] }
0x2fd6   : > { %v11114_v15 = vpack.c.bf16 %v11097_v26, %v11094_v2 }
0x2fd8   : > { %18604 = vmatprep.subr.bf16.mxu1 %v11114_v15 }
0x2fd9   : > { %18605 = vmatpush3.bf16.msra.mxu1 %v11114_v15 }
0x2fda   : > { %18606 = vmatprep.subr.bf16.mxu1 %v11115_v27 }
0x2fdd   : > { %18607 = vmatpush3.bf16.msra.mxu1 %v11115_v27 }
0x2fe0   : > { %18609 = vmatmul.mubr.bf16.vlgmr.msra.gmra.mrb[240].mxu1 %v21223_v9 }
0x2fe1   : > { %18612 = vmatprep.mubr.bf16.mxu1 %v21226_v10 }
0x2fe8   : > { %18613 = vmatmul.mubr.bf16.gmra.mrb[244].mxu1 %v21231_v38 }
0x2fe9   : > { %18616 = vmatprep.mubr.bf16.mxu1 %v21234_v40 }
0x2ff0   : > { %18617 = vmatmul.mubr.bf16.gmra.mrb[248].mxu1 %v21239_v3 }
0x2ff1   : > { %18620 = vmatprep.mubr.bf16.mxu1 %v21242_v41 }
0x2ff8   : > { %18621 = vmatmul.mubr.bf16.gmra.mrb[252].mxu1 %v21247_v0 }
0x2ff9   : > { %18672 = vmatprep.mubr.bf16.mxu1 %v21219_v16 }
0x30b3   : > { %v18610_v31 = vpop.f32.mrb[240].mxu1 }
0x30b4   : > { %v11150_v18 = vpop.f32.mrb[241].mxu1  ;;  %v11215_v12 = vmax.f32 %v18610_v31, 0.0 }
0x30b5   : > { %v18611_v11 = vpop.f32.mrb[242].mxu1  ;;  %v11213_v17 = vmax.f32 %v11150_v18, 0.0 }
0x30b6   : > { %v11216_v34 = vmax.f32 %v18611_v11, 0.0  ;;  %v11153_v35 = vpop.f32.mrb[243].mxu1 }
0x30b7   : > { %v11214_v36 = vmax.f32 %v11153_v35, 0.0 }
0x30b8   : > { %v11230_v37 = vpack.c.bf16 %v11216_v34, %v11215_v12 }
0x30b9   : > { %v11229_v32 = vpack.c.bf16 %v11214_v36, %v11213_v17 }
0x30bb   : > { %v18614_v33 = vpop.f32.mrb[244].mxu1  ;;  %18640 = vmatprep.mubr.bf16.mxu0 %v11229_v32 }
0x30bc   : > { %v11166_v28 = vpop.f32.mrb[245].mxu1  ;;  %18641 = vmatmul.mubr.bf16.vlgmr.msra.gmra.mrb[0].mxu0 %v11230_v37  ;;  %v11219_v24 = vmax.f32 %v18614_v33, 0.0 }
0x30bd   : > { %v18615_v29 = vpop.f32.mrb[246].mxu1  ;;  %v11217_v21 = vmax.f32 %v11166_v28, 0.0  ;;  %18689 = vmatpush3.bf16.msra.mxu0 %v19568_v42 }
0x30be   : > { %v11220_v25 = vmax.f32 %v18615_v29, 0.0  ;;  %v11169_v20 = vpop.f32.mrb[247].mxu1  ;;  %18690 = vmatprep.subr.bf16.mxu0 %v19569_v43 }
0x30bf   : > { %v11218_v44 = vmax.f32 %v11169_v20, 0.0 }
0x30c0   : > { %v11232_v45 = vpack.c.bf16 %v11220_v25, %v11219_v24 }
0x30c1   : > { %v11231_v46 = vpack.c.bf16 %v11218_v44, %v11217_v21  ;;  %18691 = vmatpush3.bf16.msra.mxu0 %v19569_v43 }
0x30c2   : > { %18692 = vmatprep.subr.bf16.mxu0 %v19570_v5 }
0x30c3   : > { %v18618_v47 = vpop.f32.mrb[248].mxu1  ;;  %18644 = vmatprep.mubr.bf16.mxu0 %v11231_v46 }
0x30c4   : > { %v11182_v48 = vpop.f32.mrb[249].mxu1  ;;  %18645 = vmatmul.mubr.bf16.gmra.mrb[4].mxu0 %v11232_v45  ;;  %v11223_v50 = vmax.f32 %v18618_v47, 0.0 }
0x30c5   : > { %v18619_v49 = vpop.f32.mrb[250].mxu1  ;;  %v11221_v53 = vmax.f32 %v11182_v48, 0.0  ;;  %18693 = vmatpush3.bf16.msra.mxu0 %v19570_v5 }
0x30c6   : > { %v11224_v51 = vmax.f32 %v18619_v49, 0.0  ;;  %v11185_v52 = vpop.f32.mrb[251].mxu1  ;;  %18694 = vmatprep.subr.bf16.mxu0 %v19571_v6 }
0x30c7   : > { %v11222_v54 = vmax.f32 %v11185_v52, 0.0 }
0x30c8   : > { %v11234_v55 = vpack.c.bf16 %v11224_v51, %v11223_v50 }
0x30c9   : > { %v11233_v56 = vpack.c.bf16 %v11222_v54, %v11221_v53  ;;  %18695 = vmatpush3.bf16.msra.mxu0 %v19571_v6 }
0x30ca   : > { %18696 = vmatprep.subr.bf16.mxu0 %v19572_v19 }
0x30cb   : > { %v18622_v57 = vpop.f32.mrb[252].mxu1  ;;  %18648 = vmatprep.mubr.bf16.mxu0 %v11233_v56 }
0x30cc   : > { %v11198_v58 = vpop.f32.mrb[253].mxu1  ;;  %18649 = vmatmul.mubr.bf16.gmra.mrb[8].mxu0 %v11234_v55  ;;  %v11227_v60 = vmax.f32 %v18622_v57, 0.0 }
0x30cd   : > { %v18623_v59 = vpop.f32.mrb[254].mxu1  ;;  %v11225_v63 = vmax.f32 %v11198_v58, 0.0  ;;  %18697 = vmatpush3.bf16.msra.mxu0 %v19572_v19  ;;  %v19574_v58 = vld [vmem:[%s21691_s2 + $0xf0] sm:$0xff]  }
0x30ce   : > { %v11228_v61 = vmax.f32 %v18623_v59, 0.0  ;;  %v11201_v62 = vpop.f32.mrb[255].mxu1  ;;  %18698 = vmatprep.subr.bf16.mxu0 %v19573_v7  ;;  %v19575_v59 = vld [vmem:[%s21691_s2 + $0xf8] sm:$0xff]  }
0x30cf   : > { %v11226_v8 = vmax.f32 %v11201_v62, 0.0 }
0x30d0   : > { %v11236_v14 = vpack.c.bf16 %v11228_v61, %v11227_v60 }
0x30d1   : > { %v11235_v1 = vpack.c.bf16 %v11226_v8, %v11225_v63  ;;  %18699 = vmatpush3.bf16.msra.mxu0 %v19573_v7 }
0x30d2   : > { %18700 = vmatprep.subr.bf16.mxu0 %v19574_v58 }
0x30d3   : > { %18652 = vmatprep.mubr.bf16.mxu0 %v11235_v1 }
0x30d4   : > { %18653 = vmatmul.mubr.bf16.gmra.mrb[12].mxu0 %v11236_v14 }
0x30d5   : > { %18701 = vmatpush3.bf16.msra.mxu0 %v19574_v58 }
0x30d6   : > { %18702 = vmatprep.subr.bf16.mxu0 %v19575_v59 }
0x30d9   : > { %18703 = vmatpush3.bf16.msra.mxu0 %v19575_v59 }
0x318f   : > { %v18642_v4 = vpop.f32.mrb[0].mxu0 }
0x3190   : > { %v11342_v23 = vpop.f32.mrb[1].mxu0  ;;  %v11351_v2 = vadd.f32 %v18642_v4, %v15053_v22 }
0x3191   : > { %v18643_v39 = vpop.f32.mrb[2].mxu0  ;;  %v11343_v15 = vadd.f32 %v15053_v22, %v11342_v23 }
0x3192   : > { %v11354_v26 = vadd.f32 %v18643_v39, %v15053_v22  ;;  %v11345_v27 = vpop.f32.mrb[3].mxu0 }
0x3193   : > { %v11346_v13 = vadd.f32 %v15053_v22, %v11345_v27 }
0x3194   : > { %v11406_v30 = vpack.c.bf16 %v11354_v26, %v11351_v2 }
0x3195   : > { %v11405_v31 = vpack.c.bf16 %v11346_v13, %v11343_v15 }
0x3197   : > { %v18646_v18 = vpop.f32.mrb[4].mxu0  ;;  %18656 = vmatprep.subr.bf16.mxu1 %v11405_v31 }
0x3198   : > { %v11358_v11 = vpop.f32.mrb[5].mxu0  ;;  %18657 = vmatpush3.bf16.msra.mxu1 %v11405_v31  ;;  %v11367_v34 = vadd.f32 %v18646_v18, %v15053_v22 }
0x3199   : > { %v18647_v12 = vpop.f32.mrb[6].mxu0  ;;  %18658 = vmatprep.subr.bf16.mxu1 %v11406_v30  ;;  %v11359_v36 = vadd.f32 %v15053_v22, %v11358_v11 }
0x319a   : > { %v11370_v35 = vadd.f32 %v18647_v12, %v15053_v22  ;;  %v11361_v17 = vpop.f32.mrb[7].mxu0 }
0x319b   : > { %v11362_v37 = vadd.f32 %v15053_v22, %v11361_v17 }
0x319c   : > { %v11408_v32 = vpack.c.bf16 %v11370_v35, %v11367_v34  ;;  %18659 = vmatpush3.bf16.msra.mxu1 %v11406_v30 }
0x319d   : > { %v11407_v33 = vpack.c.bf16 %v11362_v37, %v11359_v36 }
0x319f   : > { %v18650_v28 = vpop.f32.mrb[8].mxu0  ;;  %18660 = vmatprep.subr.bf16.mxu1 %v11407_v33 }
0x31a0   : > { %v11374_v29 = vpop.f32.mrb[9].mxu0  ;;  %18661 = vmatpush3.bf16.msra.mxu1 %v11407_v33  ;;  %v11383_v25 = vadd.f32 %v18650_v28, %v15053_v22 }
0x31a1   : > { %v18651_v24 = vpop.f32.mrb[10].mxu0  ;;  %18662 = vmatprep.subr.bf16.mxu1 %v11408_v32  ;;  %v11375_v44 = vadd.f32 %v15053_v22, %v11374_v29 }
0x31a2   : > { %v11386_v20 = vadd.f32 %v18651_v24, %v15053_v22  ;;  %v11377_v21 = vpop.f32.mrb[11].mxu0 }
0x31a3   : > { %v11378_v45 = vadd.f32 %v15053_v22, %v11377_v21  ;;  %v19576_v21 = vld [vmem:[%s21693_s4] sm:$0xff]  }
0x31a4   : > { %v11410_v46 = vpack.c.bf16 %v11386_v20, %v11383_v25  ;;  %18663 = vmatpush3.bf16.msra.mxu1 %v11408_v32  ;;  %18752 = vmatprep.subr.bf16.mxu0 %v19576_v21 }
0x31a5   : > { %v11409_v47 = vpack.c.bf16 %v11378_v45, %v11375_v44  ;;  %v19577_v44 = vld [vmem:[%s21693_s4 + $0x8] sm:$0xff]   ;;  %v19578_v45 = vld [vmem:[%s21693_s4 + $0x10] sm:$0xff]  }
0x31a7   : > { %v18654_v48 = vpop.f32.mrb[12].mxu0  ;;  %18664 = vmatprep.subr.bf16.mxu1 %v11409_v47 }
0x31a8   : > { %v11390_v49 = vpop.f32.mrb[13].mxu0  ;;  %18665 = vmatpush3.bf16.msra.mxu1 %v11409_v47  ;;  %v11399_v51 = vadd.f32 %v18654_v48, %v15053_v22  ;;  %v19580_v47 = vld [vmem:[%s21693_s4 + $0x20] sm:$0xff]   ;;  %v19581_v48 = vld [vmem:[%s21693_s4 + $0x28] sm:$0xff]  }
0x31a9   : > { %v18655_v50 = vpop.f32.mrb[14].mxu0  ;;  %18666 = vmatprep.subr.bf16.mxu1 %v11410_v46  ;;  %v11391_v54 = vadd.f32 %v15053_v22, %v11390_v49 }
0x31aa   : > { %v11402_v52 = vadd.f32 %v18655_v50, %v15053_v22  ;;  %v11393_v53 = vpop.f32.mrb[15].mxu0  ;;  %v15079_v50 = vld [vmem:[%s21692_s3 + $0x3] ss:$0 sm:$0xff] }
0x31ab   : > { %v11394_v55 = vadd.f32 %v15053_v22, %v11393_v53 }
0x31ac   : > { %v11412_v56 = vpack.c.bf16 %v11402_v52, %v11399_v51  ;;  %18667 = vmatpush3.bf16.msra.mxu1 %v11410_v46  ;;  %v19579_v46 = vld [vmem:[%s21693_s4 + $0x18] sm:$0xff]  }
0x31ad   : > { %v11411_v57 = vpack.c.bf16 %v11394_v55, %v11391_v54 }
0x31af   : > { %18668 = vmatprep.subr.bf16.mxu1 %v11411_v57 }
0x31b0   : > { %18669 = vmatpush3.bf16.msra.mxu1 %v11411_v57 }
0x31b1   : > { %18670 = vmatprep.subr.bf16.mxu1 %v11412_v56 }
0x31b4   : > { %18671 = vmatpush3.bf16.msra.mxu1 %v11412_v56 }
0x31b7   : > { %18673 = vmatmul.mubr.bf16.vlgmr.msra.gmra.mrb[0].mxu1 %v21223_v9 }
0x31b8   : > { %18676 = vmatprep.mubr.bf16.mxu1 %v21226_v10 }
0x31bf   : > { %18677 = vmatmul.mubr.bf16.gmra.mrb[4].mxu1 %v21231_v38 }
0x31c0   : > { %18680 = vmatprep.mubr.bf16.mxu1 %v21234_v40 }
0x31c7   : > { %18681 = vmatmul.mubr.bf16.gmra.mrb[8].mxu1 %v21239_v3 }
0x31c8   : > { %18684 = vmatprep.mubr.bf16.mxu1 %v21242_v41 }
0x31cf   : > { %18685 = vmatmul.mubr.bf16.gmra.mrb[12].mxu1 %v21247_v0 }
0x31d0   : > { %18736 = vmatprep.mubr.bf16.mxu1 %v21219_v16 }
0x328a   : > { %v18674_v60 = vpop.f32.mrb[0].mxu1 }
0x328b   : > { %v11447_v61 = vpop.f32.mrb[1].mxu1  ;;  %v11512_v63 = vmax.f32 %v18674_v60, 0.0 }
0x328c   : > { %v18675_v62 = vpop.f32.mrb[2].mxu1  ;;  %v11510_v1 = vmax.f32 %v11447_v61, 0.0 }
0x328d   : > { %v11513_v8 = vmax.f32 %v18675_v62, 0.0  ;;  %v11450_v14 = vpop.f32.mrb[3].mxu1 }
0x328e   : > { %v11511_v16 = vmax.f32 %v11450_v14, 0.0 }
0x328f   : > { %v11527_v42 = vpack.c.bf16 %v11513_v8, %v11512_v63 }
0x3290   : > { %v11526_v43 = vpack.c.bf16 %v11511_v16, %v11510_v1 }
0x3292   : > { %v18678_v5 = vpop.f32.mrb[4].mxu1  ;;  %18704 = vmatprep.mubr.bf16.mxu0 %v11526_v43 }
0x3293   : > { %v11463_v6 = vpop.f32.mrb[5].mxu1  ;;  %18705 = vmatmul.mubr.bf16.vlgmr.msra.gmra.mrb[16].mxu0 %v11527_v42  ;;  %v11516_v7 = vmax.f32 %v18678_v5, 0.0 }
0x3294   : > { %v18679_v19 = vpop.f32.mrb[6].mxu1  ;;  %v11514_v23 = vmax.f32 %v11463_v6, 0.0  ;;  %18753 = vmatpush3.bf16.msra.mxu0 %v19576_v21 }
0x3295   : > { %v11517_v4 = vmax.f32 %v18679_v19, 0.0  ;;  %v11466_v22 = vpop.f32.mrb[7].mxu1  ;;  %18754 = vmatprep.subr.bf16.mxu0 %v19577_v44 }
0x3296   : > { %v11515_v39 = vmax.f32 %v11466_v22, 0.0 }
0x3297   : > { %v11529_v2 = vpack.c.bf16 %v11517_v4, %v11516_v7 }
0x3298   : > { %v11528_v26 = vpack.c.bf16 %v11515_v39, %v11514_v23  ;;  %18755 = vmatpush3.bf16.msra.mxu0 %v19577_v44 }
0x3299   : > { %18756 = vmatprep.subr.bf16.mxu0 %v19578_v45 }
0x329a   : > { %v18682_v27 = vpop.f32.mrb[8].mxu1  ;;  %18708 = vmatprep.mubr.bf16.mxu0 %v11528_v26 }
0x329b   : > { %v11479_v15 = vpop.f32.mrb[9].mxu1  ;;  %18709 = vmatmul.mubr.bf16.gmra.mrb[20].mxu0 %v11529_v2  ;;  %v11520_v30 = vmax.f32 %v18682_v27, 0.0 }
0x329c   : > { %v18683_v13 = vpop.f32.mrb[10].mxu1  ;;  %v11518_v11 = vmax.f32 %v11479_v15, 0.0  ;;  %18757 = vmatpush3.bf16.msra.mxu0 %v19578_v45  ;;  %v19585_v45 = vld [vmem:[%s21691_s2 + $0x8] sm:$0xff]  }
0x329d   : > { %v11521_v31 = vmax.f32 %v18683_v13, 0.0  ;;  %v11482_v18 = vpop.f32.mrb[11].mxu1  ;;  %18758 = vmatprep.subr.bf16.mxu0 %v19579_v46 }
0x329e   : > { %v11519_v12 = vmax.f32 %v11482_v18, 0.0 }
0x329f   : > { %v11531_v34 = vpack.c.bf16 %v11521_v31, %v11520_v30 }
0x32a0   : > { %v11530_v35 = vpack.c.bf16 %v11519_v12, %v11518_v11  ;;  %18759 = vmatpush3.bf16.msra.mxu0 %v19579_v46 }
0x32a1   : > { %18760 = vmatprep.subr.bf16.mxu0 %v19580_v47 }
0x32a2   : > { %v18686_v17 = vpop.f32.mrb[12].mxu1  ;;  %18712 = vmatprep.mubr.bf16.mxu0 %v11530_v35 }
0x32a3   : > { %v11495_v36 = vpop.f32.mrb[13].mxu1  ;;  %18713 = vmatmul.mubr.bf16.gmra.mrb[24].mxu0 %v11531_v34  ;;  %v11524_v32 = vmax.f32 %v18686_v17, 0.0  ;;  %v19582_v17 = vld [vmem:[%s21693_s4 + $0x30] sm:$0xff]  }
0x32a4   : > { %v18687_v37 = vpop.f32.mrb[14].mxu1  ;;  %v11522_v29 = vmax.f32 %v11495_v36, 0.0  ;;  %18761 = vmatpush3.bf16.msra.mxu0 %v19580_v47  ;;  %v19605_v36 = vld [vmem:[%s21695_s6 + $0x28] sm:$0xff]  }
0x32a5   : > { %v11525_v33 = vmax.f32 %v18687_v37, 0.0  ;;  %v11498_v28 = vpop.f32.mrb[15].mxu1  ;;  %18762 = vmatprep.subr.bf16.mxu0 %v19581_v48 }
0x32a6   : > { %v11523_v24 = vmax.f32 %v11498_v28, 0.0 }
0x32a7   : > { %v11533_v25 = vpack.c.bf16 %v11525_v33, %v11524_v32 }
0x32a8   : > { %v11532_v20 = vpack.c.bf16 %v11523_v24, %v11522_v29  ;;  %18763 = vmatpush3.bf16.msra.mxu0 %v19581_v48 }
0x32a9   : > { %18764 = vmatprep.subr.bf16.mxu0 %v19582_v17 }
0x32aa   : > { %18716 = vmatprep.mubr.bf16.mxu0 %v11532_v20 }
0x32ab   : > { %18717 = vmatmul.mubr.bf16.gmra.mrb[28].mxu0 %v11533_v25 }
0x32ac   : > { %18765 = vmatpush3.bf16.msra.mxu0 %v19582_v17  ;;  %v19606_v17 = vld [vmem:[%s21695_s6 + $0x30] sm:$0xff]  }
0x3366   : > { %v18706_v49 = vpop.f32.mrb[16].mxu0 }
0x3367   : > { %v11639_v51 = vpop.f32.mrb[17].mxu0  ;;  %v11648_v53 = vadd.f32 %v18706_v49, %v15079_v50 }
0x3368   : > { %v18707_v52 = vpop.f32.mrb[18].mxu0  ;;  %v11640_v56 = vadd.f32 %v15079_v50, %v11639_v51 }
0x3369   : > { %v11651_v54 = vadd.f32 %v18707_v52, %v15079_v50  ;;  %v11642_v55 = vpop.f32.mrb[19].mxu0  ;;  %v19586_v52 = vld [vmem:[%s21691_s2 + $0x10] sm:$0xff]  }
0x336a   : > { %v11643_v57 = vadd.f32 %v15079_v50, %v11642_v55 }
0x336b   : > { %v11703_v58 = vpack.c.bf16 %v11651_v54, %v11648_v53 }
0x336c   : > { %v11702_v59 = vpack.c.bf16 %v11643_v57, %v11640_v56  ;;  %v19587_v57 = vld [vmem:[%s21691_s2 + $0x18] sm:$0xff]  }
0x336e   : > { %v18710_v60 = vpop.f32.mrb[20].mxu0  ;;  %18720 = vmatprep.subr.bf16.mxu1 %v11702_v59 }
0x336f   : > { %v11655_v61 = vpop.f32.mrb[21].mxu0  ;;  %18721 = vmatpush3.bf16.msra.mxu1 %v11702_v59  ;;  %v11664_v63 = vadd.f32 %v18710_v60, %v15079_v50 }
0x3370   : > { %v18711_v62 = vpop.f32.mrb[22].mxu0  ;;  %18722 = vmatprep.subr.bf16.mxu1 %v11703_v58  ;;  %v11656_v1 = vadd.f32 %v15079_v50, %v11655_v61 }
0x3371   : > { %v11667_v8 = vadd.f32 %v18711_v62, %v15079_v50  ;;  %v11658_v14 = vpop.f32.mrb[23].mxu0 }
0x3372   : > { %v11659_v16 = vadd.f32 %v15079_v50, %v11658_v14 }
0x3373   : > { %v11705_v42 = vpack.c.bf16 %v11667_v8, %v11664_v63  ;;  %18723 = vmatpush3.bf16.msra.mxu1 %v11703_v58  ;;  %v19588_v8 = vld [vmem:[%s21691_s2 + $0x20] sm:$0xff]  }
0x3374   : > { %v11704_v43 = vpack.c.bf16 %v11659_v16, %v11656_v1 }
0x3376   : > { %v18714_v5 = vpop.f32.mrb[24].mxu0  ;;  %18724 = vmatprep.subr.bf16.mxu1 %v11704_v43 }
0x3377   : > { %v11671_v6 = vpop.f32.mrb[25].mxu0  ;;  %18725 = vmatpush3.bf16.msra.mxu1 %v11704_v43  ;;  %v11680_v7 = vadd.f32 %v18714_v5, %v15079_v50  ;;  %v19589_v43 = vld [vmem:[%s21691_s2 + $0x28] sm:$0xff]  }
0x3378   : > { %v18715_v19 = vpop.f32.mrb[26].mxu0  ;;  %18726 = vmatprep.subr.bf16.mxu1 %v11705_v42  ;;  %v11672_v23 = vadd.f32 %v15079_v50, %v11671_v6 }
0x3379   : > { %v11683_v4 = vadd.f32 %v18715_v19, %v15079_v50  ;;  %v11674_v22 = vpop.f32.mrb[27].mxu0 }
0x337a   : > { %v11675_v39 = vadd.f32 %v15079_v50, %v11674_v22 }
0x337b   : > { %v11707_v2 = vpack.c.bf16 %v11683_v4, %v11680_v7  ;;  %18727 = vmatpush3.bf16.msra.mxu1 %v11705_v42 }
0x337c   : > { %v11706_v26 = vpack.c.bf16 %v11675_v39, %v11672_v23  ;;  %v19590_v23 = vld [vmem:[%s21691_s2 + $0x30] sm:$0xff]  }
0x337e   : > { %v18718_v27 = vpop.f32.mrb[28].mxu0  ;;  %18728 = vmatprep.subr.bf16.mxu1 %v11706_v26 }
0x337f   : > { %v11687_v15 = vpop.f32.mrb[29].mxu0  ;;  %18729 = vmatpush3.bf16.msra.mxu1 %v11706_v26  ;;  %v11696_v30 = vadd.f32 %v18718_v27, %v15079_v50 }
0x3380   : > { %v18719_v13 = vpop.f32.mrb[30].mxu0  ;;  %18730 = vmatprep.subr.bf16.mxu1 %v11707_v2  ;;  %v11688_v11 = vadd.f32 %v15079_v50, %v11687_v15  ;;  %v19592_v15 = vld [vmem:[%s19740_s17 + $0x1c0] sm:$0xff]  }
0x3381   : > { %v11699_v31 = vadd.f32 %v18719_v13, %v15079_v50  ;;  %v11690_v18 = vpop.f32.mrb[31].mxu0  ;;  %v19591_v13 = vld [vmem:[%s21691_s2 + $0x38] sm:$0xff]  }
0x3382   : > { %v11691_v12 = vadd.f32 %v15079_v50, %v11690_v18  ;;  %v19595_v18 = vld [vmem:[%s19740_s17 + $0x1d8] sm:$0xff]  }
0x3383   : > { %v11709_v34 = vpack.c.bf16 %v11699_v31, %v11696_v30  ;;  %18731 = vmatpush3.bf16.msra.mxu1 %v11707_v2  ;;  %v19593_v30 = vld [vmem:[%s19740_s17 + $0x1c8] sm:$0xff]   ;;  %v19594_v31 = vld [vmem:[%s19740_s17 + $0x1d0] sm:$0xff]  }
0x3384   : > { %v11708_v35 = vpack.c.bf16 %v11691_v12, %v11688_v11  ;;  %v19596_v11 = vld [vmem:[%s19740_s17 + $0x1e0] sm:$0xff]   ;;  %v19597_v12 = vld [vmem:[%s19740_s17 + $0x1e8] sm:$0xff]  }
0x3386   : > { %18732 = vmatprep.subr.bf16.mxu1 %v11708_v35 }
0x3387   : > { %18733 = vmatpush3.bf16.msra.mxu1 %v11708_v35  ;;  %v19599_v35 = vld [vmem:[%s19740_s17 + $0x1f8] sm:$0xff]  }
0x3388   : > { %18734 = vmatprep.subr.bf16.mxu1 %v11709_v34 }
0x338b   : > { %18735 = vmatpush3.bf16.msra.mxu1 %v11709_v34  ;;  %v19598_v34 = vld [vmem:[%s19740_s17 + $0x1f0] sm:$0xff]  }
0x338e   : > { %18737 = vmatmul.mubr.bf16.vlgmr.msra.gmra.mrb[16].mxu1 %v21223_v9  ;;  %v19583_v9 = vld [vmem:[%s21693_s4 + $0x38] sm:$0xff]  }
0x338f   : > { %18740 = vmatprep.mubr.bf16.mxu1 %v21226_v10  ;;  %18766 = vmatprep.subr.bf16.mxu0 %v19583_v9  ;;  %v19584_v10 = vld [vmem:[%s21691_s2] sm:$0xff]  }
0x3390   : > { %18767 = vmatpush3.bf16.msra.mxu0 %v19583_v9  ;;  %v19607_v9 = vld [vmem:[%s21695_s6 + $0x38] sm:$0xff]  }
0x3391   : > { %18816 = vmatprep.subr.bf16.mxu0 %v19584_v10 }
0x3396   : > { %18741 = vmatmul.mubr.bf16.gmra.mrb[20].mxu1 %v21231_v38  ;;  %v19600_v38 = vld [vmem:[%s21695_s6] sm:$0xff]  }
0x3397   : > { %18744 = vmatprep.mubr.bf16.mxu1 %v21234_v40  ;;  %v19601_v40 = vld [vmem:[%s21695_s6 + $0x8] sm:$0xff]   ;;  %18784 = vmatprep.subr.bf16.mxu1 %v19600_v38 }
0x3398   : > { %18785 = vmatpush3.bf16.msra.mxu1 %v19600_v38 }
0x3399   : > { %18786 = vmatprep.subr.bf16.mxu1 %v19601_v40 }
0x339c   : > { %18787 = vmatpush3.bf16.msra.mxu1 %v19601_v40 }
0x339e   : > { %18745 = vmatmul.mubr.bf16.gmra.mrb[24].mxu1 %v21239_v3  ;;  %v19602_v3 = vld [vmem:[%s21695_s6 + $0x10] sm:$0xff]  }
0x339f   : > { %18748 = vmatprep.mubr.bf16.mxu1 %v21242_v41  ;;  %18788 = vmatprep.subr.bf16.mxu1 %v19602_v3  ;;  %v19603_v41 = vld [vmem:[%s21695_s6 + $0x18] sm:$0xff]  }
0x33a0   : > { %18789 = vmatpush3.bf16.msra.mxu1 %v19602_v3 }
0x33a1   : > { %18790 = vmatprep.subr.bf16.mxu1 %v19603_v41 }
0x33a4   : > { %18791 = vmatpush3.bf16.msra.mxu1 %v19603_v41 }
0x33a6   : > { %18749 = vmatmul.mubr.bf16.gmra.mrb[28].mxu1 %v21247_v0  ;;  %v19604_v0 = vld [vmem:[%s21695_s6 + $0x20] sm:$0xff]  }
0x33a7   : > { %18792 = vmatprep.subr.bf16.mxu1 %v19604_v0 }
0x33a8   : > { %18793 = vmatpush3.bf16.msra.mxu1 %v19604_v0 }
0x33a9   : > { %18794 = vmatprep.subr.bf16.mxu1 %v19605_v36 }
0x33ac   : > { %18795 = vmatpush3.bf16.msra.mxu1 %v19605_v36 }
0x33ad   : > { %18796 = vmatprep.subr.bf16.mxu1 %v19606_v17 }
0x33b0   : > { %18797 = vmatpush3.bf16.msra.mxu1 %v19606_v17 }
0x33b1   : > { %18798 = vmatprep.subr.bf16.mxu1 %v19607_v9 }
0x33b4   : > { %18799 = vmatpush3.bf16.msra.mxu1 %v19607_v9 }
0x3461   : > { %v18738_v37 = vpop.f32.mrb[16].mxu1 }
0x3462   : > { %v11744_v32 = vpop.f32.mrb[17].mxu1  ;;  %v11809_v28 = vmax.f32 %v18738_v37, 0.0 }
0x3463   : > { %v18739_v33 = vpop.f32.mrb[18].mxu1  ;;  %v11807_v25 = vmax.f32 %v11744_v32, 0.0 }
0x3464   : > { %v11810_v29 = vmax.f32 %v18739_v33, 0.0  ;;  %v11747_v24 = vpop.f32.mrb[19].mxu1 }
0x3465   : > { %v11808_v20 = vmax.f32 %v11747_v24, 0.0 }
0x3466   : > { %v11824_v21 = vpack.c.bf16 %v11810_v29, %v11809_v28 }
0x3467   : > { %v11823_v44 = vpack.c.bf16 %v11808_v20, %v11807_v25 }
0x3469   : > { %v18742_v46 = vpop.f32.mrb[20].mxu1  ;;  %18768 = vmatprep.mubr.bf16.mxu0 %v11823_v44 }
0x346a   : > { %v11760_v47 = vpop.f32.mrb[21].mxu1  ;;  %18769 = vmatmul.mubr.bf16.vlgmr.msra.gmra.mrb[32].mxu0 %v11824_v21  ;;  %v11813_v49 = vmax.f32 %v18742_v46, 0.0 }
0x346b   : > { %v18743_v48 = vpop.f32.mrb[22].mxu1  ;;  %18817 = vmatpush3.bf16.msra.mxu0 %v19584_v10  ;;  %v11811_v53 = vmax.f32 %v11760_v47, 0.0  ;;  %v15088_v10 = vld [vmem:[%s21694_s5] ss:$0 sm:$0xff] }
0x346c   : > { %v11814_v50 = vmax.f32 %v18743_v48, 0.0  ;;  %v11763_v51 = vpop.f32.mrb[23].mxu1  ;;  %18818 = vmatprep.subr.bf16.mxu0 %v19585_v45 }
0x346d   : > { %v11812_v54 = vmax.f32 %v11763_v51, 0.0 }
0x346e   : > { %v11826_v55 = vpack.c.bf16 %v11814_v50, %v11813_v49 }
0x346f   : > { %v11825_v56 = vpack.c.bf16 %v11812_v54, %v11811_v53  ;;  %18819 = vmatpush3.bf16.msra.mxu0 %v19585_v45 }
0x3470   : > { %18820 = vmatprep.subr.bf16.mxu0 %v19586_v52 }
0x3471   : > { %v18746_v58 = vpop.f32.mrb[24].mxu1  ;;  %18772 = vmatprep.mubr.bf16.mxu0 %v11825_v56 }
0x3472   : > { %v11776_v59 = vpop.f32.mrb[25].mxu1  ;;  %18773 = vmatmul.mubr.bf16.gmra.mrb[36].mxu0 %v11826_v55  ;;  %v11817_v61 = vmax.f32 %v18746_v58, 0.0 }
0x3473   : > { %v18747_v60 = vpop.f32.mrb[26].mxu1  ;;  %18821 = vmatpush3.bf16.msra.mxu0 %v19586_v52  ;;  %v11815_v14 = vmax.f32 %v11776_v59, 0.0 }
0x3474   : > { %v11818_v62 = vmax.f32 %v18747_v60, 0.0  ;;  %v11779_v63 = vpop.f32.mrb[27].mxu1  ;;  %18822 = vmatprep.subr.bf16.mxu0 %v19587_v57 }
0x3475   : > { %v11816_v1 = vmax.f32 %v11779_v63, 0.0 }
0x3476   : > { %v11828_v16 = vpack.c.bf16 %v11818_v62, %v11817_v61 }
0x3477   : > { %v11827_v42 = vpack.c.bf16 %v11816_v1, %v11815_v14  ;;  %18823 = vmatpush3.bf16.msra.mxu0 %v19587_v57 }
0x3478   : > { %18824 = vmatprep.subr.bf16.mxu0 %v19588_v8 }
0x3479   : > { %v18750_v5 = vpop.f32.mrb[28].mxu1  ;;  %18776 = vmatprep.mubr.bf16.mxu0 %v11827_v42 }
0x347a   : > { %v11792_v6 = vpop.f32.mrb[29].mxu1  ;;  %18777 = vmatmul.mubr.bf16.gmra.mrb[40].mxu0 %v11828_v16  ;;  %v11821_v7 = vmax.f32 %v18750_v5, 0.0 }
0x347b   : > { %v18751_v19 = vpop.f32.mrb[30].mxu1  ;;  %18825 = vmatpush3.bf16.msra.mxu0 %v19588_v8  ;;  %v11819_v39 = vmax.f32 %v11792_v6, 0.0 }
0x347c   : > { %v11822_v4 = vmax.f32 %v18751_v19, 0.0  ;;  %v11795_v22 = vpop.f32.mrb[31].mxu1  ;;  %18826 = vmatprep.subr.bf16.mxu0 %v19589_v43 }
0x347d   : > { %v11820_v2 = vmax.f32 %v11795_v22, 0.0 }
0x347e   : > { %v11830_v26 = vpack.c.bf16 %v11822_v4, %v11821_v7 }
0x347f   : > { %v11829_v27 = vpack.c.bf16 %v11820_v2, %v11819_v39  ;;  %18827 = vmatpush3.bf16.msra.mxu0 %v19589_v43 }
0x3480   : > { %18828 = vmatprep.subr.bf16.mxu0 %v19590_v23 }
0x3481   : > { %18780 = vmatprep.mubr.bf16.mxu0 %v11829_v27 }
0x3482   : > { %18781 = vmatmul.mubr.bf16.gmra.mrb[44].mxu0 %v11830_v26 }
0x3483   : > { %18829 = vmatpush3.bf16.msra.mxu0 %v19590_v23  ;;  %18832 = vmatprep.mubr.bf16.mxu0 %v19592_v15 }
0x3484   : > { %18830 = vmatprep.subr.bf16.mxu0 %v19591_v13 }
0x3487   : > { %18831 = vmatpush3.bf16.msra.mxu0 %v19591_v13 }
0x348a   : > { %18833 = vmatmul.mubr.bf16.vlgmr.msra.gmra.mrb[48].mxu0 %v19593_v30 }
0x348b   : > { %18836 = vmatprep.mubr.bf16.mxu0 %v19594_v31 }
0x3492   : > { %18837 = vmatmul.mubr.bf16.gmra.mrb[52].mxu0 %v19595_v18 }
0x3493   : > { %18840 = vmatprep.mubr.bf16.mxu0 %v19596_v11  ;;  %v15154_v11 = vld [vmem:[%s21692_s3] ss:$0 sm:$0xff] }
0x349a   : > { %18841 = vmatmul.mubr.bf16.gmra.mrb[56].mxu0 %v19597_v12  ;;  %v21461_v12 = vld [vmem:[%s19755_s26 + $0x1c0] sm:$0xff]  }
0x349b   : > { %18844 = vmatprep.mubr.bf16.mxu0 %v19598_v34 }
0x34a2   : > { %18845 = vmatmul.mubr.bf16.gmra.mrb[60].mxu0 %v19599_v35 }
0x353d   : > { %v18770_v38 = vpop.f32.mrb[32].mxu0 }
0x353e   : > { %v11945_v40 = vadd.f32 %v18770_v38, %v15088_v10  ;;  %v11936_v3 = vpop.f32.mrb[33].mxu0 }
0x353f   : > { %v11937_v41 = vadd.f32 %v15088_v10, %v11936_v3  ;;  %v18771_v0 = vpop.f32.mrb[34].mxu0 }
0x3540   : > { %v11948_v36 = vadd.f32 %v18771_v0, %v15088_v10  ;;  %v11939_v37 = vpop.f32.mrb[35].mxu0  ;;  %v12001_v33 = vmax.f32 %v11945_v40, 0.0 }
0x3541   : > { %v11940_v32 = vadd.f32 %v15088_v10, %v11939_v37  ;;  %v11999_v29 = vmax.f32 %v11937_v41, 0.0 }
0x3542   : > { %v12002_v28 = vmax.f32 %v11948_v36, 0.0 }
0x3543   : > { %v12000_v24 = vmax.f32 %v11940_v32, 0.0 }
0x3544   : > { %v12016_v25 = vpack.c.bf16 %v12002_v28, %v12001_v33 }
0x3545   : > { %v12015_v20 = vpack.c.bf16 %v12000_v24, %v11999_v29  ;;  %v18774_v21 = vpop.f32.mrb[36].mxu0 }
0x3546   : > { %v11961_v44 = vadd.f32 %v18774_v21, %v15088_v10  ;;  %v11952_v45 = vpop.f32.mrb[37].mxu0 }
0x3547   : > { %v11953_v46 = vadd.f32 %v15088_v10, %v11952_v45  ;;  %v18775_v47 = vpop.f32.mrb[38].mxu0  ;;  %18800 = vmatprep.mubr.bf16.mxu1 %v12015_v20 }
0x3548   : > { %v11964_v48 = vadd.f32 %v18775_v47, %v15088_v10  ;;  %v11955_v49 = vpop.f32.mrb[39].mxu0  ;;  %18801 = vmatmul.mubr.bf16.vlgmr.msra.gmra.mrb[32].mxu1 %v12016_v25  ;;  %v12005_v51 = vmax.f32 %v11961_v44, 0.0 }
0x3549   : > { %v11956_v50 = vadd.f32 %v15088_v10, %v11955_v49  ;;  %v12003_v53 = vmax.f32 %v11953_v46, 0.0 }
0x354a   : > { %v12006_v52 = vmax.f32 %v11964_v48, 0.0 }
0x354b   : > { %v12004_v54 = vmax.f32 %v11956_v50, 0.0 }
0x354c   : > { %v12018_v55 = vpack.c.bf16 %v12006_v52, %v12005_v51 }
0x354d   : > { %v12017_v56 = vpack.c.bf16 %v12004_v54, %v12003_v53  ;;  %v18778_v57 = vpop.f32.mrb[40].mxu0 }
0x354e   : > { %v11977_v58 = vadd.f32 %v18778_v57, %v15088_v10  ;;  %v11968_v59 = vpop.f32.mrb[41].mxu0 }
0x354f   : > { %v11969_v60 = vadd.f32 %v15088_v10, %v11968_v59  ;;  %v18779_v61 = vpop.f32.mrb[42].mxu0  ;;  %18804 = vmatprep.mubr.bf16.mxu1 %v12017_v56 }
0x3550   : > { %v11980_v62 = vadd.f32 %v18779_v61, %v15088_v10  ;;  %v11971_v63 = vpop.f32.mrb[43].mxu0  ;;  %18805 = vmatmul.mubr.bf16.gmra.mrb[36].mxu1 %v12018_v55  ;;  %v12009_v14 = vmax.f32 %v11977_v58, 0.0 }
0x3551   : > { %v11972_v8 = vadd.f32 %v15088_v10, %v11971_v63  ;;  %v12007_v16 = vmax.f32 %v11969_v60, 0.0  ;;  %v21465_v63 = vld [vmem:[%s19755_s26 + $0x1c8] sm:$0xff]  }
0x3552   : > { %v12010_v1 = vmax.f32 %v11980_v62, 0.0 }
0x3553   : > { %v12008_v42 = vmax.f32 %v11972_v8, 0.0  ;;  %v21468_v8 = vld [vmem:[%s19755_s26 + $0x1d0] sm:$0xff]  }
0x3554   : > { %v12020_v43 = vpack.c.bf16 %v12010_v1, %v12009_v14  ;;  %v21473_v14 = vld [vmem:[%s19755_s26 + $0x1d8] sm:$0xff]   ;;  %v21476_v1 = vld [vmem:[%s19755_s26 + $0x1e0] sm:$0xff]  }
0x3555   : > { %v12019_v5 = vpack.c.bf16 %v12008_v42, %v12007_v16  ;;  %v18782_v6 = vpop.f32.mrb[44].mxu0  ;;  %v21481_v16 = vld [vmem:[%s19755_s26 + $0x1e8] sm:$0xff]   ;;  %v21484_v42 = vld [vmem:[%s19755_s26 + $0x1f0] sm:$0xff]  }
0x3556   : > { %v11993_v19 = vadd.f32 %v18782_v6, %v15088_v10  ;;  %v11984_v7 = vpop.f32.mrb[45].mxu0  ;;  %v19617_v6 = vld [vmem:[%s21691_s2 + $0x48] sm:$0xff]  }
0x3557   : > { %v11985_v4 = vadd.f32 %v15088_v10, %v11984_v7  ;;  %v18783_v22 = vpop.f32.mrb[46].mxu0  ;;  %18808 = vmatprep.mubr.bf16.mxu1 %v12019_v5  ;;  %v19616_v5 = vld [vmem:[%s21691_s2 + $0x40] sm:$0xff]   ;;  %v19619_v7 = vld [vmem:[%s21691_s2 + $0x58] sm:$0xff]  }
0x3558   : > { %v11996_v23 = vadd.f32 %v18783_v22, %v15088_v10  ;;  %v11987_v39 = vpop.f32.mrb[47].mxu0  ;;  %18809 = vmatmul.mubr.bf16.gmra.mrb[40].mxu1 %v12020_v43  ;;  %v12013_v26 = vmax.f32 %v11993_v19, 0.0  ;;  %v21489_v43 = vld [vmem:[%s19755_s26 + $0x1f8] sm:$0xff]   ;;  %18880 = vmatprep.subr.bf16.mxu0 %v19616_v5  ;;  %v19618_v19 = vld [vmem:[%s21691_s2 + $0x50] sm:$0xff]   ;;  %v19621_v22 = vld [vmem:[%s21691_s2 + $0x68] sm:$0xff]  }
0x3559   : > { %v11988_v2 = vadd.f32 %v15088_v10, %v11987_v39  ;;  %v12011_v15 = vmax.f32 %v11985_v4, 0.0  ;;  %18881 = vmatpush3.bf16.msra.mxu0 %v19616_v5  ;;  %v19620_v4 = vld [vmem:[%s21691_s2 + $0x60] sm:$0xff]   ;;  %v19623_v39 = vld [vmem:[%s21691_s2 + $0x78] sm:$0xff]  }
0x355a   : > { %v12014_v27 = vmax.f32 %v11996_v23, 0.0  ;;  %18882 = vmatprep.subr.bf16.mxu0 %v19617_v6  ;;  %v19622_v23 = vld [vmem:[%s21691_s2 + $0x70] sm:$0xff]  }
0x355b   : > { %v12012_v13 = vmax.f32 %v11988_v2, 0.0  ;;  %v15097_v2 = vld [vmem:[%s21696_s7] ss:$0 sm:$0xff] }
0x355c   : > { %v12022_v30 = vpack.c.bf16 %v12014_v27, %v12013_v26 }
0x355d   : > { %v12021_v31 = vpack.c.bf16 %v12012_v13, %v12011_v15  ;;  %v18834_v18 = vpop.f32.mrb[48].mxu0  ;;  %18883 = vmatpush3.bf16.msra.mxu0 %v19617_v6 }
0x355e   : > { %v12395_v34 = vpop.f32.mrb[49].mxu0  ;;  %v12404_v17 = vadd.f32 %v18834_v18, %v15154_v11  ;;  %18884 = vmatprep.subr.bf16.mxu0 %v19618_v19 }
0x355f   : > { %18812 = vmatprep.mubr.bf16.mxu1 %v12021_v31  ;;  %v18835_v35 = vpop.f32.mrb[50].mxu0  ;;  %v12396_v38 = vadd.f32 %v15154_v11, %v12395_v34 }
0x3560   : > { %v12407_v9 = vadd.f32 %v18835_v35, %v15154_v11  ;;  %18813 = vmatmul.mubr.bf16.gmra.mrb[44].mxu1 %v12022_v30  ;;  %v12398_v10 = vpop.f32.mrb[51].mxu0 }
0x3561   : > { %v12399_v40 = vadd.f32 %v15154_v11, %v12398_v10  ;;  %18864 = vmatprep.mubr.bf16.mxu1 %v21461_v12  ;;  %18885 = vmatpush3.bf16.msra.mxu0 %v19618_v19 }
0x3562   : > { %v12459_v3 = vpack.c.bf16 %v12407_v9, %v12404_v17  ;;  %18886 = vmatprep.subr.bf16.mxu0 %v19619_v7 }
0x3563   : > { %v12458_v41 = vpack.c.bf16 %v12399_v40, %v12396_v38 }
0x3565   : > { %v18838_v0 = vpop.f32.mrb[52].mxu0  ;;  %18848 = vmatprep.subr.bf16.mxu1 %v12458_v41  ;;  %18887 = vmatpush3.bf16.msra.mxu0 %v19619_v7 }
0x3566   : > { %v12411_v36 = vpop.f32.mrb[53].mxu0  ;;  %18849 = vmatpush3.bf16.msra.mxu1 %v12458_v41  ;;  %v12420_v32 = vadd.f32 %v18838_v0, %v15154_v11  ;;  %18888 = vmatprep.subr.bf16.mxu0 %v19620_v4 }
0x3567   : > { %v18839_v37 = vpop.f32.mrb[54].mxu0  ;;  %18850 = vmatprep.subr.bf16.mxu1 %v12459_v3  ;;  %v12412_v29 = vadd.f32 %v15154_v11, %v12411_v36 }
0x3568   : > { %v12423_v33 = vadd.f32 %v18839_v37, %v15154_v11  ;;  %v12414_v28 = vpop.f32.mrb[55].mxu0 }
0x3569   : > { %v12415_v24 = vadd.f32 %v15154_v11, %v12414_v28  ;;  %18889 = vmatpush3.bf16.msra.mxu0 %v19620_v4 }
0x356a   : > { %v12461_v25 = vpack.c.bf16 %v12423_v33, %v12420_v32  ;;  %18851 = vmatpush3.bf16.msra.mxu1 %v12459_v3  ;;  %18890 = vmatprep.subr.bf16.mxu0 %v19621_v22 }
0x356b   : > { %v12460_v20 = vpack.c.bf16 %v12415_v24, %v12412_v29 }
0x356d   : > { %v18842_v21 = vpop.f32.mrb[56].mxu0  ;;  %18852 = vmatprep.subr.bf16.mxu1 %v12460_v20  ;;  %18891 = vmatpush3.bf16.msra.mxu0 %v19621_v22 }
0x356e   : > { %v12427_v44 = vpop.f32.mrb[57].mxu0  ;;  %18853 = vmatpush3.bf16.msra.mxu1 %v12460_v20  ;;  %v12436_v46 = vadd.f32 %v18842_v21, %v15154_v11  ;;  %18892 = vmatprep.subr.bf16.mxu0 %v19622_v23 }
0x356f   : > { %v18843_v45 = vpop.f32.mrb[58].mxu0  ;;  %18854 = vmatprep.subr.bf16.mxu1 %v12461_v25  ;;  %v12428_v49 = vadd.f32 %v15154_v11, %v12427_v44 }
0x3570   : > { %v12439_v47 = vadd.f32 %v18843_v45, %v15154_v11  ;;  %v12430_v48 = vpop.f32.mrb[59].mxu0 }
0x3571   : > { %v12431_v50 = vadd.f32 %v15154_v11, %v12430_v48  ;;  %18893 = vmatpush3.bf16.msra.mxu0 %v19622_v23 }
0x3572   : > { %v12463_v51 = vpack.c.bf16 %v12439_v47, %v12436_v46  ;;  %18855 = vmatpush3.bf16.msra.mxu1 %v12461_v25  ;;  %18894 = vmatprep.subr.bf16.mxu0 %v19623_v39 }
0x3573   : > { %v12462_v52 = vpack.c.bf16 %v12431_v50, %v12428_v49 }
0x3575   : > { %v18846_v53 = vpop.f32.mrb[60].mxu0  ;;  %18856 = vmatprep.subr.bf16.mxu1 %v12462_v52  ;;  %18895 = vmatpush3.bf16.msra.mxu0 %v19623_v39 }
0x3576   : > { %v12443_v54 = vpop.f32.mrb[61].mxu0  ;;  %18857 = vmatpush3.bf16.msra.mxu1 %v12462_v52  ;;  %v12452_v56 = vadd.f32 %v18846_v53, %v15154_v11 }
0x3577   : > { %v18847_v55 = vpop.f32.mrb[62].mxu0  ;;  %18858 = vmatprep.subr.bf16.mxu1 %v12463_v51  ;;  %v12444_v59 = vadd.f32 %v15154_v11, %v12443_v54 }
0x3578   : > { %v12455_v57 = vadd.f32 %v18847_v55, %v15154_v11  ;;  %v12446_v58 = vpop.f32.mrb[63].mxu0 }
0x3579   : > { %v12447_v60 = vadd.f32 %v15154_v11, %v12446_v58 }
0x357a   : > { %v12465_v61 = vpack.c.bf16 %v12455_v57, %v12452_v56  ;;  %18859 = vmatpush3.bf16.msra.mxu1 %v12463_v51 }
0x357b   : > { %v12464_v62 = vpack.c.bf16 %v12447_v60, %v12444_v59 }
0x357d   : > { %18860 = vmatprep.subr.bf16.mxu1 %v12464_v62 }
0x357e   : > { %18861 = vmatpush3.bf16.msra.mxu1 %v12464_v62 }
0x357f   : > { %18862 = vmatprep.subr.bf16.mxu1 %v12465_v61 }
0x3582   : > { %18863 = vmatpush3.bf16.msra.mxu1 %v12465_v61 }
0x3585   : > { %18865 = vmatmul.mubr.bf16.vlgmr.msra.gmra.mrb[48].mxu1 %v21465_v63 }
0x3586   : > { %18868 = vmatprep.mubr.bf16.mxu1 %v21468_v8 }
0x358d   : > { %18869 = vmatmul.mubr.bf16.gmra.mrb[52].mxu1 %v21473_v14 }
0x358e   : > { %18872 = vmatprep.mubr.bf16.mxu1 %v21476_v1 }
0x3595   : > { %18873 = vmatmul.mubr.bf16.gmra.mrb[56].mxu1 %v21481_v16 }
0x3596   : > { %18876 = vmatprep.mubr.bf16.mxu1 %v21484_v42 }
0x359d   : > { %18877 = vmatmul.mubr.bf16.gmra.mrb[60].mxu1 %v21489_v43 }
0x359e   : > { %18928 = vmatprep.mubr.bf16.mxu1 %v21461_v12 }
0x361b   : > { %v18802_v26 = vpop.f32.mrb[32].mxu1 }
0x361c   : > { %v12137_v27 = vadd.f32 %v18802_v26, %v15097_v2  ;;  %v12128_v15 = vpop.f32.mrb[33].mxu1 }
0x361d   : > { %v12129_v13 = vadd.f32 %v15097_v2, %v12128_v15  ;;  %v18803_v30 = vpop.f32.mrb[34].mxu1 }
0x361e   : > { %15108 = vst [vmem:[%s20066_s14 + $0x310] sm:$0xff] %v12137_v27  ;;  %v12140_v31 = vadd.f32 %v18803_v30, %v15097_v2  ;;  %v12131_v18 = vpop.f32.mrb[35].mxu1 }
0x361f   : > { %15106 = vst [vmem:[%s20066_s14 + $0x300] sm:$0xff] %v12129_v13  ;;  %v12132_v11 = vadd.f32 %v15097_v2, %v12131_v18 }
0x3620   : > { %15109 = vst [vmem:[%s20066_s14 + $0x318] sm:$0xff] %v12140_v31 }
0x3621   : > { %15107 = vst [vmem:[%s20066_s14 + $0x308] sm:$0xff] %v12132_v11 }
0x3623   : > { %v18806_v34 = vpop.f32.mrb[36].mxu1 }
0x3624   : > { %v12153_v35 = vadd.f32 %v18806_v34, %v15097_v2  ;;  %v12144_v17 = vpop.f32.mrb[37].mxu1 }
0x3625   : > { %v12145_v9 = vadd.f32 %v15097_v2, %v12144_v17  ;;  %v18807_v10 = vpop.f32.mrb[38].mxu1 }
0x3626   : > { %15112 = vst [vmem:[%s20066_s14 + $0x330] sm:$0xff] %v12153_v35  ;;  %v12156_v38 = vadd.f32 %v18807_v10, %v15097_v2  ;;  %v12147_v40 = vpop.f32.mrb[39].mxu1 }
0x3627   : > { %15110 = vst [vmem:[%s20066_s14 + $0x320] sm:$0xff] %v12145_v9  ;;  %v12148_v3 = vadd.f32 %v15097_v2, %v12147_v40 }
0x3628   : > { %15113 = vst [vmem:[%s20066_s14 + $0x338] sm:$0xff] %v12156_v38 }
0x3629   : > { %15111 = vst [vmem:[%s20066_s14 + $0x328] sm:$0xff] %v12148_v3 }
0x362b   : > { %v18810_v41 = vpop.f32.mrb[40].mxu1 }
0x362c   : > { %v12169_v0 = vadd.f32 %v18810_v41, %v15097_v2  ;;  %v12160_v36 = vpop.f32.mrb[41].mxu1  ;;  %v19624_v41 = vld [vmem:[%s21691_s2 + $0x80] sm:$0xff]  }
0x362d   : > { %v12161_v37 = vadd.f32 %v15097_v2, %v12160_v36  ;;  %v18811_v32 = vpop.f32.mrb[42].mxu1  ;;  %18944 = vmatprep.subr.bf16.mxu0 %v19624_v41  ;;  %v19626_v36 = vld [vmem:[%s21691_s2 + $0x90] sm:$0xff]  }
0x362e   : > { %15116 = vst [vmem:[%s20066_s14 + $0x350] sm:$0xff] %v12169_v0  ;;  %v12172_v33 = vadd.f32 %v18811_v32, %v15097_v2  ;;  %v12163_v28 = vpop.f32.mrb[43].mxu1  ;;  %v19625_v0 = vld [vmem:[%s21691_s2 + $0x88] sm:$0xff]   ;;  %v19628_v32 = vld [vmem:[%s21691_s2 + $0xa0] sm:$0xff]  }
0x362f   : > { %15114 = vst [vmem:[%s20066_s14 + $0x340] sm:$0xff] %v12161_v37  ;;  %v12164_v29 = vadd.f32 %v15097_v2, %v12163_v28  ;;  %v19627_v37 = vld [vmem:[%s21691_s2 + $0x98] sm:$0xff]  }
0x3630   : > { %15117 = vst [vmem:[%s20066_s14 + $0x358] sm:$0xff] %v12172_v33  ;;  %v19629_v33 = vld [vmem:[%s21691_s2 + $0xa8] sm:$0xff]  }
0x3631   : > { %15115 = vst [vmem:[%s20066_s14 + $0x348] sm:$0xff] %v12164_v29  ;;  %v15196_v29 = vld [vmem:[%s21692_s3 + $0x1] ss:$0 sm:$0xff] }
0x3633   : > { %v18814_v24 = vpop.f32.mrb[44].mxu1 }
0x3634   : > { %v12185_v25 = vadd.f32 %v18814_v24, %v15097_v2  ;;  %v12176_v20 = vpop.f32.mrb[45].mxu1 }
0x3635   : > { %v12177_v21 = vadd.f32 %v15097_v2, %v12176_v20  ;;  %v18815_v44 = vpop.f32.mrb[46].mxu1 }
0x3636   : > { %15120 = vst [vmem:[%s20066_s14 + $0x370] sm:$0xff] %v12185_v25  ;;  %v12188_v45 = vadd.f32 %v18815_v44, %v15097_v2  ;;  %v12179_v46 = vpop.f32.mrb[47].mxu1 }
0x3637   : > { %15118 = vst [vmem:[%s20066_s14 + $0x360] sm:$0xff] %v12177_v21  ;;  %v12180_v47 = vadd.f32 %v15097_v2, %v12179_v46 }
0x3638   : > { %15121 = vst [vmem:[%s20066_s14 + $0x378] sm:$0xff] %v12188_v45 }
0x3639   : > { %15119 = vst [vmem:[%s20066_s14 + $0x368] sm:$0xff] %v12180_v47 }
0x3658   : > { %v18866_v48 = vpop.f32.mrb[48].mxu1 }
0x3659   : > { %v12548_v49 = vpop.f32.mrb[49].mxu1  ;;  %v12613_v51 = vmax.f32 %v18866_v48, 0.0 }
0x365a   : > { %v18867_v50 = vpop.f32.mrb[50].mxu1  ;;  %v12611_v54 = vmax.f32 %v12548_v49, 0.0 }
0x365b   : > { %v12614_v52 = vmax.f32 %v18867_v50, 0.0  ;;  %v12551_v53 = vpop.f32.mrb[51].mxu1 }
0x365c   : > { %v12612_v55 = vmax.f32 %v12551_v53, 0.0 }
0x365d   : > { %v12628_v56 = vpack.c.bf16 %v12614_v52, %v12613_v51 }
0x365e   : > { %v12627_v57 = vpack.c.bf16 %v12612_v55, %v12611_v54 }
0x3660   : > { %v18870_v58 = vpop.f32.mrb[52].mxu1  ;;  %18896 = vmatprep.mubr.bf16.mxu0 %v12627_v57 }
0x3661   : > { %v12564_v59 = vpop.f32.mrb[53].mxu1  ;;  %18897 = vmatmul.mubr.bf16.vlgmr.msra.gmra.mrb[64].mxu0 %v12628_v56  ;;  %v12617_v61 = vmax.f32 %v18870_v58, 0.0 }
0x3662   : > { %v18871_v60 = vpop.f32.mrb[54].mxu1  ;;  %v12615_v6 = vmax.f32 %v12564_v59, 0.0  ;;  %18945 = vmatpush3.bf16.msra.mxu0 %v19624_v41 }
0x3663   : > { %v12618_v62 = vmax.f32 %v18871_v60, 0.0  ;;  %v12567_v5 = vpop.f32.mrb[55].mxu1  ;;  %18946 = vmatprep.subr.bf16.mxu0 %v19625_v0 }
0x3664   : > { %v12616_v19 = vmax.f32 %v12567_v5, 0.0 }
0x3665   : > { %v12630_v7 = vpack.c.bf16 %v12618_v62, %v12617_v61 }
0x3666   : > { %v12629_v4 = vpack.c.bf16 %v12616_v19, %v12615_v6  ;;  %18947 = vmatpush3.bf16.msra.mxu0 %v19625_v0 }
0x3667   : > { %18948 = vmatprep.subr.bf16.mxu0 %v19626_v36 }
0x3668   : > { %v18874_v22 = vpop.f32.mrb[56].mxu1  ;;  %18900 = vmatprep.mubr.bf16.mxu0 %v12629_v4 }
0x3669   : > { %v12580_v23 = vpop.f32.mrb[57].mxu1  ;;  %18901 = vmatmul.mubr.bf16.gmra.mrb[68].mxu0 %v12630_v7  ;;  %v12621_v2 = vmax.f32 %v18874_v22, 0.0 }
0x366a   : > { %v18875_v39 = vpop.f32.mrb[58].mxu1  ;;  %v12619_v15 = vmax.f32 %v12580_v23, 0.0  ;;  %18949 = vmatpush3.bf16.msra.mxu0 %v19626_v36 }
0x366b   : > { %v12622_v26 = vmax.f32 %v18875_v39, 0.0  ;;  %v12583_v27 = vpop.f32.mrb[59].mxu1  ;;  %18950 = vmatprep.subr.bf16.mxu0 %v19627_v37 }
0x366c   : > { %v12620_v13 = vmax.f32 %v12583_v27, 0.0 }
0x366d   : > { %v12632_v30 = vpack.c.bf16 %v12622_v26, %v12621_v2 }
0x366e   : > { %v12631_v31 = vpack.c.bf16 %v12620_v13, %v12619_v15  ;;  %18951 = vmatpush3.bf16.msra.mxu0 %v19627_v37 }
0x366f   : > { %18952 = vmatprep.subr.bf16.mxu0 %v19628_v32 }
0x3670   : > { %v18878_v18 = vpop.f32.mrb[60].mxu1  ;;  %18904 = vmatprep.mubr.bf16.mxu0 %v12631_v31 }
0x3671   : > { %v12596_v11 = vpop.f32.mrb[61].mxu1  ;;  %18905 = vmatmul.mubr.bf16.gmra.mrb[72].mxu0 %v12632_v30  ;;  %v12625_v35 = vmax.f32 %v18878_v18, 0.0 }
0x3672   : > { %v18879_v34 = vpop.f32.mrb[62].mxu1  ;;  %v12623_v10 = vmax.f32 %v12596_v11, 0.0  ;;  %18953 = vmatpush3.bf16.msra.mxu0 %v19628_v32  ;;  %v19630_v11 = vld [vmem:[%s21691_s2 + $0xb0] sm:$0xff]  }
0x3673   : > { %v12626_v17 = vmax.f32 %v18879_v34, 0.0  ;;  %v12599_v9 = vpop.f32.mrb[63].mxu1  ;;  %18954 = vmatprep.subr.bf16.mxu0 %v19629_v33  ;;  %v19631_v34 = vld [vmem:[%s21691_s2 + $0xb8] sm:$0xff]  }
0x3674   : > { %v12624_v38 = vmax.f32 %v12599_v9, 0.0 }
0x3675   : > { %v12634_v40 = vpack.c.bf16 %v12626_v17, %v12625_v35 }
0x3676   : > { %v12633_v3 = vpack.c.bf16 %v12624_v38, %v12623_v10  ;;  %18955 = vmatpush3.bf16.msra.mxu0 %v19629_v33 }
0x3677   : > { %18956 = vmatprep.subr.bf16.mxu0 %v19630_v11 }
0x3678   : > { %18908 = vmatprep.mubr.bf16.mxu0 %v12633_v3 }
0x3679   : > { %18909 = vmatmul.mubr.bf16.gmra.mrb[76].mxu0 %v12634_v40 }
0x367a   : > { %18957 = vmatpush3.bf16.msra.mxu0 %v19630_v11 }
0x367b   : > { %18958 = vmatprep.subr.bf16.mxu0 %v19631_v34 }
0x367e   : > { %18959 = vmatpush3.bf16.msra.mxu0 %v19631_v34 }
0x3734   : > { %v18898_v28 = vpop.f32.mrb[64].mxu0 }
0x3735   : > { %v12740_v24 = vpop.f32.mrb[65].mxu0  ;;  %v12749_v20 = vadd.f32 %v18898_v28, %v15196_v29 }
0x3736   : > { %v18899_v25 = vpop.f32.mrb[66].mxu0  ;;  %v12741_v45 = vadd.f32 %v15196_v29, %v12740_v24 }
0x3737   : > { %v12752_v21 = vadd.f32 %v18899_v25, %v15196_v29  ;;  %v12743_v44 = vpop.f32.mrb[67].mxu0 }
0x3738   : > { %v12744_v46 = vadd.f32 %v15196_v29, %v12743_v44 }
0x3739   : > { %v12804_v47 = vpack.c.bf16 %v12752_v21, %v12749_v20 }
0x373a   : > { %v12803_v48 = vpack.c.bf16 %v12744_v46, %v12741_v45 }
0x373c   : > { %v18902_v49 = vpop.f32.mrb[68].mxu0  ;;  %18912 = vmatprep.subr.bf16.mxu1 %v12803_v48 }
0x373d   : > { %v12756_v50 = vpop.f32.mrb[69].mxu0  ;;  %18913 = vmatpush3.bf16.msra.mxu1 %v12803_v48  ;;  %v12765_v52 = vadd.f32 %v18902_v49, %v15196_v29 }
0x373e   : > { %v18903_v51 = vpop.f32.mrb[70].mxu0  ;;  %18914 = vmatprep.subr.bf16.mxu1 %v12804_v47  ;;  %v12757_v55 = vadd.f32 %v15196_v29, %v12756_v50 }
0x373f   : > { %v12768_v53 = vadd.f32 %v18903_v51, %v15196_v29  ;;  %v12759_v54 = vpop.f32.mrb[71].mxu0 }
0x3740   : > { %v12760_v56 = vadd.f32 %v15196_v29, %v12759_v54 }
0x3741   : > { %v12806_v57 = vpack.c.bf16 %v12768_v53, %v12765_v52  ;;  %18915 = vmatpush3.bf16.msra.mxu1 %v12804_v47 }
0x3742   : > { %v12805_v58 = vpack.c.bf16 %v12760_v56, %v12757_v55 }
0x3744   : > { %v18906_v59 = vpop.f32.mrb[72].mxu0  ;;  %18916 = vmatprep.subr.bf16.mxu1 %v12805_v58 }
0x3745   : > { %v12772_v60 = vpop.f32.mrb[73].mxu0  ;;  %18917 = vmatpush3.bf16.msra.mxu1 %v12805_v58  ;;  %v12781_v62 = vadd.f32 %v18906_v59, %v15196_v29 }
0x3746   : > { %v18907_v61 = vpop.f32.mrb[74].mxu0  ;;  %18918 = vmatprep.subr.bf16.mxu1 %v12806_v57  ;;  %v12773_v19 = vadd.f32 %v15196_v29, %v12772_v60 }
0x3747   : > { %v12784_v5 = vadd.f32 %v18907_v61, %v15196_v29  ;;  %v12775_v6 = vpop.f32.mrb[75].mxu0 }
0x3748   : > { %v12776_v7 = vadd.f32 %v15196_v29, %v12775_v6 }
0x3749   : > { %v12808_v4 = vpack.c.bf16 %v12784_v5, %v12781_v62  ;;  %18919 = vmatpush3.bf16.msra.mxu1 %v12806_v57 }
0x374a   : > { %v12807_v22 = vpack.c.bf16 %v12776_v7, %v12773_v19  ;;  %v19632_v19 = vld [vmem:[%s21691_s2 + $0xc0] sm:$0xff]   ;;  %v19633_v7 = vld [vmem:[%s21691_s2 + $0xc8] sm:$0xff]  }
0x374b   : > { %19008 = vmatprep.subr.bf16.mxu0 %v19632_v19 }
0x374c   : > { %v18910_v23 = vpop.f32.mrb[76].mxu0  ;;  %18920 = vmatprep.subr.bf16.mxu1 %v12807_v22 }
0x374d   : > { %v12788_v39 = vpop.f32.mrb[77].mxu0  ;;  %18921 = vmatpush3.bf16.msra.mxu1 %v12807_v22  ;;  %v12797_v26 = vadd.f32 %v18910_v23, %v15196_v29  ;;  %v19635_v22 = vld [vmem:[%s21691_s2 + $0xd8] sm:$0xff]   ;;  %v19636_v23 = vld [vmem:[%s21691_s2 + $0xe0] sm:$0xff]  }
0x374e   : > { %v18911_v2 = vpop.f32.mrb[78].mxu0  ;;  %18922 = vmatprep.subr.bf16.mxu1 %v12808_v4  ;;  %v12789_v13 = vadd.f32 %v15196_v29, %v12788_v39  ;;  %v19637_v39 = vld [vmem:[%s21691_s2 + $0xe8] sm:$0xff]  }
0x374f   : > { %v12800_v27 = vadd.f32 %v18911_v2, %v15196_v29  ;;  %v12791_v15 = vpop.f32.mrb[79].mxu0 }
0x3750   : > { %v12792_v30 = vadd.f32 %v15196_v29, %v12791_v15 }
0x3751   : > { %v12810_v31 = vpack.c.bf16 %v12800_v27, %v12797_v26  ;;  %18923 = vmatpush3.bf16.msra.mxu1 %v12808_v4  ;;  %v19634_v4 = vld [vmem:[%s21691_s2 + $0xd0] sm:$0xff]   ;;  %v15222_v26 = vld [vmem:[%s21692_s3 + $0x2] ss:$0 sm:$0xff] }
0x3752   : > { %v12809_v18 = vpack.c.bf16 %v12792_v30, %v12789_v13 }
0x3754   : > { %18924 = vmatprep.subr.bf16.mxu1 %v12809_v18 }
0x3755   : > { %18925 = vmatpush3.bf16.msra.mxu1 %v12809_v18 }
0x3756   : > { %18926 = vmatprep.subr.bf16.mxu1 %v12810_v31 }
0x3759   : > { %18927 = vmatpush3.bf16.msra.mxu1 %v12810_v31 }
0x375c   : > { %18929 = vmatmul.mubr.bf16.vlgmr.msra.gmra.mrb[64].mxu1 %v21465_v63 }
0x375d   : > { %18932 = vmatprep.mubr.bf16.mxu1 %v21468_v8 }
0x3764   : > { %18933 = vmatmul.mubr.bf16.gmra.mrb[68].mxu1 %v21473_v14 }
0x3765   : > { %18936 = vmatprep.mubr.bf16.mxu1 %v21476_v1 }
0x376c   : > { %18937 = vmatmul.mubr.bf16.gmra.mrb[72].mxu1 %v21481_v16 }
0x376d   : > { %18940 = vmatprep.mubr.bf16.mxu1 %v21484_v42 }
0x3774   : > { %18941 = vmatmul.mubr.bf16.gmra.mrb[76].mxu1 %v21489_v43 }
0x3775   : > { %18992 = vmatprep.mubr.bf16.mxu1 %v21461_v12 }
0x382f   : > { %v18930_v35 = vpop.f32.mrb[64].mxu1 }
0x3830   : > { %v12845_v17 = vpop.f32.mrb[65].mxu1  ;;  %v12910_v10 = vmax.f32 %v18930_v35, 0.0 }
0x3831   : > { %v18931_v9 = vpop.f32.mrb[66].mxu1  ;;  %v12908_v3 = vmax.f32 %v12845_v17, 0.0 }
0x3832   : > { %v12911_v38 = vmax.f32 %v18931_v9, 0.0  ;;  %v12848_v40 = vpop.f32.mrb[67].mxu1 }
0x3833   : > { %v12909_v41 = vmax.f32 %v12848_v40, 0.0 }
0x3834   : > { %v12925_v0 = vpack.c.bf16 %v12911_v38, %v12910_v10 }
0x3835   : > { %v12924_v36 = vpack.c.bf16 %v12909_v41, %v12908_v3 }
0x3837   : > { %v18934_v37 = vpop.f32.mrb[68].mxu1  ;;  %18960 = vmatprep.mubr.bf16.mxu0 %v12924_v36 }
0x3838   : > { %v12861_v32 = vpop.f32.mrb[69].mxu1  ;;  %18961 = vmatmul.mubr.bf16.vlgmr.msra.gmra.mrb[80].mxu0 %v12925_v0  ;;  %v12914_v28 = vmax.f32 %v18934_v37, 0.0 }
0x3839   : > { %v18935_v33 = vpop.f32.mrb[70].mxu1  ;;  %v12912_v25 = vmax.f32 %v12861_v32, 0.0  ;;  %19009 = vmatpush3.bf16.msra.mxu0 %v19632_v19 }
0x383a   : > { %v12915_v29 = vmax.f32 %v18935_v33, 0.0  ;;  %v12864_v24 = vpop.f32.mrb[71].mxu1  ;;  %19010 = vmatprep.subr.bf16.mxu0 %v19633_v7 }
0x383b   : > { %v12913_v20 = vmax.f32 %v12864_v24, 0.0 }
0x383c   : > { %v12927_v21 = vpack.c.bf16 %v12915_v29, %v12914_v28 }
0x383d   : > { %v12926_v44 = vpack.c.bf16 %v12913_v20, %v12912_v25  ;;  %19011 = vmatpush3.bf16.msra.mxu0 %v19633_v7 }
0x383e   : > { %19012 = vmatprep.subr.bf16.mxu0 %v19634_v4 }
0x383f   : > { %v18938_v45 = vpop.f32.mrb[72].mxu1  ;;  %18964 = vmatprep.mubr.bf16.mxu0 %v12926_v44 }
0x3840   : > { %v12877_v46 = vpop.f32.mrb[73].mxu1  ;;  %18965 = vmatmul.mubr.bf16.gmra.mrb[84].mxu0 %v12927_v21  ;;  %v12918_v48 = vmax.f32 %v18938_v45, 0.0 }
0x3841   : > { %v18939_v47 = vpop.f32.mrb[74].mxu1  ;;  %v12916_v51 = vmax.f32 %v12877_v46, 0.0  ;;  %19013 = vmatpush3.bf16.msra.mxu0 %v19634_v4 }
0x3842   : > { %v12919_v49 = vmax.f32 %v18939_v47, 0.0  ;;  %v12880_v50 = vpop.f32.mrb[75].mxu1  ;;  %19014 = vmatprep.subr.bf16.mxu0 %v19635_v22 }
0x3843   : > { %v12917_v52 = vmax.f32 %v12880_v50, 0.0 }
0x3844   : > { %v12929_v53 = vpack.c.bf16 %v12919_v49, %v12918_v48 }
0x3845   : > { %v12928_v54 = vpack.c.bf16 %v12917_v52, %v12916_v51  ;;  %19015 = vmatpush3.bf16.msra.mxu0 %v19635_v22 }
0x3846   : > { %19016 = vmatprep.subr.bf16.mxu0 %v19636_v23 }
0x3847   : > { %v18942_v55 = vpop.f32.mrb[76].mxu1  ;;  %18968 = vmatprep.mubr.bf16.mxu0 %v12928_v54 }
0x3848   : > { %v12893_v56 = vpop.f32.mrb[77].mxu1  ;;  %18969 = vmatmul.mubr.bf16.gmra.mrb[88].mxu0 %v12929_v53  ;;  %v12922_v58 = vmax.f32 %v18942_v55, 0.0 }
0x3849   : > { %v18943_v57 = vpop.f32.mrb[78].mxu1  ;;  %v12920_v61 = vmax.f32 %v12893_v56, 0.0  ;;  %19017 = vmatpush3.bf16.msra.mxu0 %v19636_v23  ;;  %v19638_v56 = vld [vmem:[%s21691_s2 + $0xf0] sm:$0xff]  }
0x384a   : > { %v12923_v59 = vmax.f32 %v18943_v57, 0.0  ;;  %v12896_v60 = vpop.f32.mrb[79].mxu1  ;;  %19018 = vmatprep.subr.bf16.mxu0 %v19637_v39  ;;  %v19639_v57 = vld [vmem:[%s21691_s2 + $0xf8] sm:$0xff]  }
0x384b   : > { %v12921_v62 = vmax.f32 %v12896_v60, 0.0 }
0x384c   : > { %v12931_v5 = vpack.c.bf16 %v12923_v59, %v12922_v58 }
0x384d   : > { %v12930_v6 = vpack.c.bf16 %v12921_v62, %v12920_v61  ;;  %19019 = vmatpush3.bf16.msra.mxu0 %v19637_v39 }
0x384e   : > { %19020 = vmatprep.subr.bf16.mxu0 %v19638_v56 }
0x384f   : > { %18972 = vmatprep.mubr.bf16.mxu0 %v12930_v6 }
0x3850   : > { %18973 = vmatmul.mubr.bf16.gmra.mrb[92].mxu0 %v12931_v5 }
0x3851   : > { %19021 = vmatpush3.bf16.msra.mxu0 %v19638_v56 }
0x3852   : > { %19022 = vmatprep.subr.bf16.mxu0 %v19639_v57 }
0x3855   : > { %19023 = vmatpush3.bf16.msra.mxu0 %v19639_v57 }
0x390b   : > { %v18962_v2 = vpop.f32.mrb[80].mxu0 }
0x390c   : > { %v13037_v27 = vpop.f32.mrb[81].mxu0  ;;  %v13046_v13 = vadd.f32 %v18962_v2, %v15222_v26 }
0x390d   : > { %v18963_v15 = vpop.f32.mrb[82].mxu0  ;;  %v13038_v18 = vadd.f32 %v15222_v26, %v13037_v27 }
0x390e   : > { %v13049_v30 = vadd.f32 %v18963_v15, %v15222_v26  ;;  %v13040_v31 = vpop.f32.mrb[83].mxu0 }
0x390f   : > { %v13041_v11 = vadd.f32 %v15222_v26, %v13040_v31 }
0x3910   : > { %v13101_v34 = vpack.c.bf16 %v13049_v30, %v13046_v13 }
0x3911   : > { %v13100_v35 = vpack.c.bf16 %v13041_v11, %v13038_v18 }
0x3913   : > { %v18966_v17 = vpop.f32.mrb[84].mxu0  ;;  %18976 = vmatprep.subr.bf16.mxu1 %v13100_v35 }
0x3914   : > { %v13053_v9 = vpop.f32.mrb[85].mxu0  ;;  %18977 = vmatpush3.bf16.msra.mxu1 %v13100_v35  ;;  %v13062_v38 = vadd.f32 %v18966_v17, %v15222_v26 }
0x3915   : > { %v18967_v10 = vpop.f32.mrb[86].mxu0  ;;  %18978 = vmatprep.subr.bf16.mxu1 %v13101_v34  ;;  %v13054_v41 = vadd.f32 %v15222_v26, %v13053_v9 }
0x3916   : > { %v13065_v40 = vadd.f32 %v18967_v10, %v15222_v26  ;;  %v13056_v3 = vpop.f32.mrb[87].mxu0 }
0x3917   : > { %v13057_v0 = vadd.f32 %v15222_v26, %v13056_v3 }
0x3918   : > { %v13103_v36 = vpack.c.bf16 %v13065_v40, %v13062_v38  ;;  %18979 = vmatpush3.bf16.msra.mxu1 %v13101_v34 }
0x3919   : > { %v13102_v37 = vpack.c.bf16 %v13057_v0, %v13054_v41 }
0x391b   : > { %v18970_v32 = vpop.f32.mrb[88].mxu0  ;;  %18980 = vmatprep.subr.bf16.mxu1 %v13102_v37 }
0x391c   : > { %v13069_v33 = vpop.f32.mrb[89].mxu0  ;;  %18981 = vmatpush3.bf16.msra.mxu1 %v13102_v37  ;;  %v13078_v29 = vadd.f32 %v18970_v32, %v15222_v26 }
0x391d   : > { %v18971_v28 = vpop.f32.mrb[90].mxu0  ;;  %18982 = vmatprep.subr.bf16.mxu1 %v13103_v36  ;;  %v13070_v20 = vadd.f32 %v15222_v26, %v13069_v33 }
0x391e   : > { %v13081_v24 = vadd.f32 %v18971_v28, %v15222_v26  ;;  %v13072_v25 = vpop.f32.mrb[91].mxu0 }
0x391f   : > { %v13073_v21 = vadd.f32 %v15222_v26, %v13072_v25  ;;  %v19640_v25 = vld [vmem:[%s21693_s4] sm:$0xff]  }
0x3920   : > { %v13105_v44 = vpack.c.bf16 %v13081_v24, %v13078_v29  ;;  %18983 = vmatpush3.bf16.msra.mxu1 %v13103_v36  ;;  %19072 = vmatprep.subr.bf16.mxu0 %v19640_v25 }
0x3921   : > { %v13104_v45 = vpack.c.bf16 %v13073_v21, %v13070_v20  ;;  %v19641_v20 = vld [vmem:[%s21693_s4 + $0x8] sm:$0xff]   ;;  %v19642_v21 = vld [vmem:[%s21693_s4 + $0x10] sm:$0xff]  }
0x3923   : > { %v18974_v46 = vpop.f32.mrb[92].mxu0  ;;  %18984 = vmatprep.subr.bf16.mxu1 %v13104_v45 }
0x3924   : > { %v13085_v47 = vpop.f32.mrb[93].mxu0  ;;  %18985 = vmatpush3.bf16.msra.mxu1 %v13104_v45  ;;  %v13094_v49 = vadd.f32 %v18974_v46, %v15222_v26  ;;  %v19644_v45 = vld [vmem:[%s21693_s4 + $0x20] sm:$0xff]   ;;  %v19645_v46 = vld [vmem:[%s21693_s4 + $0x28] sm:$0xff]  }
0x3925   : > { %v18975_v48 = vpop.f32.mrb[94].mxu0  ;;  %18986 = vmatprep.subr.bf16.mxu1 %v13105_v44  ;;  %v13086_v52 = vadd.f32 %v15222_v26, %v13085_v47 }
0x3926   : > { %v13097_v50 = vadd.f32 %v18975_v48, %v15222_v26  ;;  %v13088_v51 = vpop.f32.mrb[95].mxu0  ;;  %v15248_v48 = vld [vmem:[%s21692_s3 + $0x3] ss:$0 sm:$0xff] }
0x3927   : > { %v13089_v53 = vadd.f32 %v15222_v26, %v13088_v51 }
0x3928   : > { %v13107_v54 = vpack.c.bf16 %v13097_v50, %v13094_v49  ;;  %18987 = vmatpush3.bf16.msra.mxu1 %v13105_v44  ;;  %v19643_v44 = vld [vmem:[%s21693_s4 + $0x18] sm:$0xff]  }
0x3929   : > { %v13106_v55 = vpack.c.bf16 %v13089_v53, %v13086_v52 }
0x392b   : > { %18988 = vmatprep.subr.bf16.mxu1 %v13106_v55 }
0x392c   : > { %18989 = vmatpush3.bf16.msra.mxu1 %v13106_v55 }
0x392d   : > { %18990 = vmatprep.subr.bf16.mxu1 %v13107_v54 }
0x3930   : > { %18991 = vmatpush3.bf16.msra.mxu1 %v13107_v54 }
0x3933   : > { %18993 = vmatmul.mubr.bf16.vlgmr.msra.gmra.mrb[80].mxu1 %v21465_v63 }
0x3934   : > { %18996 = vmatprep.mubr.bf16.mxu1 %v21468_v8 }
0x393b   : > { %18997 = vmatmul.mubr.bf16.gmra.mrb[84].mxu1 %v21473_v14 }
0x393c   : > { %19000 = vmatprep.mubr.bf16.mxu1 %v21476_v1 }
0x3943   : > { %19001 = vmatmul.mubr.bf16.gmra.mrb[88].mxu1 %v21481_v16 }
0x3944   : > { %19004 = vmatprep.mubr.bf16.mxu1 %v21484_v42 }
0x394b   : > { %19005 = vmatmul.mubr.bf16.gmra.mrb[92].mxu1 %v21489_v43 }
0x394c   : > { %19056 = vmatprep.mubr.bf16.mxu1 %v21461_v12 }
0x3a06   : > { %v18994_v58 = vpop.f32.mrb[80].mxu1 }
0x3a07   : > { %v13142_v59 = vpop.f32.mrb[81].mxu1  ;;  %v13207_v61 = vmax.f32 %v18994_v58, 0.0 }
0x3a08   : > { %v18995_v60 = vpop.f32.mrb[82].mxu1  ;;  %v13205_v6 = vmax.f32 %v13142_v59, 0.0 }
0x3a09   : > { %v13208_v62 = vmax.f32 %v18995_v60, 0.0  ;;  %v13145_v5 = vpop.f32.mrb[83].mxu1 }
0x3a0a   : > { %v13206_v12 = vmax.f32 %v13145_v5, 0.0 }
0x3a0b   : > { %v13222_v19 = vpack.c.bf16 %v13208_v62, %v13207_v61 }
0x3a0c   : > { %v13221_v7 = vpack.c.bf16 %v13206_v12, %v13205_v6 }
0x3a0e   : > { %v18998_v4 = vpop.f32.mrb[84].mxu1  ;;  %19024 = vmatprep.mubr.bf16.mxu0 %v13221_v7 }
0x3a0f   : > { %v13158_v22 = vpop.f32.mrb[85].mxu1  ;;  %19025 = vmatmul.mubr.bf16.vlgmr.msra.gmra.mrb[96].mxu0 %v13222_v19  ;;  %v13211_v39 = vmax.f32 %v18998_v4, 0.0 }
0x3a10   : > { %v18999_v23 = vpop.f32.mrb[86].mxu1  ;;  %v13209_v27 = vmax.f32 %v13158_v22, 0.0  ;;  %19073 = vmatpush3.bf16.msra.mxu0 %v19640_v25 }
0x3a11   : > { %v13212_v2 = vmax.f32 %v18999_v23, 0.0  ;;  %v13161_v26 = vpop.f32.mrb[87].mxu1  ;;  %19074 = vmatprep.subr.bf16.mxu0 %v19641_v20 }
0x3a12   : > { %v13210_v15 = vmax.f32 %v13161_v26, 0.0 }
0x3a13   : > { %v13224_v13 = vpack.c.bf16 %v13212_v2, %v13211_v39 }
0x3a14   : > { %v13223_v30 = vpack.c.bf16 %v13210_v15, %v13209_v27  ;;  %19075 = vmatpush3.bf16.msra.mxu0 %v19641_v20 }
0x3a15   : > { %19076 = vmatprep.subr.bf16.mxu0 %v19642_v21 }
0x3a16   : > { %v19002_v31 = vpop.f32.mrb[88].mxu1  ;;  %19028 = vmatprep.mubr.bf16.mxu0 %v13223_v30 }
0x3a17   : > { %v13174_v18 = vpop.f32.mrb[89].mxu1  ;;  %19029 = vmatmul.mubr.bf16.gmra.mrb[100].mxu0 %v13224_v13  ;;  %v13215_v34 = vmax.f32 %v19002_v31, 0.0 }
0x3a18   : > { %v19003_v11 = vpop.f32.mrb[90].mxu1  ;;  %v13213_v9 = vmax.f32 %v13174_v18, 0.0  ;;  %19077 = vmatpush3.bf16.msra.mxu0 %v19642_v21 }
0x3a19   : > { %v13216_v35 = vmax.f32 %v19003_v11, 0.0  ;;  %v13177_v17 = vpop.f32.mrb[91].mxu1  ;;  %19078 = vmatprep.subr.bf16.mxu0 %v19643_v44 }
0x3a1a   : > { %v13214_v10 = vmax.f32 %v13177_v17, 0.0 }
0x3a1b   : > { %v13226_v38 = vpack.c.bf16 %v13216_v35, %v13215_v34 }
0x3a1c   : > { %v13225_v40 = vpack.c.bf16 %v13214_v10, %v13213_v9  ;;  %19079 = vmatpush3.bf16.msra.mxu0 %v19643_v44 }
0x3a1d   : > { %19080 = vmatprep.subr.bf16.mxu0 %v19644_v45 }
0x3a1e   : > { %v19006_v3 = vpop.f32.mrb[92].mxu1  ;;  %19032 = vmatprep.mubr.bf16.mxu0 %v13225_v40 }
0x3a1f   : > { %v13190_v41 = vpop.f32.mrb[93].mxu1  ;;  %19033 = vmatmul.mubr.bf16.gmra.mrb[104].mxu0 %v13226_v38  ;;  %v13219_v36 = vmax.f32 %v19006_v3, 0.0  ;;  %v19646_v3 = vld [vmem:[%s21693_s4 + $0x30] sm:$0xff]  }
0x3a20   : > { %v19007_v0 = vpop.f32.mrb[94].mxu1  ;;  %v13217_v33 = vmax.f32 %v13190_v41, 0.0  ;;  %19081 = vmatpush3.bf16.msra.mxu0 %v19644_v45 }
0x3a21   : > { %v13220_v37 = vmax.f32 %v19007_v0, 0.0  ;;  %v13193_v32 = vpop.f32.mrb[95].mxu1  ;;  %19082 = vmatprep.subr.bf16.mxu0 %v19645_v46 }
0x3a22   : > { %v13218_v28 = vmax.f32 %v13193_v32, 0.0 }
0x3a23   : > { %v13228_v29 = vpack.c.bf16 %v13220_v37, %v13219_v36 }
0x3a24   : > { %v13227_v24 = vpack.c.bf16 %v13218_v28, %v13217_v33  ;;  %19083 = vmatpush3.bf16.msra.mxu0 %v19645_v46 }
0x3a25   : > { %19084 = vmatprep.subr.bf16.mxu0 %v19646_v3 }
0x3a26   : > { %19036 = vmatprep.mubr.bf16.mxu0 %v13227_v24 }
0x3a27   : > { %19037 = vmatmul.mubr.bf16.gmra.mrb[108].mxu0 %v13228_v29 }
0x3a28   : > { %19085 = vmatpush3.bf16.msra.mxu0 %v19646_v3 }
0x3ae2   : > { %v19026_v47 = vpop.f32.mrb[96].mxu0 }
0x3ae3   : > { %v13334_v49 = vpop.f32.mrb[97].mxu0  ;;  %v13343_v51 = vadd.f32 %v19026_v47, %v15248_v48 }
0x3ae4   : > { %v19027_v50 = vpop.f32.mrb[98].mxu0  ;;  %v13335_v54 = vadd.f32 %v15248_v48, %v13334_v49 }
0x3ae5   : > { %v13346_v52 = vadd.f32 %v19027_v50, %v15248_v48  ;;  %v13337_v53 = vpop.f32.mrb[99].mxu0 }
0x3ae6   : > { %v13338_v55 = vadd.f32 %v15248_v48, %v13337_v53 }
0x3ae7   : > { %v13398_v56 = vpack.c.bf16 %v13346_v52, %v13343_v51 }
0x3ae8   : > { %v13397_v57 = vpack.c.bf16 %v13338_v55, %v13335_v54 }
0x3aea   : > { %v19030_v58 = vpop.f32.mrb[100].mxu0  ;;  %19040 = vmatprep.subr.bf16.mxu1 %v13397_v57 }
0x3aeb   : > { %v13350_v59 = vpop.f32.mrb[101].mxu0  ;;  %19041 = vmatpush3.bf16.msra.mxu1 %v13397_v57  ;;  %v13359_v61 = vadd.f32 %v19030_v58, %v15248_v48 }
0x3aec   : > { %v19031_v60 = vpop.f32.mrb[102].mxu0  ;;  %19042 = vmatprep.subr.bf16.mxu1 %v13398_v56  ;;  %v13351_v6 = vadd.f32 %v15248_v48, %v13350_v59 }
0x3aed   : > { %v13362_v62 = vadd.f32 %v19031_v60, %v15248_v48  ;;  %v13353_v5 = vpop.f32.mrb[103].mxu0 }
0x3aee   : > { %v13354_v12 = vadd.f32 %v15248_v48, %v13353_v5 }
0x3aef   : > { %v13400_v19 = vpack.c.bf16 %v13362_v62, %v13359_v61  ;;  %19043 = vmatpush3.bf16.msra.mxu1 %v13398_v56 }
0x3af0   : > { %v13399_v7 = vpack.c.bf16 %v13354_v12, %v13351_v6 }
0x3af2   : > { %v19034_v4 = vpop.f32.mrb[104].mxu0  ;;  %19044 = vmatprep.subr.bf16.mxu1 %v13399_v7 }
0x3af3   : > { %v13366_v22 = vpop.f32.mrb[105].mxu0  ;;  %19045 = vmatpush3.bf16.msra.mxu1 %v13399_v7  ;;  %v13375_v39 = vadd.f32 %v19034_v4, %v15248_v48 }
0x3af4   : > { %v19035_v23 = vpop.f32.mrb[106].mxu0  ;;  %19046 = vmatprep.subr.bf16.mxu1 %v13400_v19  ;;  %v13367_v27 = vadd.f32 %v15248_v48, %v13366_v22 }
0x3af5   : > { %v13378_v2 = vadd.f32 %v19035_v23, %v15248_v48  ;;  %v13369_v26 = vpop.f32.mrb[107].mxu0 }
0x3af6   : > { %v13370_v15 = vadd.f32 %v15248_v48, %v13369_v26  ;;  %v19655_v26 = vld [vmem:[%s21695_s6 + $0x38] sm:$0xff]  }
0x3af7   : > { %v13402_v13 = vpack.c.bf16 %v13378_v2, %v13375_v39  ;;  %19047 = vmatpush3.bf16.msra.mxu1 %v13400_v19  ;;  %v19654_v2 = vld [vmem:[%s21695_s6 + $0x30] sm:$0xff]  }
0x3af8   : > { %v13401_v30 = vpack.c.bf16 %v13370_v15, %v13367_v27  ;;  %v15257_v27 = vld [vmem:[%s21694_s5] ss:$0 sm:$0xff] }
0x3afa   : > { %v19038_v31 = vpop.f32.mrb[108].mxu0  ;;  %19048 = vmatprep.subr.bf16.mxu1 %v13401_v30 }
0x3afb   : > { %v13382_v18 = vpop.f32.mrb[109].mxu0  ;;  %19049 = vmatpush3.bf16.msra.mxu1 %v13401_v30  ;;  %v13391_v34 = vadd.f32 %v19038_v31, %v15248_v48 }
0x3afc   : > { %v19039_v11 = vpop.f32.mrb[110].mxu0  ;;  %19050 = vmatprep.subr.bf16.mxu1 %v13402_v13  ;;  %v13383_v9 = vadd.f32 %v15248_v48, %v13382_v18 }
0x3afd   : > { %v13394_v35 = vadd.f32 %v19039_v11, %v15248_v48  ;;  %v13385_v17 = vpop.f32.mrb[111].mxu0 }
0x3afe   : > { %v13386_v10 = vadd.f32 %v15248_v48, %v13385_v17 }
0x3aff   : > { %v13404_v38 = vpack.c.bf16 %v13394_v35, %v13391_v34  ;;  %19051 = vmatpush3.bf16.msra.mxu1 %v13402_v13 }
0x3b00   : > { %v13403_v40 = vpack.c.bf16 %v13386_v10, %v13383_v9 }
0x3b02   : > { %19052 = vmatprep.subr.bf16.mxu1 %v13403_v40 }
0x3b03   : > { %19053 = vmatpush3.bf16.msra.mxu1 %v13403_v40 }
0x3b04   : > { %19054 = vmatprep.subr.bf16.mxu1 %v13404_v38 }
0x3b07   : > { %19055 = vmatpush3.bf16.msra.mxu1 %v13404_v38 }
0x3b0a   : > { %19057 = vmatmul.mubr.bf16.vlgmr.msra.gmra.mrb[96].mxu1 %v21465_v63  ;;  %v19647_v63 = vld [vmem:[%s21693_s4 + $0x38] sm:$0xff]  }
0x3b0b   : > { %19060 = vmatprep.mubr.bf16.mxu1 %v21468_v8  ;;  %19086 = vmatprep.subr.bf16.mxu0 %v19647_v63  ;;  %v19648_v8 = vld [vmem:[%s21695_s6] sm:$0xff]  }
0x3b0c   : > { %19087 = vmatpush3.bf16.msra.mxu0 %v19647_v63  ;;  %19104 = vmatprep.subr.bf16.mxu1 %v19648_v8 }
0x3b0d   : > { %19105 = vmatpush3.bf16.msra.mxu1 %v19648_v8 }
0x3b12   : > { %19061 = vmatmul.mubr.bf16.gmra.mrb[100].mxu1 %v21473_v14  ;;  %v19649_v14 = vld [vmem:[%s21695_s6 + $0x8] sm:$0xff]  }
0x3b13   : > { %19064 = vmatprep.mubr.bf16.mxu1 %v21476_v1  ;;  %19106 = vmatprep.subr.bf16.mxu1 %v19649_v14  ;;  %v19650_v1 = vld [vmem:[%s21695_s6 + $0x10] sm:$0xff]  }
0x3b14   : > { %19107 = vmatpush3.bf16.msra.mxu1 %v19649_v14 }
0x3b15   : > { %19108 = vmatprep.subr.bf16.mxu1 %v19650_v1 }
0x3b18   : > { %19109 = vmatpush3.bf16.msra.mxu1 %v19650_v1 }
0x3b1a   : > { %19065 = vmatmul.mubr.bf16.gmra.mrb[104].mxu1 %v21481_v16  ;;  %v19651_v16 = vld [vmem:[%s21695_s6 + $0x18] sm:$0xff]  }
0x3b1b   : > { %19068 = vmatprep.mubr.bf16.mxu1 %v21484_v42  ;;  %19110 = vmatprep.subr.bf16.mxu1 %v19651_v16  ;;  %v19652_v42 = vld [vmem:[%s21695_s6 + $0x20] sm:$0xff]  }
0x3b1c   : > { %19111 = vmatpush3.bf16.msra.mxu1 %v19651_v16 }
0x3b1d   : > { %19112 = vmatprep.subr.bf16.mxu1 %v19652_v42 }
0x3b20   : > { %19113 = vmatpush3.bf16.msra.mxu1 %v19652_v42 }
0x3b22   : > { %19069 = vmatmul.mubr.bf16.gmra.mrb[108].mxu1 %v21489_v43  ;;  %v19653_v43 = vld [vmem:[%s21695_s6 + $0x28] sm:$0xff]  }
0x3b23   : > { %19114 = vmatprep.subr.bf16.mxu1 %v19653_v43 }
0x3b24   : > { %19115 = vmatpush3.bf16.msra.mxu1 %v19653_v43 }
0x3b25   : > { %19116 = vmatprep.subr.bf16.mxu1 %v19654_v2 }
0x3b28   : > { %19117 = vmatpush3.bf16.msra.mxu1 %v19654_v2 }
0x3b29   : > { %19118 = vmatprep.subr.bf16.mxu1 %v19655_v26 }
0x3b2c   : > { %19119 = vmatpush3.bf16.msra.mxu1 %v19655_v26 }
0x3bdd   : > { %v19058_v41 = vpop.f32.mrb[96].mxu1 }
0x3bde   : > { %v13439_v0 = vpop.f32.mrb[97].mxu1  ;;  %v13504_v37 = vmax.f32 %v19058_v41, 0.0 }
0x3bdf   : > { %v19059_v36 = vpop.f32.mrb[98].mxu1  ;;  %v13502_v28 = vmax.f32 %v13439_v0, 0.0 }
0x3be0   : > { %v13505_v32 = vmax.f32 %v19059_v36, 0.0  ;;  %v13442_v33 = vpop.f32.mrb[99].mxu1 }
0x3be1   : > { %v13503_v29 = vmax.f32 %v13442_v33, 0.0 }
0x3be2   : > { %v13519_v24 = vpack.c.bf16 %v13505_v32, %v13504_v37 }
0x3be3   : > { %v13518_v25 = vpack.c.bf16 %v13503_v29, %v13502_v28 }
0x3be5   : > { %v19062_v20 = vpop.f32.mrb[100].mxu1  ;;  %19088 = vmatprep.mubr.bf16.mxu0 %v13518_v25 }
0x3be6   : > { %v13455_v21 = vpop.f32.mrb[101].mxu1  ;;  %19089 = vmatmul.mubr.bf16.vlgmr.msra.gmra.mrb[112].mxu0 %v13519_v24  ;;  %v13508_v45 = vmax.f32 %v19062_v20, 0.0 }
0x3be7   : > { %v19063_v44 = vpop.f32.mrb[102].mxu1  ;;  %v13506_v48 = vmax.f32 %v13455_v21, 0.0 }
0x3be8   : > { %v13509_v46 = vmax.f32 %v19063_v44, 0.0  ;;  %v13458_v47 = vpop.f32.mrb[103].mxu1 }
0x3be9   : > { %v13507_v49 = vmax.f32 %v13458_v47, 0.0 }
0x3bea   : > { %v13521_v50 = vpack.c.bf16 %v13509_v46, %v13508_v45 }
0x3beb   : > { %v13520_v51 = vpack.c.bf16 %v13507_v49, %v13506_v48 }
0x3bed   : > { %v19066_v52 = vpop.f32.mrb[104].mxu1  ;;  %19092 = vmatprep.mubr.bf16.mxu0 %v13520_v51 }
0x3bee   : > { %v13471_v53 = vpop.f32.mrb[105].mxu1  ;;  %19093 = vmatmul.mubr.bf16.gmra.mrb[116].mxu0 %v13521_v50  ;;  %v13512_v55 = vmax.f32 %v19066_v52, 0.0 }
0x3bef   : > { %v19067_v54 = vpop.f32.mrb[106].mxu1  ;;  %v13510_v58 = vmax.f32 %v13471_v53, 0.0 }
0x3bf0   : > { %v13513_v56 = vmax.f32 %v19067_v54, 0.0  ;;  %v13474_v57 = vpop.f32.mrb[107].mxu1 }
0x3bf1   : > { %v13511_v59 = vmax.f32 %v13474_v57, 0.0 }
0x3bf2   : > { %v13523_v60 = vpack.c.bf16 %v13513_v56, %v13512_v55 }
0x3bf3   : > { %v13522_v61 = vpack.c.bf16 %v13511_v59, %v13510_v58 }
0x3bf5   : > { %v19070_v62 = vpop.f32.mrb[108].mxu1  ;;  %19096 = vmatprep.mubr.bf16.mxu0 %v13522_v61 }
0x3bf6   : > { %v13487_v5 = vpop.f32.mrb[109].mxu1  ;;  %19097 = vmatmul.mubr.bf16.gmra.mrb[120].mxu0 %v13523_v60  ;;  %v13516_v12 = vmax.f32 %v19070_v62, 0.0 }
0x3bf7   : > { %v19071_v6 = vpop.f32.mrb[110].mxu1  ;;  %v13514_v4 = vmax.f32 %v13487_v5, 0.0 }
0x3bf8   : > { %v13517_v19 = vmax.f32 %v19071_v6, 0.0  ;;  %v13490_v7 = vpop.f32.mrb[111].mxu1 }
0x3bf9   : > { %v13515_v22 = vmax.f32 %v13490_v7, 0.0  ;;  %v15266_v7 = vld [vmem:[%s21696_s7] ss:$0 sm:$0xff] }
0x3bfa   : > { %v13525_v23 = vpack.c.bf16 %v13517_v19, %v13516_v12 }
0x3bfb   : > { %v13524_v39 = vpack.c.bf16 %v13515_v22, %v13514_v4 }
0x3bfd   : > { %19100 = vmatprep.mubr.bf16.mxu0 %v13524_v39 }
0x3bfe   : > { %19101 = vmatmul.mubr.bf16.gmra.mrb[124].mxu0 %v13525_v23 }
0x3cb9   : > { %v19090_v15 = vpop.f32.mrb[112].mxu0 }
0x3cba   : > { %v13640_v13 = vadd.f32 %v19090_v15, %v15257_v27  ;;  %v13631_v30 = vpop.f32.mrb[113].mxu0 }
0x3cbb   : > { %v13632_v31 = vadd.f32 %v15257_v27, %v13631_v30  ;;  %v19091_v18 = vpop.f32.mrb[114].mxu0 }
0x3cbc   : > { %v13643_v11 = vadd.f32 %v19091_v18, %v15257_v27  ;;  %v13634_v34 = vpop.f32.mrb[115].mxu0  ;;  %v13696_v17 = vmax.f32 %v13640_v13, 0.0 }
0x3cbd   : > { %v13635_v35 = vadd.f32 %v15257_v27, %v13634_v34  ;;  %v13694_v10 = vmax.f32 %v13632_v31, 0.0 }
0x3cbe   : > { %v13697_v9 = vmax.f32 %v13643_v11, 0.0 }
0x3cbf   : > { %v13695_v38 = vmax.f32 %v13635_v35, 0.0 }
0x3cc0   : > { %v13711_v40 = vpack.c.bf16 %v13697_v9, %v13696_v17 }
0x3cc1   : > { %v13710_v3 = vpack.c.bf16 %v13695_v38, %v13694_v10  ;;  %v19094_v63 = vpop.f32.mrb[116].mxu0 }
0x3cc2   : > { %v13656_v8 = vadd.f32 %v19094_v63, %v15257_v27  ;;  %v13647_v14 = vpop.f32.mrb[117].mxu0 }
0x3cc3   : > { %v13648_v1 = vadd.f32 %v15257_v27, %v13647_v14  ;;  %v19095_v16 = vpop.f32.mrb[118].mxu0  ;;  %19120 = vmatprep.mubr.bf16.mxu1 %v13710_v3 }
0x3cc4   : > { %v13659_v42 = vadd.f32 %v19095_v16, %v15257_v27  ;;  %v13650_v43 = vpop.f32.mrb[119].mxu0  ;;  %19121 = vmatmul.mubr.bf16.vlgmr.msra.gmra.mrb[112].mxu1 %v13711_v40  ;;  %v13700_v0 = vmax.f32 %v13656_v8, 0.0 }
0x3cc5   : > { %v13651_v41 = vadd.f32 %v15257_v27, %v13650_v43  ;;  %v13698_v37 = vmax.f32 %v13648_v1, 0.0 }
0x3cc6   : > { %v13701_v36 = vmax.f32 %v13659_v42, 0.0 }
0x3cc7   : > { %v13699_v32 = vmax.f32 %v13651_v41, 0.0 }
0x3cc8   : > { %v13713_v33 = vpack.c.bf16 %v13701_v36, %v13700_v0 }
0x3cc9   : > { %v13712_v28 = vpack.c.bf16 %v13699_v32, %v13698_v37  ;;  %v19098_v29 = vpop.f32.mrb[120].mxu0 }
0x3cca   : > { %v13672_v24 = vadd.f32 %v19098_v29, %v15257_v27  ;;  %v13663_v25 = vpop.f32.mrb[121].mxu0 }
0x3ccb   : > { %v13664_v20 = vadd.f32 %v15257_v27, %v13663_v25  ;;  %v19099_v21 = vpop.f32.mrb[122].mxu0  ;;  %19124 = vmatprep.mubr.bf16.mxu1 %v13712_v28 }
0x3ccc   : > { %v13675_v44 = vadd.f32 %v19099_v21, %v15257_v27  ;;  %v13666_v45 = vpop.f32.mrb[123].mxu0  ;;  %19125 = vmatmul.mubr.bf16.gmra.mrb[116].mxu1 %v13713_v33  ;;  %v13704_v47 = vmax.f32 %v13672_v24, 0.0 }
0x3ccd   : > { %v13667_v46 = vadd.f32 %v15257_v27, %v13666_v45  ;;  %v13702_v49 = vmax.f32 %v13664_v20, 0.0 }
0x3cce   : > { %v13705_v48 = vmax.f32 %v13675_v44, 0.0 }
0x3ccf   : > { %v13703_v50 = vmax.f32 %v13667_v46, 0.0 }
0x3cd0   : > { %v13715_v51 = vpack.c.bf16 %v13705_v48, %v13704_v47 }
0x3cd1   : > { %v13714_v52 = vpack.c.bf16 %v13703_v50, %v13702_v49  ;;  %v19102_v53 = vpop.f32.mrb[124].mxu0 }
0x3cd2   : > { %v13688_v54 = vadd.f32 %v19102_v53, %v15257_v27  ;;  %v13679_v55 = vpop.f32.mrb[125].mxu0 }
0x3cd3   : > { %v13680_v56 = vadd.f32 %v15257_v27, %v13679_v55  ;;  %v19103_v57 = vpop.f32.mrb[126].mxu0  ;;  %19128 = vmatprep.mubr.bf16.mxu1 %v13714_v52 }
0x3cd4   : > { %v13691_v58 = vadd.f32 %v19103_v57, %v15257_v27  ;;  %v13682_v59 = vpop.f32.mrb[127].mxu0  ;;  %19129 = vmatmul.mubr.bf16.gmra.mrb[120].mxu1 %v13715_v51  ;;  %v13708_v61 = vmax.f32 %v13688_v54, 0.0 }
0x3cd5   : > { %v13683_v60 = vadd.f32 %v15257_v27, %v13682_v59  ;;  %v13706_v5 = vmax.f32 %v13680_v56, 0.0 }
0x3cd6   : > { %v13709_v62 = vmax.f32 %v13691_v58, 0.0 }
0x3cd7   : > { %v13707_v6 = vmax.f32 %v13683_v60, 0.0 }
0x3cd8   : > { %v13717_v12 = vpack.c.bf16 %v13709_v62, %v13708_v61 }
0x3cd9   : > { %v13716_v19 = vpack.c.bf16 %v13707_v6, %v13706_v5 }
0x3cdb   : > { %19132 = vmatprep.mubr.bf16.mxu1 %v13716_v19 }
0x3cdc   : > { %19133 = vmatmul.mubr.bf16.gmra.mrb[124].mxu1 %v13717_v12 }
0x3d97   : > { %v19122_v4 = vpop.f32.mrb[112].mxu1 }
0x3d98   : > { %v13832_v22 = vadd.f32 %v19122_v4, %v15266_v7  ;;  %v13823_v23 = vpop.f32.mrb[113].mxu1 }
0x3d99   : > { %v13824_v39 = vadd.f32 %v15266_v7, %v13823_v23  ;;  %v19123_v2 = vpop.f32.mrb[114].mxu1 }
0x3d9a   : > { %15277 = vst [vmem:[%s20066_s14 + $0x390] sm:$0xff] %v13832_v22  ;;  %v13835_v26 = vadd.f32 %v19123_v2, %v15266_v7  ;;  %v13826_v27 = vpop.f32.mrb[115].mxu1 }
0x3d9b   : > { %15275 = vst [vmem:[%s20066_s14 + $0x380] sm:$0xff] %v13824_v39  ;;  %v13827_v15 = vadd.f32 %v15266_v7, %v13826_v27 }
0x3d9c   : > { %15278 = vst [vmem:[%s20066_s14 + $0x398] sm:$0xff] %v13835_v26 }
0x3d9d   : > { %15276 = vst [vmem:[%s20066_s14 + $0x388] sm:$0xff] %v13827_v15 }
0x3d9f   : > { %v19126_v13 = vpop.f32.mrb[116].mxu1 }
0x3da0   : > { %v13848_v30 = vadd.f32 %v19126_v13, %v15266_v7  ;;  %v13839_v31 = vpop.f32.mrb[117].mxu1 }
0x3da1   : > { %v13840_v18 = vadd.f32 %v15266_v7, %v13839_v31  ;;  %v19127_v11 = vpop.f32.mrb[118].mxu1 }
0x3da2   : > { %15281 = vst [vmem:[%s20066_s14 + $0x3b0] sm:$0xff] %v13848_v30  ;;  %v13851_v34 = vadd.f32 %v19127_v11, %v15266_v7  ;;  %v13842_v35 = vpop.f32.mrb[119].mxu1 }
0x3da3   : > { %15279 = vst [vmem:[%s20066_s14 + $0x3a0] sm:$0xff] %v13840_v18  ;;  %v13843_v17 = vadd.f32 %v15266_v7, %v13842_v35 }
0x3da4   : > { %15282 = vst [vmem:[%s20066_s14 + $0x3b8] sm:$0xff] %v13851_v34 }
0x3da5   : > { %15280 = vst [vmem:[%s20066_s14 + $0x3a8] sm:$0xff] %v13843_v17 }
0x3da7   : > { %v19130_v9 = vpop.f32.mrb[120].mxu1 }
0x3da8   : > { %v13864_v10 = vadd.f32 %v19130_v9, %v15266_v7  ;;  %v13855_v38 = vpop.f32.mrb[121].mxu1 }
0x3da9   : > { %v13856_v40 = vadd.f32 %v15266_v7, %v13855_v38  ;;  %v19131_v3 = vpop.f32.mrb[122].mxu1 }
0x3daa   : > { %15285 = vst [vmem:[%s20066_s14 + $0x3d0] sm:$0xff] %v13864_v10  ;;  %v13867_v63 = vadd.f32 %v19131_v3, %v15266_v7  ;;  %v13858_v8 = vpop.f32.mrb[123].mxu1 }
0x3dab   : > { %15283 = vst [vmem:[%s20066_s14 + $0x3c0] sm:$0xff] %v13856_v40  ;;  %v13859_v14 = vadd.f32 %v15266_v7, %v13858_v8 }
0x3dac   : > { %15286 = vst [vmem:[%s20066_s14 + $0x3d8] sm:$0xff] %v13867_v63 }
0x3dad   : > { %15284 = vst [vmem:[%s20066_s14 + $0x3c8] sm:$0xff] %v13859_v14 }
0x3daf   : > { %v19134_v1 = vpop.f32.mrb[124].mxu1 }
0x3db0   : > { %v13880_v16 = vadd.f32 %v19134_v1, %v15266_v7  ;;  %v13871_v42 = vpop.f32.mrb[125].mxu1 }
0x3db1   : > { %v13872_v43 = vadd.f32 %v15266_v7, %v13871_v42  ;;  %v19135_v41 = vpop.f32.mrb[126].mxu1 }
0x3db2   : > { %15289 = vst [vmem:[%s20066_s14 + $0x3f0] sm:$0xff] %v13880_v16  ;;  %v13883_v0 = vadd.f32 %v19135_v41, %v15266_v7  ;;  %v13874_v36 = vpop.f32.mrb[127].mxu1 }
0x3db3   : > { %15287 = vst [vmem:[%s20066_s14 + $0x3e0] sm:$0xff] %v13872_v43  ;;  %v13875_v37 = vadd.f32 %v15266_v7, %v13874_v36 }
0x3db4   : > { %15290 = vst [vmem:[%s20066_s14 + $0x3f8] sm:$0xff] %v13883_v0 }
0x3db5   : > { %15288 = vst [vmem:[%s20066_s14 + $0x3e8] sm:$0xff] %v13875_v37 }
0x3db6 PF: > { %s18_s27 = sadd.s32 1, %s19670_s27  }
0x3db7   : > { %p15_p4 = scmp.ge.s32.totalorder %s18_s27, 4  }
0x3db9   :  { %17 = sbr.rel (!%p15_p4) target bundleno = 1 (0x1), region = 112 }

</bundles_post_ra>
